<compile_context>
chip_gen: v7x
topology: tpu7x:2x2x1
jax: 0.10.0
libtpu: 0.0.40
codegen_flags: <defaults>
</compile_context>

<pallas_src>
import functools

import jax
import jax.numpy as jnp
from jax.experimental import pallas as pl
from jax.experimental.pallas import tpu as pltpu


CIN_PAD = 8        # stem input channels padded 3 -> 8 (sublane-friendly K per tap)
CHANS = 128        # backbone width: multiple of 128 -> lane-dense activations
EMBED_REAL = 32    # logical nn.Linear(embed_size)
EMBED_PAD = 128    # padded so the final store is an unmasked full-lane vst


# ----------------------------- Pallas kernels ------------------------------

def _conv3x3_bias_relu_kernel(xp_ref, w_ref, b_ref, o_ref, *, H, W):
    """Fused 3x3 conv (stride 1, pad 1) + bias + ReLU for one image tile.

    xp_ref : [1, H+2, W+2, Cin]  zero-padded NHWC activations (bf16)
    w_ref  : [9, Cin, Cout]      weights, tap order t = dy*3 + dx (bf16)
    b_ref  : [1, Cout]           bias (f32)
    o_ref  : [1, H, W, Cout]     output (bf16)
    """
    cin = xp_ref.shape[3]
    cout = w_ref.shape[2]
    acc = jnp.zeros((H * W, cout), jnp.float32)
    for t in range(9):                         # static unroll: 9 MXU dots, f32 accum
        dy, dx = t // 3, t % 3
        patch = xp_ref[0, dy:dy + H, dx:dx + W, :].reshape(H * W, cin)
        acc = acc + jnp.dot(patch, w_ref[t], preferred_element_type=jnp.float32)
    y = jnp.maximum(acc + b_ref[...], 0.0)
    o_ref[...] = y.reshape(1, H, W, cout).astype(o_ref.dtype)


def _conv3x3_res_pool_embed_kernel(xp_ref, skip_ref, w_ref, b_ref,
                                   we_ref, be_ref, o_ref, *, H, W):
    """Fused 3x3 conv + bias + residual add + ReLU + global-avg-pool + embed.

    y2 ([H*W, C]) stays entirely on-chip; only the [1, E] embedding is stored.
    """
    c = w_ref.shape[2]
    acc = jnp.zeros((H * W, c), jnp.float32)
    for t in range(9):
        dy, dx = t // 3, t % 3
        patch = xp_ref[0, dy:dy + H, dx:dx + W, :].reshape(H * W, c)
        acc = acc + jnp.dot(patch, w_ref[t], preferred_element_type=jnp.float32)
    skip = skip_ref[...].reshape(H * W, c).astype(jnp.float32)
    y2 = jnp.maximum(acc + b_ref[...] + skip, 0.0)                 # [H*W, C] f32

    # Global average pool (adaptive avgpool to 1x1) as 8 partial row-group means
    # so the embed matmul runs with M=8 (native sublane count) instead of M=1.
    groups = (H * W) // 8
    part = jnp.mean(y2.reshape(8, groups, c), axis=1)              # [8, C] f32
    emb8 = jnp.dot(part, we_ref[...].astype(jnp.float32),
                   preferred_element_type=jnp.float32)             # [8, E]
    out = jnp.mean(emb8, axis=0, keepdims=True) + be_ref[...]      # [1, E]  (linear)
    o_ref[...] = out.reshape(1, 1, -1).astype(o_ref.dtype)


# ------------------------------ call wrappers -------------------------------

def _vmem_limit_bytes(*block_nbytes):
    # 2x for BlockSpec double-buffering + slack for in-kernel temporaries,
    # capped at the 32 MiB default scoped limit (safe on v5e/v6e/v7x).
    need = 2 * sum(int(n) for n in block_nbytes) + (8 << 20)
    return int(min(max(need, 16 << 20), 32 << 20))


def conv3x3_bias_relu(xp, w, b):
    B, Hp2, Wp2, cin = xp.shape
    H, W = Hp2 - 2, Wp2 - 2
    cout = w.shape[2]
    blk = (Hp2 * Wp2 * cin * 2, 9 * cin * cout * 2, cout * 4, H * W * cout * 2)
    cost = pl.CostEstimate(
        flops=int(2 * B * H * W * 9 * cin * cout),
        transcendentals=0,
        bytes_accessed=int(xp.size * 2 + w.size * 2 + b.size * 4
                           + B * H * W * cout * 2))
    return pl.pallas_call(
        functools.partial(_conv3x3_bias_relu_kernel, H=H, W=W),
        out_shape=jax.ShapeDtypeStruct((B, H, W, cout), jnp.bfloat16),
        grid_spec=pltpu.PrefetchScalarGridSpec(
            num_scalar_prefetch=0,
            grid=(B,),
            in_specs=[
                pl.BlockSpec((1, Hp2, Wp2, cin), lambda bi: (bi, 0, 0, 0)),
                pl.BlockSpec((9, cin, cout), lambda bi: (0, 0, 0)),
                pl.BlockSpec((1, cout), lambda bi: (0, 0)),
            ],
            out_specs=pl.BlockSpec((1, H, W, cout), lambda bi: (bi, 0, 0, 0)),
        ),
        compiler_params=pltpu.CompilerParams(
            dimension_semantics=("parallel",),
            vmem_limit_bytes=_vmem_limit_bytes(*blk)),
        cost_estimate=cost,
    )(xp, w, b)


def conv3x3_res_pool_embed(xp, skip, w, b, we, be):
    B, Hp2, Wp2, c = xp.shape
    H, W = Hp2 - 2, Wp2 - 2
    assert (H * W) % 8 == 0
    e = we.shape[1]
    blk = (Hp2 * Wp2 * c * 2, H * W * c * 2, 9 * c * c * 2, c * 4,
           c * e * 2, e * 4, e * 4)
    cost = pl.CostEstimate(
        flops=int(2 * B * H * W * 9 * c * c + 2 * B * 8 * c * e),
        transcendentals=0,
        bytes_accessed=int(xp.size * 2 + skip.size * 2 + w.size * 2 + b.size * 4
                           + we.size * 2 + be.size * 4 + B * e * 4))
    return pl.pallas_call(
        functools.partial(_conv3x3_res_pool_embed_kernel, H=H, W=W),
        out_shape=jax.ShapeDtypeStruct((B, 1, e), jnp.float32),
        grid_spec=pltpu.PrefetchScalarGridSpec(
            num_scalar_prefetch=0,
            grid=(B,),
            in_specs=[
                pl.BlockSpec((1, Hp2, Wp2, c), lambda bi: (bi, 0, 0, 0)),
                pl.BlockSpec((1, H, W, c), lambda bi: (bi, 0, 0, 0)),
                pl.BlockSpec((9, c, c), lambda bi: (0, 0, 0)),
                pl.BlockSpec((1, c), lambda bi: (0, 0)),
                pl.BlockSpec((c, e), lambda bi: (0, 0)),
                pl.BlockSpec((1, e), lambda bi: (0, 0)),
            ],
            out_specs=pl.BlockSpec((1, 1, e), lambda bi: (bi, 0, 0)),
        ),
        compiler_params=pltpu.CompilerParams(
            dimension_semantics=("parallel",),
            vmem_limit_bytes=_vmem_limit_bytes(*blk)),
        cost_estimate=cost,
    )(xp, skip, w, b, we, be)


# ------------------------------ params / forward ----------------------------

def init_params(key, cin_pad, chans, embed_pad, embed_real):
    ks = jax.random.split(key, 8)

    def uniform(k, shape, fan_in):
        s = 1.0 / jnp.sqrt(jnp.float32(fan_in))
        return jax.random.uniform(k, shape, jnp.float32, -s, s)

    w_embed = uniform(ks[6], (chans, embed_pad), chans)
    b_embed = uniform(ks[7], (1, embed_pad), chans)
    col = jnp.arange(embed_pad)
    w_embed = jnp.where(col[None, :] < embed_real, w_embed, 0.0)   # zero pad columns
    b_embed = jnp.where(col[None, :] < embed_real, b_embed, 0.0)

    return {
        "w_stem": uniform(ks[0], (9, cin_pad, chans), 9 * cin_pad).astype(jnp.bfloat16),
        "b_stem": uniform(ks[1], (1, chans), 9 * cin_pad),
        "w_res_a": uniform(ks[2], (9, chans, chans), 9 * chans).astype(jnp.bfloat16),
        "b_res_a": uniform(ks[3], (1, chans), 9 * chans),
        "w_res_b": uniform(ks[4], (9, chans, chans), 9 * chans).astype(jnp.bfloat16),
        "b_res_b": uniform(ks[5], (1, chans), 9 * chans),
        "w_embed": w_embed.astype(jnp.bfloat16),   # nn.Linear weight, [in, out_pad]
        "b_embed": b_embed,
    }


def encoder_cnn_forward(params, images_nchw):
    """EncoderCNN.forward: backbone -> flatten -> embed. Returns [B, embed]."""
    B, cin, H, W = images_nchw.shape
    cin_pad = params["w_stem"].shape[1]

    x = jnp.transpose(images_nchw, (0, 2, 3, 1)).astype(jnp.float32)   # NCHW -> NHWC
    x = jnp.pad(x, ((0, 0), (0, 0), (0, 0), (0, cin_pad - cin)))       # channel pad
    xp0 = jnp.pad(x, ((0, 0), (1, 1), (1, 1), (0, 0))).astype(jnp.bfloat16)

    # conv stem (3x3, relu)
    y0 = conv3x3_bias_relu(xp0, params["w_stem"], params["b_stem"])    # [B,H,W,C] bf16

    # residual block: relu(conv_b(relu(conv_a(y0))) + y0), fused with pool + embed
    xp1 = jnp.pad(y0, ((0, 0), (1, 1), (1, 1), (0, 0)))
    y1 = conv3x3_bias_relu(xp1, params["w_res_a"], params["b_res_a"])  # [B,H,W,C] bf16
    xp2 = jnp.pad(y1, ((0, 0), (1, 1), (1, 1), (0, 0)))

    emb = conv3x3_res_pool_embed(xp2, y0, params["w_res_b"], params["b_res_b"],
                                 params["w_embed"], params["b_embed"])  # [B,1,E_pad]
    return emb[:, 0, :EMBED_REAL]


# ------------------------------ pure-JAX reference --------------------------

def _im2col_3x3(xp):
    B, Hp2, Wp2, C = xp.shape
    H, W = Hp2 - 2, Wp2 - 2
    cols = [xp[:, dy:dy + H, dx:dx + W, :] for dy in range(3) for dx in range(3)]
    return jnp.concatenate(cols, axis=-1).reshape(B * H * W, 9 * C)


def encoder_cnn_reference(params, images_nchw):
    B, cin, H, W = images_nchw.shape
    chans = params["w_res_a"].shape[2]
    cin_pad = params["w_stem"].shape[1]

    x = jnp.transpose(images_nchw, (0, 2, 3, 1)).astype(jnp.float32)
    x = jnp.pad(x, ((0, 0), (0, 0), (0, 0), (0, cin_pad - cin)))
    xp0 = jnp.pad(x, ((0, 0), (1, 1), (1, 1), (0, 0))).astype(jnp.bfloat16)

    def conv(xp, w, b):
        k = w.shape[1]
        y = jnp.dot(_im2col_3x3(xp), w.reshape(9 * k, -1),
                    preferred_element_type=jnp.float32)
        return jnp.maximum(y + b, 0.0)

    y0 = conv(xp0, params["w_stem"], params["b_stem"]).astype(jnp.bfloat16)
    y0 = y0.reshape(B, H, W, chans)
    xp1 = jnp.pad(y0, ((0, 0), (1, 1), (1, 1), (0, 0)))
    y1 = conv(xp1, params["w_res_a"], params["b_res_a"]).astype(jnp.bfloat16)
    xp2 = jnp.pad(y1.reshape(B, H, W, chans), ((0, 0), (1, 1), (1, 1), (0, 0)))

    y2 = jnp.dot(_im2col_3x3(xp2), params["w_res_b"].reshape(9 * chans, chans),
                 preferred_element_type=jnp.float32)
    y2 = jnp.maximum(y2 + params["b_res_b"]
                     + y0.reshape(B * H * W, chans).astype(jnp.float32), 0.0)
    feats = jnp.mean(y2.reshape(B, H * W, chans), axis=1)
    out = jnp.dot(feats, params["w_embed"].astype(jnp.float32),
                  preferred_element_type=jnp.float32) + params["b_embed"]
    return out[:, :EMBED_REAL]


# --------------------------------- main --------------------------------------

if __name__ == "__main__":
    key = jax.random.PRNGKey(0)
    k_img, k_par = jax.random.split(key)

    B, Cin, H, W = 2, 3, 16, 16
    images = jax.random.normal(k_img, (B, Cin, H, W), jnp.float32)   # NCHW like PyTorch
    params = init_params(k_par, CIN_PAD, CHANS, EMBED_PAD, EMBED_REAL)

    out = jax.jit(encoder_cnn_forward)(params, images)
    out = jax.block_until_ready(out)

    ref = encoder_cnn_reference(params, images)
    assert out.shape == (B, EMBED_REAL)
    assert jnp.allclose(out, ref, atol=1e-2, rtol=1e-2), "mismatch vs reference"

    print("KERNEL_OK")
</pallas_src>

<mosaic_0001>
module attributes {stable_mosaic.version = 11 : i64} {
  func.func @_conv3x3_bias_relu_kernel(%arg0: i32, %arg1: memref<1x18x18x8xbf16, #tpu.memory_space<vmem>>, %arg2: memref<9x8x128xbf16, #tpu.memory_space<vmem>>, %arg3: memref<1x128xf32, #tpu.memory_space<vmem>>, %arg4: memref<1x16x16x128xbf16, #tpu.memory_space<vmem>>) attributes {dimension_semantics = [#tpu.dimension_semantics<parallel>], iteration_bounds = array<i64: 2>, scalar_prefetch = 0 : i64, scratch_operands = 0 : i64, tpu.core_type = #tpu.core_type<tc>, window_params = [{transform_indices = @transform_0, window_bounds = array<i64: 1, 18, 18, 8>}, {pipeline_mode = #tpu.pipeline_mode<synchronous>, transform_indices = @transform_1, window_bounds = array<i64: 9, 8, 128>}, {pipeline_mode = #tpu.pipeline_mode<synchronous>, transform_indices = @transform_2, window_bounds = array<i64: 1, 128>}, {transform_indices = @transform_3, window_bounds = array<i64: 1, 16, 16, 128>}]} {
    %cst = arith.constant 0.000000e+00 : f32
    %0 = vector.broadcast %cst : f32 to vector<256x128xf32>
    %c0 = arith.constant 0 : index
    %c0_0 = arith.constant 0 : index
    %c0_1 = arith.constant 0 : index
    %c0_2 = arith.constant 0 : index
    %1 = vector.load %arg1[%c0, %c0_0, %c0_1, %c0_2] : memref<1x18x18x8xbf16, #tpu.memory_space<vmem>>, vector<1x16x16x8xbf16>
    %2 = vector.shape_cast %1 : vector<1x16x16x8xbf16> to vector<16x16x8xbf16>
    %3 = vector.shape_cast %2 : vector<16x16x8xbf16> to vector<256x8xbf16>
    %c0_3 = arith.constant 0 : index
    %c0_4 = arith.constant 0 : index
    %c0_5 = arith.constant 0 : index
    %4 = vector.load %arg2[%c0_3, %c0_4, %c0_5] : memref<9x8x128xbf16, #tpu.memory_space<vmem>>, vector<1x8x128xbf16>
    %5 = vector.shape_cast %4 : vector<1x8x128xbf16> to vector<8x128xbf16>
    %cst_6 = arith.constant dense<0.000000e+00> : vector<256x128xf32>
    %6 = tpu.matmul %3, %5, %cst_6 {dimension_numbers = #tpu.dot_dimension_numbers<[1], [0], [0], [1], [0, 0, 1, 1], [], []>} : vector<256x8xbf16>, vector<8x128xbf16>, vector<256x128xf32> -> vector<256x128xf32>
    %7 = arith.addf %0, %6 : vector<256x128xf32>
    %c0_7 = arith.constant 0 : index
    %c0_8 = arith.constant 0 : index
    %c1 = arith.constant 1 : index
    %c0_9 = arith.constant 0 : index
    %8 = vector.load %arg1[%c0_7, %c0_8, %c1, %c0_9] : memref<1x18x18x8xbf16, #tpu.memory_space<vmem>>, vector<1x16x16x8xbf16>
    %9 = vector.shape_cast %8 : vector<1x16x16x8xbf16> to vector<16x16x8xbf16>
    %10 = vector.shape_cast %9 : vector<16x16x8xbf16> to vector<256x8xbf16>
    %c1_10 = arith.constant 1 : index
    %c0_11 = arith.constant 0 : index
    %c0_12 = arith.constant 0 : index
    %11 = vector.load %arg2[%c1_10, %c0_11, %c0_12] : memref<9x8x128xbf16, #tpu.memory_space<vmem>>, vector<1x8x128xbf16>
    %12 = vector.shape_cast %11 : vector<1x8x128xbf16> to vector<8x128xbf16>
    %cst_13 = arith.constant dense<0.000000e+00> : vector<256x128xf32>
    %13 = tpu.matmul %10, %12, %cst_13 {dimension_numbers = #tpu.dot_dimension_numbers<[1], [0], [0], [1], [0, 0, 1, 1], [], []>} : vector<256x8xbf16>, vector<8x128xbf16>, vector<256x128xf32> -> vector<256x128xf32>
    %14 = arith.addf %7, %13 : vector<256x128xf32>
    %c0_14 = arith.constant 0 : index
    %c0_15 = arith.constant 0 : index
    %c2 = arith.constant 2 : index
    %c0_16 = arith.constant 0 : index
    %15 = vector.load %arg1[%c0_14, %c0_15, %c2, %c0_16] : memref<1x18x18x8xbf16, #tpu.memory_space<vmem>>, vector<1x16x16x8xbf16>
    %16 = vector.shape_cast %15 : vector<1x16x16x8xbf16> to vector<16x16x8xbf16>
    %17 = vector.shape_cast %16 : vector<16x16x8xbf16> to vector<256x8xbf16>
    %c2_17 = arith.constant 2 : index
    %c0_18 = arith.constant 0 : index
    %c0_19 = arith.constant 0 : index
    %18 = vector.load %arg2[%c2_17, %c0_18, %c0_19] : memref<9x8x128xbf16, #tpu.memory_space<vmem>>, vector<1x8x128xbf16>
    %19 = vector.shape_cast %18 : vector<1x8x128xbf16> to vector<8x128xbf16>
    %cst_20 = arith.constant dense<0.000000e+00> : vector<256x128xf32>
    %20 = tpu.matmul %17, %19, %cst_20 {dimension_numbers = #tpu.dot_dimension_numbers<[1], [0], [0], [1], [0, 0, 1, 1], [], []>} : vector<256x8xbf16>, vector<8x128xbf16>, vector<256x128xf32> -> vector<256x128xf32>
    %21 = arith.addf %14, %20 : vector<256x128xf32>
    %c0_21 = arith.constant 0 : index
    %c1_22 = arith.constant 1 : index
    %c0_23 = arith.constant 0 : index
    %c0_24 = arith.constant 0 : index
    %22 = vector.load %arg1[%c0_21, %c1_22, %c0_23, %c0_24] : memref<1x18x18x8xbf16, #tpu.memory_space<vmem>>, vector<1x16x16x8xbf16>
    %23 = vector.shape_cast %22 : vector<1x16x16x8xbf16> to vector<16x16x8xbf16>
    %24 = vector.shape_cast %23 : vector<16x16x8xbf16> to vector<256x8xbf16>
    %c3 = arith.constant 3 : index
    %c0_25 = arith.constant 0 : index
    %c0_26 = arith.constant 0 : index
    %25 = vector.load %arg2[%c3, %c0_25, %c0_26] : memref<9x8x128xbf16, #tpu.memory_space<vmem>>, vector<1x8x128xbf16>
    %26 = vector.shape_cast %25 : vector<1x8x128xbf16> to vector<8x128xbf16>
    %cst_27 = arith.constant dense<0.000000e+00> : vector<256x128xf32>
    %27 = tpu.matmul %24, %26, %cst_27 {dimension_numbers = #tpu.dot_dimension_numbers<[1], [0], [0], [1], [0, 0, 1, 1], [], []>} : vector<256x8xbf16>, vector<8x128xbf16>, vector<256x128xf32> -> vector<256x128xf32>
    %28 = arith.addf %21, %27 : vector<256x128xf32>
    %c0_28 = arith.constant 0 : index
    %c1_29 = arith.constant 1 : index
    %c1_30 = arith.constant 1 : index
    %c0_31 = arith.constant 0 : index
    %29 = vector.load %arg1[%c0_28, %c1_29, %c1_30, %c0_31] : memref<1x18x18x8xbf16, #tpu.memory_space<vmem>>, vector<1x16x16x8xbf16>
    %30 = vector.shape_cast %29 : vector<1x16x16x8xbf16> to vector<16x16x8xbf16>
    %31 = vector.shape_cast %30 : vector<16x16x8xbf16> to vector<256x8xbf16>
    %c4 = arith.constant 4 : index
    %c0_32 = arith.constant 0 : index
    %c0_33 = arith.constant 0 : index
    %32 = vector.load %arg2[%c4, %c0_32, %c0_33] : memref<9x8x128xbf16, #tpu.memory_space<vmem>>, vector<1x8x128xbf16>
    %33 = vector.shape_cast %32 : vector<1x8x128xbf16> to vector<8x128xbf16>
    %cst_34 = arith.constant dense<0.000000e+00> : vector<256x128xf32>
    %34 = tpu.matmul %31, %33, %cst_34 {dimension_numbers = #tpu.dot_dimension_numbers<[1], [0], [0], [1], [0, 0, 1, 1], [], []>} : vector<256x8xbf16>, vector<8x128xbf16>, vector<256x128xf32> -> vector<256x128xf32>
    %35 = arith.addf %28, %34 : vector<256x128xf32>
    %c0_35 = arith.constant 0 : index
    %c1_36 = arith.constant 1 : index
    %c2_37 = arith.constant 2 : index
    %c0_38 = arith.constant 0 : index
    %36 = vector.load %arg1[%c0_35, %c1_36, %c2_37, %c0_38] : memref<1x18x18x8xbf16, #tpu.memory_space<vmem>>, vector<1x16x16x8xbf16>
    %37 = vector.shape_cast %36 : vector<1x16x16x8xbf16> to vector<16x16x8xbf16>
    %38 = vector.shape_cast %37 : vector<16x16x8xbf16> to vector<256x8xbf16>
    %c5 = arith.constant 5 : index
    %c0_39 = arith.constant 0 : index
    %c0_40 = arith.constant 0 : index
    %39 = vector.load %arg2[%c5, %c0_39, %c0_40] : memref<9x8x128xbf16, #tpu.memory_space<vmem>>, vector<1x8x128xbf16>
    %40 = vector.shape_cast %39 : vector<1x8x128xbf16> to vector<8x128xbf16>
    %cst_41 = arith.constant dense<0.000000e+00> : vector<256x128xf32>
    %41 = tpu.matmul %38, %40, %cst_41 {dimension_numbers = #tpu.dot_dimension_numbers<[1], [0], [0], [1], [0, 0, 1, 1], [], []>} : vector<256x8xbf16>, vector<8x128xbf16>, vector<256x128xf32> -> vector<256x128xf32>
    %42 = arith.addf %35, %41 : vector<256x128xf32>
    %c0_42 = arith.constant 0 : index
    %c2_43 = arith.constant 2 : index
    %c0_44 = arith.constant 0 : index
    %c0_45 = arith.constant 0 : index
    %43 = vector.load %arg1[%c0_42, %c2_43, %c0_44, %c0_45] : memref<1x18x18x8xbf16, #tpu.memory_space<vmem>>, vector<1x16x16x8xbf16>
    %44 = vector.shape_cast %43 : vector<1x16x16x8xbf16> to vector<16x16x8xbf16>
    %45 = vector.shape_cast %44 : vector<16x16x8xbf16> to vector<256x8xbf16>
    %c6 = arith.constant 6 : index
    %c0_46 = arith.constant 0 : index
    %c0_47 = arith.constant 0 : index
    %46 = vector.load %arg2[%c6, %c0_46, %c0_47] : memref<9x8x128xbf16, #tpu.memory_space<vmem>>, vector<1x8x128xbf16>
    %47 = vector.shape_cast %46 : vector<1x8x128xbf16> to vector<8x128xbf16>
    %cst_48 = arith.constant dense<0.000000e+00> : vector<256x128xf32>
    %48 = tpu.matmul %45, %47, %cst_48 {dimension_numbers = #tpu.dot_dimension_numbers<[1], [0], [0], [1], [0, 0, 1, 1], [], []>} : vector<256x8xbf16>, vector<8x128xbf16>, vector<256x128xf32> -> vector<256x128xf32>
    %49 = arith.addf %42, %48 : vector<256x128xf32>
    %c0_49 = arith.constant 0 : index
    %c2_50 = arith.constant 2 : index
    %c1_51 = arith.constant 1 : index
    %c0_52 = arith.constant 0 : index
    %50 = vector.load %arg1[%c0_49, %c2_50, %c1_51, %c0_52] : memref<1x18x18x8xbf16, #tpu.memory_space<vmem>>, vector<1x16x16x8xbf16>
    %51 = vector.shape_cast %50 : vector<1x16x16x8xbf16> to vector<16x16x8xbf16>
    %52 = vector.shape_cast %51 : vector<16x16x8xbf16> to vector<256x8xbf16>
    %c7 = arith.constant 7 : index
    %c0_53 = arith.constant 0 : index
    %c0_54 = arith.constant 0 : index
    %53 = vector.load %arg2[%c7, %c0_53, %c0_54] : memref<9x8x128xbf16, #tpu.memory_space<vmem>>, vector<1x8x128xbf16>
    %54 = vector.shape_cast %53 : vector<1x8x128xbf16> to vector<8x128xbf16>
    %cst_55 = arith.constant dense<0.000000e+00> : vector<256x128xf32>
    %55 = tpu.matmul %52, %54, %cst_55 {dimension_numbers = #tpu.dot_dimension_numbers<[1], [0], [0], [1], [0, 0, 1, 1], [], []>} : vector<256x8xbf16>, vector<8x128xbf16>, vector<256x128xf32> -> vector<256x128xf32>
    %56 = arith.addf %49, %55 : vector<256x128xf32>
    %c0_56 = arith.constant 0 : index
    %c2_57 = arith.constant 2 : index
    %c2_58 = arith.constant 2 : index
    %c0_59 = arith.constant 0 : index
    %57 = vector.load %arg1[%c0_56, %c2_57, %c2_58, %c0_59] : memref<1x18x18x8xbf16, #tpu.memory_space<vmem>>, vector<1x16x16x8xbf16>
    %58 = vector.shape_cast %57 : vector<1x16x16x8xbf16> to vector<16x16x8xbf16>
    %59 = vector.shape_cast %58 : vector<16x16x8xbf16> to vector<256x8xbf16>
    %c8 = arith.constant 8 : index
    %c0_60 = arith.constant 0 : index
    %c0_61 = arith.constant 0 : index
    %60 = vector.load %arg2[%c8, %c0_60, %c0_61] : memref<9x8x128xbf16, #tpu.memory_space<vmem>>, vector<1x8x128xbf16>
    %61 = vector.shape_cast %60 : vector<1x8x128xbf16> to vector<8x128xbf16>
    %cst_62 = arith.constant dense<0.000000e+00> : vector<256x128xf32>
    %62 = tpu.matmul %59, %61, %cst_62 {dimension_numbers = #tpu.dot_dimension_numbers<[1], [0], [0], [1], [0, 0, 1, 1], [], []>} : vector<256x8xbf16>, vector<8x128xbf16>, vector<256x128xf32> -> vector<256x128xf32>
    %63 = arith.addf %56, %62 : vector<256x128xf32>
    %c0_63 = arith.constant 0 : index
    %c0_64 = arith.constant 0 : index
    %64 = vector.load %arg3[%c0_63, %c0_64] : memref<1x128xf32, #tpu.memory_space<vmem>>, vector<1x128xf32>
    %65 = vector.broadcast %64 : vector<1x128xf32> to vector<256x128xf32>
    %66 = arith.addf %63, %65 : vector<256x128xf32>
    %cst_65 = arith.constant 0.000000e+00 : f32
    %67 = vector.broadcast %cst_65 : f32 to vector<256x128xf32>
    %68 = arith.maximumf %66, %67 : vector<256x128xf32>
    %69 = vector.shape_cast %68 : vector<256x128xf32> to vector<1x16x16x128xf32>
    %70 = arith.truncf %69 : vector<1x16x16x128xf32> to vector<1x16x16x128xbf16>
    %c0_66 = arith.constant 0 : index
    %c0_67 = arith.constant 0 : index
    %c0_68 = arith.constant 0 : index
    %c0_69 = arith.constant 0 : index
    %71 = vector.load %arg4[%c0_66, %c0_67, %c0_68, %c0_69] : memref<1x16x16x128xbf16, #tpu.memory_space<vmem>>, vector<1x16x16x128xbf16>
    tpu.vector_store %arg4[%c0_66, %c0_67, %c0_68, %c0_69], %70 {strides = array<i32>} : memref<1x16x16x128xbf16, #tpu.memory_space<vmem>>, vector<1x16x16x128xbf16>,
    return
  }
  func.func @transform_0(%arg0: i32) -> (i32, i32, i32, i32) {
    %c0_i32 = arith.constant 0 : i32
    %c0_i32_0 = arith.constant 0 : i32
    %c0_i32_1 = arith.constant 0 : i32
    %c0_i32_2 = arith.constant 0 : i32
    return %arg0, %c0_i32, %c0_i32_0, %c0_i32_1 : i32, i32, i32, i32
  }
  func.func @transform_1(%arg0: i32) -> (i32, i32, i32) {
    %c0_i32 = arith.constant 0 : i32
    %c0_i32_0 = arith.constant 0 : i32
    %c0_i32_1 = arith.constant 0 : i32
    %c0_i32_2 = arith.constant 0 : i32
    return %c0_i32, %c0_i32_0, %c0_i32_1 : i32, i32, i32
  }
  func.func @transform_2(%arg0: i32) -> (i32, i32) {
    %c0_i32 = arith.constant 0 : i32
    %c0_i32_0 = arith.constant 0 : i32
    %c0_i32_1 = arith.constant 0 : i32
    return %c0_i32, %c0_i32_0 : i32, i32
  }
  func.func @transform_3(%arg0: i32) -> (i32, i32, i32, i32) {
    %c0_i32 = arith.constant 0 : i32
    %c0_i32_0 = arith.constant 0 : i32
    %c0_i32_1 = arith.constant 0 : i32
    %c0_i32_2 = arith.constant 0 : i32
    return %arg0, %c0_i32, %c0_i32_0, %c0_i32_1 : i32, i32, i32, i32
  }
}

module attributes {stable_mosaic.version = 11 : i64} {
  func.func @_conv3x3_bias_relu_kernel(%arg0: i32, %arg1: memref<1x18x18x128xbf16, #tpu.memory_space<vmem>>, %arg2: memref<9x128x128xbf16, #tpu.memory_space<vmem>>, %arg3: memref<1x128xf32, #tpu.memory_space<vmem>>, %arg4: memref<1x16x16x128xbf16, #tpu.memory_space<vmem>>) attributes {dimension_semantics = [#tpu.dimension_semantics<parallel>], iteration_bounds = array<i64: 2>, scalar_prefetch = 0 : i64, scratch_operands = 0 : i64, tpu.core_type = #tpu.core_type<tc>, window_params = [{transform_indices = @transform_0, window_bounds = array<i64: 1, 18, 18, 128>}, {pipeline_mode = #tpu.pipeline_mode<synchronous>, transform_indices = @transform_1, window_bounds = array<i64: 9, 128, 128>}, {pipeline_mode = #tpu.pipeline_mode<synchronous>, transform_indices = @transform_2, window_bounds = array<i64: 1, 128>}, {transform_indices = @transform_3, window_bounds = array<i64: 1, 16, 16, 128>}]} {
    %cst = arith.constant 0.000000e+00 : f32
    %0 = vector.broadcast %cst : f32 to vector<256x128xf32>
    %c0 = arith.constant 0 : index
    %c0_0 = arith.constant 0 : index
    %c0_1 = arith.constant 0 : index
    %c0_2 = arith.constant 0 : index
    %1 = vector.load %arg1[%c0, %c0_0, %c0_1, %c0_2] : memref<1x18x18x128xbf16, #tpu.memory_space<vmem>>, vector<1x16x16x128xbf16>
    %2 = vector.shape_cast %1 : vector<1x16x16x128xbf16> to vector<16x16x128xbf16>
    %3 = vector.shape_cast %2 : vector<16x16x128xbf16> to vector<256x128xbf16>
    %c0_3 = arith.constant 0 : index
    %c0_4 = arith.constant 0 : index
    %c0_5 = arith.constant 0 : index
    %4 = vector.load %arg2[%c0_3, %c0_4, %c0_5] : memref<9x128x128xbf16, #tpu.memory_space<vmem>>, vector<1x128x128xbf16>
    %5 = vector.shape_cast %4 : vector<1x128x128xbf16> to vector<128x128xbf16>
    %cst_6 = arith.constant dense<0.000000e+00> : vector<256x128xf32>
    %6 = tpu.matmul %3, %5, %cst_6 {dimension_numbers = #tpu.dot_dimension_numbers<[1], [0], [0], [1], [0, 0, 1, 1], [], []>} : vector<256x128xbf16>, vector<128x128xbf16>, vector<256x128xf32> -> vector<256x128xf32>
    %7 = arith.addf %0, %6 : vector<256x128xf32>
    %c0_7 = arith.constant 0 : index
    %c0_8 = arith.constant 0 : index
    %c1 = arith.constant 1 : index
    %c0_9 = arith.constant 0 : index
    %8 = vector.load %arg1[%c0_7, %c0_8, %c1, %c0_9] : memref<1x18x18x128xbf16, #tpu.memory_space<vmem>>, vector<1x16x16x128xbf16>
    %9 = vector.shape_cast %8 : vector<1x16x16x128xbf16> to vector<16x16x128xbf16>
    %10 = vector.shape_cast %9 : vector<16x16x128xbf16> to vector<256x128xbf16>
    %c1_10 = arith.constant 1 : index
    %c0_11 = arith.constant 0 : index
    %c0_12 = arith.constant 0 : index
    %11 = vector.load %arg2[%c1_10, %c0_11, %c0_12] : memref<9x128x128xbf16, #tpu.memory_space<vmem>>, vector<1x128x128xbf16>
    %12 = vector.shape_cast %11 : vector<1x128x128xbf16> to vector<128x128xbf16>
    %cst_13 = arith.constant dense<0.000000e+00> : vector<256x128xf32>
    %13 = tpu.matmul %10, %12, %cst_13 {dimension_numbers = #tpu.dot_dimension_numbers<[1], [0], [0], [1], [0, 0, 1, 1], [], []>} : vector<256x128xbf16>, vector<128x128xbf16>, vector<256x128xf32> -> vector<256x128xf32>
    %14 = arith.addf %7, %13 : vector<256x128xf32>
    %c0_14 = arith.constant 0 : index
    %c0_15 = arith.constant 0 : index
    %c2 = arith.constant 2 : index
    %c0_16 = arith.constant 0 : index
    %15 = vector.load %arg1[%c0_14, %c0_15, %c2, %c0_16] : memref<1x18x18x128xbf16, #tpu.memory_space<vmem>>, vector<1x16x16x128xbf16>
    %16 = vector.shape_cast %15 : vector<1x16x16x128xbf16> to vector<16x16x128xbf16>
    %17 = vector.shape_cast %16 : vector<16x16x128xbf16> to vector<256x128xbf16>
    %c2_17 = arith.constant 2 : index
    %c0_18 = arith.constant 0 : index
    %c0_19 = arith.constant 0 : index
    %18 = vector.load %arg2[%c2_17, %c0_18, %c0_19] : memref<9x128x128xbf16, #tpu.memory_space<vmem>>, vector<1x128x128xbf16>
    %19 = vector.shape_cast %18 : vector<1x128x128xbf16> to vector<128x128xbf16>
    %cst_20 = arith.constant dense<0.000000e+00> : vector<256x128xf32>
    %20 = tpu.matmul %17, %19, %cst_20 {dimension_numbers = #tpu.dot_dimension_numbers<[1], [0], [0], [1], [0, 0, 1, 1], [], []>} : vector<256x128xbf16>, vector<128x128xbf16>, vector<256x128xf32> -> vector<256x128xf32>
    %21 = arith.addf %14, %20 : vector<256x128xf32>
    %c0_21 = arith.constant 0 : index
    %c1_22 = arith.constant 1 : index
    %c0_23 = arith.constant 0 : index
    %c0_24 = arith.constant 0 : index
    %22 = vector.load %arg1[%c0_21, %c1_22, %c0_23, %c0_24] : memref<1x18x18x128xbf16, #tpu.memory_space<vmem>>, vector<1x16x16x128xbf16>
    %23 = vector.shape_cast %22 : vector<1x16x16x128xbf16> to vector<16x16x128xbf16>
    %24 = vector.shape_cast %23 : vector<16x16x128xbf16> to vector<256x128xbf16>
    %c3 = arith.constant 3 : index
    %c0_25 = arith.constant 0 : index
    %c0_26 = arith.constant 0 : index
    %25 = vector.load %arg2[%c3, %c0_25, %c0_26] : memref<9x128x128xbf16, #tpu.memory_space<vmem>>, vector<1x128x128xbf16>
    %26 = vector.shape_cast %25 : vector<1x128x128xbf16> to vector<128x128xbf16>
    %cst_27 = arith.constant dense<0.000000e+00> : vector<256x128xf32>
    %27 = tpu.matmul %24, %26, %cst_27 {dimension_numbers = #tpu.dot_dimension_numbers<[1], [0], [0], [1], [0, 0, 1, 1], [], []>} : vector<256x128xbf16>, vector<128x128xbf16>, vector<256x128xf32> -> vector<256x128xf32>
    %28 = arith.addf %21, %27 : vector<256x128xf32>
    %c0_28 = arith.constant 0 : index
    %c1_29 = arith.constant 1 : index
    %c1_30 = arith.constant 1 : index
    %c0_31 = arith.constant 0 : index
    %29 = vector.load %arg1[%c0_28, %c1_29, %c1_30, %c0_31] : memref<1x18x18x128xbf16, #tpu.memory_space<vmem>>, vector<1x16x16x128xbf16>
    %30 = vector.shape_cast %29 : vector<1x16x16x128xbf16> to vector<16x16x128xbf16>
    %31 = vector.shape_cast %30 : vector<16x16x128xbf16> to vector<256x128xbf16>
    %c4 = arith.constant 4 : index
    %c0_32 = arith.constant 0 : index
    %c0_33 = arith.constant 0 : index
    %32 = vector.load %arg2[%c4, %c0_32, %c0_33] : memref<9x128x128xbf16, #tpu.memory_space<vmem>>, vector<1x128x128xbf16>
    %33 = vector.shape_cast %32 : vector<1x128x128xbf16> to vector<128x128xbf16>
    %cst_34 = arith.constant dense<0.000000e+00> : vector<256x128xf32>
    %34 = tpu.matmul %31, %33, %cst_34 {dimension_numbers = #tpu.dot_dimension_numbers<[1], [0], [0], [1], [0, 0, 1, 1], [], []>} : vector<256x128xbf16>, vector<128x128xbf16>, vector<256x128xf32> -> vector<256x128xf32>
    %35 = arith.addf %28, %34 : vector<256x128xf32>
    %c0_35 = arith.constant 0 : index
    %c1_36 = arith.constant 1 : index
    %c2_37 = arith.constant 2 : index
    %c0_38 = arith.constant 0 : index
    %36 = vector.load %arg1[%c0_35, %c1_36, %c2_37, %c0_38] : memref<1x18x18x128xbf16, #tpu.memory_space<vmem>>, vector<1x16x16x128xbf16>
    %37 = vector.shape_cast %36 : vector<1x16x16x128xbf16> to vector<16x16x128xbf16>
    %38 = vector.shape_cast %37 : vector<16x16x128xbf16> to vector<256x128xbf16>
    %c5 = arith.constant 5 : index
    %c0_39 = arith.constant 0 : index
    %c0_40 = arith.constant 0 : index
    %39 = vector.load %arg2[%c5, %c0_39, %c0_40] : memref<9x128x128xbf16, #tpu.memory_space<vmem>>, vector<1x128x128xbf16>
    %40 = vector.shape_cast %39 : vector<1x128x128xbf16> to vector<128x128xbf16>
    %cst_41 = arith.constant dense<0.000000e+00> : vector<256x128xf32>
    %41 = tpu.matmul %38, %40, %cst_41 {dimension_numbers = #tpu.dot_dimension_numbers<[1], [0], [0], [1], [0, 0, 1, 1], [], []>} : vector<256x128xbf16>, vector<128x128xbf16>, vector<256x128xf32> -> vector<256x128xf32>
    %42 = arith.addf %35, %41 : vector<256x128xf32>
    %c0_42 = arith.constant 0 : index
    %c2_43 = arith.constant 2 : index
    %c0_44 = arith.constant 0 : index
    %c0_45 = arith.constant 0 : index
    %43 = vector.load %arg1[%c0_42, %c2_43, %c0_44, %c0_45] : memref<1x18x18x128xbf16, #tpu.memory_space<vmem>>, vector<1x16x16x128xbf16>
    %44 = vector.shape_cast %43 : vector<1x16x16x128xbf16> to vector<16x16x128xbf16>
    %45 = vector.shape_cast %44 : vector<16x16x128xbf16> to vector<256x128xbf16>
    %c6 = arith.constant 6 : index
    %c0_46 = arith.constant 0 : index
    %c0_47 = arith.constant 0 : index
    %46 = vector.load %arg2[%c6, %c0_46, %c0_47] : memref<9x128x128xbf16, #tpu.memory_space<vmem>>, vector<1x128x128xbf16>
    %47 = vector.shape_cast %46 : vector<1x128x128xbf16> to vector<128x128xbf16>
    %cst_48 = arith.constant dense<0.000000e+00> : vector<256x128xf32>
    %48 = tpu.matmul %45, %47, %cst_48 {dimension_numbers = #tpu.dot_dimension_numbers<[1], [0], [0], [1], [0, 0, 1, 1], [], []>} : vector<256x128xbf16>, vector<128x128xbf16>, vector<256x128xf32> -> vector<256x128xf32>
    %49 = arith.addf %42, %48 : vector<256x128xf32>
    %c0_49 = arith.constant 0 : index
    %c2_50 = arith.constant 2 : index
    %c1_51 = arith.constant 1 : index
    %c0_52 = arith.constant 0 : index
    %50 = vector.load %arg1[%c0_49, %c2_50, %c1_51, %c0_52] : memref<1x18x18x128xbf16, #tpu.memory_space<vmem>>, vector<1x16x16x128xbf16>
    %51 = vector.shape_cast %50 : vector<1x16x16x128xbf16> to vector<16x16x128xbf16>
    %52 = vector.shape_cast %51 : vector<16x16x128xbf16> to vector<256x128xbf16>
    %c7 = arith.constant 7 : index
    %c0_53 = arith.constant 0 : index
    %c0_54 = arith.constant 0 : index
    %53 = vector.load %arg2[%c7, %c0_53, %c0_54] : memref<9x128x128xbf16, #tpu.memory_space<vmem>>, vector<1x128x128xbf16>
    %54 = vector.shape_cast %53 : vector<1x128x128xbf16> to vector<128x128xbf16>
    %cst_55 = arith.constant dense<0.000000e+00> : vector<256x128xf32>
    %55 = tpu.matmul %52, %54, %cst_55 {dimension_numbers = #tpu.dot_dimension_numbers<[1], [0], [0], [1], [0, 0, 1, 1], [], []>} : vector<256x128xbf16>, vector<128x128xbf16>, vector<256x128xf32> -> vector<256x128xf32>
    %56 = arith.addf %49, %55 : vector<256x128xf32>
    %c0_56 = arith.constant 0 : index
    %c2_57 = arith.constant 2 : index
    %c2_58 = arith.constant 2 : index
    %c0_59 = arith.constant 0 : index
    %57 = vector.load %arg1[%c0_56, %c2_57, %c2_58, %c0_59] : memref<1x18x18x128xbf16, #tpu.memory_space<vmem>>, vector<1x16x16x128xbf16>
    %58 = vector.shape_cast %57 : vector<1x16x16x128xbf16> to vector<16x16x128xbf16>
    %59 = vector.shape_cast %58 : vector<16x16x128xbf16> to vector<256x128xbf16>
    %c8 = arith.constant 8 : index
    %c0_60 = arith.constant 0 : index
    %c0_61 = arith.constant 0 : index
    %60 = vector.load %arg2[%c8, %c0_60, %c0_61] : memref<9x128x128xbf16, #tpu.memory_space<vmem>>, vector<1x128x128xbf16>
    %61 = vector.shape_cast %60 : vector<1x128x128xbf16> to vector<128x128xbf16>
    %cst_62 = arith.constant dense<0.000000e+00> : vector<256x128xf32>
    %62 = tpu.matmul %59, %61, %cst_62 {dimension_numbers = #tpu.dot_dimension_numbers<[1], [0], [0], [1], [0, 0, 1, 1], [], []>} : vector<256x128xbf16>, vector<128x128xbf16>, vector<256x128xf32> -> vector<256x128xf32>
    %63 = arith.addf %56, %62 : vector<256x128xf32>
    %c0_63 = arith.constant 0 : index
    %c0_64 = arith.constant 0 : index
    %64 = vector.load %arg3[%c0_63, %c0_64] : memref<1x128xf32, #tpu.memory_space<vmem>>, vector<1x128xf32>
    %65 = vector.broadcast %64 : vector<1x128xf32> to vector<256x128xf32>
    %66 = arith.addf %63, %65 : vector<256x128xf32>
    %cst_65 = arith.constant 0.000000e+00 : f32
    %67 = vector.broadcast %cst_65 : f32 to vector<256x128xf32>
    %68 = arith.maximumf %66, %67 : vector<256x128xf32>
    %69 = vector.shape_cast %68 : vector<256x128xf32> to vector<1x16x16x128xf32>
    %70 = arith.truncf %69 : vector<1x16x16x128xf32> to vector<1x16x16x128xbf16>
    %c0_66 = arith.constant 0 : index
    %c0_67 = arith.constant 0 : index
    %c0_68 = arith.constant 0 : index
    %c0_69 = arith.constant 0 : index
    %71 = vector.load %arg4[%c0_66, %c0_67, %c0_68, %c0_69] : memref<1x16x16x128xbf16, #tpu.memory_space<vmem>>, vector<1x16x16x128xbf16>
    tpu.vector_store %arg4[%c0_66, %c0_67, %c0_68, %c0_69], %70 {strides = array<i32>} : memref<1x16x16x128xbf16, #tpu.memory_space<vmem>>, vector<1x16x16x128xbf16>,
    return
  }
  func.func @transform_0(%arg0: i32) -> (i32, i32, i32, i32) {
    %c0_i32 = arith.constant 0 : i32
    %c0_i32_0 = arith.constant 0 : i32
    %c0_i32_1 = arith.constant 0 : i32
    %c0_i32_2 = arith.constant 0 : i32
    return %arg0, %c0_i32, %c0_i32_0, %c0_i32_1 : i32, i32, i32, i32
  }
  func.func @transform_1(%arg0: i32) -> (i32, i32, i32) {
    %c0_i32 = arith.constant 0 : i32
    %c0_i32_0 = arith.constant 0 : i32
    %c0_i32_1 = arith.constant 0 : i32
    %c0_i32_2 = arith.constant 0 : i32
    return %c0_i32, %c0_i32_0, %c0_i32_1 : i32, i32, i32
  }
  func.func @transform_2(%arg0: i32) -> (i32, i32) {
    %c0_i32 = arith.constant 0 : i32
    %c0_i32_0 = arith.constant 0 : i32
    %c0_i32_1 = arith.constant 0 : i32
    return %c0_i32, %c0_i32_0 : i32, i32
  }
  func.func @transform_3(%arg0: i32) -> (i32, i32, i32, i32) {
    %c0_i32 = arith.constant 0 : i32
    %c0_i32_0 = arith.constant 0 : i32
    %c0_i32_1 = arith.constant 0 : i32
    %c0_i32_2 = arith.constant 0 : i32
    return %arg0, %c0_i32, %c0_i32_0, %c0_i32_1 : i32, i32, i32, i32
  }
}

module attributes {stable_mosaic.version = 11 : i64} {
  func.func @_conv3x3_res_pool_embed_kernel(%arg0: i32, %arg1: memref<1x18x18x128xbf16, #tpu.memory_space<vmem>>, %arg2: memref<1x16x16x128xbf16, #tpu.memory_space<vmem>>, %arg3: memref<9x128x128xbf16, #tpu.memory_space<vmem>>, %arg4: memref<1x128xf32, #tpu.memory_space<vmem>>, %arg5: memref<128x128xbf16, #tpu.memory_space<vmem>>, %arg6: memref<1x128xf32, #tpu.memory_space<vmem>>, %arg7: memref<1x1x128xf32, #tpu.memory_space<vmem>>) attributes {dimension_semantics = [#tpu.dimension_semantics<parallel>], iteration_bounds = array<i64: 2>, scalar_prefetch = 0 : i64, scratch_operands = 0 : i64, tpu.core_type = #tpu.core_type<tc>, window_params = [{transform_indices = @transform_0, window_bounds = array<i64: 1, 18, 18, 128>}, {transform_indices = @transform_1, window_bounds = array<i64: 1, 16, 16, 128>}, {pipeline_mode = #tpu.pipeline_mode<synchronous>, transform_indices = @transform_2, window_bounds = array<i64: 9, 128, 128>}, {pipeline_mode = #tpu.pipeline_mode<synchronous>, transform_indices = @transform_3, window_bounds = array<i64: 1, 128>}, {pipeline_mode = #tpu.pipeline_mode<synchronous>, transform_indices = @transform_4, window_bounds = array<i64: 128, 128>}, {pipeline_mode = #tpu.pipeline_mode<synchronous>, transform_indices = @transform_5, window_bounds = array<i64: 1, 128>}, {transform_indices = @transform_6, window_bounds = array<i64: 1, 1, 128>}]} {
    %cst = arith.constant 0.000000e+00 : f32
    %0 = vector.broadcast %cst : f32 to vector<256x128xf32>
    %c0 = arith.constant 0 : index
    %c0_0 = arith.constant 0 : index
    %c0_1 = arith.constant 0 : index
    %c0_2 = arith.constant 0 : index
    %1 = vector.load %arg1[%c0, %c0_0, %c0_1, %c0_2] : memref<1x18x18x128xbf16, #tpu.memory_space<vmem>>, vector<1x16x16x128xbf16>
    %2 = vector.shape_cast %1 : vector<1x16x16x128xbf16> to vector<16x16x128xbf16>
    %3 = vector.shape_cast %2 : vector<16x16x128xbf16> to vector<256x128xbf16>
    %c0_3 = arith.constant 0 : index
    %c0_4 = arith.constant 0 : index
    %c0_5 = arith.constant 0 : index
    %4 = vector.load %arg3[%c0_3, %c0_4, %c0_5] : memref<9x128x128xbf16, #tpu.memory_space<vmem>>, vector<1x128x128xbf16>
    %5 = vector.shape_cast %4 : vector<1x128x128xbf16> to vector<128x128xbf16>
    %cst_6 = arith.constant dense<0.000000e+00> : vector<256x128xf32>
    %6 = tpu.matmul %3, %5, %cst_6 {dimension_numbers = #tpu.dot_dimension_numbers<[1], [0], [0], [1], [0, 0, 1, 1], [], []>} : vector<256x128xbf16>, vector<128x128xbf16>, vector<256x128xf32> -> vector<256x128xf32>
    %7 = arith.addf %0, %6 : vector<256x128xf32>
    %c0_7 = arith.constant 0 : index
    %c0_8 = arith.constant 0 : index
    %c1 = arith.constant 1 : index
    %c0_9 = arith.constant 0 : index
    %8 = vector.load %arg1[%c0_7, %c0_8, %c1, %c0_9] : memref<1x18x18x128xbf16, #tpu.memory_space<vmem>>, vector<1x16x16x128xbf16>
    %9 = vector.shape_cast %8 : vector<1x16x16x128xbf16> to vector<16x16x128xbf16>
    %10 = vector.shape_cast %9 : vector<16x16x128xbf16> to vector<256x128xbf16>
    %c1_10 = arith.constant 1 : index
    %c0_11 = arith.constant 0 : index
    %c0_12 = arith.constant 0 : index
    %11 = vector.load %arg3[%c1_10, %c0_11, %c0_12] : memref<9x128x128xbf16, #tpu.memory_space<vmem>>, vector<1x128x128xbf16>
    %12 = vector.shape_cast %11 : vector<1x128x128xbf16> to vector<128x128xbf16>
    %cst_13 = arith.constant dense<0.000000e+00> : vector<256x128xf32>
    %13 = tpu.matmul %10, %12, %cst_13 {dimension_numbers = #tpu.dot_dimension_numbers<[1], [0], [0], [1], [0, 0, 1, 1], [], []>} : vector<256x128xbf16>, vector<128x128xbf16>, vector<256x128xf32> -> vector<256x128xf32>
    %14 = arith.addf %7, %13 : vector<256x128xf32>
    %c0_14 = arith.constant 0 : index
    %c0_15 = arith.constant 0 : index
    %c2 = arith.constant 2 : index
    %c0_16 = arith.constant 0 : index
    %15 = vector.load %arg1[%c0_14, %c0_15, %c2, %c0_16] : memref<1x18x18x128xbf16, #tpu.memory_space<vmem>>, vector<1x16x16x128xbf16>
    %16 = vector.shape_cast %15 : vector<1x16x16x128xbf16> to vector<16x16x128xbf16>
    %17 = vector.shape_cast %16 : vector<16x16x128xbf16> to vector<256x128xbf16>
    %c2_17 = arith.constant 2 : index
    %c0_18 = arith.constant 0 : index
    %c0_19 = arith.constant 0 : index
    %18 = vector.load %arg3[%c2_17, %c0_18, %c0_19] : memref<9x128x128xbf16, #tpu.memory_space<vmem>>, vector<1x128x128xbf16>
    %19 = vector.shape_cast %18 : vector<1x128x128xbf16> to vector<128x128xbf16>
    %cst_20 = arith.constant dense<0.000000e+00> : vector<256x128xf32>
    %20 = tpu.matmul %17, %19, %cst_20 {dimension_numbers = #tpu.dot_dimension_numbers<[1], [0], [0], [1], [0, 0, 1, 1], [], []>} : vector<256x128xbf16>, vector<128x128xbf16>, vector<256x128xf32> -> vector<256x128xf32>
    %21 = arith.addf %14, %20 : vector<256x128xf32>
    %c0_21 = arith.constant 0 : index
    %c1_22 = arith.constant 1 : index
    %c0_23 = arith.constant 0 : index
    %c0_24 = arith.constant 0 : index
    %22 = vector.load %arg1[%c0_21, %c1_22, %c0_23, %c0_24] : memref<1x18x18x128xbf16, #tpu.memory_space<vmem>>, vector<1x16x16x128xbf16>
    %23 = vector.shape_cast %22 : vector<1x16x16x128xbf16> to vector<16x16x128xbf16>
    %24 = vector.shape_cast %23 : vector<16x16x128xbf16> to vector<256x128xbf16>
    %c3 = arith.constant 3 : index
    %c0_25 = arith.constant 0 : index
    %c0_26 = arith.constant 0 : index
    %25 = vector.load %arg3[%c3, %c0_25, %c0_26] : memref<9x128x128xbf16, #tpu.memory_space<vmem>>, vector<1x128x128xbf16>
    %26 = vector.shape_cast %25 : vector<1x128x128xbf16> to vector<128x128xbf16>
    %cst_27 = arith.constant dense<0.000000e+00> : vector<256x128xf32>
    %27 = tpu.matmul %24, %26, %cst_27 {dimension_numbers = #tpu.dot_dimension_numbers<[1], [0], [0], [1], [0, 0, 1, 1], [], []>} : vector<256x128xbf16>, vector<128x128xbf16>, vector<256x128xf32> -> vector<256x128xf32>
    %28 = arith.addf %21, %27 : vector<256x128xf32>
    %c0_28 = arith.constant 0 : index
    %c1_29 = arith.constant 1 : index
    %c1_30 = arith.constant 1 : index
    %c0_31 = arith.constant 0 : index
    %29 = vector.load %arg1[%c0_28, %c1_29, %c1_30, %c0_31] : memref<1x18x18x128xbf16, #tpu.memory_space<vmem>>, vector<1x16x16x128xbf16>
    %30 = vector.shape_cast %29 : vector<1x16x16x128xbf16> to vector<16x16x128xbf16>
    %31 = vector.shape_cast %30 : vector<16x16x128xbf16> to vector<256x128xbf16>
    %c4 = arith.constant 4 : index
    %c0_32 = arith.constant 0 : index
    %c0_33 = arith.constant 0 : index
    %32 = vector.load %arg3[%c4, %c0_32, %c0_33] : memref<9x128x128xbf16, #tpu.memory_space<vmem>>, vector<1x128x128xbf16>
    %33 = vector.shape_cast %32 : vector<1x128x128xbf16> to vector<128x128xbf16>
    %cst_34 = arith.constant dense<0.000000e+00> : vector<256x128xf32>
    %34 = tpu.matmul %31, %33, %cst_34 {dimension_numbers = #tpu.dot_dimension_numbers<[1], [0], [0], [1], [0, 0, 1, 1], [], []>} : vector<256x128xbf16>, vector<128x128xbf16>, vector<256x128xf32> -> vector<256x128xf32>
    %35 = arith.addf %28, %34 : vector<256x128xf32>
    %c0_35 = arith.constant 0 : index
    %c1_36 = arith.constant 1 : index
    %c2_37 = arith.constant 2 : index
    %c0_38 = arith.constant 0 : index
    %36 = vector.load %arg1[%c0_35, %c1_36, %c2_37, %c0_38] : memref<1x18x18x128xbf16, #tpu.memory_space<vmem>>, vector<1x16x16x128xbf16>
    %37 = vector.shape_cast %36 : vector<1x16x16x128xbf16> to vector<16x16x128xbf16>
    %38 = vector.shape_cast %37 : vector<16x16x128xbf16> to vector<256x128xbf16>
    %c5 = arith.constant 5 : index
    %c0_39 = arith.constant 0 : index
    %c0_40 = arith.constant 0 : index
    %39 = vector.load %arg3[%c5, %c0_39, %c0_40] : memref<9x128x128xbf16, #tpu.memory_space<vmem>>, vector<1x128x128xbf16>
    %40 = vector.shape_cast %39 : vector<1x128x128xbf16> to vector<128x128xbf16>
    %cst_41 = arith.constant dense<0.000000e+00> : vector<256x128xf32>
    %41 = tpu.matmul %38, %40, %cst_41 {dimension_numbers = #tpu.dot_dimension_numbers<[1], [0], [0], [1], [0, 0, 1, 1], [], []>} : vector<256x128xbf16>, vector<128x128xbf16>, vector<256x128xf32> -> vector<256x128xf32>
    %42 = arith.addf %35, %41 : vector<256x128xf32>
    %c0_42 = arith.constant 0 : index
    %c2_43 = arith.constant 2 : index
    %c0_44 = arith.constant 0 : index
    %c0_45 = arith.constant 0 : index
    %43 = vector.load %arg1[%c0_42, %c2_43, %c0_44, %c0_45] : memref<1x18x18x128xbf16, #tpu.memory_space<vmem>>, vector<1x16x16x128xbf16>
    %44 = vector.shape_cast %43 : vector<1x16x16x128xbf16> to vector<16x16x128xbf16>
    %45 = vector.shape_cast %44 : vector<16x16x128xbf16> to vector<256x128xbf16>
    %c6 = arith.constant 6 : index
    %c0_46 = arith.constant 0 : index
    %c0_47 = arith.constant 0 : index
    %46 = vector.load %arg3[%c6, %c0_46, %c0_47] : memref<9x128x128xbf16, #tpu.memory_space<vmem>>, vector<1x128x128xbf16>
    %47 = vector.shape_cast %46 : vector<1x128x128xbf16> to vector<128x128xbf16>
    %cst_48 = arith.constant dense<0.000000e+00> : vector<256x128xf32>
    %48 = tpu.matmul %45, %47, %cst_48 {dimension_numbers = #tpu.dot_dimension_numbers<[1], [0], [0], [1], [0, 0, 1, 1], [], []>} : vector<256x128xbf16>, vector<128x128xbf16>, vector<256x128xf32> -> vector<256x128xf32>
    %49 = arith.addf %42, %48 : vector<256x128xf32>
    %c0_49 = arith.constant 0 : index
    %c2_50 = arith.constant 2 : index
    %c1_51 = arith.constant 1 : index
    %c0_52 = arith.constant 0 : index
    %50 = vector.load %arg1[%c0_49, %c2_50, %c1_51, %c0_52] : memref<1x18x18x128xbf16, #tpu.memory_space<vmem>>, vector<1x16x16x128xbf16>
    %51 = vector.shape_cast %50 : vector<1x16x16x128xbf16> to vector<16x16x128xbf16>
    %52 = vector.shape_cast %51 : vector<16x16x128xbf16> to vector<256x128xbf16>
    %c7 = arith.constant 7 : index
    %c0_53 = arith.constant 0 : index
    %c0_54 = arith.constant 0 : index
    %53 = vector.load %arg3[%c7, %c0_53, %c0_54] : memref<9x128x128xbf16, #tpu.memory_space<vmem>>, vector<1x128x128xbf16>
    %54 = vector.shape_cast %53 : vector<1x128x128xbf16> to vector<128x128xbf16>
    %cst_55 = arith.constant dense<0.000000e+00> : vector<256x128xf32>
    %55 = tpu.matmul %52, %54, %cst_55 {dimension_numbers = #tpu.dot_dimension_numbers<[1], [0], [0], [1], [0, 0, 1, 1], [], []>} : vector<256x128xbf16>, vector<128x128xbf16>, vector<256x128xf32> -> vector<256x128xf32>
    %56 = arith.addf %49, %55 : vector<256x128xf32>
    %c0_56 = arith.constant 0 : index
    %c2_57 = arith.constant 2 : index
    %c2_58 = arith.constant 2 : index
    %c0_59 = arith.constant 0 : index
    %57 = vector.load %arg1[%c0_56, %c2_57, %c2_58, %c0_59] : memref<1x18x18x128xbf16, #tpu.memory_space<vmem>>, vector<1x16x16x128xbf16>
    %58 = vector.shape_cast %57 : vector<1x16x16x128xbf16> to vector<16x16x128xbf16>
    %59 = vector.shape_cast %58 : vector<16x16x128xbf16> to vector<256x128xbf16>
    %c8 = arith.constant 8 : index
    %c0_60 = arith.constant 0 : index
    %c0_61 = arith.constant 0 : index
    %60 = vector.load %arg3[%c8, %c0_60, %c0_61] : memref<9x128x128xbf16, #tpu.memory_space<vmem>>, vector<1x128x128xbf16>
    %61 = vector.shape_cast %60 : vector<1x128x128xbf16> to vector<128x128xbf16>
    %cst_62 = arith.constant dense<0.000000e+00> : vector<256x128xf32>
    %62 = tpu.matmul %59, %61, %cst_62 {dimension_numbers = #tpu.dot_dimension_numbers<[1], [0], [0], [1], [0, 0, 1, 1], [], []>} : vector<256x128xbf16>, vector<128x128xbf16>, vector<256x128xf32> -> vector<256x128xf32>
    %63 = arith.addf %56, %62 : vector<256x128xf32>
    %c0_63 = arith.constant 0 : index
    %c0_64 = arith.constant 0 : index
    %c0_65 = arith.constant 0 : index
    %c0_66 = arith.constant 0 : index
    %64 = vector.load %arg2[%c0_63, %c0_64, %c0_65, %c0_66] : memref<1x16x16x128xbf16, #tpu.memory_space<vmem>>, vector<1x16x16x128xbf16>
    %65 = vector.shape_cast %64 : vector<1x16x16x128xbf16> to vector<256x128xbf16>
    %66 = arith.extf %65 : vector<256x128xbf16> to vector<256x128xf32>
    %c0_67 = arith.constant 0 : index
    %c0_68 = arith.constant 0 : index
    %67 = vector.load %arg4[%c0_67, %c0_68] : memref<1x128xf32, #tpu.memory_space<vmem>>, vector<1x128xf32>
    %68 = vector.broadcast %67 : vector<1x128xf32> to vector<256x128xf32>
    %69 = arith.addf %63, %68 : vector<256x128xf32>
    %70 = arith.addf %69, %66 : vector<256x128xf32>
    %cst_69 = arith.constant 0.000000e+00 : f32
    %71 = vector.broadcast %cst_69 : f32 to vector<256x128xf32>
    %72 = arith.maximumf %70, %71 : vector<256x128xf32>
    %73 = vector.shape_cast %72 : vector<256x128xf32> to vector<8x32x128xf32>
    %cst_70 = arith.constant dense<0.000000e+00> : vector<8x128xf32>
    %74 = vector.multi_reduction <add>, %73, %cst_70 [1] : vector<8x32x128xf32> to vector<8x128xf32>
    %cst_71 = arith.constant 3.200000e+01 : f32
    %75 = vector.broadcast %cst_71 : f32 to vector<8x128xf32>
    %76 = arith.divf %74, %75 : vector<8x128xf32>
    %c0_72 = arith.constant 0 : index
    %c0_73 = arith.constant 0 : index
    %77 = vector.load %arg5[%c0_72, %c0_73] : memref<128x128xbf16, #tpu.memory_space<vmem>>, vector<128x128xbf16>
    %78 = arith.extf %77 : vector<128x128xbf16> to vector<128x128xf32>
    %cst_74 = arith.constant dense<0.000000e+00> : vector<8x128xf32>
    %79 = tpu.matmul %76, %78, %cst_74 {dimension_numbers = #tpu.dot_dimension_numbers<[1], [0], [0], [1], [0, 0, 1, 1], [], []>} : vector<8x128xf32>, vector<128x128xf32>, vector<8x128xf32> -> vector<8x128xf32>
    %cst_75 = arith.constant dense<0.000000e+00> : vector<128xf32>
    %80 = vector.multi_reduction <add>, %79, %cst_75 [0] : vector<8x128xf32> to vector<128xf32>
    %81 = vector.shape_cast %80 : vector<128xf32> to vector<1x128xf32>
    %cst_76 = arith.constant 8.000000e+00 : f32
    %82 = vector.broadcast %cst_76 : f32 to vector<1x128xf32>
    %83 = arith.divf %81, %82 : vector<1x128xf32>
    %c0_77 = arith.constant 0 : index
    %c0_78 = arith.constant 0 : index
    %84 = vector.load %arg6[%c0_77, %c0_78] : memref<1x128xf32, #tpu.memory_space<vmem>>, vector<1x128xf32>
    %85 = arith.addf %83, %84 : vector<1x128xf32>
    %86 = vector.shape_cast %85 : vector<1x128xf32> to vector<1x1x128xf32>
    %c0_79 = arith.constant 0 : index
    %c0_80 = arith.constant 0 : index
    %c0_81 = arith.constant 0 : index
    %87 = vector.load %arg7[%c0_79, %c0_80, %c0_81] : memref<1x1x128xf32, #tpu.memory_space<vmem>>, vector<1x1x128xf32>
    tpu.vector_store %arg7[%c0_79, %c0_80, %c0_81], %86 {strides = array<i32>} : memref<1x1x128xf32, #tpu.memory_space<vmem>>, vector<1x1x128xf32>,
    return
  }
  func.func @transform_0(%arg0: i32) -> (i32, i32, i32, i32) {
    %c0_i32 = arith.constant 0 : i32
    %c0_i32_0 = arith.constant 0 : i32
    %c0_i32_1 = arith.constant 0 : i32
    %c0_i32_2 = arith.constant 0 : i32
    return %arg0, %c0_i32, %c0_i32_0, %c0_i32_1 : i32, i32, i32, i32
  }
  func.func @transform_1(%arg0: i32) -> (i32, i32, i32, i32) {
    %c0_i32 = arith.constant 0 : i32
    %c0_i32_0 = arith.constant 0 : i32
    %c0_i32_1 = arith.constant 0 : i32
    %c0_i32_2 = arith.constant 0 : i32
    return %arg0, %c0_i32, %c0_i32_0, %c0_i32_1 : i32, i32, i32, i32
  }
  func.func @transform_2(%arg0: i32) -> (i32, i32, i32) {
    %c0_i32 = arith.constant 0 : i32
    %c0_i32_0 = arith.constant 0 : i32
    %c0_i32_1 = arith.constant 0 : i32
    %c0_i32_2 = arith.constant 0 : i32
    return %c0_i32, %c0_i32_0, %c0_i32_1 : i32, i32, i32
  }
  func.func @transform_3(%arg0: i32) -> (i32, i32) {
    %c0_i32 = arith.constant 0 : i32
    %c0_i32_0 = arith.constant 0 : i32
    %c0_i32_1 = arith.constant 0 : i32
    return %c0_i32, %c0_i32_0 : i32, i32
  }
  func.func @transform_4(%arg0: i32) -> (i32, i32) {
    %c0_i32 = arith.constant 0 : i32
    %c0_i32_0 = arith.constant 0 : i32
    %c0_i32_1 = arith.constant 0 : i32
    return %c0_i32, %c0_i32_0 : i32, i32
  }
  func.func @transform_5(%arg0: i32) -> (i32, i32) {
    %c0_i32 = arith.constant 0 : i32
    %c0_i32_0 = arith.constant 0 : i32
    %c0_i32_1 = arith.constant 0 : i32
    return %c0_i32, %c0_i32_0 : i32, i32
  }
  func.func @transform_6(%arg0: i32) -> (i32, i32, i32) {
    %c0_i32 = arith.constant 0 : i32
    %c0_i32_0 = arith.constant 0 : i32
    %c0_i32_1 = arith.constant 0 : i32
    return %arg0, %c0_i32, %c0_i32_0 : i32, i32, i32
  }
}

</mosaic_0001>

<bundles_post_ra>
// kernel: encoder_cnn_forward.3
= control target key start
LH: loop header
LB: loop body
LE: loop exit
PB: predicated region body
PF: predicated region fallthrough
CT: control target
= control target key end

     0   :  { %s6593_s12 = smov 0   ;;  %s8378_s0 = inlined_call_operand.vmem [shape: bf16[2,18,18,8], index: 0, kind: input, shape index: {}]   ;;  %s8379_s1 = inlined_call_operand.vmem [shape: bf16[9,8,128], index: 1, kind: input, shape index: {}]   ;;  %s8380_s2 = inlined_call_operand.vmem [shape: f32[1,128], index: 2, kind: input, shape index: {}]   ;;  %s8381_s3 = inlined_call_operand.vmem [shape: bf16[2,16,16,128], index: 3, kind: output, shape index: {}]  }
   0x1 LB: > { %s5017_s13 = sadd.s32 4294967295, %s6571_s12   ;;  %p5021_p0 = scmp.ge.s32.totalorder %s6571_s12, 1  ;;  %s6571_s12 = sphi %s6593_s12, %s13_s12  }
   0x2   : > { %p137_p1 = scmp.lt.s32.totalorder %s6571_s12, 3 }
   0x4   : > { %p138_p2 = pnand %p5021_p0, %p137_p1 }
   0x6   : > { %141 = sbr.rel (%p138_p2) target bundleno = 589 (0x24d), region = 32 }
   0xd   : > { %v5025_v0 = vld [vmem:[%s8379_s1 + $0x4] sm:$0xf]  ;;  %vm707_vm0 = vcmask 1043456   ;;  %v5252_v1 = vld [vmem:[%s8379_s1 + $0x10] sm:$0xf]  ;;  %p161_p3 = scmp.lt.s32.totalorder %s5017_s13, 1 }
   0xe   : > { %6441 = vmatprep.subr.msk.bf16.mxu1 %vm707_vm0, %v5025_v0  ;;  %6445 = vmatprep.subr.msk.bf16.mxu0 %vm707_vm0, %v5252_v1  ;;  %v709_v2 = vsel %vm707_vm0, %v5025_v0, 0  ;;  %v6611_v3 = vsel %vm707_vm0, %v5252_v1, 0  ;;  %v204_v4 = vld [vmem:[%s8379_s1] sm:$0xf]  ;;  %v5317_v5 = vld [vmem:[%s8379_s1 + $0x14] sm:$0xf] }
   0xf   : > { %8395 = vst [vmem:[#allocation2_spill] sm:$0xff] %v6611_v3  ;;  %5878 = vmatpush3.bf16.msra.mxu1 %v709_v2  ;;  %6014 = vmatpush3.bf16.msra.mxu0 %v6611_v3  ;;  %s8450_s13 = smov (!%p161_p3, %s5017_s13), 1  ;;  %vm221_vm1 = vsmask.f32 3328  ;;  %vm222_vm2 = vsmask.f32 7440 }
  0x10   : > { %6442 = vmatprep.subr.msk.bf16.mxu1 %vm707_vm0, %v204_v4  ;;  %6447 = vmatprep.subr.msk.bf16.mxu0 %vm707_vm0, %v5317_v5  ;;  %s6451_s22 = smul.u32 216, %s8450_s13  ;;  %vm658_vm3 = vcmask 64512   ;;  %v6641_v17 = vsel %vm707_vm0, %v204_v4, 0  ;;  %v6647_v26 = vld [vmem:[%s8379_s1 + $0x18] sm:$0xf]  ;;  %vm6654_vm4 = vmor %vm221_vm1, %vm222_vm2  ;;  %v6660_v37 = vsel %vm707_vm0, %v5317_v5, 0 }
  0x11   : > { %v6664_v41 = vsel %vm707_vm0, %v6647_v26, 0  ;;  %vm1212_vm5 = vcmask 1042432   ;;  %vm1213_vm6 = vcmask 1046532   ;;  %s5596_s17 = sshll.u32 %s8450_s13, 7 }
  0x12   : > { %s6628_s25 = scalar_lea.vmem %s8378_s0, %s6451_s22  ;;  %vm6880_vm7 = vmor %vm1212_vm5, %vm1213_vm6  ;;  %s8325_s20 = scalar_lea.vmem %s8381_s3, %s5596_s17 }
  0x13   : > { %v172_v6 = vld [vmem:[%s6628_s25] sm:$0xf]  ;;  %v173_v7 = vld [vmem:[%s6628_s25 + $0x4] sm:$0xf]  ;;  %v205_v8 = vld [vmem:[%s6628_s25 + $0x8] sm:$0x1] }
  0x14   : > { %v225_v9 = vshrl.u32 %v172_v6, 16  ;;  %v228_v10 = vshll.u32 %v172_v6, 16  ;;  %v234_v11 = vshll.u32 %v173_v7, 16  ;;  %v238_v12 = vshrl.u32 %v173_v7, 16  ;;  %v5204_v13 = vld [vmem:[%s6628_s25 + $0xc] sm:$0xf] }
  0x15   : > { %v244_v14 = vshll.u32 %v205_v8, 16  ;;  %v6635_v15 = vld [vmem:[%s6628_s25 + $0x10] sm:$0xf]  ;;  %v6638_v16 = vld [vmem:[%s6628_s25 + $0x14] sm:$0x1]  ;;  %v2029_v23 = vshrl.u32 %v5204_v13, 16 }
  0x16   : > { %v227_v18 = vrot.slane %v225_v9, 4  ;;  %v230_v19 = vrot.slane %v228_v10, 5  ;;  %v236_v20 = vrot.slane %v234_v11, 5  ;;  %v240_v21 = vrot.slane %v238_v12, 4  ;;  %v174_v31 = vld [vmem:[%s6628_s25 + $0xc] sm:$0xf] }
  0x17   : > { %v246_v22 = vrot.slane %v244_v14, 5  ;;  %v2032_v24 = vshll.u32 %v5204_v13, 16  ;;  %v2038_v25 = vshll.u32 %v6635_v15, 16  ;;  %v2042_v29 = vshrl.u32 %v6635_v15, 16  ;;  %v175_v36 = vld [vmem:[%s6628_s25 + $0x10] sm:$0xf] }
  0x18   : > { %v231_v27 = vor.u32 %v230_v19, %v227_v18  ;;  %v241_v28 = vor.u32 %v240_v21, %v236_v20  ;;  %v2048_v30 = vshll.u32 %v6638_v16, 16  ;;  %v2031_v33 = vrot.slane %v2029_v23, 4  ;;  %v206_v44 = vld [vmem:[%s6628_s25 + $0x14] sm:$0x1]  ;;  %v5207_v55 = vld [vmem:[%s6628_s25 + $0x18] sm:$0xf] }
  0x19   : > { %v2034_v34 = vrot.slane %v2032_v24, 5  ;;  %v2040_v35 = vrot.slane %v2038_v25, 5  ;;  %v2044_v40 = vrot.slane %v2042_v29, 4  ;;  %v249_v45 = vshrl.u32 %v174_v31, 16  ;;  %v6673_v60 = vld [vmem:[%s6628_s25 + $0x1c] sm:$0xf] }
  0x1a   : > { %v232_v38 = vrot.slane %v231_v27, 4  ;;  %v242_v39 = vrot.slane %v241_v28, 4  ;;  %v2050_v43 = vrot.slane %v2048_v30, 5  ;;  %v252_v46 = vshll.u32 %v174_v31, 16  ;;  %v6681_v1 = vld [vmem:[%s6628_s25 + $0x20] sm:$0x1] }
  0x1b   : > { %v2035_v42 = vor.u32 %v2034_v34, %v2031_v33  ;;  %v2045_v49 = vor.u32 %v2044_v40, %v2040_v35  ;;  %v258_v50 = vshll.u32 %v175_v36, 16  ;;  %v251_v53 = vrot.slane %v249_v45, 4  ;;  %v176_v18 = vld [vmem:[%s6628_s25 + $0x18] sm:$0xf]  ;;  %v177_v23 = vld [vmem:[%s6628_s25 + $0x1c] sm:$0xf] }
  0x1c   : > { %v237_v47 = vsel %vm6654_vm4, %v232_v38, %v236_v20  ;;  %v247_v48 = vsel %vm6654_vm4, %v242_v39, %v246_v22  ;;  %v254_v54 = vrot.slane %v252_v46, 5  ;;  %v262_v58 = vshrl.u32 %v175_v36, 16  ;;  %v207_v31 = vld [vmem:[%s6628_s25 + $0x20] sm:$0x1]  ;;  %v5210_v40 = vld [vmem:[%s6628_s25 + $0x24] sm:$0xf] }
  0x1d   : > { %v5026_v51 = vcombine.low %v237_v47, %v247_v48  ;;  %v2036_v52 = vrot.slane %v2035_v42, 4  ;;  %v2046_v56 = vrot.slane %v2045_v49, 4  ;;  %v260_v57 = vrot.slane %v258_v50, 5  ;;  %v6704_v46 = vld [vmem:[%s6628_s25 + $0x28] sm:$0xf] }
  0x1e   : > { %v268_v59 = vshll.u32 %v206_v44, 16  ;;  %v2772_v62 = vrot.slane %v6635_v15, 5  ;;  %v2775_v63 = vrot.slane %v6638_v16, 5  ;;  %v255_v0 = vor.u32 %v254_v54, %v251_v53  ;;  %v6713_v54 = vld [vmem:[%s6628_s25 + $0x2c] sm:$0x1] }
  0x1f   : > { %5879 = vmatprep.mubr.msk.bf16.mxu1 %vm658_vm3, %v5026_v51  ;;  %v2041_v61 = vsel %vm6654_vm4, %v2036_v52, %v2040_v35  ;;  %v2051_v2 = vsel %vm6654_vm4, %v2046_v56, %v2050_v43  ;;  %v264_v4 = vrot.slane %v262_v58, 4  ;;  %v2053_v6 = vshrl.u32 %v5207_v55, 16  ;;  %v5106_v51 = vld [vmem:[%s8379_s1 + $0x8] sm:$0xf]  ;;  %v6913_v16 = vld [vmem:[%s6628_s25 + $0x7c] sm:$0xf] }
  0x20   : > { %v270_v5 = vrot.slane %v268_v59, 5  ;;  %v5253_v7 = vcombine.low %v2041_v61, %v2051_v2  ;;  %v256_v8 = vrot.slane %v255_v0, 4  ;;  %v2056_v9 = vshll.u32 %v5207_v55, 16  ;;  %v178_v0 = vld [vmem:[%s6628_s25 + $0x24] sm:$0xf] }
  0x21   : > { %v2062_v10 = vshll.u32 %v6673_v60, 16  ;;  %v265_v11 = vor.u32 %v264_v4, %v260_v57  ;;  %v2055_v12 = vrot.slane %v2053_v6, 4  ;;  %v2066_v13 = vshrl.u32 %v6673_v60, 16 }
  0x22   : > { %v2072_v14 = vshll.u32 %v6681_v1, 16  ;;  %6015 = vmatprep.mubr.msk.bf16.mxu0 %vm658_vm3, %v5253_v7  ;;  %v261_v19 = vsel %vm6654_vm4, %v256_v8, %v260_v57  ;;  %v2058_v20 = vrot.slane %v2056_v9, 5  ;;  %v2779_v22 = vrot.slane %v6673_v60, 5  ;;  %v179_v7 = vld [vmem:[%s6628_s25 + $0x28] sm:$0xf] }
  0x23   : > { %v2064_v21 = vrot.slane %v2062_v10, 5  ;;  %v266_v24 = vrot.slane %v265_v11, 4  ;;  %v2068_v25 = vrot.slane %v2066_v13, 4  ;;  %v2782_v28 = vrot.slane %v6681_v1, 5  ;;  %v208_v13 = vld [vmem:[%s6628_s25 + $0x2c] sm:$0x1] }
  0x24   : > { %v2074_v27 = vrot.slane %v2072_v14, 5  ;;  %v2059_v29 = vor.u32 %v2058_v20, %v2055_v12  ;;  %v6697_v30 = vrot.slane %v2779_v22, 4  ;;  %v273_v33 = vshrl.u32 %v176_v18, 16 }
  0x25   : > { %v276_v34 = vshll.u32 %v176_v18, 16  ;;  %v271_v35 = vsel %vm6654_vm4, %v266_v24, %v270_v5  ;;  %v2069_v36 = vor.u32 %v2068_v25, %v2064_v21  ;;  %v282_v38 = vshll.u32 %v177_v23, 16  ;;  %v5213_v24 = vld [vmem:[%s6628_s25 + $0x30] sm:$0xf] }
  0x26   : > { %v286_v39 = vshrl.u32 %v177_v23, 16  ;;  %v5027_v42 = vcombine.low %v261_v19, %v271_v35  ;;  %v2060_v43 = vrot.slane %v2059_v29, 4  ;;  %v275_v44 = vrot.slane %v273_v33, 4  ;;  %v6733_v33 = vld [vmem:[%s6628_s25 + $0x34] sm:$0xf] }
  0x27   : > { %v278_v45 = vrot.slane %v276_v34, 5  ;;  %v2070_v47 = vrot.slane %v2069_v36, 4  ;;  %v284_v48 = vrot.slane %v282_v38, 5  ;;  %v292_v50 = vshll.u32 %v207_v31, 16 }
  0x28   : > { %v288_v49 = vrot.slane %v286_v39, 4  ;;  %5880 = vmatmul.mubr.msk.bf16.vlgmr.msra.gmra.mrb[0].mxu1 %vm658_vm3, %v5027_v42  ;;  %v2065_v52 = vsel %vm6654_vm4, %v2060_v43, %v2064_v21  ;;  %v2077_v55 = vshrl.u32 %v5210_v40, 16  ;;  %v2080_v56 = vshll.u32 %v5210_v40, 16  ;;  %v6741_v40 = vld [vmem:[%s6628_s25 + $0x38] sm:$0x1] }
  0x29   : > { %v279_v53 = vor.u32 %v278_v45, %v275_v44  ;;  %5912 = vmatpush3.bf16.msra.mxu1 %v6641_v17  ;;  %v2075_v57 = vsel %vm6654_vm4, %v2070_v47, %v2074_v27  ;;  %v294_v59 = vrot.slane %v292_v50, 5  ;;  %v2086_v61 = vshll.u32 %v6704_v46, 16 }
  0x2a   : > { %v289_v58 = vor.u32 %v288_v49, %v284_v48  ;;  %v5254_v2 = vcombine.low %v2065_v52, %v2075_v57  ;;  %v2079_v5 = vrot.slane %v2077_v55, 4  ;;  %v2082_v6 = vrot.slane %v2080_v56, 5  ;;  %6443 = vmatprep.subr.msk.bf16.mxu1 %vm707_vm0, %v5106_v51  ;;  %v180_v52 = vld [vmem:[%s6628_s25 + $0x30] sm:$0xf] }
  0x2b   : > { %v280_v4 = vrot.slane %v279_v53, 4  ;;  %v2088_v9 = vrot.slane %v2086_v61, 5  ;;  %v2090_v17 = vshrl.u32 %v6704_v46, 16  ;;  %v2096_v10 = vshll.u32 %v6713_v54, 16 }
  0x2c   : > { %v290_v8 = vrot.slane %v289_v58, 4  ;;  %6016 = vmatmul.mubr.msk.bf16.vlgmr.msra.gmra.mrb[0].mxu0 %vm658_vm3, %v5254_v2  ;;  %v2083_v12 = vor.u32 %v2082_v6, %v2079_v5  ;;  %v297_v14 = vshrl.u32 %v178_v0, 16  ;;  %v300_v18 = vshll.u32 %v178_v0, 16  ;;  %v181_v58 = vld [vmem:[%s6628_s25 + $0x34] sm:$0xf] }
  0x2d   : > { %v285_v11 = vsel %vm6654_vm4, %v280_v4, %v284_v48  ;;  %6048 = vmatpush3.bf16.msra.mxu0 %v6660_v37  ;;  %v2092_v20 = vrot.slane %v2090_v17, 4  ;;  %v2098_v21 = vrot.slane %v2096_v10, 5  ;;  %v306_v23 = vshll.u32 %v179_v7, 16  ;;  %v209_v4 = vld [vmem:[%s6628_s25 + $0x38] sm:$0x1] }
  0x2e   : > { %v295_v19 = vsel %vm6654_vm4, %v290_v8, %v294_v59  ;;  %v2084_v27 = vrot.slane %v2083_v12, 4  ;;  %v299_v29 = vrot.slane %v297_v14, 4  ;;  %v302_v31 = vrot.slane %v300_v18, 5  ;;  %6448 = vmatprep.subr.msk.bf16.mxu0 %vm707_vm0, %v6647_v26  ;;  %v5216_v12 = vld [vmem:[%s6628_s25 + $0x3c] sm:$0xf] }
  0x2f   : > { %v5028_v25 = vcombine.low %v285_v11, %v295_v19  ;;  %v2093_v34 = vor.u32 %v2092_v20, %v2088_v9  ;;  %v308_v35 = vrot.slane %v306_v23, 5  ;;  %v310_v37 = vshrl.u32 %v179_v7, 16  ;;  %v6758_v20 = vld [vmem:[%s6628_s25 + $0x40] sm:$0xf] }
  0x30   : > { %v316_v36 = vshll.u32 %v208_v13, 16  ;;  %v2089_v38 = vsel %vm6654_vm4, %v2084_v27, %v2088_v9  ;;  %v303_v39 = vor.u32 %v302_v31, %v299_v29  ;;  %v2101_v42 = vshrl.u32 %v5213_v24, 16 }
  0x31   : > { %5883 = vmatprep.mubr.msk.bf16.mxu1 %vm658_vm3, %v5028_v25  ;;  %v2104_v43 = vshll.u32 %v5213_v24, 16  ;;  %v2094_v44 = vrot.slane %v2093_v34, 4  ;;  %v312_v45 = vrot.slane %v310_v37, 4  ;;  %v2110_v26 = vshll.u32 %v6733_v33, 16  ;;  %v6763_v34 = vld [vmem:[%s6628_s25 + $0x44] sm:$0x1] }
  0x32   : > { %v318_v47 = vrot.slane %v316_v36, 5  ;;  %v304_v48 = vrot.slane %v303_v39, 4  ;;  %v2103_v49 = vrot.slane %v2101_v42, 4  ;;  %v2114_v51 = vshrl.u32 %v6733_v33, 16  ;;  %v182_v42 = vld [vmem:[%s6628_s25 + $0x3c] sm:$0xf] }
  0x33   : > { %v2106_v50 = vrot.slane %v2104_v43, 5  ;;  %v2099_v53 = vsel %vm6654_vm4, %v2094_v44, %v2098_v21  ;;  %v313_v55 = vor.u32 %v312_v45, %v308_v35  ;;  %v2112_v56 = vrot.slane %v2110_v26, 5  ;;  %v183_v26 = vld [vmem:[%s6628_s25 + $0x40] sm:$0xf] }
  0x34   : > { %v2120_v57 = vshll.u32 %v6741_v40, 16  ;;  %v5255_v59 = vcombine.low %v2089_v38, %v2099_v53  ;;  %v309_v61 = vsel %vm6654_vm4, %v304_v48, %v308_v35  ;;  %v2116_v2 = vrot.slane %v2114_v51, 4 }
  0x35   : > { %v2107_v0 = vor.u32 %v2106_v50, %v2103_v49  ;;  %v314_v5 = vrot.slane %v313_v55, 4  ;;  %v321_v7 = vshrl.u32 %v180_v52, 16  ;;  %v324_v8 = vshll.u32 %v180_v52, 16 }
  0x36   : > { %v2122_v6 = vrot.slane %v2120_v57, 5  ;;  %6019 = vmatprep.mubr.msk.bf16.mxu0 %vm658_vm3, %v5255_v59  ;;  %v2117_v17 = vor.u32 %v2116_v2, %v2112_v56  ;;  %v330_v10 = vshll.u32 %v181_v58, 16  ;;  %v334_v11 = vshrl.u32 %v181_v58, 16  ;;  %v5219_v2 = vld [vmem:[%s6628_s25 + $0x48] sm:$0xf] }
  0x37   : > { %v2108_v9 = vrot.slane %v2107_v0, 4  ;;  %v319_v13 = vsel %vm6654_vm4, %v314_v5, %v318_v47  ;;  %v323_v14 = vrot.slane %v321_v7, 4  ;;  %v326_v18 = vrot.slane %v324_v8, 5  ;;  %v6781_v8 = vld [vmem:[%s6628_s25 + $0x4c] sm:$0xf] }
  0x38   : > { %v340_v19 = vshll.u32 %v209_v4, 16  ;;  %v5029_v21 = vcombine.low %v309_v61, %v319_v13  ;;  %v2118_v24 = vrot.slane %v2117_v17, 4  ;;  %v332_v25 = vrot.slane %v330_v10, 5  ;;  %v210_v61 = vld [vmem:[%s6628_s25 + $0x44] sm:$0x1] }
  0x39   : > { %v2113_v23 = vsel %vm6654_vm4, %v2108_v9, %v2112_v56  ;;  %v327_v27 = vor.u32 %v326_v18, %v323_v14  ;;  %v336_v29 = vrot.slane %v334_v11, 4  ;;  %v2125_v35 = vshrl.u32 %v5216_v12, 16 }
  0x3a   : > { %v342_v31 = vrot.slane %v340_v19, 5  ;;  %5884 = vmatmul.mubr.msk.bf16.gmra.mrb[4].mxu1 %vm658_vm3, %v5029_v21  ;;  %v2123_v37 = vsel %vm6654_vm4, %v2118_v24, %v2122_v6  ;;  %v2128_v36 = vshll.u32 %v5216_v12, 16  ;;  %v2134_v38 = vshll.u32 %v6758_v20, 16 }
  0x3b   : > { %v2138_v39 = vshrl.u32 %v6758_v20, 16  ;;  %v5256_v43 = vcombine.low %v2113_v23, %v2123_v37  ;;  %v328_v44 = vrot.slane %v327_v27, 4  ;;  %v337_v45 = vor.u32 %v336_v29, %v332_v25  ;;  %v6789_v23 = vld [vmem:[%s6628_s25 + $0x50] sm:$0x1]  ;;  %v6793_v27 = vld [vmem:[%s6628_s25 + $0x48] sm:$0xf] }
  0x3c   : > { %v2127_v47 = vrot.slane %v2125_v35, 4  ;;  %v2130_v48 = vrot.slane %v2128_v36, 5  ;;  %v2136_v49 = vrot.slane %v2134_v38, 5  ;;  %v2144_v51 = vshll.u32 %v6763_v34, 16  ;;  %v6796_v36 = vld [vmem:[%s6628_s25 + $0x4c] sm:$0xf] }
  0x3d   : > { %v2140_v50 = vrot.slane %v2138_v39, 4  ;;  %6020 = vmatmul.mubr.msk.bf16.gmra.mrb[4].mxu0 %vm658_vm3, %v5256_v43  ;;  %v333_v52 = vsel %vm6654_vm4, %v328_v44, %v332_v25  ;;  %v338_v53 = vrot.slane %v337_v45, 4  ;;  %v345_v55 = vshrl.u32 %v182_v42, 16 }
  0x3e   : > { %v348_v56 = vshll.u32 %v182_v42, 16  ;;  %v2131_v57 = vor.u32 %v2130_v48, %v2127_v47  ;;  %v2146_v59 = vrot.slane %v2144_v51, 5  ;;  %v354_v0 = vshll.u32 %v183_v26, 16 }
  0x3f   : > { %v2141_v58 = vor.u32 %v2140_v50, %v2136_v49  ;;  %v343_v4 = vsel %vm6654_vm4, %v338_v53, %v342_v31  ;;  %v347_v5 = vrot.slane %v345_v55, 4  ;;  %v358_v7 = vshrl.u32 %v183_v26, 16  ;;  %v211_v26 = vld [vmem:[%s6628_s25 + $0x50] sm:$0x1]  ;;  %v5222_v53 = vld [vmem:[%s6628_s25 + $0x54] sm:$0xf] }
  0x40   : > { %v350_v6 = vrot.slane %v348_v56, 5  ;;  %v5030_v9 = vcombine.low %v333_v52, %v343_v4  ;;  %v2132_v17 = vrot.slane %v2131_v57, 4  ;;  %v356_v11 = vrot.slane %v354_v0, 5  ;;  %v6812_v4 = vld [vmem:[%s6628_s25 + $0x58] sm:$0xf] }
  0x41   : > { %v2142_v10 = vrot.slane %v2141_v58, 4  ;;  %v360_v13 = vrot.slane %v358_v7, 4  ;;  %v364_v14 = vshll.u32 %v210_v61, 16  ;;  %v2149_v18 = vshrl.u32 %v5219_v2, 16 }
  0x42   : > { %v351_v12 = vor.u32 %v350_v6, %v347_v5  ;;  %5887 = vmatprep.mubr.msk.bf16.mxu1 %vm658_vm3, %v5030_v9  ;;  %v2137_v19 = vsel %vm6654_vm4, %v2132_v17, %v2136_v49  ;;  %v2152_v24 = vshll.u32 %v5219_v2, 16  ;;  %v2158_v25 = vshll.u32 %v6781_v8, 16 }
  0x43   : > { %v2147_v21 = vsel %vm6654_vm4, %v2142_v10, %v2146_v59  ;;  %v361_v35 = vor.u32 %v360_v13, %v356_v11  ;;  %v366_v37 = vrot.slane %v364_v14, 5  ;;  %v2151_v38 = vrot.slane %v2149_v18, 4 }
  0x44   : > { %v5257_v29 = vcombine.low %v2137_v19, %v2147_v21  ;;  %v352_v31 = vrot.slane %v351_v12, 4  ;;  %v2154_v39 = vrot.slane %v2152_v24, 5  ;;  %v2160_v42 = vrot.slane %v2158_v25, 5  ;;  %v6818_v12 = vld [vmem:[%s6628_s25 + $0x5c] sm:$0x1] }
  0x45   : > { %v2162_v43 = vshrl.u32 %v6781_v8, 16  ;;  %v362_v45 = vrot.slane %v361_v35, 4  ;;  %v2168_v47 = vshll.u32 %v6789_v23, 16  ;;  %v369_v48 = vshrl.u32 %v6793_v27, 16  ;;  %v6822_v24 = vld [vmem:[%s6628_s25 + $0x54] sm:$0xf] }
  0x46   : > { %6023 = vmatprep.mubr.msk.bf16.mxu0 %vm658_vm3, %v5257_v29  ;;  %v357_v44 = vsel %vm6654_vm4, %v352_v31, %v356_v11  ;;  %v2155_v49 = vor.u32 %v2154_v39, %v2151_v38  ;;  %v372_v51 = vshll.u32 %v6793_v27, 16  ;;  %v378_v52 = vshll.u32 %v6796_v36, 16 }
  0x47   : > { %v2164_v50 = vrot.slane %v2162_v43, 4  ;;  %v367_v55 = vsel %vm6654_vm4, %v362_v45, %v366_v37  ;;  %v2170_v56 = vrot.slane %v2168_v47, 5  ;;  %v371_v57 = vrot.slane %v369_v48, 4  ;;  %v6828_v37 = vld [vmem:[%s6628_s25 + $0x58] sm:$0xf] }
  0x48   : > { %v382_v58 = vshrl.u32 %v6796_v36, 16  ;;  %v5031_v59 = vcombine.low %v357_v44, %v367_v55  ;;  %v2156_v61 = vrot.slane %v2155_v49, 4  ;;  %v374_v2 = vrot.slane %v372_v51, 5 }
  0x49   : > { %v2165_v0 = vor.u32 %v2164_v50, %v2160_v42  ;;  %v380_v5 = vrot.slane %v378_v52, 5  ;;  %v388_v7 = vshll.u32 %v211_v26, 16  ;;  %v2173_v9 = vshrl.u32 %v5222_v53, 16  ;;  %v212_v26 = vld [vmem:[%s6628_s25 + $0x5c] sm:$0x1] }
  0x4a   : > { %v384_v6 = vrot.slane %v382_v58, 4  ;;  %5888 = vmatmul.mubr.msk.bf16.gmra.mrb[8].mxu1 %vm658_vm3, %v5031_v59  ;;  %v2161_v17 = vsel %vm6654_vm4, %v2156_v61, %v2160_v42  ;;  %v375_v11 = vor.u32 %v374_v2, %v371_v57  ;;  %v2176_v13 = vshll.u32 %v5222_v53, 16  ;;  %v5225_v53 = vld [vmem:[%s6628_s25 + $0x60] sm:$0xf]  ;;  %v6842_v59 = vld [vmem:[%s6628_s25 + $0x64] sm:$0xf] }
  0x4b   : > { %v2166_v10 = vrot.slane %v2165_v0, 4  ;;  %v390_v18 = vrot.slane %v388_v7, 5  ;;  %v2175_v19 = vrot.slane %v2173_v9, 4  ;;  %v2182_v21 = vshll.u32 %v6812_v4, 16  ;;  %v6849_v9 = vld [vmem:[%s6628_s25 + $0x68] sm:$0x1] }
  0x4c   : > { %v385_v14 = vor.u32 %v384_v6, %v380_v5  ;;  %v376_v29 = vrot.slane %v375_v11, 4  ;;  %v2178_v31 = vrot.slane %v2176_v13, 5  ;;  %v2186_v35 = vshrl.u32 %v6812_v4, 16 }
  0x4d   : > { %v2171_v25 = vsel %vm6654_vm4, %v2166_v10, %v2170_v56  ;;  %v2184_v42 = vrot.slane %v2182_v21, 5  ;;  %v2192_v43 = vshll.u32 %v6818_v12, 16  ;;  %v393_v48 = vshrl.u32 %v6822_v24, 16 }
  0x4e   : > { %v5258_v38 = vcombine.low %v2161_v17, %v2171_v25  ;;  %v386_v39 = vrot.slane %v385_v14, 4  ;;  %v381_v44 = vsel %vm6654_vm4, %v376_v29, %v380_v5  ;;  %v2179_v45 = vor.u32 %v2178_v31, %v2175_v19  ;;  %v6853_v19 = vld [vmem:[%s6628_s25 + $0x60] sm:$0xf] }
  0x4f   : > { %v2188_v47 = vrot.slane %v2186_v35, 4  ;;  %v2194_v50 = vrot.slane %v2192_v43, 5  ;;  %v396_v51 = vshll.u32 %v6822_v24, 16  ;;  %v402_v52 = vshll.u32 %v6828_v37, 16  ;;  %v6859_v35 = vld [vmem:[%s6628_s25 + $0x64] sm:$0xf] }
  0x50   : > { %6024 = vmatmul.mubr.msk.bf16.gmra.mrb[8].mxu0 %vm658_vm3, %v5258_v38  ;;  %v391_v49 = vsel %vm6654_vm4, %v386_v39, %v390_v18  ;;  %v2180_v56 = vrot.slane %v2179_v45, 4  ;;  %v395_v58 = vrot.slane %v393_v48, 4  ;;  %v406_v2 = vshrl.u32 %v6828_v37, 16 }
  0x51   : > { %v5032_v55 = vcombine.low %v381_v44, %v391_v49  ;;  %v2189_v57 = vor.u32 %v2188_v47, %v2184_v42  ;;  %v398_v61 = vrot.slane %v396_v51, 5  ;;  %v404_v0 = vrot.slane %v402_v52, 5 }
  0x52   : > { %v412_v5 = vshll.u32 %v212_v26, 16  ;;  %v2185_v6 = vsel %vm6654_vm4, %v2180_v56, %v2184_v42  ;;  %v2197_v17 = vshrl.u32 %v5225_v53, 16  ;;  %v2200_v10 = vshll.u32 %v5225_v53, 16 }
  0x53   : > { %5891 = vmatprep.mubr.msk.bf16.mxu1 %vm658_vm3, %v5032_v55  ;;  %v2190_v7 = vrot.slane %v2189_v57, 4  ;;  %v399_v11 = vor.u32 %v398_v61, %v395_v58  ;;  %v408_v13 = vrot.slane %v406_v2, 4  ;;  %v2206_v18 = vshll.u32 %v6842_v59, 16  ;;  %v5285_v58 = vld [vmem:[%s6628_s25 + $0xc] sm:$0xe] }
  0x54   : > { %v414_v14 = vrot.slane %v412_v5, 5  ;;  %v2199_v25 = vrot.slane %v2197_v17, 4  ;;  %v2202_v29 = vrot.slane %v2200_v10, 5  ;;  %v2210_v31 = vshrl.u32 %v6842_v59, 16 }
  0x55   : > { %v2195_v21 = vsel %vm6654_vm4, %v2190_v7, %v2194_v50  ;;  %v400_v39 = vrot.slane %v399_v11, 4  ;;  %v409_v42 = vor.u32 %v408_v13, %v404_v0  ;;  %v2208_v43 = vrot.slane %v2206_v18, 5  ;;  %v213_v50 = vld [vmem:[%s6628_s25 + $0x68] sm:$0x1] }
  0x56   : > { %v5259_v38 = vcombine.low %v2185_v6, %v2195_v21  ;;  %v2203_v44 = vor.u32 %v2202_v29, %v2199_v25  ;;  %v2212_v45 = vrot.slane %v2210_v31, 4  ;;  %v2216_v47 = vshll.u32 %v6849_v9, 16  ;;  %v6887_v29 = vld [vmem:[%s6628_s25 + $0x70] sm:$0xf] }
  0x57   : > { %v417_v26 = vshrl.u32 %v6853_v19, 16  ;;  %v405_v48 = vsel %vm6654_vm4, %v400_v39, %v404_v0  ;;  %v410_v49 = vrot.slane %v409_v42, 4  ;;  %v420_v51 = vshll.u32 %v6853_v19, 16  ;;  %v6874_v0 = vld [vmem:[%s6628_s25 + $0x6c] sm:$0xf] }
  0x58   : > { %6027 = vmatprep.mubr.msk.bf16.mxu0 %vm658_vm3, %v5259_v38  ;;  %v426_v52 = vshll.u32 %v6859_v35, 16  ;;  %v2204_v53 = vrot.slane %v2203_v44, 4  ;;  %v2213_v55 = vor.u32 %v2212_v45, %v2208_v43  ;;  %v2218_v56 = vrot.slane %v2216_v47, 5 }
  0x59   : > { %v419_v57 = vrot.slane %v417_v26, 4  ;;  %v415_v61 = vsel %vm6654_vm4, %v410_v49, %v414_v14  ;;  %v422_v2 = vrot.slane %v420_v51, 5  ;;  %v430_v6 = vshrl.u32 %v6859_v35, 16  ;;  %v214_v26 = vld [vmem:[%s6628_s25 + $0x74] sm:$0x1] }
  0x5a   : > { %v428_v5 = vrot.slane %v426_v52, 5  ;;  %v5033_v7 = vcombine.low %v405_v48, %v415_v61  ;;  %v2209_v17 = vsel %vm6654_vm4, %v2204_v53, %v2208_v43  ;;  %v2214_v10 = vrot.slane %v2213_v55, 4  ;;  %v5286_v48 = vld [vmem:[%s6628_s25 + $0x18] sm:$0xe] }
  0x5b   : > { %v436_v11 = vshll.u32 %v213_v50, 16  ;;  %v423_v14 = vor.u32 %v422_v2, %v419_v57  ;;  %v432_v18 = vrot.slane %v430_v6, 4  ;;  %v5301_v21 = vrot.slane %v5285_v58, 9  ;;  %v6906_v53 = vld [vmem:[%s6628_s25 + $0x78] sm:$0xf] }
  0x5c   : > { %v2774_v25 = vrot.slane %v2772_v62, 4  ;;  %5892 = vmatmul.mubr.msk.bf16.gmra.mrb[12].mxu1 %vm658_vm3, %v5033_v7  ;;  %v2219_v31 = vsel %vm6654_vm4, %v2214_v10, %v2218_v56  ;;  %v441_v39 = vshrl.u32 %v6874_v0, 16  ;;  %v444_v42 = vshll.u32 %v6874_v0, 16  ;;  %v215_v57 = vld [vmem:[%s6628_s25 + $0x80] sm:$0x1] }
  0x5d   : > { %v438_v38 = vrot.slane %v436_v11, 5  ;;  %v5260_v43 = vcombine.low %v2209_v17, %v2219_v31  ;;  %v424_v44 = vrot.slane %v423_v14, 4  ;;  %v433_v45 = vor.u32 %v432_v18, %v428_v5  ;;  %v5287_v10 = vld [vmem:[%s6628_s25 + $0x24] sm:$0xe] }
  0x5e   : > { %v2773_v47 = vsel %vm6880_vm7, %v5301_v21, %v2772_v62  ;;  %v2776_v49 = vsel %vm6880_vm7, %v2774_v25, %v2775_v63  ;;  %v443_v50 = vrot.slane %v441_v39, 4  ;;  %v446_v51 = vrot.slane %v444_v42, 5  ;;  %v6932_v39 = vld [vmem:[%s6628_s25 + $0x84] sm:$0xf] }
  0x5f   : > { %v450_v52 = vshll.u32 %v6887_v29, 16  ;;  %6028 = vmatmul.mubr.msk.bf16.gmra.mrb[12].mxu0 %vm658_vm3, %v5260_v43  ;;  %v429_v15 = vsel %vm6654_vm4, %v424_v44, %v428_v5  ;;  %v434_v62 = vrot.slane %v433_v45, 4  ;;  %v5318_v55 = vcombine.low %v2773_v47, %v2776_v49  ;;  %v6940_v43 = vld [vmem:[%s6628_s25 + $0x88] sm:$0xf] }
  0x60   : > { %v454_v56 = vshrl.u32 %v6887_v29, 16  ;;  %v447_v63 = vor.u32 %v446_v51, %v443_v50  ;;  %v460_v61 = vshll.u32 %v214_v26, 16  ;;  %v5302_v2 = vrot.slane %v5286_v48, 9 }
  0x61   : > { %v452_v58 = vrot.slane %v450_v52, 5  ;;  %v439_v6 = vsel %vm6654_vm4, %v434_v62, %v438_v38  ;;  %6049 = vmatprep.mubr.msk.bf16.mxu0 %vm658_vm3, %v5318_v55  ;;  %v2783_v5 = vsel %vm6880_vm7, %v6697_v30, %v2782_v28  ;;  %v465_v17 = vshrl.u32 %v6906_v53, 16  ;;  %v216_v52 = vld [vmem:[%s6628_s25 + $0x8c] sm:$0x1] }
  0x62   : > { %v456_v7 = vrot.slane %v454_v56, 4  ;;  %v5034_v11 = vcombine.low %v429_v15, %v439_v6  ;;  %v448_v14 = vrot.slane %v447_v63, 4  ;;  %v462_v18 = vrot.slane %v460_v61, 5 }
  0x63   : > { %v2780_v21 = vsel %vm6880_vm7, %v5302_v2, %v2779_v22  ;;  %v467_v38 = vrot.slane %v465_v17, 4  ;;  %v468_v1 = vshll.u32 %v6906_v53, 16  ;;  %v474_v30 = vshll.u32 %v6913_v16, 16  ;;  %v6945_v22 = vld [vmem:[%s8379_s1 + $0x1c] sm:$0xf] }
  0x64   : > { %v457_v25 = vor.u32 %v456_v7, %v452_v58  ;;  %v5319_v31 = vcombine.low %v2780_v21, %v2783_v5  ;;  %5895 = vmatprep.mubr.msk.bf16.mxu1 %vm658_vm3, %v5034_v11  ;;  %v453_v28 = vsel %vm6654_vm4, %v448_v14, %v452_v58  ;;  %v478_v60 = vshrl.u32 %v6913_v16, 16  ;;  %v6964_v5 = vld [vmem:[%s6628_s25 + $0x90] sm:$0xf] }
  0x65   : > { %v484_v42 = vshll.u32 %v215_v57, 16  ;;  %v470_v45 = vrot.slane %v468_v1, 5  ;;  %v5303_v47 = vrot.slane %v5287_v10, 9  ;;  %v2786_v26 = vrot.slane %v6704_v46, 5  ;;  %v5288_v57 = vld [vmem:[%s6628_s25 + $0x30] sm:$0xe] }
  0x66   : > { %v458_v44 = vrot.slane %v457_v25, 4  ;;  %v476_v48 = vrot.slane %v474_v30, 5  ;;  %v480_v49 = vrot.slane %v478_v60, 4  ;;  %v2789_v51 = vrot.slane %v6713_v54, 5  ;;  %v6976_v30 = vld [vmem:[%s6628_s25 + $0x94] sm:$0xf] }
  0x67   : > { %v486_v50 = vrot.slane %v484_v42, 5  ;;  %6050 = vmatmul.mubr.msk.bf16.vlgmr.msra.gmra.mrb[0].mxu0 %vm658_vm3, %v5319_v31  ;;  %v471_v62 = vor.u32 %v470_v45, %v467_v38  ;;  %v2787_v55 = vsel %vm6880_vm7, %v5303_v47, %v2786_v26  ;;  %v2788_v56 = vrot.slane %v2786_v26, 4  ;;  %v217_v60 = vld [vmem:[%s6628_s25 + $0x98] sm:$0x1]  ;;  %v5289_v26 = vld [vmem:[%s6628_s25 + $0x3c] sm:$0xe] }
  0x68   : > { %v463_v15 = vsel %vm6654_vm4, %v458_v44, %v462_v18  ;;  %6082 = vmatpush3.bf16.msra.mxu0 %v6664_v41  ;;  %v481_v46 = vor.u32 %v480_v49, %v476_v48  ;;  %v489_v58 = vshrl.u32 %v6932_v39, 16  ;;  %v492_v54 = vshll.u32 %v6932_v39, 16 }
  0x69   : > { %v5035_v63 = vcombine.low %v453_v28, %v463_v15  ;;  %v472_v61 = vrot.slane %v471_v62, 4  ;;  %v2790_v2 = vsel %vm6880_vm7, %v2788_v56, %v2789_v51  ;;  %v498_v6 = vshll.u32 %v6940_v43, 16  ;;  %6449 = vmatprep.subr.msk.bf16.mxu0 %vm707_vm0, %v6945_v22 }
  0x6a   : > { %v502_v7 = vshrl.u32 %v6940_v43, 16  ;;  %v482_v41 = vrot.slane %v481_v46, 4  ;;  %v5320_v17 = vcombine.low %v2787_v55, %v2790_v2  ;;  %v491_v10 = vrot.slane %v489_v58, 4  ;;  %v6996_v46 = vld [vmem:[%s6628_s25 + $0xa0] sm:$0xf] }
  0x6b   : > { %5896 = vmatmul.mubr.msk.bf16.gmra.mrb[16].mxu1 %vm658_vm3, %v5035_v63  ;;  %v494_v11 = vrot.slane %v492_v54, 5  ;;  %v477_v14 = vsel %vm6654_vm4, %v472_v61, %v476_v48  ;;  %v500_v18 = vrot.slane %v498_v6, 5  ;;  %v508_v25 = vshll.u32 %v216_v52, 16  ;;  %v6985_v52 = vld [vmem:[%s6628_s25 + $0x9c] sm:$0xf] }
  0x6c   : > { %v504_v21 = vrot.slane %v502_v7, 4  ;;  %v487_v31 = vsel %vm6654_vm4, %v482_v41, %v486_v50  ;;  %6053 = vmatprep.mubr.msk.bf16.mxu0 %vm658_vm3, %v5320_v17  ;;  %v5304_v1 = vrot.slane %v5288_v57, 9  ;;  %v2793_v28 = vrot.slane %v6733_v33, 5 }
  0x6d   : > { %v495_v38 = vor.u32 %v494_v11, %v491_v10  ;;  %v5036_v42 = vcombine.low %v477_v14, %v487_v31  ;;  %v510_v45 = vrot.slane %v508_v25, 5  ;;  %v2796_v47 = vrot.slane %v6741_v40, 5  ;;  %v218_v10 = vld [vmem:[%s6628_s25 + $0xa4] sm:$0x1]  ;;  %v5290_v11 = vld [vmem:[%s6628_s25 + $0x48] sm:$0xe] }
  0x6e   : > { %v505_v44 = vor.u32 %v504_v21, %v500_v18  ;;  %v2794_v49 = vsel %vm6880_vm7, %v5304_v1, %v2793_v28  ;;  %v2795_v50 = vrot.slane %v2793_v28, 4  ;;  %v513_v51 = vshrl.u32 %v6964_v5, 16 }
  0x6f   : > { %v496_v48 = vrot.slane %v495_v38, 4  ;;  %5899 = vmatprep.mubr.msk.bf16.mxu1 %vm658_vm3, %v5036_v42  ;;  %v516_v15 = vshll.u32 %v6964_v5, 16  ;;  %v522_v62 = vshll.u32 %v6976_v30, 16  ;;  %v526_v40 = vshrl.u32 %v6976_v30, 16 }
  0x70   : > { %v506_v33 = vrot.slane %v505_v44, 4  ;;  %v2797_v56 = vsel %vm6880_vm7, %v2795_v50, %v2796_v47  ;;  %v515_v57 = vrot.slane %v513_v51, 4  ;;  %v532_v63 = vshll.u32 %v217_v60, 16 }
  0x71   : > { %v501_v55 = vsel %vm6654_vm4, %v496_v48, %v500_v18  ;;  %v5321_v54 = vcombine.low %v2794_v49, %v2797_v56  ;;  %v518_v61 = vrot.slane %v516_v15, 5  ;;  %v524_v2 = vrot.slane %v522_v62, 5  ;;  %v7022_v56 = vld [vmem:[%s6628_s25 + $0xac] sm:$0xf] }
  0x72   : > { %v511_v58 = vsel %vm6654_vm4, %v506_v33, %v510_v45  ;;  %v528_v7 = vrot.slane %v526_v40, 4  ;;  %v534_v41 = vrot.slane %v532_v63, 5  ;;  %v5305_v17 = vrot.slane %v5289_v26, 9  ;;  %v7017_v33 = vld [vmem:[%s6628_s25 + $0xa8] sm:$0xf] }
  0x73   : > { %v5037_v6 = vcombine.low %v501_v55, %v511_v58  ;;  %6054 = vmatmul.mubr.msk.bf16.gmra.mrb[4].mxu0 %vm658_vm3, %v5321_v54  ;;  %v519_v14 = vor.u32 %v518_v61, %v515_v57  ;;  %v2800_v18 = vrot.slane %v6758_v20, 5  ;;  %v2803_v21 = vrot.slane %v6763_v34, 5  ;;  %v219_v61 = vld [vmem:[%s6628_s25 + $0xb0] sm:$0x1] }
  0x74   : > { %v537_v25 = vshrl.u32 %v6985_v52, 16  ;;  %v529_v31 = vor.u32 %v528_v7, %v524_v2  ;;  %v540_v38 = vshll.u32 %v6985_v52, 16  ;;  %v546_v1 = vshll.u32 %v6996_v46, 16 }
  0x75   : > { %5900 = vmatmul.mubr.msk.bf16.gmra.mrb[20].mxu1 %vm658_vm3, %v5037_v6  ;;  %v550_v28 = vshrl.u32 %v6996_v46, 16  ;;  %v520_v60 = vrot.slane %v519_v14, 4  ;;  %v2801_v42 = vsel %vm6880_vm7, %v5305_v17, %v2800_v18  ;;  %v2802_v20 = vrot.slane %v2800_v18, 4  ;;  %v7037_v14 = vld [vmem:[%s6628_s25 + $0xb4] sm:$0xf] }
  0x76   : > { %v539_v44 = vrot.slane %v537_v25, 4  ;;  %v530_v34 = vrot.slane %v529_v31, 4  ;;  %v542_v45 = vrot.slane %v540_v38, 5  ;;  %v548_v47 = vrot.slane %v546_v1, 5 }
  0x77   : > { %v552_v26 = vrot.slane %v550_v28, 4  ;;  %v525_v48 = vsel %vm6654_vm4, %v520_v60, %v524_v2  ;;  %v2804_v49 = vsel %vm6880_vm7, %v2802_v20, %v2803_v21  ;;  %v556_v50 = vshll.u32 %v218_v10, 16  ;;  %v5291_v2 = vld [vmem:[%s6628_s25 + $0x54] sm:$0xe] }
  0x78   : > { %v5306_v51 = vrot.slane %v5290_v11, 9  ;;  %v535_v15 = vsel %vm6654_vm4, %v530_v34, %v534_v41  ;;  %v5322_v62 = vcombine.low %v2801_v42, %v2804_v49  ;;  %v543_v40 = vor.u32 %v542_v45, %v539_v44  ;;  %v7046_v42 = vld [vmem:[%s6628_s25 + $0xb8] sm:$0xf]  ;;  %v220_v49 = vld [vmem:[%s6628_s25 + $0xbc] sm:$0x1] }
  0x79   : > { %v553_v55 = vor.u32 %v552_v26, %v548_v47  ;;  %v5038_v57 = vcombine.low %v525_v48, %v535_v15  ;;  %v558_v63 = vrot.slane %v556_v50, 5  ;;  %v2807_v58 = vrot.slane %v6781_v8, 5 }
  0x7a   : > { %v2810_v54 = vrot.slane %v6789_v23, 5  ;;  %6057 = vmatprep.mubr.msk.bf16.mxu0 %vm658_vm3, %v5322_v62  ;;  %v544_v6 = vrot.slane %v543_v40, 4  ;;  %v561_v41 = vshrl.u32 %v7017_v33, 16  ;;  %v564_v17 = vshll.u32 %v7017_v33, 16 }
  0x7b   : > { %v554_v7 = vrot.slane %v553_v55, 4  ;;  %5903 = vmatprep.mubr.msk.bf16.mxu1 %vm658_vm3, %v5038_v57  ;;  %v2808_v10 = vsel %vm6880_vm7, %v5306_v51, %v2807_v58  ;;  %v2809_v11 = vrot.slane %v2807_v58, 4  ;;  %v570_v8 = vshll.u32 %v7022_v56, 16  ;;  %v5292_v55 = vld [vmem:[%s6628_s25 + $0x60] sm:$0xe] }
  0x7c   : > { %v574_v23 = vshrl.u32 %v7022_v56, 16  ;;  %v549_v18 = vsel %vm6654_vm4, %v544_v6, %v548_v47  ;;  %v563_v25 = vrot.slane %v561_v41, 4  ;;  %v566_v31 = vrot.slane %v564_v17, 5  ;;  %v5293_v6 = vld [vmem:[%s6628_s25 + $0x6c] sm:$0xe] }
  0x7d   : > { %v559_v21 = vsel %vm6654_vm4, %v554_v7, %v558_v63  ;;  %v2811_v1 = vsel %vm6880_vm7, %v2809_v11, %v2810_v54  ;;  %v572_v28 = vrot.slane %v570_v8, 5  ;;  %v580_v34 = vshll.u32 %v219_v61, 16  ;;  %v5229_v11 = vld [vmem:[%s6628_s25 + $0x70] sm:$0xf]  ;;  %v5230_v8 = vld [vmem:[%s6628_s25 + $0x74] sm:$0x1] }
  0x7e   : > { %v5039_v38 = vcombine.low %v549_v18, %v559_v21  ;;  %v576_v60 = vrot.slane %v574_v23, 4  ;;  %v5323_v20 = vcombine.low %v2808_v10, %v2811_v1  ;;  %v567_v44 = vor.u32 %v566_v31, %v563_v25 }
  0x7f   : > { %v5307_v45 = vrot.slane %v5291_v2, 9  ;;  %v2814_v26 = vrot.slane %v6812_v4, 5  ;;  %v2817_v48 = vrot.slane %v6818_v12, 5  ;;  %v585_v50 = vshrl.u32 %v7037_v14, 16 }
  0x80   : > { %5904 = vmatmul.mubr.msk.bf16.gmra.mrb[24].mxu1 %vm658_vm3, %v5039_v38  ;;  %v577_v47 = vor.u32 %v576_v60, %v572_v28  ;;  %6058 = vmatmul.mubr.msk.bf16.gmra.mrb[8].mxu0 %vm658_vm3, %v5323_v20  ;;  %v568_v51 = vrot.slane %v567_v44, 4  ;;  %v582_v15 = vrot.slane %v580_v34, 5  ;;  %v588_v62 = vshll.u32 %v7037_v14, 16 }
  0x81   : > { %v594_v40 = vshll.u32 %v7046_v42, 16  ;;  %v2815_v4 = vsel %vm6880_vm7, %v5307_v45, %v2814_v26  ;;  %v2816_v12 = vrot.slane %v2814_v26, 4  ;;  %v587_v63 = vrot.slane %v585_v50, 4 }
  0x82   : > { %v578_v57 = vrot.slane %v577_v47, 4  ;;  %v573_v58 = vsel %vm6654_vm4, %v568_v51, %v572_v28  ;;  %v590_v54 = vrot.slane %v588_v62, 5  ;;  %v598_v2 = vshrl.u32 %v7046_v42, 16  ;;  %v5294_v47 = vld [vmem:[%s6628_s25 + $0x78] sm:$0xe] }
  0x83   : > { %v596_v61 = vrot.slane %v594_v40, 5  ;;  %v2818_v41 = vsel %vm6880_vm7, %v2816_v12, %v2817_v48  ;;  %v604_v17 = vshll.u32 %v220_v49, 16  ;;  %v5308_v10 = vrot.slane %v5292_v55, 9  ;;  %v6508_v51 = vld [vmem:[%s6628_s25] sm:$0xf] }
  0x84   : > { %v583_v7 = vsel %vm6654_vm4, %v578_v57, %v582_v15  ;;  %v5324_v18 = vcombine.low %v2815_v4, %v2818_v41  ;;  %v591_v21 = vor.u32 %v590_v54, %v587_v63  ;;  %v600_v25 = vrot.slane %v598_v2, 4  ;;  %v7084_v15 = vld [vmem:[%s6628_s25 + $0x4] sm:$0xf]  ;;  %v7088_v40 = vld [vmem:[%s6628_s25 + $0x7c] sm:$0xf] }
  0x85   : > { %v5040_v23 = vcombine.low %v573_v58, %v583_v7  ;;  %v606_v31 = vrot.slane %v604_v17, 5  ;;  %v2821_v38 = vrot.slane %v6842_v59, 5  ;;  %v2824_v1 = vrot.slane %v6849_v9, 5  ;;  %v7091_v55 = vld [vmem:[%s6628_s25 + $0x80] sm:$0x1] }
  0x86   : > { %v5309_v28 = vrot.slane %v5293_v6, 9  ;;  %6061 = vmatprep.mubr.msk.bf16.mxu0 %vm658_vm3, %v5324_v18  ;;  %v592_v60 = vrot.slane %v591_v21, 4  ;;  %v601_v20 = vor.u32 %v600_v25, %v596_v61  ;;  %v2828_v44 = vrot.slane %v5229_v11, 5  ;;  %v5235_v57 = vld [vmem:[%s6628_s25 + $0x88] sm:$0xf] }
  0x87   : > { %5907 = vmatprep.mubr.msk.bf16.mxu1 %vm658_vm3, %v5040_v23  ;;  %v2831_v34 = vrot.slane %v5230_v8, 5  ;;  %v2822_v45 = vsel %vm6880_vm7, %v5308_v10, %v2821_v38  ;;  %v2823_v59 = vrot.slane %v2821_v38, 4  ;;  %v5058_v62 = vcombine.low %v6508_v51, %v7084_v15  ;;  %v5236_v54 = vld [vmem:[%s6628_s25 + $0x8c] sm:$0x1]  ;;  %v5238_v17 = vld [vmem:[%s6628_s25 + $0x94] sm:$0xf] }
  0x88   : > { %v597_v9 = vsel %vm6654_vm4, %v592_v60, %v596_v61  ;;  %v602_v26 = vrot.slane %v601_v20, 4  ;;  %v2829_v48 = vsel %vm6880_vm7, %v5309_v28, %v2828_v44  ;;  %v2830_v49 = vrot.slane %v2828_v44, 4  ;;  %v5295_v61 = vld [vmem:[%s6628_s25 + $0x84] sm:$0xe]  ;;  %v5296_v23 = vld [vmem:[%s6628_s25 + $0x90] sm:$0xe] }
  0x89   : > { %v2825_v50 = vsel %vm6880_vm7, %v2823_v59, %v2824_v1  ;;  %v5310_v58 = vrot.slane %v5294_v47, 9  ;;  %v2835_v7 = vrot.slane %v7088_v40, 5  ;;  %v2838_v41 = vrot.slane %v7091_v55, 5  ;;  %v5239_v25 = vld [vmem:[%s6628_s25 + $0x98] sm:$0x1] }
  0x8a   : > { %v607_v4 = vsel %vm6654_vm4, %v602_v26, %v606_v31  ;;  %v5325_v12 = vcombine.low %v2822_v45, %v2825_v50  ;;  %v2832_v63 = vsel %vm6880_vm7, %v2830_v49, %v2831_v34  ;;  %v5311_v10 = vrot.slane %v5295_v61, 9  ;;  %v5241_v31 = vld [vmem:[%s6628_s25 + $0xa0] sm:$0xf]  ;;  %v5242_v60 = vld [vmem:[%s6628_s25 + $0xa4] sm:$0x1] }
  0x8b   : > { %v5041_v2 = vcombine.low %v597_v9, %v607_v4  ;;  %v5326_v6 = vcombine.low %v2829_v48, %v2832_v63  ;;  %v2842_v11 = vrot.slane %v5235_v57, 5  ;;  %v2845_v8 = vrot.slane %v5236_v54, 5  ;;  %v5297_v20 = vld [vmem:[%s6628_s25 + $0x9c] sm:$0xe]  ;;  %v6510_v44 = vld [vmem:[%s6628_s25 + $0xc] sm:$0xf] }
  0x8c   : > { %6062 = vmatmul.mubr.msk.bf16.gmra.mrb[12].mxu0 %vm658_vm3, %v5325_v12  ;;  %v2836_v18 = vsel %vm6880_vm7, %v5310_v58, %v2835_v7  ;;  %v2837_v21 = vrot.slane %v2835_v7, 4  ;;  %v2849_v28 = vrot.slane %v5238_v17, 5  ;;  %v7118_v34 = vld [vmem:[%s6628_s25 + $0x10] sm:$0xf]  ;;  %v6512_v47 = vld [vmem:[%s6628_s25 + $0x18] sm:$0xf] }
  0x8d   : > { %5908 = vmatmul.mubr.msk.bf16.gmra.mrb[28].mxu1 %vm658_vm3, %v5041_v2  ;;  %6065 = vmatprep.mubr.msk.bf16.mxu0 %vm658_vm3, %v5326_v6  ;;  %v2843_v38 = vsel %vm6880_vm7, %v5311_v10, %v2842_v11  ;;  %v2844_v1 = vrot.slane %v2842_v11, 4  ;;  %v5059_v45 = vcombine.low %v6510_v44, %v7118_v34  ;;  %v7125_v9 = vld [vmem:[%s6628_s25 + $0x1c] sm:$0xf]  ;;  %v5312_v48 = vrot.slane %v5296_v23, 9  ;;  %v5244_v57 = vld [vmem:[%s6628_s25 + $0xac] sm:$0xf] }
  0x8e   : > { %5913 = vmatprep.mubr.msk.bf16.mxu1 %vm658_vm3, %v5058_v62  ;;  %v2839_v59 = vsel %vm6880_vm7, %v2837_v21, %v2838_v41  ;;  %v5060_v26 = vcombine.low %v6512_v47, %v7125_v9  ;;  %v2851_v51 = vrot.slane %v2849_v28, 4  ;;  %v2852_v62 = vrot.slane %v5239_v25, 5  ;;  %v6514_v54 = vld [vmem:[%s8379_s1 + $0x8] sm:$0xf]  ;;  %v5247_v2 = vld [vmem:[%s6628_s25 + $0xb8] sm:$0xf] }
  0x8f   : > { %v5327_v49 = vcombine.low %v2836_v18, %v2839_v59  ;;  %v2846_v50 = vsel %vm6880_vm7, %v2844_v1, %v2845_v8  ;;  %v5313_v12 = vrot.slane %v5297_v20, 9  ;;  %v2856_v63 = vrot.slane %v5241_v31, 5  ;;  %v7140_v7 = vld [vmem:[%s8379_s1 + $0xc] sm:$0xf]  ;;  %v5245_v10 = vld [vmem:[%s6628_s25 + $0xb0] sm:$0x1] }
  0x90   : > { %v5328_v4 = vcombine.low %v2843_v38, %v2846_v50  ;;  %v2859_v58 = vrot.slane %v5242_v60, 5  ;;  %v1426_v61 = vsel %vm707_vm0, %v6514_v54, 0  ;;  %v2850_v41 = vsel %vm6880_vm7, %v5312_v48, %v2849_v28  ;;  %v5298_v11 = vld [vmem:[%s6628_s25 + $0xa8] sm:$0xe]  ;;  %v5248_v25 = vld [vmem:[%s6628_s25 + $0xbc] sm:$0x1] }
  0x91   : > { %v2858_v6 = vrot.slane %v2856_v63, 4  ;;  %v2853_v17 = vsel %vm6880_vm7, %v2851_v51, %v2852_v62  ;;  %v2863_v8 = vrot.slane %v5244_v57, 5  ;;  %v2857_v23 = vsel %vm6880_vm7, %v5313_v12, %v2856_v63  ;;  %v5299_v31 = vld [vmem:[%s6628_s25 + $0xb4] sm:$0xe]  ;;  %v6515_v38 = vld [vmem:[%s6628_s25 + $0x24] sm:$0xf] }
  0x92   : > { %v2870_v21 = vrot.slane %v5247_v2, 5  ;;  %v7161_v1 = vld [vmem:[%s6628_s25 + $0x28] sm:$0xf]  ;;  %v5329_v60 = vcombine.low %v2850_v41, %v2853_v17  ;;  %v5314_v44 = vrot.slane %v5298_v11, 9  ;;  %v2866_v59 = vrot.slane %v5245_v10, 5 }
  0x93   : > { %v2860_v18 = vsel %vm6880_vm7, %v2858_v6, %v2859_v58  ;;  %v5061_v28 = vcombine.low %v6515_v38, %v7161_v1  ;;  %v6517_v47 = vld [vmem:[%s6628_s25 + $0x30] sm:$0xf]  ;;  %v2873_v51 = vrot.slane %v5248_v25, 5  ;;  %v5250_v62 = vld [vmem:[%s6628_s25 + $0xc4] sm:$0xf]  ;;  %v2258_v25 = vshrl.u32 %v7088_v40, 16 }
  0x94   : > { %6066 = vmatmul.mubr.msk.bf16.gmra.mrb[16].mxu0 %vm658_vm3, %v5327_v49  ;;  %v5330_v20 = vcombine.low %v2857_v23, %v2860_v18  ;;  %v5315_v49 = vrot.slane %v5299_v31, 9  ;;  %v2872_v50 = vrot.slane %v2870_v21, 4  ;;  %v2864_v57 = vsel %vm6880_vm7, %v5314_v44, %v2863_v8  ;;  %v5300_v12 = vld [vmem:[%s6628_s25 + $0xc0] sm:$0xe]  ;;  %v6519_v41 = vld [vmem:[%s6628_s25 + $0x3c] sm:$0xf] }
  0x95   : > { %5914 = vmatmul.mubr.msk.bf16.vlgmr.msra.gmra.mrb[0].mxu1 %vm658_vm3, %v5059_v45  ;;  %6069 = vmatprep.mubr.msk.bf16.mxu0 %vm658_vm3, %v5328_v4  ;;  %v2865_v45 = vrot.slane %v2863_v8, 4  ;;  %v2877_v63 = vrot.slane %v5250_v62, 5  ;;  %v5316_v6 = vrot.slane %v5300_v12, 9  ;;  %v7186_v17 = vld [vmem:[%s6628_s25 + $0x40] sm:$0xf]  ;;  %v5064_v18 = vcombine.low %v6793_v27, %v6796_v36  ;;  %v6471_v62 = vld [vmem:[%s6628_s25 + $0x24] sm:$0xff]  }
  0x96   : > { %5946 = vmatpush3.bf16.msra.mxu1 %v1426_v61  ;;  %5917 = vmatprep.mubr.msk.bf16.mxu1 %vm658_vm3, %v5060_v26  ;;  %v7166_v26 = vld [vmem:[%s6628_s25 + $0x34] sm:$0xf]  ;;  %v2871_v58 = vsel %vm6880_vm7, %v5315_v49, %v2870_v21  ;;  %v2874_v54 = vsel %vm6880_vm7, %v2872_v50, %v2873_v51  ;;  %v5251_v61 = vld [vmem:[%s6628_s25 + $0xc8] sm:$0x1]  ;;  %v5063_v10 = vcombine.low %v6519_v41, %v7186_v17  ;;  %v2254_v21 = vshll.u32 %v7088_v40, 16 }
  0x97   : > { %6444 = vmatprep.subr.msk.bf16.mxu1 %vm707_vm0, %v7140_v7  ;;  %v5062_v48 = vcombine.low %v6517_v47, %v7166_v26  ;;  %v2867_v4 = vsel %vm6880_vm7, %v2865_v45, %v2866_v59  ;;  %v5332_v11 = vcombine.low %v2871_v58, %v2874_v54  ;;  %v2879_v8 = vrot.slane %v2877_v63, 4  ;;  %v1164_v45 = vld [vmem:[%s6628_s25] sm:$0xe]  ;;  %v1165_v59 = vld [vmem:[%s6628_s25 + $0xc] sm:$0xe] }
  0x98   : > { %v5331_v2 = vcombine.low %v2864_v57, %v2867_v4  ;;  %v2880_v23 = vrot.slane %v5251_v61, 5  ;;  %v2878_v31 = vsel %vm6880_vm7, %v5316_v6, %v2877_v63  ;;  %v7201_v27 = vrot.slane %v2254_v21, 5  ;;  %v1168_v41 = vld [vmem:[%s6628_s25 + $0x30] sm:$0xe] }
  0x99   : > { %v2260_v36 = vrot.slane %v2258_v25, 4  ;;  %v5066_v44 = vcombine.low %v6853_v19, %v6859_v35  ;;  %v2264_v47 = vshll.u32 %v7091_v55, 16  ;;  %v5090_v19 = vrot.slane %v1164_v45, 9 }
  0x9a   : > { %v2881_v38 = vsel %vm6880_vm7, %v2879_v8, %v2880_v23  ;;  %8400 = vst [vmem:[#allocation3_spill] sm:$0xff] %v7201_v27  ;;  %v5091_v35 = vrot.slane %v1165_v59, 9  ;;  %v1231_v4 = vrot.slane %v7125_v9, 5  ;;  %v1238_v12 = vrot.slane %v7161_v1, 5  ;;  %v1169_v8 = vld [vmem:[%s6628_s25 + $0x3c] sm:$0xe] }
  0x9b   : > { %v5333_v40 = vcombine.low %v2878_v31, %v2881_v38  ;;  %v2261_v49 = vor.u32 %v2260_v36, %v7201_v27  ;;  %v7221_v51 = vrot.slane %v2264_v47, 5  ;;  %v5067_v58 = vcombine.low %v6874_v0, %v6887_v29  ;;  %v1170_v31 = vld [vmem:[%s6628_s25 + $0x48] sm:$0xe]  ;;  %v6525_v59 = vld [vmem:[%s6628_s25 + $0x38] sm:$0x1] }
  0x9c   : > { %6070 = vmatmul.mubr.msk.bf16.gmra.mrb[20].mxu0 %vm658_vm3, %v5329_v60  ;;  %v5065_v60 = vcombine.low %v6822_v24, %v6828_v37  ;;  %v6522_v24 = vld [vmem:[%s6628_s25 + $0x14] sm:$0x1]  ;;  %v4066_v54 = vsel %vm707_vm0, %v6945_v22, 0  ;;  %v5068_v61 = vcombine.low %v6906_v53, %v6913_v16  ;;  %v5069_v6 = vcombine.low %v6932_v39, %v6940_v43  ;;  %v6523_v16 = vld [vmem:[%s6628_s25 + $0x20] sm:$0x1] }
  0x9d   : > { %5918 = vmatmul.mubr.msk.bf16.gmra.mrb[4].mxu1 %vm658_vm3, %v5061_v28  ;;  %6073 = vmatprep.mubr.msk.bf16.mxu0 %vm658_vm3, %v5330_v20  ;;  %v1224_v28 = vrot.slane %v7118_v34, 5  ;;  %v6469_v20 = vld [vmem:[%s6628_s25 + $0x18] sm:$0xff]   ;;  %v6521_v34 = vld [vmem:[%s6628_s25 + $0x8] sm:$0x1]  ;;  %v1227_v37 = vrot.slane %v6522_v24, 5  ;;  %8401 = vst [vmem:[#allocation4_spill] sm:$0xff] %v7221_v51  ;;  %v5070_v9 = vcombine.low %v6964_v5, %v6976_v30 }
  0x9e   : > { %5921 = vmatprep.mubr.msk.bf16.mxu1 %vm658_vm3, %v5062_v48  ;;  %v1217_v48 = vrot.slane %v7084_v15, 5  ;;  %v1220_v50 = vrot.slane %v6521_v34, 5  ;;  %v1166_v15 = vld [vmem:[%s6628_s25 + $0x18] sm:$0xe]  ;;  %v7226_v63 = vrot.slane %v2261_v49, 4  ;;  %v1234_v22 = vrot.slane %v6523_v16, 5 }
  0x9f   : > { %v1226_v55 = vrot.slane %v1224_v28, 4  ;;  %v5092_v1 = vrot.slane %v1166_v15, 9  ;;  %v7248_v29 = vsel %vm6880_vm7, %v5091_v35, %v1224_v28  ;;  %v1240_v25 = vrot.slane %v1238_v12, 4  ;;  %v5415_v24 = vld [vmem:[%s6628_s25 + $0x18] sm:$0xf] }
  0xa0   : > { %v1219_v57 = vrot.slane %v1217_v48, 4  ;;  %8402 = vst [vmem:[#allocation5_spill] sm:$0xff] %v7226_v63  ;;  %v7244_v0 = vsel %vm6880_vm7, %v5090_v19, %v1217_v48  ;;  %v1248_v47 = vrot.slane %v6525_v59, 5  ;;  %v7285_v49 = vsel %vm707_vm0, %v7140_v7, 0  ;;  %v5416_v7 = vld [vmem:[%s6628_s25 + $0x1c] sm:$0xf] }
  0xa1   : > { %v7252_v53 = vsel %vm6880_vm7, %v1226_v55, %v1227_v37  ;;  %v7289_v34 = vsel %vm6880_vm7, %v5092_v1, %v1231_v4  ;;  %v6475_v37 = vld [vmem:[%s6628_s25 + $0x3c] sm:$0xff]   ;;  %v5095_v35 = vrot.slane %v1169_v8, 9  ;;  %v6526_v55 = vld [vmem:[%s6628_s25 + $0x44] sm:$0x1]  ;;  %v3587_v8 = vshll.u32 %v5415_v24, 16 }
  0xa2   : > { %v7263_v23 = vsel %vm6880_vm7, %v1219_v57, %v1220_v50  ;;  %v1171_v50 = vld [vmem:[%s6628_s25 + $0x54] sm:$0xe]  ;;  %v1255_v15 = vrot.slane %v6526_v55, 5  ;;  %v5419_v39 = vld [vmem:[%s6628_s25 + $0x28] sm:$0xf] }
  0xa3   : > { %v6533_v5 = vld [vmem:[%s6628_s25 + $0x70] sm:$0xf] }
  0xa4   : > { %6074 = vmatmul.mubr.msk.bf16.gmra.mrb[24].mxu0 %vm658_vm3, %v5331_v2  ;;  %v1167_v2 = vld [vmem:[%s6628_s25 + $0x24] sm:$0xe]  ;;  %v1280_v30 = vrot.slane %v6533_v5, 5 }
  0xa5   : > { %5922 = vmatmul.mubr.msk.bf16.gmra.mrb[8].mxu1 %vm658_vm3, %v5063_v10  ;;  %6077 = vmatprep.mubr.msk.bf16.mxu0 %vm658_vm3, %v5332_v11  ;;  %v1245_v10 = vrot.slane %v7166_v26, 5  ;;  %v6473_v11 = vld [vmem:[%s6628_s25 + $0x30] sm:$0xff]   ;;  %v7259_v26 = vld [vmem:[%s8379_s1 + $0x20] sm:$0xf]  ;;  %v5093_v21 = vrot.slane %v1167_v2, 9 }
  0xa6   : > { %5925 = vmatprep.mubr.msk.bf16.mxu1 %vm658_vm3, %v5064_v18  ;;  %v1233_v18 = vrot.slane %v1231_v4, 4  ;;  %v1282_v48 = vrot.slane %v1280_v30, 4 }
  0xa7   : > { %v1247_v45 = vrot.slane %v1245_v10, 4  ;;  %v7296_v19 = vsel %vm6880_vm7, %v5093_v21, %v1238_v12  ;;  %v3597_v21 = vshrl.u32 %v5416_v7, 16 }
  0xa8   : > { %v7305_v4 = vsel %vm6880_vm7, %v1233_v18, %v1234_v22  ;;  %v3584_v22 = vshrl.u32 %v5415_v24, 16  ;;  %v3593_v18 = vshll.u32 %v5416_v7, 16  ;;  %v5418_v24 = vld [vmem:[%s6628_s25 + $0x24] sm:$0xf] }
  0xa9   : > { %v7318_v1 = vsel %vm6880_vm7, %v1247_v45, %v1248_v47 }
  0xaa   : > { %v3586_v43 = vrot.slane %v3584_v22, 4  ;;  %v7360_v7 = vrot.slane %v3593_v18, 5  ;;  %v3611_v22 = vshll.u32 %v5418_v24, 16  ;;  %v3621_v18 = vshrl.u32 %v5419_v39, 16 }
  0xac   : > { %6078 = vmatmul.mubr.msk.bf16.gmra.mrb[28].mxu0 %vm658_vm3, %v5333_v40  ;;  %v6524_v40 = vld [vmem:[%s6628_s25 + $0x2c] sm:$0x1]  ;;  %v3613_v27 = vrot.slane %v3611_v22, 5 }
  0xad   : > { %5926 = vmatmul.mubr.msk.bf16.gmra.mrb[12].mxu1 %vm658_vm3, %v5065_v60  ;;  %6083 = vmatprep.mubr.msk.bf16.mxu0 %vm658_vm3, %v6469_v20  ;;  %v1241_v28 = vrot.slane %v6524_v40, 5  ;;  %v1252_v60 = vrot.slane %v7186_v17, 5  ;;  %v6529_v40 = vld [vmem:[%s6628_s25 + $0x50] sm:$0x1]  ;;  %v6534_v17 = vld [vmem:[%s6628_s25 + $0x74] sm:$0x1] }
  0xae   : > { %5929 = vmatprep.mubr.msk.bf16.mxu1 %vm658_vm3, %v5066_v44  ;;  %v5094_v44 = vrot.slane %v1168_v41, 9  ;;  %v5097_v41 = vrot.slane %v1171_v50, 9  ;;  %v1172_v50 = vld [vmem:[%s6628_s25 + $0x60] sm:$0xe]  ;;  %v5420_v20 = vld [vmem:[%s6628_s25 + $0x2c] sm:$0x1] }
  0xaf   : > { %v1254_v12 = vrot.slane %v1252_v60, 4  ;;  %v7331_v45 = vsel %vm6880_vm7, %v5095_v35, %v1252_v60  ;;  %v6530_v35 = vld [vmem:[%s6628_s25 + $0x5c] sm:$0x1] }
  0xb0   : > { %v7314_v2 = vsel %vm6880_vm7, %v5094_v44, %v1245_v10  ;;  %v1269_v55 = vrot.slane %v6530_v35, 5  ;;  %v1173_v35 = vld [vmem:[%s6628_s25 + $0x6c] sm:$0xe] }
  0xb1   : > { %v7335_v59 = vsel %vm6880_vm7, %v1254_v12, %v1255_v15  ;;  %v6531_v15 = vld [vmem:[%s6628_s25 + $0x64] sm:$0xf]  ;;  %v3599_v12 = vrot.slane %v3597_v21, 4  ;;  %v5099_v5 = vrot.slane %v1173_v35, 9 }
  0xb2   : > { %v6481_v21 = vld [vmem:[%s6628_s25 + $0x60] sm:$0xff]  }
  0xb4   : > { %6084 = vmatmul.mubr.msk.bf16.vlgmr.msra.gmra.mrb[0].mxu0 %vm658_vm3, %v6471_v62  ;;  %v6527_v62 = vld [vmem:[%s6628_s25 + $0x4c] sm:$0xf] }
  0xb5   : > { %5930 = vmatmul.mubr.msk.bf16.gmra.mrb[16].mxu1 %vm658_vm3, %v5067_v58  ;;  %6116 = vmatpush3.bf16.msra.mxu0 %v4066_v54  ;;  %v1259_v57 = vrot.slane %v6527_v62, 5  ;;  %v7309_v58 = vsel %vm6880_vm7, %v1240_v25, %v1241_v28  ;;  %v5096_v54 = vrot.slane %v1170_v31, 9  ;;  %v1262_v28 = vrot.slane %v6529_v40, 5 }
  0xb6   : > { %5933 = vmatprep.mubr.msk.bf16.mxu1 %vm658_vm3, %v5068_v61  ;;  %6087 = vmatprep.mubr.msk.bf16.mxu0 %vm658_vm3, %v6473_v11  ;;  %v6477_v61 = vld [vmem:[%s6628_s25 + $0x48] sm:$0xff]   ;;  %v6528_v11 = vld [vmem:[%s6628_s25 + $0x58] sm:$0xf]  ;;  %v1273_v62 = vrot.slane %v6531_v15, 5  ;;  %v5422_v15 = vld [vmem:[%s6628_s25 + $0x34] sm:$0xf] }
  0xb7   : > { %6450 = vmatprep.subr.msk.bf16.mxu0 %vm707_vm0, %v7259_v26  ;;  %v1266_v16 = vrot.slane %v6528_v11, 5  ;;  %v1261_v31 = vrot.slane %v1259_v57, 4  ;;  %v7339_v47 = vsel %vm6880_vm7, %v5096_v54, %v1259_v57  ;;  %v5417_v57 = vld [vmem:[%s6628_s25 + $0x20] sm:$0x1]  ;;  %v5421_v54 = vld [vmem:[%s6628_s25 + $0x30] sm:$0xf] }
  0xb8   : > { %v5098_v11 = vrot.slane %v1172_v50, 9  ;;  %v3635_v50 = vshll.u32 %v5421_v54, 16  ;;  %v3603_v25 = vshll.u32 %v5417_v57, 16  ;;  %v3641_v36 = vshll.u32 %v5422_v15, 16 }
  0xb9   : > { %v7350_v60 = vsel %vm6880_vm7, %v5097_v41, %v1266_v16  ;;  %v7366_v41 = vsel %vm6880_vm7, %v1261_v31, %v1262_v28  ;;  %v1275_v31 = vrot.slane %v1273_v62, 4  ;;  %v3632_v28 = vshrl.u32 %v5421_v54, 16 }
  0xba   : > { %v7408_v35 = vrot.slane %v3641_v36, 5 }
  0xbc   : > { %6088 = vmatmul.mubr.msk.bf16.gmra.mrb[4].mxu0 %vm658_vm3, %v6475_v37  ;;  %v1268_v37 = vrot.slane %v1266_v16, 4  ;;  %v6532_v16 = vld [vmem:[%s6628_s25 + $0x68] sm:$0x1] }
  0xbd   : > { %5934 = vmatmul.mubr.msk.bf16.gmra.mrb[20].mxu1 %vm658_vm3, %v5069_v6  ;;  %6091 = vmatprep.mubr.msk.bf16.mxu0 %vm658_vm3, %v6477_v61  ;;  %v3589_v6 = vrot.slane %v3587_v8, 5  ;;  %v6479_v61 = vld [vmem:[%s6628_s25 + $0x54] sm:$0xff]   ;;  %v1276_v40 = vrot.slane %v6532_v16, 5  ;;  %v3617_v8 = vshll.u32 %v5419_v39, 16  ;;  %v3600_v16 = vor.u32 %v3599_v12, %v7360_v7 }
  0xbe   : > { %5937 = vmatprep.mubr.msk.bf16.mxu1 %vm658_vm3, %v5070_v9  ;;  %v3608_v9 = vshrl.u32 %v5418_v24, 16  ;;  %v7375_v44 = vsel %vm6880_vm7, %v1268_v37, %v1269_v55  ;;  %v1283_v24 = vrot.slane %v6534_v17, 5  ;;  %v3645_v39 = vshrl.u32 %v5422_v15, 16 }
  0xbf   : > { %v3590_v10 = vor.u32 %v3589_v6, %v3586_v43  ;;  %v7381_v37 = vrot.slane %v3617_v8, 5  ;;  %v3623_v55 = vrot.slane %v3621_v18, 4  ;;  %v8403_v43 = vcombine.low %v6985_v52, %v6996_v46  ;;  %v6535_v8 = vld [vmem:[%s6628_s25 + $0x7c] sm:$0xf]  ;;  %v7417_v18 = vld [vmem:[%s6628_s25 + $0x38] sm:$0x1] }
  0xc0   : > { %v3610_v38 = vrot.slane %v3608_v9, 4  ;;  %v7390_v17 = vsel %vm6880_vm7, %v5098_v11, %v1273_v62  ;;  %v7394_v57 = vsel %vm6880_vm7, %v1275_v31, %v1276_v40  ;;  %v3634_v6 = vrot.slane %v3632_v28, 4  ;;  %8405 = vst [vmem:[#allocation6_spill] sm:$0xff] %v7417_v18 }
  0xc1   : > { %v3637_v12 = vrot.slane %v3635_v50, 5  ;;  %v8404_v52 = vcombine.low %v7017_v33, %v7022_v56  ;;  %v3591_v46 = vrot.slane %v3590_v10, 4  ;;  %v3601_v54 = vrot.slane %v3600_v16, 4  ;;  %v6483_v33 = vld [vmem:[%s6628_s25 + $0x6c] sm:$0xff]   ;;  %v1175_v16 = vld [vmem:[%s6628_s25 + $0x84] sm:$0xe] }
  0xc2   : > { %v3627_v62 = vshll.u32 %v5420_v20, 16  ;;  %v7402_v11 = vsel %vm6880_vm7, %v5099_v5, %v1280_v30  ;;  %v7406_v40 = vsel %vm6880_vm7, %v1282_v48, %v1283_v24  ;;  %v3647_v9 = vrot.slane %v3645_v39, 4  ;;  %v6484_v48 = vld [vmem:[%s6628_s25 + $0x78] sm:$0xff]  }
  0xc3   : > { %v3614_v10 = vor.u32 %v3613_v27, %v3610_v38  ;;  %v3624_v20 = vor.u32 %v3623_v55, %v7381_v37  ;;  %v1287_v30 = vrot.slane %v6535_v8, 5  ;;  %v3638_v38 = vor.u32 %v3637_v12, %v3634_v6  ;;  %v5424_v5 = vld [vmem:[%s6628_s25 + $0x3c] sm:$0xf] }
  0xc4   : > { %6092 = vmatmul.mubr.msk.bf16.gmra.mrb[8].mxu0 %vm658_vm3, %v6479_v61  ;;  %v3605_v61 = vrot.slane %v3603_v25, 5  ;;  %v1174_v25 = vld [vmem:[%s6628_s25 + $0x78] sm:$0xe]  ;;  %v7433_v50 = vrot.slane %v3627_v62, 5  ;;  %v3648_v39 = vor.u32 %v3647_v9, %v7408_v35  ;;  %v3651_v55 = vshll.u32 %v7417_v18, 16 }
  0xc5   : > { %5938 = vmatmul.mubr.msk.bf16.gmra.mrb[24].mxu1 %vm658_vm3, %v8403_v43  ;;  %6095 = vmatprep.mubr.msk.bf16.mxu0 %vm658_vm3, %v6481_v21  ;;  %v3596_v21 = vsel %vm6654_vm4, %v3591_v46, %v7360_v7  ;;  %v5100_v24 = vrot.slane %v1174_v25, 9  ;;  %v6536_v43 = vld [vmem:[%s6628_s25 + $0x88] sm:$0xf]  ;;  %v7441_v7 = vld [vmem:[%s6628_s25 + $0x40] sm:$0xf]  ;;  %v3615_v12 = vrot.slane %v3614_v10, 4  ;;  %v8407_v62 = vcombine.low %v7037_v14, %v7046_v42 }
  0xc6   : > { %5941 = vmatprep.mubr.msk.bf16.mxu1 %vm658_vm3, %v8404_v52  ;;  %v3606_v31 = vsel %vm6654_vm4, %v3601_v54, %v3605_v61  ;;  %v1294_v6 = vrot.slane %v6536_v43, 5  ;;  %8406 = vst [vmem:[#allocation7_spill] sm:$0xff] %v7441_v7  ;;  %v3625_v52 = vrot.slane %v3624_v20, 4  ;;  %v1289_v46 = vrot.slane %v1287_v30, 4  ;;  %v6537_v54 = vld [vmem:[%s6628_s25 + $0x80] sm:$0x1] }
  0xc7   : > { %v1290_v61 = vrot.slane %v6537_v54, 5  ;;  %v3639_v9 = vrot.slane %v3638_v38, 4  ;;  %v5101_v25 = vrot.slane %v1175_v16, 9  ;;  %v3656_v8 = vshrl.u32 %v5424_v5, 16  ;;  %v6485_v10 = vld [vmem:[%s6628_s25 + $0x84] sm:$0xff]  }
  0xc8   : > { %v3659_v43 = vshll.u32 %v5424_v5, 16  ;;  %v7455_v20 = vcombine.low %v3596_v21, %v3606_v31  ;;  %v7459_v14 = vsel %vm707_vm0, %v7259_v26, 0  ;;  %v3669_v38 = vshrl.u32 %v7441_v7, 16  ;;  %v6486_v21 = vld [vmem:[%s6628_s25 + $0x90] sm:$0xff]   ;;  %v6542_v18 = vld [vmem:[%s6628_s25 + $0xa0] sm:$0xf] }
  0xc9   : > { %v3649_v16 = vrot.slane %v3648_v39, 4  ;;  %v3653_v5 = vrot.slane %v3651_v55, 5  ;;  %v1296_v54 = vrot.slane %v1294_v6, 4  ;;  %v3620_v31 = vsel %vm6654_vm4, %v3615_v12, %v7381_v37 }
  0xca   : > { %v3630_v26 = vsel %vm6654_vm4, %v3625_v52, %v7433_v50  ;;  %v7474_v39 = vsel %vm6880_vm7, %v5100_v24, %v1287_v30  ;;  %v7478_v55 = vsel %vm6880_vm7, %v1289_v46, %v1290_v61  ;;  %v3644_v37 = vsel %vm6654_vm4, %v3639_v9, %v7408_v35  ;;  %v5430_v30 = vld [vmem:[%s6628_s25 + $0x54] sm:$0xf]  ;;  %v7495_v24 = vld [vmem:[%s6628_s25 + $0x58] sm:$0xf]  ;;  %v7500_v61 = vld [vmem:[%s6628_s25 + $0x90] sm:$0xe] }
  0xcb   : > { %v7491_v12 = vsel %vm6880_vm7, %v5101_v25, %v1294_v6  ;;  %v3658_v50 = vrot.slane %v3656_v8, 4  ;;  %v3661_v52 = vrot.slane %v3659_v43, 5  ;;  %v3671_v46 = vrot.slane %v3669_v38, 4 }
  0xcc   : > { %6096 = vmatmul.mubr.msk.bf16.gmra.mrb[12].mxu0 %vm658_vm3, %v6483_v33  ;;  %v8408_v33 = vcombine.low %v7244_v0, %v7263_v23  ;;  %v6538_v0 = vld [vmem:[%s6628_s25 + $0x8c] sm:$0x1]  ;;  %v3654_v36 = vsel %vm6654_vm4, %v3649_v16, %v3653_v5  ;;  %v3704_v25 = vshrl.u32 %v5430_v30, 16  ;;  %v3707_v8 = vshll.u32 %v5430_v30, 16 }
  0xcd   : > { %5942 = vmatmul.mubr.msk.bf16.gmra.mrb[28].mxu1 %vm658_vm3, %v8407_v62  ;;  %6099 = vmatprep.mubr.msk.bf16.mxu0 %vm658_vm3, %v6484_v48  ;;  %v3665_v48 = vshll.u32 %v7441_v7, 16  ;;  %v1297_v23 = vrot.slane %v6538_v0, 5  ;;  %v5427_v62 = vld [vmem:[%s6628_s25 + $0x48] sm:$0xf]  ;;  %v7484_v0 = vld [vmem:[%s6628_s25 + $0x4c] sm:$0xf]  ;;  %v8410_v38 = vcombine.low %v7248_v29, %v7252_v53  ;;  %v7518_v16 = vcombine.low %v3620_v31, %v3630_v26 }
  0xce   : > { %5947 = vmatprep.mubr.msk.bf16.mxu1 %vm658_vm3, %v8408_v33  ;;  %v7481_v33 = vld [vmem:[%s6628_s25 + $0x44] sm:$0x1]  ;;  %v3680_v27 = vshrl.u32 %v5427_v62, 16  ;;  %v3683_v15 = vshll.u32 %v5427_v62, 16  ;;  %v3689_v6 = vshll.u32 %v7484_v0, 16  ;;  %v3693_v9 = vshrl.u32 %v7484_v0, 16 }
  0xcf   : > { %8409 = vst [vmem:[#allocation8_spill] sm:$0xff] %v7481_v33  ;;  %v7497_v28 = vrot.slane %v3665_v48, 5  ;;  %v7506_v35 = vsel %vm6880_vm7, %v1296_v54, %v1297_v23  ;;  %v3713_v43 = vshll.u32 %v7495_v24, 16  ;;  %v3717_v48 = vshrl.u32 %v7495_v24, 16  ;;  %v5433_v31 = vld [vmem:[%s6628_s25 + $0x60] sm:$0xf] }
  0xd0   : > { %v3675_v5 = vshll.u32 %v7481_v33, 16  ;;  %v5102_v54 = vrot.slane %v7500_v61, 9  ;;  %v8411_v23 = vcombine.low %v7289_v34, %v7305_v4  ;;  %v7529_v29 = vcombine.low %v3644_v37, %v3654_v36  ;;  %v6487_v26 = vld [vmem:[%s6628_s25 + $0x9c] sm:$0xff]   ;;  %v6488_v30 = vld [vmem:[%s6628_s25 + $0xa8] sm:$0xff]   ;;  %v6539_v36 = vld [vmem:[%s8379_s1 + $0x10] sm:$0xf] }
  0xd1   : > { %v3662_v53 = vor.u32 %v3661_v52, %v3658_v50  ;;  %v3682_v62 = vrot.slane %v3680_v27, 4  ;;  %v7540_v34 = vrot.slane %v3689_v6, 5  ;;  %v3695_v4 = vrot.slane %v3693_v9, 4  ;;  %v6540_v6 = vld [vmem:[%s6628_s25 + $0x94] sm:$0xf] }
  0xd2   : > { %v3706_v27 = vrot.slane %v3704_v25, 4  ;;  %v3709_v37 = vrot.slane %v3707_v8, 5  ;;  %v7549_v50 = vrot.slane %v3713_v43, 5  ;;  %v3719_v52 = vrot.slane %v3717_v48, 4  ;;  %v7555_v9 = vld [vmem:[%s6628_s25 + $0x64] sm:$0xf] }
  0xd3   : > { %8412 = vst [vmem:[#allocation9_spill] sm:$0xff] %v7555_v9  ;;  %v3728_v61 = vshrl.u32 %v5433_v31, 16  ;;  %v7557_v22 = vrot.slane %v3662_v53, 4  ;;  %v1308_v25 = vrot.slane %v6542_v18, 5  ;;  %v3696_v43 = vor.u32 %v3695_v4, %v7540_v34 }
  0xd4   : > { %6100 = vmatmul.mubr.msk.bf16.gmra.mrb[16].mxu0 %vm658_vm3, %v6485_v10  ;;  %v3731_v10 = vshll.u32 %v5433_v31, 16  ;;  %v3710_v31 = vor.u32 %v3709_v37, %v3706_v27  ;;  %v3720_v53 = vor.u32 %v3719_v52, %v7549_v50  ;;  %v8413_v18 = vcombine.low %v7296_v19, %v7309_v58  ;;  %v6489_v37 = vld [vmem:[%s6628_s25 + $0xb4] sm:$0xff]  }
  0xd5   : > { %5948 = vmatmul.mubr.msk.bf16.vlgmr.msra.gmra.mrb[0].mxu1 %vm658_vm3, %v8410_v38  ;;  %6103 = vmatprep.mubr.msk.bf16.mxu0 %vm658_vm3, %v6486_v21  ;;  %v3685_v21 = vrot.slane %v3683_v15, 5  ;;  %v7538_v38 = vld [vmem:[%s6628_s25 + $0x50] sm:$0x1]  ;;  %v7547_v15 = vld [vmem:[%s6628_s25 + $0x5c] sm:$0x1]  ;;  %v8414_v27 = vcombine.low %v7314_v2, %v7318_v1  ;;  %v1310_v52 = vrot.slane %v1308_v25, 4 }
  0xd6   : > { %5980 = vmatpush3.bf16.msra.mxu1 %v7285_v49  ;;  %5951 = vmatprep.mubr.msk.bf16.mxu1 %vm658_vm3, %v8411_v23  ;;  %v3672_v49 = vor.u32 %v3671_v46, %v7497_v28  ;;  %v7551_v46 = vrot.slane %v3675_v5, 5  ;;  %v1301_v23 = vrot.slane %v6540_v6, 5  ;;  %v3699_v48 = vshll.u32 %v7538_v38, 16  ;;  %v1177_v5 = vld [vmem:[%s6628_s25 + $0x9c] sm:$0xe] }
  0xd7   : > { %6446 = vmatprep.subr.msk.bf16.mxu1 %vm707_vm0, %v6539_v36  ;;  %v6541_v36 = vld [vmem:[%s6628_s25 + $0x98] sm:$0x1]  ;;  %v3686_v7 = vor.u32 %v3685_v21, %v3682_v62  ;;  %v3723_v6 = vshll.u32 %v7547_v15, 16  ;;  %v3741_v62 = vshrl.u32 %v7555_v9, 16  ;;  %v3733_v4 = vrot.slane %v3731_v10, 5 }
  0xd8   : > { %v1304_v33 = vrot.slane %v6541_v36, 5  ;;  %v3673_v8 = vrot.slane %v3672_v49, 4  ;;  %v3737_v36 = vshll.u32 %v7555_v9, 16  ;;  %v7576_v21 = vsel %vm6880_vm7, %v5102_v54, %v1301_v23  ;;  %v7587_v2 = vld [vmem:[%s6628_s25 + $0x68] sm:$0x1] }
  0xd9   : > { %v3730_v49 = vrot.slane %v3728_v61, 4  ;;  %v3687_v19 = vrot.slane %v3686_v7, 4  ;;  %v5103_v58 = vrot.slane %v1177_v5, 9  ;;  %v3697_v3 = vrot.slane %v3696_v43, 4  ;;  %8415 = vst [vmem:[#allocation10_spill] sm:$0xff] %v7587_v2  ;;  %v6490_v5 = vld [vmem:[%s6628_s25 + $0xc0] sm:$0xff]  }
  0xda   : > { %v3701_v54 = vrot.slane %v3699_v48, 5  ;;  %v3725_v63 = vrot.slane %v3723_v6, 5  ;;  %v1315_v61 = vrot.slane %v7022_v56, 5  ;;  %v3711_v10 = vrot.slane %v3710_v31, 4  ;;  %v1179_v31 = vld [vmem:[%s6628_s25 + $0xb4] sm:$0xe] }
  0xdb   : > { %v3721_v51 = vrot.slane %v3720_v53, 4  ;;  %v7589_v1 = vrot.slane %v3737_v36, 5  ;;  %v3743_v7 = vrot.slane %v3741_v62, 4  ;;  %v3668_v43 = vsel %vm6654_vm4, %v7557_v22, %v7497_v28  ;;  %v6544_v62 = vld [vmem:[%s6628_s25 + $0xb0] sm:$0x1] }
  0xdc   : > { %6104 = vmatmul.mubr.msk.bf16.gmra.mrb[20].mxu0 %vm658_vm3, %v6487_v26  ;;  %v1303_v26 = vrot.slane %v1301_v23, 4  ;;  %v1178_v23 = vld [vmem:[%s6628_s25 + $0xa8] sm:$0xe]  ;;  %v3678_v48 = vsel %vm6654_vm4, %v3673_v8, %v7551_v46  ;;  %v3734_v6 = vor.u32 %v3733_v4, %v3730_v49  ;;  %v3692_v53 = vsel %vm6654_vm4, %v3687_v19, %v7540_v34  ;;  %v5436_v46 = vld [vmem:[%s6628_s25 + $0x6c] sm:$0xf] }
  0xdd   : > { %5952 = vmatmul.mubr.msk.bf16.gmra.mrb[4].mxu1 %vm658_vm3, %v8413_v18  ;;  %6107 = vmatprep.mubr.msk.bf16.mxu0 %vm658_vm3, %v6488_v30  ;;  %v6543_v18 = vld [vmem:[%s6628_s25 + $0xa4] sm:$0x1]  ;;  %v7609_v36 = vsel %vm6880_vm7, %v5103_v58, %v1308_v25  ;;  %v5104_v28 = vrot.slane %v1178_v23, 9  ;;  %v1317_v8 = vrot.slane %v1315_v61, 4  ;;  %v3747_v49 = vshll.u32 %v7587_v2, 16 }
  0xde   : > { %5955 = vmatprep.mubr.msk.bf16.mxu1 %vm658_vm3, %v8414_v27  ;;  %v1311_v30 = vrot.slane %v6543_v18, 5  ;;  %v7601_v56 = vsel %vm6880_vm7, %v1303_v26, %v1304_v33  ;;  %v3702_v33 = vsel %vm6654_vm4, %v3697_v3, %v3701_v54  ;;  %v1318_v26 = vrot.slane %v6544_v62, 5  ;;  %v5439_v18 = vld [vmem:[%s6628_s25 + $0x78] sm:$0xf]  ;;  %v7664_v54 = vld [vmem:[%s6628_s25 + $0xbc] sm:$0x1] }
  0xdf   : > { %v3716_v34 = vsel %vm6654_vm4, %v3711_v10, %v7549_v50  ;;  %v3726_v25 = vsel %vm6654_vm4, %v3721_v51, %v3725_v63  ;;  %v3744_v4 = vor.u32 %v3743_v7, %v7589_v1  ;;  %v5105_v27 = vrot.slane %v1179_v31, 9  ;;  %v7638_v51 = vld [vmem:[%s6628_s25 + $0x70] sm:$0xf]  ;;  %v7668_v10 = vld [vmem:[%s6628_s25 + $0x7c] sm:$0xf] }
  0xe0   : > { %v7613_v22 = vsel %vm6880_vm7, %v1310_v52, %v1311_v30  ;;  %v8417_v3 = vcombine.low %v7331_v45, %v7335_v59  ;;  %v7634_v19 = vrot.slane %v3734_v6, 4  ;;  %v1322_v50 = vrot.slane %v7046_v42, 5  ;;  %8418 = vst [vmem:[#allocation12_spill] sm:$0xff] %v7638_v51  ;;  %8420 = vst [vmem:[#allocation13_spill] sm:$0xff] %v7668_v10  ;;  %v5442_v7 = vld [vmem:[%s6628_s25 + $0x84] sm:$0xf] }
  0xe1   : > { %8416 = vst [vmem:[#allocation11_spill] sm:$0xff] %v7613_v22  ;;  %v3752_v63 = vshrl.u32 %v5436_v46, 16  ;;  %v8419_v45 = vcombine.low %v7339_v47, %v7366_v41  ;;  %v7646_v58 = vcombine.low %v3692_v53, %v3702_v33  ;;  %v7652_v42 = vsel %vm6880_vm7, %v5104_v28, %v1315_v61  ;;  %v6491_v61 = vld [vmem:[%s6628_s25 + $0xcc] sm:$0xff]   ;;  %v7680_v31 = vld [vmem:[%s6628_s25 + $0x88] sm:$0xf] }
  0xe2   : > { %v7655_v30 = vcombine.low %v3716_v34, %v3726_v25  ;;  %v7659_v47 = vsel %vm6880_vm7, %v1317_v8, %v1318_v26  ;;  %v7661_v41 = vrot.slane %v3747_v49, 5  ;;  %v3761_v6 = vshll.u32 %v7638_v51, 16  ;;  %8421 = vst [vmem:[#allocation14_spill] sm:$0xff] %v7680_v31  ;;  %v5445_v62 = vld [vmem:[%s6628_s25 + $0x90] sm:$0xf] }
  0xe3   : > { %v7686_v28 = vrot.slane %v1322_v50, 4  ;;  %v7688_v33 = vrot.slane %v3752_v63, 4  ;;  %v3765_v8 = vshrl.u32 %v7638_v51, 16  ;;  %v3776_v26 = vshrl.u32 %v5439_v18, 16  ;;  %v7695_v25 = vld [vmem:[%s6628_s25 + $0x94] sm:$0xf] }
  0xe4   : > { %6108 = vmatmul.mubr.msk.bf16.gmra.mrb[24].mxu0 %vm658_vm3, %v6489_v37  ;;  %v7632_v37 = vcombine.low %v3668_v43, %v3678_v48  ;;  %v7676_v43 = vsel %vm6880_vm7, %v5105_v27, %v1322_v50  ;;  %v3755_v48 = vshll.u32 %v5436_v46, 16  ;;  %v3779_v49 = vshll.u32 %v5439_v18, 16  ;;  %8422 = vst [vmem:[#allocation15_spill] sm:$0xff] %v7695_v25  ;;  %v7733_v2 = vld [vmem:[%s6628_s25 + $0x8c] sm:$0x1] }
  0xe5   : > { %5956 = vmatmul.mubr.msk.bf16.gmra.mrb[8].mxu1 %vm658_vm3, %v8417_v3  ;;  %6111 = vmatprep.mubr.msk.bf16.mxu0 %vm658_vm3, %v6490_v5  ;;  %v7672_v5 = vrot.slane %v3744_v4, 4  ;;  %v3785_v46 = vshll.u32 %v7668_v10, 16  ;;  %v3789_v34 = vshrl.u32 %v7668_v10, 16  ;;  %v3800_v4 = vshrl.u32 %v5442_v7, 16 }
  0xe6   : > { %5959 = vmatprep.mubr.msk.bf16.mxu1 %vm658_vm3, %v8419_v45  ;;  %v3803_v27 = vshll.u32 %v5442_v7, 16  ;;  %v3809_v3 = vshll.u32 %v7680_v31, 16  ;;  %v3813_v50 = vshrl.u32 %v7680_v31, 16  ;;  %v7705_v45 = vld [vmem:[%s6628_s25 + $0x74] sm:$0x1]  ;;  %v3757_v18 = vrot.slane %v3755_v48, 5 }
  0xe7   : > { %v3824_v52 = vshrl.u32 %v5445_v62, 16  ;;  %v3827_v53 = vshll.u32 %v5445_v62, 16  ;;  %v8423_v7 = vcombine.low %v7350_v60, %v7375_v44  ;;  %v3767_v59 = vrot.slane %v3765_v8, 4  ;;  %v5448_v48 = vld [vmem:[%s6628_s25 + $0x9c] sm:$0xf] }
  0xe8   : > { %v3833_v63 = vshll.u32 %v7695_v25, 16  ;;  %v3837_v23 = vshrl.u32 %v7695_v25, 16  ;;  %v8424_v62 = vcombine.low %v7390_v17, %v7394_v57  ;;  %v7723_v44 = vld [vmem:[%s6628_s25 + $0x80] sm:$0x1]  ;;  %v3778_v60 = vrot.slane %v3776_v26, 4 }
  0xe9   : > { %8425 = vst [vmem:[#allocation16_spill] sm:$0xff] %v7723_v44  ;;  %v3802_v31 = vrot.slane %v3800_v4, 4  ;;  %v3805_v8 = vrot.slane %v3803_v27, 5  ;;  %v7727_v10 = vrot.slane %v3809_v3, 5  ;;  %v3815_v51 = vrot.slane %v3813_v50, 4 }
  0xea   : > { %v7730_v25 = vld [vmem:[%s6628_s25 + $0xa0] sm:$0xf]  ;;  %v3826_v17 = vrot.slane %v3824_v52, 4  ;;  %v3829_v57 = vrot.slane %v3827_v53, 5  ;;  %v3851_v9 = vshll.u32 %v5448_v48, 16  ;;  %v3758_v26 = vor.u32 %v3757_v18, %v7688_v33 }
  0xeb   : > { %v3795_v27 = vshll.u32 %v7723_v44, 16  ;;  %v7742_v3 = vld [vmem:[%s6628_s25 + $0x98] sm:$0x1]  ;;  %v3857_v50 = vshll.u32 %v7730_v25, 16  ;;  %v3861_v52 = vshrl.u32 %v7730_v25, 16  ;;  %v3806_v22 = vor.u32 %v3805_v8, %v3802_v31 }
  0xec   : > { %6112 = vmatmul.mubr.msk.bf16.gmra.mrb[28].mxu0 %vm658_vm3, %v6491_v61  ;;  %v7713_v61 = vrot.slane %v3761_v6, 5  ;;  %v3791_v6 = vrot.slane %v3789_v34, 4  ;;  %v3839_v34 = vrot.slane %v3837_v23, 4  ;;  %v3819_v33 = vshll.u32 %v7733_v2, 16 }
  0xed   : > { %5960 = vmatmul.mubr.msk.bf16.gmra.mrb[12].mxu1 %vm658_vm3, %v8423_v7  ;;  %6117 = vmatprep.mubr.msk.bf16.mxu0 %vm658_vm3, %v7455_v20  ;;  %v3781_v7 = vrot.slane %v3779_v49, 5  ;;  %v7725_v20 = vrot.slane %v3785_v46, 5  ;;  %v3771_v49 = vshll.u32 %v7705_v45, 16  ;;  %v7737_v46 = vrot.slane %v3833_v63, 5 }
  0xee   : > { %5963 = vmatprep.mubr.msk.bf16.mxu1 %vm658_vm3, %v8424_v62  ;;  %v3848_v62 = vshrl.u32 %v5448_v48, 16  ;;  %v3768_v4 = vor.u32 %v3767_v59, %v7713_v61  ;;  %v3816_v23 = vor.u32 %v3815_v51, %v7727_v10  ;;  %v3830_v59 = vor.u32 %v3829_v57, %v3826_v17  ;;  %v7775_v57 = vld [vmem:[%s6628_s25 + $0xa4] sm:$0x1] }
  0xef   : > { %v3782_v53 = vor.u32 %v3781_v7, %v3778_v60  ;;  %v3792_v48 = vor.u32 %v3791_v6, %v7725_v20  ;;  %v3853_v18 = vrot.slane %v3851_v9, 5  ;;  %v8426_v44 = vcombine.low %v7402_v11, %v7406_v40 }
  0xf0   : > { %v3850_v63 = vrot.slane %v3848_v62, 4  ;;  %v8427_v31 = vrot.slane %v7664_v54, 5  ;;  %v3773_v51 = vrot.slane %v3771_v49, 5  ;;  %v3840_v60 = vor.u32 %v3839_v34, %v7737_v46  ;;  %v7778_v34 = vld [vmem:[%s6628_s25 + $0xac] sm:$0xf] }
  0xf1   : > { %v3843_v9 = vshll.u32 %v7742_v3, 16  ;;  %v8428_v11 = vcombine.low %v7474_v39, %v7478_v55  ;;  %v3759_v40 = vrot.slane %v3758_v26, 4  ;;  %v7771_v54 = vrot.slane %v3857_v50, 5 }
  0xf2   : > { %v3783_v7 = vrot.slane %v3782_v53, 4  ;;  %v3793_v6 = vrot.slane %v3792_v48, 4  ;;  %v3797_v8 = vrot.slane %v3795_v27, 5  ;;  %v3821_v17 = vrot.slane %v3819_v33, 5  ;;  %v7788_v48 = vld [vmem:[%s6628_s25 + $0xb0] sm:$0x1] }
  0xf3   : > { %v3807_v39 = vrot.slane %v3806_v22, 4  ;;  %v3817_v55 = vrot.slane %v3816_v23, 4  ;;  %v3831_v62 = vrot.slane %v3830_v59, 4  ;;  %v3854_v49 = vor.u32 %v3853_v18, %v3850_v63 }
  0xf4   : > { %6118 = vmatmul.mubr.msk.bf16.vlgmr.msra.gmra.mrb[0].mxu0 %vm658_vm3, %v7518_v16  ;;  %v7761_v16 = vsel %vm6880_vm7, %v7686_v28, %v8427_v31  ;;  %v3863_v28 = vrot.slane %v3861_v52, 4  ;;  %v3845_v26 = vrot.slane %v3843_v9, 5  ;;  %v3764_v52 = vsel %vm6654_vm4, %v3759_v40, %v7713_v61 }
  0xf5   : > { %5964 = vmatmul.mubr.msk.bf16.gmra.mrb[16].mxu1 %vm658_vm3, %v8426_v44  ;;  %6150 = vmatpush3.bf16.msra.mxu0 %v7459_v14  ;;  %v3769_v14 = vrot.slane %v3768_v4, 4  ;;  %v5451_v44 = vld [vmem:[%s6628_s25 + $0xa8] sm:$0xf]  ;;  %v3867_v22 = vshll.u32 %v7775_v57, 16  ;;  %v3788_v33 = vsel %vm6654_vm4, %v3783_v7, %v7725_v20  ;;  %v3798_v23 = vsel %vm6654_vm4, %v3793_v6, %v3797_v8 }
  0xf6   : > { %5967 = vmatprep.mubr.msk.bf16.mxu1 %vm658_vm3, %v8428_v11  ;;  %6121 = vmatprep.mubr.msk.bf16.mxu0 %vm658_vm3, %v7529_v29  ;;  %v3841_v29 = vrot.slane %v3840_v60, 4  ;;  %v3872_v4 = vshrl.u32 %v5451_v44, 16  ;;  %v3875_v50 = vshll.u32 %v5451_v44, 16  ;;  %v3864_v53 = vor.u32 %v3863_v28, %v7771_v54  ;;  %v5500_v11 = vld [vmem:[%s6628_s25 + $0x48] sm:$0xe] }
  0xf7   : > { %v3774_v27 = vsel %vm6654_vm4, %v3769_v14, %v3773_v51  ;;  %v3881_v59 = vshll.u32 %v7778_v34, 16  ;;  %v3885_v61 = vshrl.u32 %v7778_v34, 16  ;;  %v3812_v63 = vsel %vm6654_vm4, %v3807_v39, %v7727_v10  ;;  %v7853_v39 = vld [vmem:[%s6628_s25 + $0xb8] sm:$0xf] }
  0xf8   : > { %v3822_v18 = vsel %vm6654_vm4, %v3817_v55, %v3821_v17  ;;  %v3836_v20 = vsel %vm6654_vm4, %v3831_v62, %v7737_v46  ;;  %v3855_v31 = vrot.slane %v3854_v49, 4  ;;  %v8429_v51 = vcombine.low %v7491_v12, %v7506_v35 }
  0xf9   : > { %v3874_v10 = vrot.slane %v3872_v4, 4  ;;  %v3877_v60 = vrot.slane %v3875_v50, 5  ;;  %v3891_v9 = vshll.u32 %v7788_v48, 16  ;;  %v8430_v46 = vcombine.low %v7576_v21, %v7601_v56  ;;  %v5454_v21 = vld [vmem:[%s6628_s25 + $0xb4] sm:$0xf] }
  0xfa   : > { %v5121_v12 = vcombine.low %v7652_v42, %v7659_v47  ;;  %v8431_v35 = vsel %vm6654_vm4, %v7672_v5, %v7661_v41  ;;  %v3865_v14 = vrot.slane %v3864_v53, 4  ;;  %v3869_v28 = vrot.slane %v3867_v22, 5  ;;  %v5502_v4 = vld [vmem:[%s6628_s25 + $0x60] sm:$0xe]  ;;  %v5503_v53 = vld [vmem:[%s6628_s25 + $0x6c] sm:$0xe] }
  0xfb   : > { %v5122_v56 = vcombine.low %v7676_v43, %v7761_v16  ;;  %v7836_v44 = vcombine.low %v3764_v52, %v3774_v27  ;;  %v7838_v42 = vrot.slane %v3881_v59, 5  ;;  %v3887_v47 = vrot.slane %v3885_v61, 4  ;;  %v8440_v16 = vld [vmem:[#allocation4_spill] sm:$0xff] }
  0xfc   : > { %6122 = vmatmul.mubr.msk.bf16.gmra.mrb[4].mxu0 %vm658_vm3, %v7632_v37  ;;  %v3846_v37 = vsel %vm6654_vm4, %v3841_v29, %v3845_v26  ;;  %v7840_v41 = vcombine.low %v3788_v33, %v3798_v23  ;;  %v7842_v5 = vcombine.low %v3812_v63, %v3822_v18  ;;  %v3860_v6 = vsel %vm6654_vm4, %v3855_v31, %v7771_v54  ;;  %v8433_v23 = vld [vmem:[#allocation11_spill] sm:$0xff]  ;;  %v5457_v63 = vld [vmem:[%s6628_s25 + $0xc0] sm:$0xf]  ;;  %v8435_v18 = vld [vmem:[#allocation9_spill] sm:$0xff] }
  0xfd   : > { %5968 = vmatmul.mubr.msk.bf16.gmra.mrb[20].mxu1 %vm658_vm3, %v8429_v51  ;;  %6125 = vmatprep.mubr.msk.bf16.mxu0 %vm658_vm3, %v7646_v58  ;;  %v8432_v58 = vsel %vm6654_vm4, %v7634_v19, %v7589_v1  ;;  %v7844_v7 = vcombine.low %v3836_v20, %v3846_v37  ;;  %v5516_v1 = vrot.slane %v5500_v11, 9  ;;  %v5501_v19 = vld [vmem:[%s6628_s25 + $0x54] sm:$0xe]  ;;  %v3878_v8 = vor.u32 %v3877_v60, %v3874_v10  ;;  %v8436_v31 = vld [vmem:[#allocation10_spill] sm:$0xff] }
  0xfe   : > { %5971 = vmatprep.mubr.msk.bf16.mxu1 %vm658_vm3, %v8430_v46  ;;  %v5470_v40 = vcombine.low %v8432_v58, %v8431_v35  ;;  %v7850_v17 = vrot.slane %v3891_v9, 5  ;;  %v3896_v55 = vshrl.u32 %v5454_v21, 16  ;;  %v3870_v62 = vsel %vm6654_vm4, %v3865_v14, %v3869_v28  ;;  %v8437_v9 = vld [vmem:[#allocation12_spill] sm:$0xff]  ;;  %v7902_v35 = vld [vmem:[%s6628_s25 + $0xbc] sm:$0x1] }
  0xff   : > { %v3899_v49 = vshll.u32 %v5454_v21, 16  ;;  %v4355_v29 = vrot.slane %v7484_v0, 5  ;;  %v4358_v26 = vrot.slane %v7538_v38, 5  ;;  %v3888_v50 = vor.u32 %v3887_v47, %v7838_v42  ;;  %v7905_v58 = vld [vmem:[%s6628_s25 + $0xc4] sm:$0xf] }
 0x100   : > { %v5517_v52 = vrot.slane %v5501_v19, 9  ;;  %v4362_v54 = vrot.slane %v7495_v24, 5  ;;  %v4365_v27 = vrot.slane %v7547_v15, 5  ;;  %v3905_v22 = vshll.u32 %v7853_v39, 16  ;;  %v5504_v19 = vld [vmem:[%s6628_s25 + $0x78] sm:$0xe] }
 0x101   : > { %v3909_v33 = vshrl.u32 %v7853_v39, 16  ;;  %v7870_v0 = vsel %vm6880_vm7, %v5516_v1, %v4355_v29  ;;  %v4357_v38 = vrot.slane %v4355_v29, 4  ;;  %v8434_v59 = vcombine.low %v7609_v36, %v8433_v23  ;;  %v8438_v23 = vld [vmem:[#allocation13_spill] sm:$0xff] }
 0x102   : > { %v7877_v24 = vcombine.low %v3860_v6, %v3870_v62  ;;  %v7881_v15 = vsel %vm6880_vm7, %v5517_v52, %v4362_v54  ;;  %v5518_v61 = vrot.slane %v5502_v4, 9  ;;  %v4369_v20 = vrot.slane %v8435_v18, 5  ;;  %v6492_v6 = vld [vmem:[%s6628_s25 + $0xc] sm:$0xff]  }
 0x103   : > { %v7887_v36 = vsel %vm6880_vm7, %v4357_v38, %v4358_v26  ;;  %v4372_v51 = vrot.slane %v8436_v31, 5  ;;  %v5519_v37 = vrot.slane %v5503_v53, 9  ;;  %v4376_v11 = vrot.slane %v8437_v9, 5 }
 0x104   : > { %6126 = vmatmul.mubr.msk.bf16.gmra.mrb[8].mxu0 %vm658_vm3, %v7655_v30  ;;  %v4364_v30 = vrot.slane %v4362_v54, 4  ;;  %v5533_v10 = vcombine.low %v7870_v0, %v7887_v36  ;;  %v4379_v46 = vrot.slane %v7705_v45, 5  ;;  %v7911_v14 = vsel %vm6880_vm7, %v5518_v61, %v4369_v20 }
 0x105   : > { %5972 = vmatmul.mubr.msk.bf16.gmra.mrb[24].mxu1 %vm658_vm3, %v8434_v59  ;;  %6129 = vmatprep.mubr.msk.bf16.mxu0 %vm658_vm3, %v5470_v40  ;;  %v4371_v28 = vrot.slane %v4369_v20, 4  ;;  %v7913_v21 = vrot.slane %v3896_v55, 4  ;;  %v3920_v47 = vshrl.u32 %v5457_v63, 16  ;;  %v7917_v45 = vsel %vm6880_vm7, %v5519_v37, %v4376_v11  ;;  %v5231_v55 = vld [vmem:[%s6628_s25 + $0x78] sm:$0xf]  ;;  %v8439_v59 = vld [vmem:[#allocation16_spill] sm:$0xff] }
 0x106   : > { %5975 = vmatprep.mubr.msk.bf16.mxu1 %vm658_vm3, %v5121_v12  ;;  %v7895_v60 = vsel %vm6880_vm7, %v4364_v30, %v4365_v27  ;;  %v7899_v12 = vrot.slane %v3878_v8, 4  ;;  %v4378_v1 = vrot.slane %v4376_v11, 4  ;;  %v7921_v8 = vrot.slane %v3888_v50, 4 }
 0x107   : > { %v5534_v40 = vcombine.low %v7881_v15, %v7895_v60  ;;  %v7923_v62 = vrot.slane %v3899_v49, 5  ;;  %v3923_v29 = vshll.u32 %v5457_v63, 16  ;;  %v7927_v26 = vsel %vm6880_vm7, %v4371_v28, %v4372_v51  ;;  %v8442_v28 = vld [vmem:[#allocation14_spill] sm:$0xff] }
 0x108   : > { %v7930_v4 = vrot.slane %v3905_v22, 5  ;;  %v7932_v52 = vrot.slane %v3909_v33, 4  ;;  %v5535_v54 = vcombine.low %v7911_v14, %v7927_v26  ;;  %v7938_v27 = vsel %vm6880_vm7, %v4378_v1, %v4379_v46  ;;  %v5505_v33 = vld [vmem:[%s6628_s25 + $0x84] sm:$0xe]  ;;  %v6493_v1 = vld [vmem:[%s6628_s25 + $0x18] sm:$0xff]  }
 0x109   : > { %v3915_v49 = vshll.u32 %v7902_v35, 16  ;;  %v3929_v50 = vshll.u32 %v7905_v58, 16  ;;  %v5536_v53 = vcombine.low %v7917_v45, %v7938_v27  ;;  %v5520_v22 = vrot.slane %v5504_v19, 9  ;;  %v6555_v60 = vld [vmem:[%s6628_s25 + $0xa0] sm:$0xf] }
 0x10a   : > { %v3922_v38 = vrot.slane %v3920_v47, 4  ;;  %v4386_v30 = vrot.slane %v8439_v59, 5  ;;  %v2245_v61 = vshrl.u32 %v5231_v55, 16  ;;  %v3925_v63 = vrot.slane %v3923_v29, 5  ;;  %v5460_v29 = vld [vmem:[%s6628_s25 + $0xcc] sm:$0xf] }
 0x10b   : > { %v3933_v18 = vshrl.u32 %v7905_v58, 16  ;;  %v2248_v43 = vshll.u32 %v5231_v55, 16  ;;  %v5521_v37 = vrot.slane %v5505_v33, 9  ;;  %v3884_v9 = vsel %vm6654_vm4, %v7899_v12, %v7838_v42  ;;  %v7981_v55 = vld [vmem:[%s6628_s25 + $0xd0] sm:$0xf] }
 0x10c   : > { %6130 = vmatmul.mubr.msk.bf16.gmra.mrb[12].mxu0 %vm658_vm3, %v7836_v44  ;;  %v4383_v44 = vrot.slane %v8438_v23, 5  ;;  %v2247_v51 = vrot.slane %v2245_v61, 4  ;;  %v3902_v11 = vor.u32 %v7923_v62, %v7913_v21  ;;  %v4390_v47 = vrot.slane %v8442_v28, 5  ;;  %v6494_v21 = vld [vmem:[%s6628_s25 + $0x24] sm:$0xff]   ;;  %v6559_v27 = vld [vmem:[%s6628_s25 + $0xac] sm:$0xf] }
 0x10d   : > { %5976 = vmatmul.mubr.msk.bf16.gmra.mrb[28].mxu1 %vm658_vm3, %v5122_v56  ;;  %6133 = vmatprep.mubr.msk.bf16.mxu0 %vm658_vm3, %v7840_v41  ;;  %v8441_v56 = vld [vmem:[#allocation5_spill] sm:$0xff]  ;;  %v2250_v46 = vrot.slane %v2248_v43, 5  ;;  %v3894_v19 = vsel %vm6654_vm4, %v7921_v8, %v7850_v17  ;;  %v4393_v12 = vrot.slane %v7733_v2, 5  ;;  %v7989_v62 = vrot.slane %v3929_v50, 5  ;;  %v5506_v8 = vld [vmem:[%s6628_s25 + $0x90] sm:$0xe] }
 0x10e   : > { %5981 = vmatprep.mubr.msk.bf16.mxu1 %vm658_vm3, %v6492_v6  ;;  %v2267_v41 = vsel %vm6654_vm4, %v8441_v56, %v8440_v16  ;;  %v7963_v20 = vsel %vm6880_vm7, %v5520_v22, %v4383_v44  ;;  %v4385_v31 = vrot.slane %v4383_v44, 4  ;;  %v3912_v6 = vor.u32 %v7932_v52, %v7930_v4  ;;  %v7995_v52 = vld [vmem:[%s6628_s25 + $0xc8] sm:$0x1]  ;;  %v8444_v16 = vld [vmem:[#allocation2_spill] sm:$0xff] }
 0x10f   : > { %v3935_v22 = vrot.slane %v3933_v18, 4  ;;  %v2251_v17 = vor.u32 %v2250_v46, %v2247_v51  ;;  %v3917_v23 = vrot.slane %v3915_v49, 5  ;;  %v3926_v44 = vor.u32 %v3925_v63, %v3922_v38  ;;  %v8445_v51 = vld [vmem:[#allocation3_spill] sm:$0xff] }
 0x110   : > { %v7985_v42 = vsel %vm6880_vm7, %v4385_v31, %v4386_v30  ;;  %v7999_v59 = vsel %vm6880_vm7, %v5521_v37, %v4390_v47  ;;  %v4392_v30 = vrot.slane %v4390_v47, 4  ;;  %v3944_v2 = vshrl.u32 %v5460_v29, 16 }
 0x111   : > { %v5537_v33 = vcombine.low %v7963_v20, %v7985_v42  ;;  %v3947_v50 = vshll.u32 %v5460_v29, 16  ;;  %v3953_v61 = vshll.u32 %v7981_v55, 16  ;;  %v2252_v18 = vrot.slane %v2251_v17, 4  ;;  %v6495_v29 = vld [vmem:[%s6628_s25 + $0x30] sm:$0xff]  }
 0x112   : > { %v3957_v49 = vshrl.u32 %v7981_v55, 16  ;;  %v8010_v38 = vsel %vm6880_vm7, %v4392_v30, %v4393_v12  ;;  %v5522_v63 = vrot.slane %v5506_v8, 9  ;;  %v3936_v56 = vor.u32 %v3935_v22, %v7989_v62 }
 0x113   : > { %v3939_v31 = vshll.u32 %v7995_v52, 16  ;;  %v5538_v37 = vcombine.low %v7999_v59, %v8010_v38  ;;  %v5476_v46 = vcombine.low %v3884_v9, %v3894_v19  ;;  %v3903_v28 = vrot.slane %v3902_v11, 4  ;;  %v5507_v11 = vld [vmem:[%s6628_s25 + $0x9c] sm:$0xe] }
 0x114   : > { %6134 = vmatmul.mubr.msk.bf16.gmra.mrb[16].mxu0 %vm658_vm3, %v7842_v5  ;;  %v8443_v5 = vld [vmem:[#allocation15_spill] sm:$0xff]  ;;  %v3913_v47 = vrot.slane %v3912_v6, 4  ;;  %v3927_v12 = vrot.slane %v3926_v44, 4  ;;  %v4400_v8 = vrot.slane %v7742_v3, 5  ;;  %v3946_v30 = vrot.slane %v3944_v2, 4  ;;  %v6496_v19 = vld [vmem:[%s6628_s25 + $0x3c] sm:$0xff]  }
 0x115   : > { %5982 = vmatmul.mubr.msk.bf16.vlgmr.msra.gmra.mrb[0].mxu1 %vm658_vm3, %v6493_v1  ;;  %6137 = vmatprep.mubr.msk.bf16.mxu0 %vm658_vm3, %v7844_v7  ;;  %v4397_v43 = vrot.slane %v8443_v5, 5  ;;  %v2257_v7 = vsel %vm6654_vm4, %v2252_v18, %v8445_v51  ;;  %v3949_v18 = vrot.slane %v3947_v50, 5  ;;  %v8033_v5 = vrot.slane %v3953_v61, 5 }
 0x116   : > { %6184 = vmatpush3.bf16.msra.mxu1 %v8444_v16  ;;  %5985 = vmatprep.mubr.msk.bf16.mxu1 %vm658_vm3, %v6494_v21  ;;  %v8022_v1 = vcombine.low %v2257_v7, %v2267_v41  ;;  %v8026_v21 = vld [vmem:[%s6628_s25 + $0xd4] sm:$0x1]  ;;  %v3959_v9 = vrot.slane %v3957_v49, 4  ;;  %v3937_v41 = vrot.slane %v3936_v56, 4  ;;  %v3941_v6 = vrot.slane %v3939_v31, 5 }
 0x117   : > { %v8030_v22 = vsel %vm6880_vm7, %v5522_v63, %v4397_v43  ;;  %v4399_v17 = vrot.slane %v4397_v43, 4  ;;  %v3908_v63 = vsel %vm6654_vm4, %v3903_v28, %v7930_v4  ;;  %v3918_v2 = vsel %vm6654_vm4, %v3913_v47, %v3917_v23  ;;  %v6546_v16 = vld [vmem:[%s6628_s25 + $0x1c] sm:$0xf]  ;;  %v5508_v28 = vld [vmem:[%s6628_s25 + $0xa8] sm:$0xe] }
 0x118   : > { %v3963_v50 = vshll.u32 %v8026_v21, 16  ;;  %v5523_v61 = vrot.slane %v5507_v11, 9  ;;  %v4404_v49 = vrot.slane %v7730_v25, 5  ;;  %v3932_v4 = vsel %vm6654_vm4, %v3927_v12, %v7989_v62  ;;  %v5496_v62 = vld [vmem:[%s6628_s25 + $0x18] sm:$0xe]  ;;  %v6497_v47 = vld [vmem:[%s6628_s25 + $0x48] sm:$0xff]  }
 0x119   : > { %v8039_v44 = vsel %vm6880_vm7, %v4399_v17, %v4400_v8  ;;  %v3960_v43 = vor.u32 %v3959_v9, %v8033_v5  ;;  %v4407_v23 = vrot.slane %v7775_v57, 5  ;;  %v3942_v25 = vsel %vm6654_vm4, %v3937_v41, %v3941_v6  ;;  %v6547_v11 = vld [vmem:[%s6628_s25 + $0x20] sm:$0x1] }
 0x11a   : > { %v5539_v3 = vcombine.low %v8030_v22, %v8039_v44  ;;  %v4327_v56 = vrot.slane %v6546_v16, 5  ;;  %v8065_v31 = vsel %vm6880_vm7, %v5523_v61, %v4404_v49  ;;  %v4406_v51 = vrot.slane %v4404_v49, 4  ;;  %v5509_v49 = vld [vmem:[%s6628_s25 + $0xb4] sm:$0xe] }
 0x11b   : > { %v5477_v7 = vcombine.low %v3908_v63, %v3918_v2  ;;  %v3961_v17 = vrot.slane %v3960_v43, 4  ;;  %v5524_v41 = vrot.slane %v5508_v28, 9  ;;  %v4411_v6 = vrot.slane %v7778_v34, 5  ;;  %v5497_v2 = vld [vmem:[%s6628_s25 + $0x24] sm:$0xe] }
 0x11c   : > { %6138 = vmatmul.mubr.msk.bf16.gmra.mrb[20].mxu0 %vm658_vm3, %v7877_v24  ;;  %v3950_v24 = vor.u32 %v3949_v18, %v3946_v30  ;;  %v8070_v57 = vsel %vm6880_vm7, %v4406_v51, %v4407_v23  ;;  %v6498_v30 = vld [vmem:[%s6628_s25 + $0x54] sm:$0xff]   ;;  %v5512_v18 = vrot.slane %v5496_v62, 9  ;;  %v4329_v9 = vrot.slane %v4327_v56, 4  ;;  %v6550_v28 = vld [vmem:[%s6628_s25 + $0x2c] sm:$0x1] }
 0x11d   : > { %5986 = vmatmul.mubr.msk.bf16.gmra.mrb[4].mxu1 %vm658_vm3, %v6495_v29  ;;  %6141 = vmatprep.mubr.msk.bf16.mxu0 %vm658_vm3, %v5476_v46  ;;  %v3965_v46 = vrot.slane %v3963_v50, 5  ;;  %v5478_v29 = vcombine.low %v3932_v4, %v3942_v25  ;;  %v5540_v8 = vcombine.low %v8065_v31, %v8070_v57  ;;  %v4414_v63 = vrot.slane %v7788_v48, 5  ;;  %v6548_v50 = vld [vmem:[%s6628_s25 + $0x28] sm:$0xf]  ;;  %v5498_v25 = vld [vmem:[%s6628_s25 + $0x30] sm:$0xe] }
 0x11e   : > { %5989 = vmatprep.mubr.msk.bf16.mxu1 %vm658_vm3, %v6496_v19  ;;  %v3951_v12 = vrot.slane %v3950_v24, 4  ;;  %v4330_v19 = vrot.slane %v6547_v11, 5  ;;  %v4334_v61 = vrot.slane %v6548_v50, 5  ;;  %v8093_v48 = vsel %vm6880_vm7, %v5524_v41, %v4411_v6  ;;  %v6500_v11 = vld [vmem:[%s6628_s25 + $0x6c] sm:$0xff]   ;;  %v8446_v41 = vld [vmem:[#allocation6_spill] sm:$0xff] }
 0x11f   : > { %v3966_v34 = vsel %vm6654_vm4, %v3961_v17, %v3965_v46  ;;  %v4413_v24 = vrot.slane %v4411_v6, 4  ;;  %v4328_v43 = vsel %vm6880_vm7, %v5512_v18, %v4327_v56  ;;  %v5513_v51 = vrot.slane %v5497_v2, 9  ;;  %v5510_v50 = vld [vmem:[%s6628_s25 + $0xc0] sm:$0xe]  ;;  %v6564_v31 = vld [vmem:[%s6628_s25 + $0xc8] sm:$0x1] }
 0x120   : > { %v3956_v4 = vsel %vm6654_vm4, %v3951_v12, %v8033_v5  ;;  %v4331_v23 = vsel %vm6880_vm7, %v4329_v9, %v4330_v19  ;;  %v6549_v5 = vld [vmem:[%s6628_s25 + $0x34] sm:$0xf]  ;;  %v6499_v12 = vld [vmem:[%s6628_s25 + $0x60] sm:$0xff]   ;;  %v5514_v18 = vrot.slane %v5498_v25, 9  ;;  %v4421_v9 = vrot.slane %v7902_v35, 5 }
 0x121   : > { %v4341_v16 = vrot.slane %v6549_v5, 5  ;;  %v8104_v62 = vsel %vm6880_vm7, %v4413_v24, %v4414_v63  ;;  %v5479_v46 = vcombine.low %v3956_v4, %v3966_v34  ;;  %v5529_v17 = vcombine.low %v4328_v43, %v4331_v23  ;;  %v5499_v24 = vld [vmem:[%s6628_s25 + $0x3c] sm:$0xe] }
 0x122   : > { %v5541_v56 = vcombine.low %v8093_v48, %v8104_v62  ;;  %v4344_v6 = vrot.slane %v8446_v41, 5  ;;  %v4335_v35 = vsel %vm6880_vm7, %v5513_v51, %v4334_v61  ;;  %v5526_v5 = vrot.slane %v5510_v50, 9 }
 0x123   : > { %v4343_v19 = vrot.slane %v4341_v16, 4  ;;  %v4342_v23 = vsel %vm6880_vm7, %v5514_v18, %v4341_v16  ;;  %v4428_v51 = vrot.slane %v7995_v52, 5  ;;  %v2408_v57 = vshll.u32 %v6564_v31, 16 }
 0x124   : > { %6142 = vmatmul.mubr.msk.bf16.gmra.mrb[24].mxu0 %vm658_vm3, %v5477_v7  ;;  %v5525_v7 = vrot.slane %v5509_v49, 9 }
 0x125   : > { %5990 = vmatmul.mubr.msk.bf16.gmra.mrb[8].mxu1 %vm658_vm3, %v6497_v47  ;;  %6145 = vmatprep.mubr.msk.bf16.mxu0 %vm658_vm3, %v5478_v29  ;;  %v4337_v47 = vrot.slane %v6550_v28, 5  ;;  %v4418_v29 = vrot.slane %v7853_v39, 5  ;;  %v8447_v39 = vld [vmem:[#allocation7_spill] sm:$0xff]  ;;  %v4345_v25 = vsel %vm6880_vm7, %v4343_v19, %v4344_v6  ;;  %v5515_v28 = vrot.slane %v5499_v24, 9 }
 0x126   : > { %5993 = vmatprep.mubr.msk.bf16.mxu1 %vm658_vm3, %v6498_v30  ;;  %v4336_v30 = vrot.slane %v4334_v61, 4  ;;  %v4348_v49 = vrot.slane %v8447_v39, 5  ;;  %v4425_v61 = vrot.slane %v7905_v58, 5  ;;  %v6551_v39 = vld [vmem:[%s6628_s25 + $0x70] sm:$0xf]  ;;  %v4432_v24 = vrot.slane %v7981_v55, 5 }
 0x127   : > { %v8116_v63 = vsel %vm6880_vm7, %v5525_v7, %v4418_v29  ;;  %v4420_v2 = vrot.slane %v4418_v29, 4  ;;  %v5228_v7 = vld [vmem:[%s6628_s25 + $0x6c] sm:$0xf]  ;;  %v8448_v29 = vld [vmem:[#allocation8_spill] sm:$0xff] }
 0x128   : > { %v4338_v34 = vsel %vm6880_vm7, %v4336_v30, %v4337_v47  ;;  %v4350_v47 = vrot.slane %v4348_v49, 4  ;;  %v6501_v30 = vld [vmem:[%s6628_s25 + $0x78] sm:$0xff]   ;;  %v8147_v16 = vsel %vm6880_vm7, %v5526_v5, %v4425_v61  ;;  %v4427_v18 = vrot.slane %v4425_v61, 4 }
 0x129   : > { %v8123_v4 = vsel %vm6880_vm7, %v4420_v2, %v4421_v9  ;;  %v5531_v9 = vcombine.low %v4342_v23, %v4345_v25  ;;  %v2221_v19 = vshrl.u32 %v5228_v7, 16  ;;  %v2224_v41 = vshll.u32 %v5228_v7, 16 }
 0x12a   : > { %v5542_v43 = vcombine.low %v8116_v63, %v8123_v4  ;;  %v8152_v58 = vsel %vm6880_vm7, %v4427_v18, %v4428_v51  ;;  %v4349_v6 = vsel %vm6880_vm7, %v5515_v28, %v4348_v49  ;;  %v4435_v49 = vrot.slane %v8026_v21, 5  ;;  %v6503_v51 = vld [vmem:[%s6628_s25 + $0x90] sm:$0xff]   ;;  %v6504_v21 = vld [vmem:[%s6628_s25 + $0x9c] sm:$0xff]  }
 0x12b   : > { %v5543_v50 = vcombine.low %v8147_v16, %v8152_v58  ;;  %v2223_v23 = vrot.slane %v2221_v19, 4  ;;  %v2226_v25 = vrot.slane %v2224_v41, 5  ;;  %v4434_v7 = vrot.slane %v4432_v24, 4 }
 0x12c   : > { %6146 = vmatmul.mubr.msk.bf16.gmra.mrb[28].mxu0 %vm658_vm3, %v5479_v46  ;;  %v5530_v46 = vcombine.low %v4335_v35, %v4338_v34  ;;  %v2230_v35 = vshll.u32 %v6551_v39, 16  ;;  %v2234_v34 = vshrl.u32 %v6551_v39, 16 }
 0x12d   : > { %5994 = vmatmul.mubr.msk.bf16.gmra.mrb[12].mxu1 %vm658_vm3, %v6499_v12  ;;  %6151 = vmatprep.mubr.msk.bf16.mxu0 %vm658_vm3, %v5529_v17  ;;  %v4351_v12 = vrot.slane %v8448_v29, 5  ;;  %v5511_v17 = vld [vmem:[%s6628_s25 + $0xcc] sm:$0xe]  ;;  %v8174_v55 = vsel %vm6880_vm7, %v4434_v7, %v4435_v49 }
 0x12e   : > { %5997 = vmatprep.mubr.msk.bf16.mxu1 %vm658_vm3, %v6500_v11  ;;  %v6502_v11 = vld [vmem:[%s6628_s25 + $0x84] sm:$0xff]   ;;  %v5527_v52 = vrot.slane %v5511_v17, 9  ;;  %v2236_v28 = vrot.slane %v2234_v34, 4  ;;  %v6552_v17 = vld [vmem:[%s6628_s25 + $0x74] sm:$0x1] }
 0x12f   : > { %v4352_v2 = vsel %vm6880_vm7, %v4350_v47, %v4351_v12  ;;  %v5234_v47 = vld [vmem:[%s6628_s25 + $0x84] sm:$0xf]  ;;  %v2227_v12 = vor.u32 %v2226_v25, %v2223_v23  ;;  %v6506_v34 = vld [vmem:[%s6628_s25 + $0xb4] sm:$0xff]  }
 0x130   : > { %v8169_v5 = vsel %vm6880_vm7, %v5527_v52, %v4432_v24  ;;  %v5532_v61 = vcombine.low %v4349_v6, %v4352_v2  ;;  %v2272_v18 = vshll.u32 %v5234_v47, 16  ;;  %v5237_v6 = vld [vmem:[%s6628_s25 + $0x90] sm:$0xf]  ;;  %v6505_v2 = vld [vmem:[%s6628_s25 + $0xa8] sm:$0xff]  }
 0x131   : > { %v5544_v29 = vcombine.low %v8169_v5, %v8174_v55  ;;  %v2228_v52 = vrot.slane %v2227_v12, 4  ;;  %v2293_v23 = vshrl.u32 %v5237_v6, 16  ;;  %v2296_v25 = vshll.u32 %v5237_v6, 16 }
 0x132   : > { %v2326_v12 = vshll.u32 %v6555_v60, 16 }
 0x133   : > { %v2298_v14 = vrot.slane %v2296_v25, 5  ;;  %v6558_v25 = vld [vmem:[%s6628_s25 + $0xa4] sm:$0x1] }
 0x134   : > { %6152 = vmatmul.mubr.msk.bf16.vlgmr.msra.gmra.mrb[0].mxu0 %vm658_vm3, %v5530_v46  ;;  %v2232_v46 = vrot.slane %v2230_v35, 5  ;;  %v5240_v35 = vld [vmem:[%s6628_s25 + $0x9c] sm:$0xf]  ;;  %v8216_v6 = vrot.slane %v2326_v12, 5 }
 0x135   : > { %5998 = vmatmul.mubr.msk.bf16.gmra.mrb[16].mxu1 %vm658_vm3, %v6501_v30  ;;  %6155 = vmatprep.mubr.msk.bf16.mxu0 %vm658_vm3, %v5531_v9  ;;  %v2240_v30 = vshll.u32 %v6552_v17, 16  ;;  %v2269_v9 = vshrl.u32 %v5234_v47, 16  ;;  %v2320_v47 = vshll.u32 %v5240_v35, 16  ;;  %v6556_v17 = vld [vmem:[%s6628_s25 + $0x8c] sm:$0x1] }
 0x136   : > { %6001 = vmatprep.mubr.msk.bf16.mxu1 %vm658_vm3, %v6502_v11  ;;  %v2237_v13 = vor.u32 %v2236_v28, %v2232_v46  ;;  %v6553_v11 = vld [vmem:[%s6628_s25 + $0x88] sm:$0xf]  ;;  %v2233_v7 = vsel %vm6654_vm4, %v2228_v52, %v2232_v46 }
 0x137   : > { %v2278_v19 = vshll.u32 %v6553_v11, 16  ;;  %v2282_v41 = vshrl.u32 %v6553_v11, 16  ;;  %v2242_v0 = vrot.slane %v2240_v30, 5  ;;  %v2271_v36 = vrot.slane %v2269_v9, 4 }
 0x138   : > { %v2238_v39 = vrot.slane %v2237_v13, 4  ;;  %v2288_v30 = vshll.u32 %v6556_v17, 16  ;;  %v2295_v9 = vrot.slane %v2293_v23, 4  ;;  %v2322_v11 = vrot.slane %v2320_v47, 5 }
 0x139   : > { %v8193_v24 = vrot.slane %v2278_v19, 5  ;;  %v2284_v49 = vrot.slane %v2282_v41, 4  ;;  %v6507_v19 = vld [vmem:[%s6628_s25 + $0xc0] sm:$0xff]  }
 0x13a   : > { %v2243_v46 = vsel %vm6654_vm4, %v2238_v39, %v2242_v0  ;;  %v5243_v39 = vld [vmem:[%s6628_s25 + $0xa8] sm:$0xf] }
 0x13b   : > { %v2285_v13 = vor.u32 %v2284_v49, %v8193_v24  ;;  %v5261_v41 = vcombine.low %v2233_v7, %v2243_v46  ;;  %v2336_v7 = vshll.u32 %v6558_v25, 16  ;;  %v2344_v45 = vshll.u32 %v5243_v39, 16 }
 0x13c   : > { %6156 = vmatmul.mubr.msk.bf16.gmra.mrb[4].mxu0 %vm658_vm3, %v5532_v61  ;;  %v6554_v61 = vld [vmem:[%s6628_s25 + $0x94] sm:$0xf] }
 0x13d   : > { %6002 = vmatmul.mubr.msk.bf16.gmra.mrb[20].mxu1 %vm658_vm3, %v6503_v51  ;;  %6159 = vmatprep.mubr.msk.bf16.mxu0 %vm658_vm3, %v5533_v10  ;;  %v2274_v10 = vrot.slane %v2272_v18, 5  ;;  %v2302_v51 = vshll.u32 %v6554_v61, 16  ;;  %v2306_v28 = vshrl.u32 %v6554_v61, 16  ;;  %v2286_v0 = vrot.slane %v2285_v13, 4 }
 0x13e   : > { %6005 = vmatprep.mubr.msk.bf16.mxu1 %vm658_vm3, %v6504_v21  ;;  %v2317_v21 = vshrl.u32 %v5240_v35, 16  ;;  %v6557_v35 = vld [vmem:[%s6628_s25 + $0x98] sm:$0x1]  ;;  %v2341_v61 = vshrl.u32 %v5243_v39, 16  ;;  %v5249_v39 = vld [vmem:[%s6628_s25 + $0xc0] sm:$0xf] }
 0x13f   : > { %v2275_v15 = vor.u32 %v2274_v10, %v2271_v36  ;;  %v8213_v26 = vrot.slane %v2302_v51, 5  ;;  %v2290_v36 = vrot.slane %v2288_v30, 5  ;;  %v2299_v10 = vor.u32 %v2298_v14, %v2295_v9  ;;  %v5246_v51 = vld [vmem:[%s6628_s25 + $0xb4] sm:$0xf] }
 0x140   : > { %v2319_v18 = vrot.slane %v2317_v21, 4  ;;  %v2354_v21 = vshrl.u32 %v6559_v27, 16  ;;  %v2365_v20 = vshrl.u32 %v5246_v51, 16  ;;  %v2368_v42 = vshll.u32 %v5246_v51, 16 }
 0x141   : > { %v2276_v52 = vrot.slane %v2275_v15, 4  ;;  %v2291_v46 = vsel %vm6654_vm4, %v2286_v0, %v2290_v36  ;;  %v2300_v15 = vrot.slane %v2299_v10, 4  ;;  %v2338_v30 = vrot.slane %v2336_v7, 5 }
 0x142   : > { %v2323_v23 = vor.u32 %v2322_v11, %v2319_v18  ;;  %v2343_v9 = vrot.slane %v2341_v61, 4  ;;  %v2356_v11 = vrot.slane %v2354_v21, 4  ;;  %v6563_v61 = vld [vmem:[%s6628_s25 + $0xbc] sm:$0x1] }
 0x143   : > { %v2281_v47 = vsel %vm6654_vm4, %v2276_v52, %v8193_v24  ;;  %v2305_v0 = vsel %vm6654_vm4, %v2300_v15, %v8213_v26  ;;  %v2384_v22 = vshll.u32 %v6563_v61, 16 }
 0x144   : > { %6160 = vmatmul.mubr.msk.bf16.gmra.mrb[8].mxu0 %vm658_vm3, %v5534_v40  ;;  %v2330_v40 = vshrl.u32 %v6555_v60, 16  ;;  %v2324_v17 = vrot.slane %v2323_v23, 4  ;;  %v5263_v24 = vcombine.low %v2281_v47, %v2291_v46 }
 0x145   : > { %6006 = vmatmul.mubr.msk.bf16.gmra.mrb[24].mxu1 %vm658_vm3, %v6505_v2  ;;  %6163 = vmatprep.mubr.msk.bf16.mxu0 %vm658_vm3, %v5535_v54  ;;  %v2308_v54 = vrot.slane %v2306_v28, 4 }
 0x146   : > { %6009 = vmatprep.mubr.msk.bf16.mxu1 %vm658_vm3, %v6506_v34  ;;  %v2332_v2 = vrot.slane %v2330_v40, 4  ;;  %v2312_v34 = vshll.u32 %v6557_v35, 16  ;;  %v2329_v10 = vsel %vm6654_vm4, %v2324_v17, %v8216_v6  ;;  %v2410_v17 = vrot.slane %v2408_v57, 5 }
 0x147   : > { %v2309_v49 = vor.u32 %v2308_v54, %v8213_v26  ;;  %v2346_v54 = vrot.slane %v2344_v45, 5  ;;  %v6561_v26 = vld [vmem:[%s6628_s25 + $0xb0] sm:$0x1] }
 0x148   : > { %v2333_v28 = vor.u32 %v2332_v2, %v8216_v6  ;;  %v2314_v60 = vrot.slane %v2312_v34, 5  ;;  %v2360_v35 = vshll.u32 %v6561_v26, 16  ;;  %v2389_v34 = vshrl.u32 %v5249_v39, 16 }
 0x149   : > { %v2310_v13 = vrot.slane %v2309_v49, 4  ;;  %v2347_v38 = vor.u32 %v2346_v54, %v2343_v9  ;;  %v2392_v6 = vshll.u32 %v5249_v39, 16  ;;  %v6562_v49 = vld [vmem:[%s6628_s25 + $0xc4] sm:$0xf] }
 0x14a   : > { %v2334_v14 = vrot.slane %v2333_v28, 4  ;;  %v2398_v23 = vshll.u32 %v6562_v49, 16  ;;  %v2402_v25 = vshrl.u32 %v6562_v49, 16  ;;  %v2362_v45 = vrot.slane %v2360_v35, 5 }
 0x14b   : > { %v2315_v36 = vsel %vm6654_vm4, %v2310_v13, %v2314_v60  ;;  %v2348_v51 = vrot.slane %v2347_v38, 4  ;;  %v2386_v60 = vrot.slane %v2384_v22, 5 }
 0x14c   : > { %6164 = vmatmul.mubr.msk.bf16.gmra.mrb[12].mxu0 %vm658_vm3, %v5536_v53  ;;  %v2350_v53 = vshll.u32 %v6559_v27, 16  ;;  %v2339_v59 = vsel %vm6654_vm4, %v2334_v14, %v2338_v30  ;;  %v5264_v44 = vcombine.low %v2305_v0, %v2315_v36  ;;  %v2391_v27 = vrot.slane %v2389_v34, 4 }
 0x14d   : > { %6010 = vmatmul.mubr.msk.bf16.gmra.mrb[28].mxu1 %vm658_vm3, %v6507_v19  ;;  %6167 = vmatprep.mubr.msk.bf16.mxu0 %vm658_vm3, %v5537_v33  ;;  %v6560_v33 = vld [vmem:[%s6628_s25 + $0xb8] sm:$0xf]  ;;  %v2367_v19 = vrot.slane %v2365_v20, 4  ;;  %v2400_v21 = vrot.slane %v2398_v23, 5  ;;  %v2404_v47 = vrot.slane %v2402_v25, 4 }
 0x14e   : > { %6031 = vmatprep.mubr.msk.bf16.mxu1 %vm658_vm3, %v5261_v41  ;;  %v2374_v12 = vshll.u32 %v6560_v33, 16  ;;  %v2378_v40 = vshrl.u32 %v6560_v33, 16  ;;  %v2352_v18 = vrot.slane %v2350_v53, 5  ;;  %v2370_v41 = vrot.slane %v2368_v42, 5 }
 0x14f   : > { %v2394_v53 = vrot.slane %v2392_v6, 5 }
 0x150   : > { %v2376_v52 = vrot.slane %v2374_v12, 5  ;;  %v2380_v2 = vrot.slane %v2378_v40, 4  ;;  %v2353_v20 = vsel %vm6654_vm4, %v2348_v51, %v2352_v18  ;;  %v2405_v12 = vor.u32 %v2404_v47, %v2400_v21 }
 0x151   : > { %v2395_v33 = vor.u32 %v2394_v53, %v2391_v27 }
 0x152   : > { %v2381_v7 = vor.u32 %v2380_v2, %v2376_v52  ;;  %v2406_v13 = vrot.slane %v2405_v12, 4  ;;  %v8315_v2 = vld [vmem:[%s8380_s2] ss:$0 sm:$0xff] }
 0x153   : > { %v2396_v40 = vrot.slane %v2395_v33, 4 }
 0x154   : > { %6168 = vmatmul.mubr.msk.bf16.gmra.mrb[16].mxu0 %vm658_vm3, %v5538_v37  ;;  %v2357_v37 = vor.u32 %v2356_v11, %v2352_v18  ;;  %v2382_v15 = vrot.slane %v2381_v7, 4  ;;  %v2411_v9 = vsel %vm6654_vm4, %v2406_v13, %v2410_v17 }
 0x155   : > { %6032 = vmatmul.mubr.msk.bf16.vlgmr.msra.gmra.mrb[16].mxu1 %vm658_vm3, %v8022_v1  ;;  %6171 = vmatprep.mubr.msk.bf16.mxu0 %vm658_vm3, %v5539_v3  ;;  %v2371_v1 = vor.u32 %v2370_v41, %v2367_v19  ;;  %v5265_v3 = vcombine.low %v2329_v10, %v2339_v59  ;;  %v2401_v30 = vsel %vm6654_vm4, %v2396_v40, %v2400_v21 }
 0x156   : > { %6035 = vmatprep.mubr.msk.bf16.mxu1 %vm658_vm3, %v5263_v24  ;;  %v2358_v28 = vrot.slane %v2357_v37, 4  ;;  %v2387_v48 = vsel %vm6654_vm4, %v2382_v15, %v2386_v60  ;;  %v5268_v14 = vcombine.low %v2401_v30, %v2411_v9 }
 0x157   : > { %v2372_v46 = vrot.slane %v2371_v1, 4 }
 0x158   : > { %v2363_v42 = vsel %vm6654_vm4, %v2358_v28, %v2362_v45 }
 0x159   : > { %v5266_v62 = vcombine.low %v2353_v20, %v2363_v42 }
 0x15c   : > { %6172 = vmatmul.mubr.msk.bf16.gmra.mrb[20].mxu0 %vm658_vm3, %v5540_v8  ;;  %v2377_v8 = vsel %vm6654_vm4, %v2372_v46, %v2376_v52 }
 0x15d   : > { %6036 = vmatmul.mubr.msk.bf16.gmra.mrb[20].mxu1 %vm658_vm3, %v5264_v44  ;;  %6175 = vmatprep.mubr.msk.bf16.mxu0 %vm658_vm3, %v5541_v56  ;;  %v5267_v56 = vcombine.low %v2377_v8, %v2387_v48 }
 0x15e   : > { %6039 = vmatprep.mubr.msk.bf16.mxu1 %vm658_vm3, %v5265_v3 }
 0x164   : > { %6176 = vmatmul.mubr.msk.bf16.gmra.mrb[24].mxu0 %vm658_vm3, %v5542_v43 }
 0x165   : > { %6040 = vmatmul.mubr.msk.bf16.gmra.mrb[24].mxu1 %vm658_vm3, %v5266_v62  ;;  %6179 = vmatprep.mubr.msk.bf16.mxu0 %vm658_vm3, %v5543_v50 }
 0x166   : > { %6043 = vmatprep.mubr.msk.bf16.mxu1 %vm658_vm3, %v5267_v56 }
 0x16c   : > { %6180 = vmatmul.mubr.msk.bf16.gmra.mrb[28].mxu0 %vm658_vm3, %v5544_v29 }
 0x16d   : > { %6044 = vmatmul.mubr.msk.bf16.gmra.mrb[28].mxu1 %vm658_vm3, %v5268_v14 }
 0x1e8   : > { %v5983_v63 = vpop.f32.mrb[0].mxu1 }
 0x1e9   : > { %v1821_v4 = vpop.f32.mrb[1].mxu1 }
 0x1ea   : > { %v5984_v43 = vpop.f32.mrb[2].mxu1 }
 0x1eb   : > { %v1824_v16 = vpop.f32.mrb[3].mxu1 }
 0x1f0   : > { %v5987_v58 = vpop.f32.mrb[4].mxu1 }
 0x1f1   : > { %v1837_v50 = vpop.f32.mrb[5].mxu1 }
 0x1f2   : > { %v5988_v54 = vpop.f32.mrb[6].mxu1 }
 0x1f3   : > { %v1840_v18 = vpop.f32.mrb[7].mxu1 }
 0x1f8   : > { %v5991_v11 = vpop.f32.mrb[8].mxu1 }
 0x1f9   : > { %v1853_v24 = vpop.f32.mrb[9].mxu1 }
 0x1fa   : > { %v5992_v32 = vpop.f32.mrb[10].mxu1 }
 0x1fb   : > { %v1856_v19 = vpop.f32.mrb[11].mxu1 }
 0x200   : > { %v8304_v41 = vpop.f32.mrb[12].mxu1 }
 0x201   : > { %v8306_v5 = vpop.f32.mrb[13].mxu1 }
 0x202   : > { %v8308_v55 = vpop.f32.mrb[14].mxu1 }
 0x203   : > { %v8310_v29 = vpop.f32.mrb[15].mxu1 }
 0x207   : > { %v6153_v52 = vpop.f32.mrb[0].mxu0 }
 0x208   : > { %v6185_v39 = vadd.f32 %v6153_v52, %v5983_v63  ;;  %v4572_v0 = vpop.f32.mrb[1].mxu0 }
 0x209   : > { %v6186_v36 = vadd.f32 %v4572_v0, %v1821_v4  ;;  %v6154_v10 = vpop.f32.mrb[2].mxu0 }
 0x20a   : > { %v4740_v59 = vadd.f32 %v6185_v39, %v8315_v2  ;;  %v6187_v38 = vadd.f32 %v6154_v10, %v5984_v43  ;;  %v4575_v37 = vpop.f32.mrb[3].mxu0 }
 0x20b   : > { %v4738_v26 = vadd.f32 %v6186_v36, %v8315_v2  ;;  %v6188_v35 = vadd.f32 %v4575_v37, %v1824_v16 }
 0x20c   : > { %v4741_v34 = vadd.f32 %v6187_v38, %v8315_v2  ;;  %v4772_v49 = vmax.f32 %v4740_v59, 0.0 }
 0x20d   : > { %v4739_v6 = vadd.f32 %v6188_v35, %v8315_v2  ;;  %v4770_v25 = vmax.f32 %v4738_v26, 0.0 }
 0x20e   : > { %v4773_v23 = vmax.f32 %v4741_v34, 0.0 }
 0x20f   : > { %v4771_v1 = vmax.f32 %v4739_v6, 0.0  ;;  %v6157_v7 = vpop.f32.mrb[4].mxu0 }
 0x210   : > { %v5637_v61 = vpack.c.bf16 %v4773_v23, %v4772_v49  ;;  %v6189_v22 = vadd.f32 %v6157_v7, %v5987_v58  ;;  %v4588_v44 = vpop.f32.mrb[5].mxu0 }
 0x211   : > { %v5632_v3 = vpack.c.bf16 %v4771_v1, %v4770_v25  ;;  %v6190_v51 = vadd.f32 %v4588_v44, %v1837_v50  ;;  %v6158_v28 = vpop.f32.mrb[6].mxu0 }
 0x212   : > { %5709 = vst [vmem:[%s8325_s20 + $0x8] sm:$0xff] %v5637_v61   ;;  %v4744_v45 = vadd.f32 %v6189_v22, %v8315_v2  ;;  %v6191_v27 = vadd.f32 %v6158_v28, %v5988_v54  ;;  %v4591_v53 = vpop.f32.mrb[7].mxu0 }
 0x213   : > { %5633 = vst [vmem:[%s8325_s20] sm:$0xff] %v5632_v3   ;;  %v4742_v21 = vadd.f32 %v6190_v51, %v8315_v2  ;;  %v6192_v47 = vadd.f32 %v4591_v53, %v1840_v18 }
 0x214   : > { %v4745_v46 = vadd.f32 %v6191_v27, %v8315_v2  ;;  %v4776_v60 = vmax.f32 %v4744_v45, 0.0 }
 0x215   : > { %v4743_v15 = vadd.f32 %v6192_v47, %v8315_v2  ;;  %v4774_v42 = vmax.f32 %v4742_v21, 0.0 }
 0x216   : > { %v4777_v20 = vmax.f32 %v4745_v46, 0.0 }
 0x217   : > { %v4775_v33 = vmax.f32 %v4743_v15, 0.0  ;;  %v6161_v12 = vpop.f32.mrb[8].mxu0 }
 0x218   : > { %v5647_v31 = vpack.c.bf16 %v4777_v20, %v4776_v60  ;;  %v6193_v57 = vadd.f32 %v6161_v12, %v5991_v11  ;;  %v4604_v8 = vpop.f32.mrb[9].mxu0 }
 0x219   : > { %v5642_v48 = vpack.c.bf16 %v4775_v33, %v4774_v42  ;;  %v6194_v62 = vadd.f32 %v4604_v8, %v1853_v24  ;;  %v6162_v56 = vpop.f32.mrb[10].mxu0 }
 0x21a   : > { %5711 = vst [vmem:[%s8325_s20 + $0x18] sm:$0xff] %v5647_v31   ;;  %v4748_v40 = vadd.f32 %v6193_v57, %v8315_v2  ;;  %v6195_v13 = vadd.f32 %v6162_v56, %v5992_v32  ;;  %v4607_v17 = vpop.f32.mrb[11].mxu0 }
 0x21b   : > { %5710 = vst [vmem:[%s8325_s20 + $0x10] sm:$0xff] %v5642_v48   ;;  %v4746_v30 = vadd.f32 %v6194_v62, %v8315_v2  ;;  %v6196_v9 = vadd.f32 %v4607_v17, %v1856_v19 }
 0x21c   : > { %v4749_v14 = vadd.f32 %v6195_v13, %v8315_v2  ;;  %v4780_v4 = vmax.f32 %v4748_v40, 0.0 }
 0x21d   : > { %v4747_v63 = vadd.f32 %v6196_v9, %v8315_v2  ;;  %v4778_v16 = vmax.f32 %v4746_v30, 0.0 }
 0x21e   : > { %v4781_v43 = vmax.f32 %v4749_v14, 0.0 }
 0x21f   : > { %v4779_v58 = vmax.f32 %v4747_v63, 0.0  ;;  %v6165_v50 = vpop.f32.mrb[12].mxu0 }
 0x220   : > { %v5657_v54 = vpack.c.bf16 %v4781_v43, %v4780_v4  ;;  %v6197_v18 = vadd.f32 %v6165_v50, %v8304_v41  ;;  %v4620_v11 = vpop.f32.mrb[13].mxu0 }
 0x221   : > { %v5652_v24 = vpack.c.bf16 %v4779_v58, %v4778_v16  ;;  %v6198_v32 = vadd.f32 %v4620_v11, %v8306_v5  ;;  %v6166_v52 = vpop.f32.mrb[14].mxu0 }
 0x222   : > { %5713 = vst [vmem:[%s8325_s20 + $0x28] sm:$0xff] %v5657_v54   ;;  %v4752_v19 = vadd.f32 %v6197_v18, %v8315_v2  ;;  %v6199_v39 = vadd.f32 %v6166_v52, %v8308_v55  ;;  %v4623_v0 = vpop.f32.mrb[15].mxu0 }
 0x223   : > { %5712 = vst [vmem:[%s8325_s20 + $0x20] sm:$0xff] %v5652_v24   ;;  %v4750_v36 = vadd.f32 %v6198_v32, %v8315_v2  ;;  %v6200_v10 = vadd.f32 %v4623_v0, %v8310_v29 }
 0x224   : > { %v4753_v59 = vadd.f32 %v6199_v39, %v8315_v2  ;;  %v4784_v38 = vmax.f32 %v4752_v19, 0.0 }
 0x225   : > { %v4751_v41 = vadd.f32 %v6200_v10, %v8315_v2  ;;  %v4782_v37 = vmax.f32 %v4750_v36, 0.0 }
 0x226   : > { %v4785_v5 = vmax.f32 %v4753_v59, 0.0 }
 0x227   : > { %v4783_v26 = vmax.f32 %v4751_v41, 0.0  ;;  %v6169_v35 = vpop.f32.mrb[16].mxu0 }
 0x228   : > { %v5667_v34 = vpack.c.bf16 %v4785_v5, %v4784_v38  ;;  %v6033_v6 = vpop.f32.mrb[16].mxu1  ;;  %v4636_v55 = vpop.f32.mrb[17].mxu0 }
 0x229   : > { %v5662_v49 = vpack.c.bf16 %v4783_v26, %v4782_v37  ;;  %v6201_v23 = vadd.f32 %v6169_v35, %v6033_v6  ;;  %v2611_v25 = vpop.f32.mrb[17].mxu1  ;;  %v6170_v1 = vpop.f32.mrb[18].mxu0 }
 0x22a   : > { %5715 = vst [vmem:[%s8325_s20 + $0x38] sm:$0xff] %v5667_v34   ;;  %v6202_v7 = vadd.f32 %v4636_v55, %v2611_v25  ;;  %v6034_v29 = vpop.f32.mrb[18].mxu1  ;;  %v4639_v61 = vpop.f32.mrb[19].mxu0 }
 0x22b   : > { %5714 = vst [vmem:[%s8325_s20 + $0x30] sm:$0xff] %v5662_v49   ;;  %v4756_v22 = vadd.f32 %v6201_v23, %v8315_v2  ;;  %v6203_v44 = vadd.f32 %v6170_v1, %v6034_v29  ;;  %v2614_v3 = vpop.f32.mrb[19].mxu1 }
 0x22c   : > { %v4754_v51 = vadd.f32 %v6202_v7, %v8315_v2  ;;  %v6204_v28 = vadd.f32 %v4639_v61, %v2614_v3 }
 0x22d   : > { %v4757_v45 = vadd.f32 %v6203_v44, %v8315_v2  ;;  %v4788_v53 = vmax.f32 %v4756_v22, 0.0 }
 0x22e   : > { %v4755_v27 = vadd.f32 %v6204_v28, %v8315_v2  ;;  %v4786_v46 = vmax.f32 %v4754_v51, 0.0 }
 0x22f   : > { %v4789_v21 = vmax.f32 %v4757_v45, 0.0  ;;  %v6173_v47 = vpop.f32.mrb[20].mxu0 }
 0x230   : > { %v4787_v15 = vmax.f32 %v4755_v27, 0.0  ;;  %v6037_v60 = vpop.f32.mrb[20].mxu1  ;;  %v4652_v20 = vpop.f32.mrb[21].mxu0 }
 0x231   : > { %v5677_v42 = vpack.c.bf16 %v4789_v21, %v4788_v53  ;;  %v6205_v33 = vadd.f32 %v6173_v47, %v6037_v60  ;;  %v2627_v12 = vpop.f32.mrb[21].mxu1  ;;  %v6174_v31 = vpop.f32.mrb[22].mxu0 }
 0x232   : > { %v5672_v57 = vpack.c.bf16 %v4787_v15, %v4786_v46  ;;  %v6206_v8 = vadd.f32 %v4652_v20, %v2627_v12  ;;  %v6038_v48 = vpop.f32.mrb[22].mxu1  ;;  %v4655_v62 = vpop.f32.mrb[23].mxu0 }
 0x233   : > { %5717 = vst [vmem:[%s8325_s20 + $0x48] sm:$0xff] %v5677_v42   ;;  %v4760_v56 = vadd.f32 %v6205_v33, %v8315_v2  ;;  %v6207_v40 = vadd.f32 %v6174_v31, %v6038_v48  ;;  %v2630_v13 = vpop.f32.mrb[23].mxu1 }
 0x234   : > { %5716 = vst [vmem:[%s8325_s20 + $0x40] sm:$0xff] %v5672_v57   ;;  %v4758_v17 = vadd.f32 %v6206_v8, %v8315_v2  ;;  %v6208_v30 = vadd.f32 %v4655_v62, %v2630_v13 }
 0x235   : > { %v4761_v9 = vadd.f32 %v6207_v40, %v8315_v2  ;;  %v4792_v63 = vmax.f32 %v4760_v56, 0.0 }
 0x236   : > { %v4759_v14 = vadd.f32 %v6208_v30, %v8315_v2  ;;  %v4790_v16 = vmax.f32 %v4758_v17, 0.0 }
 0x237   : > { %v4793_v4 = vmax.f32 %v4761_v9, 0.0  ;;  %v6177_v43 = vpop.f32.mrb[24].mxu0 }
 0x238   : > { %v4791_v58 = vmax.f32 %v4759_v14, 0.0  ;;  %v6041_v50 = vpop.f32.mrb[24].mxu1  ;;  %v4668_v54 = vpop.f32.mrb[25].mxu0 }
 0x239   : > { %v5687_v18 = vpack.c.bf16 %v4793_v4, %v4792_v63  ;;  %v6209_v11 = vadd.f32 %v6177_v43, %v6041_v50  ;;  %v2643_v24 = vpop.f32.mrb[25].mxu1  ;;  %v6178_v32 = vpop.f32.mrb[26].mxu0 }
 0x23a   : > { %v5682_v52 = vpack.c.bf16 %v4791_v58, %v4790_v16  ;;  %v6210_v19 = vadd.f32 %v4668_v54, %v2643_v24  ;;  %v6042_v39 = vpop.f32.mrb[26].mxu1  ;;  %v4671_v0 = vpop.f32.mrb[27].mxu0 }
 0x23b   : > { %5719 = vst [vmem:[%s8325_s20 + $0x58] sm:$0xff] %v5687_v18   ;;  %v4764_v36 = vadd.f32 %v6209_v11, %v8315_v2  ;;  %v6211_v10 = vadd.f32 %v6178_v32, %v6042_v39  ;;  %v2646_v59 = vpop.f32.mrb[27].mxu1 }
 0x23c   : > { %5718 = vst [vmem:[%s8325_s20 + $0x50] sm:$0xff] %v5682_v52   ;;  %v4762_v41 = vadd.f32 %v6210_v19, %v8315_v2  ;;  %v6212_v38 = vadd.f32 %v4671_v0, %v2646_v59 }
 0x23d   : > { %v4765_v5 = vadd.f32 %v6211_v10, %v8315_v2  ;;  %v4796_v26 = vmax.f32 %v4764_v36, 0.0 }
 0x23e   : > { %v4763_v37 = vadd.f32 %v6212_v38, %v8315_v2  ;;  %v4794_v6 = vmax.f32 %v4762_v41, 0.0 }
 0x23f   : > { %v4797_v35 = vmax.f32 %v4765_v5, 0.0  ;;  %v6181_v34 = vpop.f32.mrb[28].mxu0 }
 0x240   : > { %v4795_v55 = vmax.f32 %v4763_v37, 0.0  ;;  %v6045_v49 = vpop.f32.mrb[28].mxu1  ;;  %v4684_v23 = vpop.f32.mrb[29].mxu0 }
 0x241   : > { %v5697_v25 = vpack.c.bf16 %v4797_v35, %v4796_v26  ;;  %v6213_v1 = vadd.f32 %v6181_v34, %v6045_v49  ;;  %v2659_v7 = vpop.f32.mrb[29].mxu1  ;;  %v6182_v29 = vpop.f32.mrb[30].mxu0 }
 0x242   : > { %v5692_v61 = vpack.c.bf16 %v4795_v55, %v4794_v6  ;;  %v6214_v22 = vadd.f32 %v4684_v23, %v2659_v7  ;;  %v6046_v44 = vpop.f32.mrb[30].mxu1  ;;  %v4687_v3 = vpop.f32.mrb[31].mxu0 }
 0x243   : > { %5721 = vst [vmem:[%s8325_s20 + $0x68] sm:$0xff] %v5697_v25   ;;  %v4768_v51 = vadd.f32 %v6213_v1, %v8315_v2  ;;  %v6215_v28 = vadd.f32 %v6182_v29, %v6046_v44  ;;  %v2662_v45 = vpop.f32.mrb[31].mxu1 }
 0x244   : > { %5720 = vst [vmem:[%s8325_s20 + $0x60] sm:$0xff] %v5692_v61   ;;  %v4766_v27 = vadd.f32 %v6214_v22, %v8315_v2  ;;  %v6216_v53 = vadd.f32 %v4687_v3, %v2662_v45 }
 0x245   : > { %v4769_v21 = vadd.f32 %v6215_v28, %v8315_v2  ;;  %v4800_v46 = vmax.f32 %v4768_v51, 0.0 }
 0x246   : > { %v4767_v47 = vadd.f32 %v6216_v53, %v8315_v2  ;;  %v4798_v60 = vmax.f32 %v4766_v27, 0.0 }
 0x247   : > { %v4801_v15 = vmax.f32 %v4769_v21, 0.0 }
 0x248   : > { %v4799_v20 = vmax.f32 %v4767_v47, 0.0 }
 0x249   : > { %v5707_v42 = vpack.c.bf16 %v4801_v15, %v4800_v46 }
 0x24a   : > { %v5702_v33 = vpack.c.bf16 %v4799_v20, %v4798_v60 }
 0x24b   : > { %5723 = vst [vmem:[%s8325_s20 + $0x78] sm:$0xff] %v5707_v42  }
 0x24c   : > { %5722 = vst [vmem:[%s8325_s20 + $0x70] sm:$0xff] %v5702_v33  }
 0x24d PF: > { %s13_s12 = sadd.s32 1, %s6571_s12  }
 0x24e   : > { %p10_p4 = scmp.ge.s32.totalorder %s13_s12, 4  }
 0x250   :  { %12 = sbr.rel (!%p10_p4) target bundleno = 1 (0x1), region = 72 }

// kernel: encoder_cnn_forward.4
= control target key start
LH: loop header
LB: loop body
LE: loop exit
PB: predicated region body
PF: predicated region fallthrough
CT: control target
= control target key end

     0   :  { %s7169_s12 = smov 0   ;;  %s9015_s0 = inlined_call_operand.vmem [shape: bf16[2,18,18,128], index: 0, kind: input, shape index: {}]   ;;  %s9016_s1 = inlined_call_operand.vmem [shape: bf16[9,128,128], index: 1, kind: input, shape index: {}]   ;;  %s9017_s2 = inlined_call_operand.vmem [shape: f32[1,128], index: 2, kind: input, shape index: {}]   ;;  %s9018_s3 = inlined_call_operand.vmem [shape: bf16[2,16,16,128], index: 3, kind: output, shape index: {}]  }
   0x1 LB: > { %s5267_s13 = sadd.s32 4294967295, %s7147_s12   ;;  %p5271_p0 = scmp.ge.s32.totalorder %s7147_s12, 1  ;;  %s7147_s12 = sphi %s7169_s12, %s13_s12  }
   0x2   : > { %p137_p1 = scmp.lt.s32.totalorder %s7147_s12, 3 }
   0x4   : > { %p138_p2 = pnand %p5271_p0, %p137_p1 }
   0x6   : > { %141 = sbr.rel (%p138_p2) target bundleno = 589 (0x24d), region = 32 }
   0xd   : > { %v6951_v0 = vld [vmem:[%s9016_s1 + $0x40] sm:$0xff]   ;;  %p161_p3 = scmp.lt.s32.totalorder %s5267_s13, 1  ;;  %v6953_v2 = vld [vmem:[%s9016_s1 + $0x48] sm:$0xff]   ;;  %v6955_v4 = vld [vmem:[%s9016_s1 + $0x50] sm:$0xff]   ;;  %vm236_vm0 = vsmask.f32 3328 }
   0xe   : > { %v6952_v1 = vld [vmem:[%s9016_s1 + $0x100] sm:$0xff]   ;;  %6238 = vmatprep.subr.bf16.mxu1 %v6951_v0  ;;  %v6954_v3 = vld [vmem:[%s9016_s1 + $0x108] sm:$0xff]   ;;  %v6956_v5 = vld [vmem:[%s9016_s1 + $0x110] sm:$0xff]   ;;  %vm237_vm1 = vsmask.f32 7440  ;;  %vm1266_vm3 = vcmask 1042432  }
   0xf   : > { %6430 = vmatprep.subr.bf16.mxu0 %v6952_v1  ;;  %6239 = vmatpush3.bf16.msra.mxu1 %v6951_v0  ;;  %s9086_s13 = smov (!%p161_p3, %s5267_s13), 1  ;;  %v6957_v6 = vld [vmem:[%s9016_s1 + $0x58] sm:$0xff]   ;;  %v6959_v8 = vld [vmem:[%s9016_s1 + $0x60] sm:$0xff]   ;;  %v6961_v10 = vld [vmem:[%s9016_s1 + $0x68] sm:$0xff]   ;;  %vm1267_vm4 = vcmask 1046532  }
  0x10   : > { %6431 = vmatpush3.bf16.msra.mxu0 %v6952_v1  ;;  %6240 = vmatprep.subr.bf16.mxu1 %v6953_v2  ;;  %v6958_v7 = vld [vmem:[%s9016_s1 + $0x118] sm:$0xff]   ;;  %s6942_s30 = smul.u32 216, %s9086_s13  ;;  %v6960_v9 = vld [vmem:[%s9016_s1 + $0x120] sm:$0xff]   ;;  %v6962_v11 = vld [vmem:[%s9016_s1 + $0x128] sm:$0xff]   ;;  %s5894_s7 = sshll.u32 %s9086_s13, 7 }
  0x11   : > { %6432 = vmatprep.subr.bf16.mxu0 %v6954_v3  ;;  %v6963_v25 = vld [vmem:[%s9016_s1 + $0x70] sm:$0xff]   ;;  %v6965_v36 = vld [vmem:[%s9016_s1 + $0x78] sm:$0xff]   ;;  %vm7245_vm2 = vmor %vm236_vm0, %vm237_vm1  ;;  %s8962_s11 = scalar_lea.vmem %s9018_s3, %s5894_s7 }
  0x12   : > { %s7213_s10 = scalar_lea.vmem %s9015_s0, %s6942_s30  ;;  %v6964_v30 = vld [vmem:[%s9016_s1 + $0x130] sm:$0xff]   ;;  %v6966_v51 = vld [vmem:[%s9016_s1 + $0x138] sm:$0xff]   ;;  %vm7491_vm5 = vmor %vm1266_vm3, %vm1267_vm4 }
  0x13   : > { %6241 = vmatpush3.bf16.msra.mxu1 %v6953_v2  ;;  %v172_v12 = vld [vmem:[%s7213_s10] sm:$0xf]  ;;  %v173_v13 = vld [vmem:[%s7213_s10 + $0x4] sm:$0xf]  ;;  %v220_v14 = vld [vmem:[%s7213_s10 + $0x8] sm:$0x1] }
  0x14   : > { %6433 = vmatpush3.bf16.msra.mxu0 %v6954_v3  ;;  %6242 = vmatprep.subr.bf16.mxu1 %v6955_v4  ;;  %v240_v15 = vshrl.u32 %v172_v12, 16  ;;  %v243_v16 = vshll.u32 %v172_v12, 16  ;;  %v249_v17 = vshll.u32 %v173_v13, 16  ;;  %v253_v18 = vshrl.u32 %v173_v13, 16  ;;  %v5467_v20 = vld [vmem:[%s7213_s10 + $0xc] sm:$0xf] }
  0x15   : > { %6434 = vmatprep.subr.bf16.mxu0 %v6956_v5  ;;  %v259_v19 = vshll.u32 %v220_v14, 16  ;;  %v7226_v23 = vld [vmem:[%s7213_s10 + $0x10] sm:$0xf]  ;;  %v7229_v24 = vld [vmem:[%s7213_s10 + $0x14] sm:$0x1]  ;;  %v2139_v29 = vshrl.u32 %v5467_v20, 16 }
  0x16   : > { %v242_v21 = vrot.slane %v240_v15, 4  ;;  %v245_v22 = vrot.slane %v243_v16, 5  ;;  %v251_v26 = vrot.slane %v249_v17, 5  ;;  %v255_v27 = vrot.slane %v253_v18, 4  ;;  %v174_v35 = vld [vmem:[%s7213_s10 + $0xc] sm:$0xf] }
  0x17   : > { %6243 = vmatpush3.bf16.msra.mxu1 %v6955_v4  ;;  %v261_v28 = vrot.slane %v259_v19, 5  ;;  %v2142_v32 = vshll.u32 %v5467_v20, 16  ;;  %v2148_v33 = vshll.u32 %v7226_v23, 16  ;;  %v2152_v34 = vshrl.u32 %v7226_v23, 16  ;;  %v175_v42 = vld [vmem:[%s7213_s10 + $0x10] sm:$0xf] }
  0x18   : > { %6435 = vmatpush3.bf16.msra.mxu0 %v6956_v5  ;;  %6244 = vmatprep.subr.bf16.mxu1 %v6957_v6  ;;  %v246_v31 = vor.u32 %v245_v22, %v242_v21  ;;  %v256_v38 = vor.u32 %v255_v27, %v251_v26  ;;  %v2141_v39 = vrot.slane %v2139_v29, 4  ;;  %v2158_v40 = vshll.u32 %v7229_v24, 16  ;;  %v221_v55 = vld [vmem:[%s7213_s10 + $0x14] sm:$0x1]  ;;  %v5470_v57 = vld [vmem:[%s7213_s10 + $0x18] sm:$0xf] }
  0x19   : > { %6436 = vmatprep.subr.bf16.mxu0 %v6958_v7  ;;  %v2913_v41 = vrot.slane %v7229_v24, 5  ;;  %v2144_v44 = vrot.slane %v2142_v32, 5  ;;  %v2150_v45 = vrot.slane %v2148_v33, 5  ;;  %v2154_v46 = vrot.slane %v2152_v34, 4  ;;  %v7262_v62 = vld [vmem:[%s7213_s10 + $0x1c] sm:$0xf] }
  0x1a   : > { %v247_v43 = vrot.slane %v246_v31, 4  ;;  %v257_v47 = vrot.slane %v256_v38, 4  ;;  %v2160_v48 = vrot.slane %v2158_v40, 5  ;;  %v264_v49 = vshrl.u32 %v174_v35, 16  ;;  %v6967_v3 = vld [vmem:[%s9016_s1] sm:$0xff]  }
  0x1b   : > { %6245 = vmatpush3.bf16.msra.mxu1 %v6957_v6  ;;  %v267_v50 = vshll.u32 %v174_v35, 16  ;;  %v2145_v53 = vor.u32 %v2144_v44, %v2141_v39  ;;  %v2155_v54 = vor.u32 %v2154_v46, %v2150_v45  ;;  %v273_v56 = vshll.u32 %v175_v42, 16  ;;  %v7270_v4 = vld [vmem:[%s9016_s1 + $0x140] sm:$0xff]   ;;  %v176_v21 = vld [vmem:[%s7213_s10 + $0x18] sm:$0xf]  ;;  %v6970_v46 = vld [vmem:[%s9016_s1 + $0x8] sm:$0xff]  }
  0x1c   : > { %6437 = vmatpush3.bf16.msra.mxu0 %v6958_v7  ;;  %6246 = vmatprep.subr.bf16.mxu1 %v6959_v8  ;;  %v252_v52 = vsel %vm7245_vm2, %v247_v43, %v251_v26  ;;  %v262_v58 = vsel %vm7245_vm2, %v257_v47, %v261_v28  ;;  %v266_v59 = vrot.slane %v264_v49, 4  ;;  %v277_v61 = vshrl.u32 %v175_v42, 16  ;;  %v177_v28 = vld [vmem:[%s7213_s10 + $0x1c] sm:$0xf]  ;;  %v222_v33 = vld [vmem:[%s7213_s10 + $0x20] sm:$0x1] }
  0x1d   : > { %6438 = vmatprep.subr.bf16.mxu0 %v6960_v9  ;;  %v269_v60 = vrot.slane %v267_v50, 5  ;;  %v5291_v63 = vcombine.low %v252_v52, %v262_v58  ;;  %v2146_v0 = vrot.slane %v2145_v53, 4  ;;  %v2156_v1 = vrot.slane %v2155_v54, 4  ;;  %v5473_v39 = vld [vmem:[%s7213_s10 + $0x24] sm:$0xf] }
  0x1e   : > { %v275_v2 = vrot.slane %v273_v56, 5  ;;  %v279_v6 = vrot.slane %v277_v61, 4  ;;  %v283_v7 = vshll.u32 %v221_v55, 16  ;;  %v2166_v12 = vshll.u32 %v5470_v57, 16  ;;  %v178_v52 = vld [vmem:[%s7213_s10 + $0x24] sm:$0xf] }
  0x1f   : > { %6247 = vmatpush3.bf16.msra.mxu1 %v6959_v8  ;;  %v270_v5 = vor.u32 %v269_v60, %v266_v59  ;;  %v7273_v8 = vld [vmem:[%s7213_s10 + $0x20] sm:$0x1]  ;;  %6254 = vmatprep.mubr.bf16.mxu1 %v5291_v63  ;;  %v2172_v19 = vshll.u32 %v7262_v62, 16  ;;  %v2176_v20 = vshrl.u32 %v7262_v62, 16  ;;  %v2917_v27 = vrot.slane %v7262_v62, 5  ;;  %v6969_v63 = vld [vmem:[%s9016_s1 + $0x148] sm:$0xff]  }
  0x20   : > { %6439 = vmatpush3.bf16.msra.mxu0 %v6960_v9  ;;  %6248 = vmatprep.subr.bf16.mxu1 %v6961_v10  ;;  %v2151_v9 = vsel %vm7245_vm2, %v2146_v0, %v2150_v45  ;;  %v280_v15 = vor.u32 %v279_v6, %v275_v2  ;;  %v285_v16 = vrot.slane %v283_v7, 5  ;;  %v2168_v18 = vrot.slane %v2166_v12, 5  ;;  %v7298_v45 = vld [vmem:[%s7213_s10 + $0x28] sm:$0xf] }
  0x21   : > { %6440 = vmatprep.subr.bf16.mxu0 %v6962_v11  ;;  %v271_v14 = vrot.slane %v270_v5, 4  ;;  %v2182_v26 = vshll.u32 %v7273_v8, 16  ;;  %v2178_v31 = vrot.slane %v2176_v20, 4  ;;  %v2920_v32 = vrot.slane %v7273_v8, 5  ;;  %v179_v5 = vld [vmem:[%s7213_s10 + $0x28] sm:$0xf] }
  0x22   : > { %v288_v38 = vshrl.u32 %v176_v21, 16  ;;  %v291_v44 = vshll.u32 %v176_v21, 16  ;;  %v301_v49 = vshrl.u32 %v177_v28, 16  ;;  %v307_v50 = vshll.u32 %v222_v33, 16  ;;  %v7329_v33 = vld [vmem:[%s7213_s10 + $0x34] sm:$0xf] }
  0x23   : > { %6249 = vmatpush3.bf16.msra.mxu1 %v6961_v10  ;;  %v2161_v10 = vsel %vm7245_vm2, %v2156_v1, %v2160_v48  ;;  %v276_v22 = vsel %vm7245_vm2, %v271_v14, %v275_v2  ;;  %v2184_v35 = vrot.slane %v2182_v26, 5  ;;  %v297_v48 = vshll.u32 %v177_v28, 16 }
  0x24   : > { %6441 = vmatpush3.bf16.msra.mxu0 %v6962_v11  ;;  %6250 = vmatprep.subr.bf16.mxu1 %v6963_v25  ;;  %v2163_v11 = vshrl.u32 %v5470_v57, 16  ;;  %v5531_v13 = vcombine.low %v2151_v9, %v2161_v10  ;;  %v290_v47 = vrot.slane %v288_v38, 4  ;;  %v293_v55 = vrot.slane %v291_v44, 5 }
  0x25   : > { %6442 = vmatprep.subr.bf16.mxu0 %v6964_v30  ;;  %v2187_v56 = vshrl.u32 %v5473_v39, 16  ;;  %v299_v57 = vrot.slane %v297_v48, 5  ;;  %v303_v58 = vrot.slane %v301_v49, 4  ;;  %v309_v59 = vrot.slane %v307_v50, 5  ;;  %v6972_v48 = vld [vmem:[%s9016_s1 + $0x158] sm:$0xff]  }
  0x26   : > { %v2165_v17 = vrot.slane %v2163_v11, 4  ;;  %6446 = vmatprep.mubr.bf16.mxu0 %v5531_v13  ;;  %v2190_v60 = vshll.u32 %v5473_v39, 16  ;;  %v294_v0 = vor.u32 %v293_v55, %v290_v47  ;;  %v2196_v2 = vshll.u32 %v7298_v45, 16  ;;  %v223_v11 = vld [vmem:[%s7213_s10 + $0x2c] sm:$0x1] }
  0x27   : > { %6251 = vmatpush3.bf16.msra.mxu1 %v6963_v25  ;;  %v281_v25 = vrot.slane %v280_v15, 4  ;;  %v2189_v1 = vrot.slane %v2187_v56, 4  ;;  %v304_v7 = vor.u32 %v303_v58, %v299_v57  ;;  %v2200_v10 = vshrl.u32 %v7298_v45, 16 }
  0x28   : > { %6443 = vmatpush3.bf16.msra.mxu0 %v6964_v30  ;;  %6252 = vmatprep.subr.bf16.mxu1 %v6965_v36  ;;  %v2169_v29 = vor.u32 %v2168_v18, %v2165_v17  ;;  %v2174_v30 = vrot.slane %v2172_v19, 5  ;;  %v2192_v9 = vrot.slane %v2190_v60, 5  ;;  %v295_v12 = vrot.slane %v294_v0, 4  ;;  %v6979_v60 = vld [vmem:[%s9016_s1 + $0x20] sm:$0xff]  }
  0x29   : > { %6444 = vmatprep.subr.bf16.mxu0 %v6966_v51  ;;  %v286_v34 = vsel %vm7245_vm2, %v281_v25, %v285_v16  ;;  %v2198_v13 = vrot.slane %v2196_v2, 5  ;;  %v312_v15 = vshrl.u32 %v178_v52, 16  ;;  %v5476_v16 = vld [vmem:[%s7213_s10 + $0x30] sm:$0xf]  ;;  %v305_v17 = vrot.slane %v304_v7, 4 }
  0x2a   : > { %v5292_v40 = vcombine.low %v276_v22, %v286_v34  ;;  %v2170_v42 = vrot.slane %v2169_v29, 4  ;;  %v2179_v43 = vor.u32 %v2178_v31, %v2174_v30  ;;  %v2193_v18 = vor.u32 %v2192_v9, %v2189_v1  ;;  %v6976_v34 = vld [vmem:[%s9016_s1 + $0x18] sm:$0xff]  }
  0x2b   : > { %6253 = vmatpush3.bf16.msra.mxu1 %v6965_v36  ;;  %v7294_v36 = vrot.slane %v2917_v27, 4  ;;  %v2202_v19 = vrot.slane %v2200_v10, 4  ;;  %v315_v20 = vshll.u32 %v178_v52, 16  ;;  %v300_v21 = vsel %vm7245_vm2, %v295_v12, %v299_v57  ;;  %v224_v2 = vld [vmem:[%s7213_s10 + $0x38] sm:$0x1] }
  0x2c   : > { %6445 = vmatpush3.bf16.msra.mxu0 %v6966_v51  ;;  %6286 = vmatprep.subr.bf16.mxu1 %v6967_v3  ;;  %v7304_v51 = vld [vmem:[%s7213_s10 + $0x2c] sm:$0x1]  ;;  %v2175_v53 = vsel %vm7245_vm2, %v2170_v42, %v2174_v30  ;;  %v2180_v54 = vrot.slane %v2179_v43, 4  ;;  %v314_v25 = vrot.slane %v312_v15, 4  ;;  %v321_v26 = vshll.u32 %v179_v5, 16 }
  0x2d   : > { %6478 = vmatprep.subr.bf16.mxu0 %v7270_v4  ;;  %v2206_v14 = vshll.u32 %v7304_v51, 16  ;;  %v310_v28 = vsel %vm7245_vm2, %v305_v17, %v309_v59  ;;  %v2194_v29 = vrot.slane %v2193_v18, 4  ;;  %v2203_v30 = vor.u32 %v2202_v19, %v2198_v13  ;;  %v181_v59 = vld [vmem:[%s7213_s10 + $0x34] sm:$0xf]  ;;  %v5479_v9 = vld [vmem:[%s7213_s10 + $0x3c] sm:$0xf] }
  0x2e   : > { %6255 = vmatmul.mubr.bf16.vlgmr.msra.gmra.mrb[0].mxu1 %v5292_v40  ;;  %v2185_v61 = vsel %vm7245_vm2, %v2180_v54, %v2184_v35  ;;  %v317_v31 = vrot.slane %v315_v20, 5  ;;  %v5293_v35 = vcombine.low %v300_v21, %v310_v28  ;;  %v323_v38 = vrot.slane %v321_v26, 5  ;;  %v180_v54 = vld [vmem:[%s7213_s10 + $0x30] sm:$0xf]  ;;  %v7363_v19 = vld [vmem:[%s7213_s10 + $0x40] sm:$0xf] }
  0x2f   : > { %6287 = vmatpush3.bf16.msra.mxu1 %v6967_v3  ;;  %v6973_v3 = vld [vmem:[%s9016_s1 + $0x10] sm:$0xff]   ;;  %v5532_v6 = vcombine.low %v2175_v53, %v2185_v61  ;;  %v2208_v22 = vrot.slane %v2206_v14, 5  ;;  %v325_v39 = vshrl.u32 %v179_v5, 16  ;;  %v331_v40 = vshll.u32 %v223_v11, 16  ;;  %v6981_v14 = vld [vmem:[%s9016_s1 + $0x28] sm:$0xff]   ;;  %v6974_v20 = vld [vmem:[%s9016_s1 + $0x160] sm:$0xff]  }
  0x30   : > { %6288 = vmatprep.subr.bf16.mxu1 %v6970_v46  ;;  %v2199_v42 = vsel %vm7245_vm2, %v2194_v29, %v2198_v13  ;;  %v2204_v43 = vrot.slane %v2203_v30, 4  ;;  %v318_v44 = vor.u32 %v317_v31, %v314_v25  ;;  %v2211_v47 = vshrl.u32 %v5476_v16, 16  ;;  %6258 = vmatprep.mubr.bf16.mxu1 %v5293_v35  ;;  %v7371_v28 = vld [vmem:[%s7213_s10 + $0x44] sm:$0x1]  ;;  %v6983_v35 = vld [vmem:[%s9016_s1 + $0x30] sm:$0xff]  }
  0x31   : > { %6447 = vmatmul.mubr.bf16.vlgmr.msra.gmra.mrb[0].mxu0 %v5532_v6  ;;  %v327_v49 = vrot.slane %v325_v39, 4  ;;  %v333_v50 = vrot.slane %v331_v40, 5  ;;  %v2214_v52 = vshll.u32 %v5476_v16, 16  ;;  %v2220_v53 = vshll.u32 %v7329_v33, 16 }
  0x32   : > { %6479 = vmatpush3.bf16.msra.mxu0 %v7270_v4  ;;  %v6971_v4 = vld [vmem:[%s9016_s1 + $0x150] sm:$0xff]   ;;  %v2209_v55 = vsel %vm7245_vm2, %v2204_v43, %v2208_v22  ;;  %v319_v56 = vrot.slane %v318_v44, 4  ;;  %v2213_v57 = vrot.slane %v2211_v47, 4  ;;  %v2224_v58 = vshrl.u32 %v7329_v33, 16 }
  0x33   : > { %6289 = vmatpush3.bf16.msra.mxu1 %v6970_v46  ;;  %6480 = vmatprep.subr.bf16.mxu0 %v6969_v63  ;;  %v7340_v46 = vld [vmem:[%s7213_s10 + $0x38] sm:$0x1]  ;;  %v5533_v61 = vcombine.low %v2199_v42, %v2209_v55  ;;  %v2216_v0 = vrot.slane %v2214_v52, 5  ;;  %v2222_v1 = vrot.slane %v2220_v53, 5  ;;  %v336_v7 = vshrl.u32 %v180_v54, 16 }
  0x34   : > { %6290 = vmatprep.subr.bf16.mxu1 %v6973_v3  ;;  %v324_v5 = vsel %vm7245_vm2, %v319_v56, %v323_v38  ;;  %v2230_v6 = vshll.u32 %v7340_v46, 16  ;;  %v339_v12 = vshll.u32 %v180_v54, 16  ;;  %v345_v13 = vshll.u32 %v181_v59, 16  ;;  %v183_v55 = vld [vmem:[%s7213_s10 + $0x40] sm:$0xf] }
  0x35   : > { %6450 = vmatprep.mubr.bf16.mxu0 %v5533_v61  ;;  %v2217_v11 = vor.u32 %v2216_v0, %v2213_v57  ;;  %v338_v17 = vrot.slane %v336_v7, 4  ;;  %v349_v18 = vshrl.u32 %v181_v59, 16  ;;  %v2235_v40 = vshrl.u32 %v5479_v9, 16 }
  0x36   : > { %6481 = vmatpush3.bf16.msra.mxu0 %v6969_v63  ;;  %v328_v63 = vor.u32 %v327_v49, %v323_v38  ;;  %v2232_v16 = vrot.slane %v2230_v6, 5  ;;  %v341_v25 = vrot.slane %v339_v12, 5  ;;  %v347_v26 = vrot.slane %v345_v13, 5 }
  0x37   : > { %6291 = vmatpush3.bf16.msra.mxu1 %v6973_v3  ;;  %6482 = vmatprep.subr.bf16.mxu0 %v6971_v4  ;;  %v2226_v3 = vrot.slane %v2224_v58, 4  ;;  %v2218_v22 = vrot.slane %v2217_v11, 4  ;;  %v351_v31 = vrot.slane %v349_v18, 4  ;;  %v2238_v42 = vshll.u32 %v5479_v9, 16  ;;  %v5482_v9 = vld [vmem:[%s7213_s10 + $0x48] sm:$0xf] }
  0x38   : > { %6292 = vmatprep.subr.bf16.mxu1 %v6976_v34  ;;  %v329_v10 = vrot.slane %v328_v63, 4  ;;  %v342_v39 = vor.u32 %v341_v25, %v338_v17  ;;  %v2244_v49 = vshll.u32 %v7363_v19, 16  ;;  %v2237_v53 = vrot.slane %v2235_v40, 4  ;;  %v225_v63 = vld [vmem:[%s7213_s10 + $0x44] sm:$0x1] }
  0x39   : > { %v2227_v15 = vor.u32 %v2226_v3, %v2222_v1  ;;  %v2223_v38 = vsel %vm7245_vm2, %v2218_v22, %v2222_v1  ;;  %v352_v44 = vor.u32 %v351_v31, %v347_v26  ;;  %v2240_v54 = vrot.slane %v2238_v42, 5  ;;  %v7404_v22 = vld [vmem:[%s7213_s10 + $0x50] sm:$0x1]  ;;  %v6978_v31 = vld [vmem:[%s9016_s1 + $0x178] sm:$0xff]  }
  0x3a   : > { %6483 = vmatpush3.bf16.msra.mxu0 %v6971_v4  ;;  %v334_v21 = vsel %vm7245_vm2, %v329_v10, %v333_v50  ;;  %v355_v4 = vshll.u32 %v224_v2, 16  ;;  %v343_v52 = vrot.slane %v342_v39, 4  ;;  %v2246_v57 = vrot.slane %v2244_v49, 5  ;;  %v6985_v2 = vld [vmem:[%s9016_s1 + $0x38] sm:$0xff]  }
  0x3b   : > { %6293 = vmatpush3.bf16.msra.mxu1 %v6976_v34  ;;  %6484 = vmatprep.subr.bf16.mxu0 %v6972_v48  ;;  %v5294_v29 = vcombine.low %v324_v5, %v334_v21  ;;  %v2228_v30 = vrot.slane %v2227_v15, 4  ;;  %v182_v34 = vld [vmem:[%s7213_s10 + $0x3c] sm:$0xf]  ;;  %v353_v56 = vrot.slane %v352_v44, 4  ;;  %v2248_v58 = vshrl.u32 %v7363_v19, 16  ;;  %v6977_v15 = vld [vmem:[%s9016_s1 + $0x170] sm:$0xff]  }
  0x3c   : > { %6294 = vmatprep.subr.bf16.mxu1 %v6979_v60  ;;  %v357_v47 = vrot.slane %v355_v4, 5  ;;  %v2254_v59 = vshll.u32 %v7371_v28, 16  ;;  %v2241_v61 = vor.u32 %v2240_v54, %v2237_v53  ;;  %v360_v0 = vshrl.u32 %v182_v34, 16  ;;  %v7415_v4 = vld [vmem:[%s9016_s1 + $0x80] sm:$0xff]   ;;  %v185_v53 = vld [vmem:[%s7213_s10 + $0x4c] sm:$0xf] }
  0x3d   : > { %6259 = vmatmul.mubr.bf16.gmra.mrb[4].mxu1 %v5294_v29  ;;  %v2233_v43 = vsel %vm7245_vm2, %v2228_v30, %v2232_v16  ;;  %v363_v1 = vshll.u32 %v182_v34, 16  ;;  %v2250_v3 = vrot.slane %v2248_v58, 4  ;;  %v369_v7 = vshll.u32 %v183_v55, 16  ;;  %v184_v30 = vld [vmem:[%s7213_s10 + $0x48] sm:$0xf] }
  0x3e   : > { %6485 = vmatpush3.bf16.msra.mxu0 %v6972_v48  ;;  %v5534_v50 = vcombine.low %v2223_v38, %v2233_v43  ;;  %v6975_v48 = vld [vmem:[%s9016_s1 + $0x168] sm:$0xff]   ;;  %v358_v5 = vsel %vm7245_vm2, %v353_v56, %v357_v47  ;;  %v2256_v6 = vrot.slane %v2254_v59, 5  ;;  %v2242_v11 = vrot.slane %v2241_v61, 4  ;;  %v226_v54 = vld [vmem:[%s7213_s10 + $0x50] sm:$0x1] }
  0x3f   : > { %6295 = vmatpush3.bf16.msra.mxu1 %v6979_v60  ;;  %6486 = vmatprep.subr.bf16.mxu0 %v6974_v20  ;;  %v348_v60 = vsel %vm7245_vm2, %v343_v52, %v347_v26  ;;  %v362_v12 = vrot.slane %v360_v0, 4  ;;  %v365_v13 = vrot.slane %v363_v1, 5  ;;  %v2251_v16 = vor.u32 %v2250_v3, %v2246_v57  ;;  %v5485_v58 = vld [vmem:[%s7213_s10 + $0x54] sm:$0xf]  ;;  %v7429_v0 = vld [vmem:[%s7213_s10 + $0x58] sm:$0xf] }
  0x40   : > { %6296 = vmatprep.subr.bf16.mxu1 %v6981_v14  ;;  %6451 = vmatmul.mubr.bf16.gmra.mrb[4].mxu0 %v5534_v50  ;;  %v5295_v10 = vcombine.low %v348_v60, %v358_v5  ;;  %v371_v17 = vrot.slane %v369_v7, 5  ;;  %v373_v18 = vshrl.u32 %v183_v55, 16  ;;  %v379_v21 = vshll.u32 %v225_v63, 16 }
  0x41   : > { %v366_v25 = vor.u32 %v365_v13, %v362_v12  ;;  %v2259_v26 = vshrl.u32 %v5482_v9, 16  ;;  %v2262_v29 = vshll.u32 %v5482_v9, 16  ;;  %v2252_v34 = vrot.slane %v2251_v16, 4 }
  0x42   : > { %6487 = vmatpush3.bf16.msra.mxu0 %v6974_v20  ;;  %6262 = vmatprep.mubr.bf16.mxu1 %v5295_v10  ;;  %v2247_v20 = vsel %vm7245_vm2, %v2242_v11, %v2246_v57  ;;  %v381_v38 = vrot.slane %v379_v21, 5  ;;  %v2278_v52 = vshll.u32 %v7404_v22, 16  ;;  %v384_v61 = vshrl.u32 %v184_v30, 16 }
  0x43   : > { %6297 = vmatpush3.bf16.msra.mxu1 %v6981_v14  ;;  %v7398_v14 = vld [vmem:[%s7213_s10 + $0x4c] sm:$0xf]  ;;  %6488 = vmatprep.subr.bf16.mxu0 %v6975_v48  ;;  %v367_v40 = vrot.slane %v366_v25, 4  ;;  %v2261_v42 = vrot.slane %v2259_v26, 4  ;;  %v2264_v43 = vrot.slane %v2262_v29, 5  ;;  %v2257_v47 = vsel %vm7245_vm2, %v2252_v34, %v2256_v6  ;;  %v7434_v6 = vld [vmem:[%s9016_s1 + $0x180] sm:$0xff]  }
  0x44   : > { %6298 = vmatprep.subr.bf16.mxu1 %v6983_v35  ;;  %v2268_v39 = vshll.u32 %v7398_v14, 16  ;;  %v2272_v44 = vshrl.u32 %v7398_v14, 16  ;;  %v5535_v55 = vcombine.low %v2247_v20, %v2257_v47  ;;  %v2280_v60 = vrot.slane %v2278_v52, 5  ;;  %v7441_v20 = vld [vmem:[%s7213_s10 + $0x5c] sm:$0x1] }
  0x45   : > { %v2265_v56 = vor.u32 %v2264_v43, %v2261_v42  ;;  %v387_v63 = vshll.u32 %v184_v30, 16  ;;  %v397_v3 = vshrl.u32 %v185_v53, 16  ;;  %v386_v9 = vrot.slane %v384_v61, 4  ;;  %v187_v43 = vld [vmem:[%s7213_s10 + $0x58] sm:$0xf] }
  0x46   : > { %6489 = vmatpush3.bf16.msra.mxu0 %v6975_v48  ;;  %v2270_v50 = vrot.slane %v2268_v39, 5  ;;  %v372_v48 = vsel %vm7245_vm2, %v367_v40, %v371_v17  ;;  %v2274_v57 = vrot.slane %v2272_v44, 4  ;;  %6454 = vmatprep.mubr.bf16.mxu0 %v5535_v55  ;;  %v403_v11 = vshll.u32 %v226_v54, 16  ;;  %v5488_v52 = vld [vmem:[%s7213_s10 + $0x60] sm:$0xf] }
  0x47   : > { %6299 = vmatpush3.bf16.msra.mxu1 %v6983_v35  ;;  %v375_v35 = vrot.slane %v373_v18, 4  ;;  %6490 = vmatprep.subr.bf16.mxu0 %v6977_v15  ;;  %v2266_v1 = vrot.slane %v2265_v56, 4  ;;  %v389_v10 = vrot.slane %v387_v63, 5  ;;  %v399_v18 = vrot.slane %v397_v3, 4 }
  0x48   : > { %6300 = vmatprep.subr.bf16.mxu1 %v6985_v2  ;;  %v2275_v5 = vor.u32 %v2274_v57, %v2270_v50  ;;  %v405_v21 = vrot.slane %v403_v11, 5  ;;  %v2283_v25 = vshrl.u32 %v5485_v58, 16  ;;  %v2286_v29 = vshll.u32 %v5485_v58, 16 }
  0x49   : > { %v376_v49 = vor.u32 %v375_v35, %v371_v17  ;;  %v2271_v13 = vsel %vm7245_vm2, %v2266_v1, %v2270_v50  ;;  %v390_v17 = vor.u32 %v389_v10, %v386_v9  ;;  %v2292_v30 = vshll.u32 %v7429_v0, 16  ;;  %v186_v35 = vld [vmem:[%s7213_s10 + $0x54] sm:$0xf]  ;;  %v227_v50 = vld [vmem:[%s7213_s10 + $0x5c] sm:$0x1] }
  0x4a   : > { %6491 = vmatpush3.bf16.msra.mxu0 %v6977_v15  ;;  %v2276_v15 = vrot.slane %v2275_v5, 4  ;;  %v2296_v34 = vshrl.u32 %v7429_v0, 16  ;;  %v2285_v42 = vrot.slane %v2283_v25, 4  ;;  %v408_v55 = vshrl.u32 %v186_v35, 16  ;;  %v7469_v25 = vld [vmem:[%s7213_s10 + $0x60] sm:$0xf] }
  0x4b   : > { %6301 = vmatpush3.bf16.msra.mxu1 %v6985_v2  ;;  %v377_v59 = vrot.slane %v376_v49, 4  ;;  %v393_v2 = vshll.u32 %v185_v53, 16  ;;  %6492 = vmatprep.subr.bf16.mxu0 %v6978_v31  ;;  %v391_v39 = vrot.slane %v390_v17, 4  ;;  %v2294_v44 = vrot.slane %v2292_v30, 5  ;;  %v7465_v17 = vld [vmem:[%s7213_s10 + $0x68] sm:$0x1] }
  0x4c   : > { %6334 = vmatprep.subr.bf16.mxu1 %v7415_v4  ;;  %v2281_v26 = vsel %vm7245_vm2, %v2276_v15, %v2280_v60  ;;  %v2298_v47 = vrot.slane %v2296_v34, 4  ;;  %v2302_v49 = vshll.u32 %v7441_v20, 16  ;;  %v7456_v60 = vld [vmem:[%s7213_s10 + $0x64] sm:$0xf]  ;;  %v410_v63 = vrot.slane %v408_v55, 4 }
  0x4d   : > { %v382_v7 = vsel %vm7245_vm2, %v377_v59, %v381_v38  ;;  %v395_v16 = vrot.slane %v393_v2, 5  ;;  %v5536_v38 = vcombine.low %v2271_v13, %v2281_v26  ;;  %v417_v59 = vshll.u32 %v187_v43, 16 }
  0x4e   : > { %v5296_v12 = vcombine.low %v372_v48, %v382_v7  ;;  %6493 = vmatpush3.bf16.msra.mxu0 %v6978_v31  ;;  %v2288_v31 = vrot.slane %v2286_v29, 5  ;;  %v411_v48 = vshll.u32 %v186_v35, 16  ;;  %v2299_v57 = vor.u32 %v2298_v47, %v2294_v44  ;;  %v7472_v35 = vld [vmem:[%s7213_s10 + $0x64] sm:$0xf] }
  0x4f   : > { %6526 = vmatprep.subr.bf16.mxu0 %v7434_v6  ;;  %v400_v40 = vor.u32 %v399_v18, %v395_v16  ;;  %6455 = vmatmul.mubr.bf16.gmra.mrb[8].mxu0 %v5536_v38  ;;  %v396_v53 = vsel %vm7245_vm2, %v391_v39, %v395_v16  ;;  %v2304_v58 = vrot.slane %v2302_v49, 5  ;;  %v421_v5 = vshrl.u32 %v187_v43, 16  ;;  %v228_v43 = vld [vmem:[%s7213_s10 + $0x68] sm:$0x1] }
  0x50   : > { %6263 = vmatmul.mubr.bf16.gmra.mrb[8].mxu1 %v5296_v12  ;;  %v2289_v56 = vor.u32 %v2288_v31, %v2285_v42  ;;  %v413_v1 = vrot.slane %v411_v48, 5  ;;  %v2300_v7 = vrot.slane %v2299_v57, 4  ;;  %v419_v9 = vrot.slane %v417_v59, 5 }
  0x51   : > { %v401_v54 = vrot.slane %v400_v40, 4  ;;  %v423_v11 = vrot.slane %v421_v5, 4  ;;  %v427_v12 = vshll.u32 %v227_v50, 16  ;;  %v2307_v13 = vshrl.u32 %v5488_v52, 16  ;;  %v5555_v50 = vld [vmem:[%s7213_s10 + $0xc] sm:$0xe] }
  0x52   : > { %v2290_v3 = vrot.slane %v2289_v56, 4  ;;  %v414_v10 = vor.u32 %v413_v1, %v410_v63  ;;  %v2305_v16 = vsel %vm7245_vm2, %v2300_v7, %v2304_v58  ;;  %v2310_v18 = vshll.u32 %v5488_v52, 16  ;;  %v7487_v5 = vld [vmem:[%s7213_s10 + $0x6c] sm:$0xf] }
  0x53   : > { %v406_v61 = vsel %vm7245_vm2, %v401_v54, %v405_v21  ;;  %v2316_v21 = vshll.u32 %v7456_v60, 16  ;;  %v424_v30 = vor.u32 %v423_v11, %v419_v9  ;;  %v429_v34 = vrot.slane %v427_v12, 5 }
  0x54   : > { %v5297_v2 = vcombine.low %v396_v53, %v406_v61  ;;  %v2295_v15 = vsel %vm7245_vm2, %v2290_v3, %v2294_v44  ;;  %v415_v29 = vrot.slane %v414_v10, 4  ;;  %v2309_v38 = vrot.slane %v2307_v13, 4 }
  0x55   : > { %v5537_v26 = vcombine.low %v2295_v15, %v2305_v16  ;;  %v2312_v39 = vrot.slane %v2310_v18, 5  ;;  %v2318_v40 = vrot.slane %v2316_v21, 5  ;;  %v2320_v42 = vshrl.u32 %v7456_v60, 16  ;;  %v7499_v21 = vld [vmem:[%s7213_s10 + $0x70] sm:$0xf] }
  0x56   : > { %6266 = vmatprep.mubr.bf16.mxu1 %v5297_v2  ;;  %v420_v31 = vsel %vm7245_vm2, %v415_v29, %v419_v9  ;;  %v425_v44 = vrot.slane %v424_v30, 4  ;;  %v2326_v47 = vshll.u32 %v7465_v17, 16  ;;  %v432_v49 = vshrl.u32 %v7469_v25, 16  ;;  %v7069_v9 = vld [vmem:[%s7213_s10 + $0xb4] sm:$0xff]  }
  0x57   : > { %6458 = vmatprep.mubr.bf16.mxu0 %v5537_v26  ;;  %v2313_v52 = vor.u32 %v2312_v39, %v2309_v38  ;;  %v2322_v53 = vrot.slane %v2320_v42, 4  ;;  %v435_v54 = vshll.u32 %v7469_v25, 16  ;;  %v441_v55 = vshll.u32 %v7472_v35, 16 }
  0x58   : > { %v430_v48 = vsel %vm7245_vm2, %v425_v44, %v429_v34  ;;  %v2328_v56 = vrot.slane %v2326_v47, 5  ;;  %v434_v57 = vrot.slane %v432_v49, 4  ;;  %v445_v58 = vshrl.u32 %v7472_v35, 16  ;;  %v7510_v47 = vld [vmem:[%s7213_s10 + $0x78] sm:$0xf] }
  0x59   : > { %v5298_v59 = vcombine.low %v420_v31, %v430_v48  ;;  %v2314_v61 = vrot.slane %v2313_v52, 4  ;;  %v2323_v63 = vor.u32 %v2322_v53, %v2318_v40  ;;  %v437_v1 = vrot.slane %v435_v54, 5  ;;  %v7521_v54 = vld [vmem:[%s7213_s10 + $0x7c] sm:$0xf] }
  0x5a   : > { %v443_v2 = vrot.slane %v441_v55, 5  ;;  %v447_v3 = vrot.slane %v445_v58, 4  ;;  %v451_v7 = vshll.u32 %v228_v43, 16  ;;  %v5571_v10 = vrot.slane %v5555_v50, 9  ;;  %v230_v58 = vld [vmem:[%s7213_s10 + $0x80] sm:$0x1] }
  0x5b   : > { %6267 = vmatmul.mubr.bf16.gmra.mrb[12].mxu1 %v5298_v59  ;;  %v2319_v11 = vsel %vm7245_vm2, %v2314_v61, %v2318_v40  ;;  %v2324_v12 = vrot.slane %v2323_v63, 4  ;;  %v438_v13 = vor.u32 %v437_v1, %v434_v57  ;;  %v2910_v15 = vrot.slane %v7226_v23, 5  ;;  %v229_v40 = vld [vmem:[%s7213_s10 + $0x74] sm:$0x1]  ;;  %v5556_v23 = vld [vmem:[%s7213_s10 + $0x18] sm:$0xe] }
  0x5c   : > { %v448_v16 = vor.u32 %v447_v3, %v443_v2  ;;  %v453_v18 = vrot.slane %v451_v7, 5  ;;  %v456_v26 = vshrl.u32 %v7487_v5, 16  ;;  %v459_v29 = vshll.u32 %v7487_v5, 16 }
  0x5d   : > { %v2329_v30 = vsel %vm7245_vm2, %v2324_v12, %v2328_v56  ;;  %v439_v34 = vrot.slane %v438_v13, 4  ;;  %v2911_v38 = vsel %vm7491_vm5, %v5571_v10, %v2910_v15  ;;  %v2912_v39 = vrot.slane %v2910_v15, 4  ;;  %v5557_v13 = vld [vmem:[%s7213_s10 + $0x24] sm:$0xe] }
  0x5e   : > { %v5538_v42 = vcombine.low %v2319_v11, %v2329_v30  ;;  %v449_v43 = vrot.slane %v448_v16, 4  ;;  %v458_v31 = vrot.slane %v456_v26, 4  ;;  %v461_v44 = vrot.slane %v459_v29, 5  ;;  %v7543_v16 = vld [vmem:[%s7213_s10 + $0x84] sm:$0xf]  ;;  %v6982_v29 = vld [vmem:[%s9016_s1 + $0x188] sm:$0xff]  }
  0x5f   : > { %v444_v49 = vsel %vm7245_vm2, %v439_v34, %v443_v2  ;;  %v2914_v50 = vsel %vm7491_vm5, %v2912_v39, %v2913_v41  ;;  %v465_v52 = vshll.u32 %v7499_v21, 16  ;;  %v469_v53 = vshrl.u32 %v7499_v21, 16 }
  0x60   : > { %6459 = vmatmul.mubr.bf16.gmra.mrb[12].mxu0 %v5538_v42  ;;  %v454_v55 = vsel %vm7245_vm2, %v449_v43, %v453_v18  ;;  %v5603_v48 = vcombine.low %v2911_v38, %v2914_v50  ;;  %v462_v56 = vor.u32 %v461_v44, %v458_v31  ;;  %v475_v57 = vshll.u32 %v229_v40, 16  ;;  %v7551_v40 = vld [vmem:[%s7213_s10 + $0x88] sm:$0xf]  ;;  %v231_v31 = vld [vmem:[%s7213_s10 + $0x8c] sm:$0x1] }
  0x61   : > { %v5299_v59 = vcombine.low %v444_v49, %v454_v55  ;;  %v467_v24 = vrot.slane %v465_v52, 5  ;;  %v471_v61 = vrot.slane %v469_v53, 4  ;;  %v5572_v63 = vrot.slane %v5556_v23, 9 }
  0x62   : > { %6494 = vmatprep.mubr.bf16.mxu0 %v5603_v48  ;;  %v463_v41 = vrot.slane %v462_v56, 4  ;;  %v477_v1 = vrot.slane %v475_v57, 5  ;;  %v2921_v2 = vsel %vm7491_vm5, %v7294_v36, %v2920_v32  ;;  %v480_v3 = vshrl.u32 %v7510_v47, 16 }
  0x63   : > { %6270 = vmatprep.mubr.bf16.mxu1 %v5299_v59  ;;  %v472_v7 = vor.u32 %v471_v61, %v467_v24  ;;  %v2918_v10 = vsel %vm7491_vm5, %v5572_v63, %v2917_v27  ;;  %v483_v11 = vshll.u32 %v7510_v47, 16  ;;  %v489_v12 = vshll.u32 %v7521_v54, 16 }
  0x64   : > { %v468_v8 = vsel %vm7245_vm2, %v463_v41, %v467_v24  ;;  %v5604_v15 = vcombine.low %v2918_v10, %v2921_v2  ;;  %v482_v32 = vrot.slane %v480_v3, 4  ;;  %v493_v36 = vshrl.u32 %v7521_v54, 16  ;;  %v7572_v2 = vld [vmem:[%s7213_s10 + $0x90] sm:$0xf]  ;;  %v7575_v3 = vld [vmem:[%s7213_s10 + $0x94] sm:$0xf] }
  0x65   : > { %v473_v62 = vrot.slane %v472_v7, 4  ;;  %v485_v18 = vrot.slane %v483_v11, 5  ;;  %v491_v26 = vrot.slane %v489_v12, 5  ;;  %v499_v27 = vshll.u32 %v230_v58, 16 }
  0x66   : > { %v495_v30 = vrot.slane %v493_v36, 4  ;;  %v5573_v34 = vrot.slane %v5557_v13, 9  ;;  %v2924_v38 = vrot.slane %v7298_v45, 5  ;;  %v2927_v39 = vrot.slane %v7304_v51, 5  ;;  %v5558_v45 = vld [vmem:[%s7213_s10 + $0x30] sm:$0xe] }
  0x67   : > { %v478_v23 = vsel %vm7245_vm2, %v473_v62, %v477_v1  ;;  %v486_v42 = vor.u32 %v485_v18, %v482_v32  ;;  %v501_v43 = vrot.slane %v499_v27, 5  ;;  %v504_v44 = vshrl.u32 %v7543_v16, 16  ;;  %v232_v62 = vld [vmem:[%s7213_s10 + $0x98] sm:$0x1] }
  0x68   : > { %v5300_v49 = vcombine.low %v468_v8, %v478_v23  ;;  %6495 = vmatmul.mubr.bf16.vlgmr.msra.gmra.mrb[0].mxu0 %v5604_v15  ;;  %v496_v50 = vor.u32 %v495_v30, %v491_v26  ;;  %v2925_v52 = vsel %vm7491_vm5, %v5573_v34, %v2924_v38  ;;  %v2926_v53 = vrot.slane %v2924_v38, 4  ;;  %v6986_v30 = vld [vmem:[%s9016_s1 + $0x198] sm:$0xff]  }
  0x69   : > { %6527 = vmatpush3.bf16.msra.mxu0 %v7434_v6  ;;  %v487_v51 = vrot.slane %v486_v42, 4  ;;  %v506_v55 = vrot.slane %v504_v44, 4  ;;  %v507_v48 = vshll.u32 %v7543_v16, 16  ;;  %v513_v56 = vshll.u32 %v7551_v40, 16  ;;  %v6984_v6 = vld [vmem:[%s9016_s1 + $0x190] sm:$0xff]  }
  0x6a   : > { %6271 = vmatmul.mubr.bf16.gmra.mrb[16].mxu1 %v5300_v49  ;;  %v497_v57 = vrot.slane %v496_v50, 4  ;;  %v2928_v58 = vsel %vm7491_vm5, %v2926_v53, %v2927_v39  ;;  %v517_v59 = vshrl.u32 %v7551_v40, 16  ;;  %v523_v24 = vshll.u32 %v231_v31, 16  ;;  %6528 = vmatprep.subr.bf16.mxu0 %v6982_v29  ;;  %v5559_v38 = vld [vmem:[%s7213_s10 + $0x3c] sm:$0xe] }
  0x6b   : > { %v492_v61 = vsel %vm7245_vm2, %v487_v51, %v491_v26  ;;  %v5605_v63 = vcombine.low %v2925_v52, %v2928_v58  ;;  %v509_v41 = vrot.slane %v507_v48, 5  ;;  %v515_v1 = vrot.slane %v513_v56, 5  ;;  %v7593_v31 = vld [vmem:[%s7213_s10 + $0x9c] sm:$0xf]  ;;  %v7602_v48 = vld [vmem:[%s7213_s10 + $0xa0] sm:$0xf] }
  0x6c   : > { %v502_v7 = vsel %vm7245_vm2, %v497_v57, %v501_v43  ;;  %v519_v10 = vrot.slane %v517_v59, 4  ;;  %v525_v11 = vrot.slane %v523_v24, 5  ;;  %v5574_v12 = vrot.slane %v5558_v45, 9  ;;  %v6990_v56 = vld [vmem:[%s9016_s1 + $0x1a0] sm:$0xff]  }
  0x6d   : > { %v5301_v13 = vcombine.low %v492_v61, %v502_v7  ;;  %6498 = vmatprep.mubr.bf16.mxu0 %v5605_v63  ;;  %v510_v8 = vor.u32 %v509_v41, %v506_v55  ;;  %v2931_v15 = vrot.slane %v7329_v33, 5  ;;  %v2934_v32 = vrot.slane %v7340_v46, 5  ;;  %6529 = vmatpush3.bf16.msra.mxu0 %v6982_v29  ;;  %v233_v61 = vld [vmem:[%s7213_s10 + $0xa4] sm:$0x1] }
  0x6e   : > { %v520_v36 = vor.u32 %v519_v10, %v515_v1  ;;  %v528_v18 = vshrl.u32 %v7572_v2, 16  ;;  %v531_v26 = vshll.u32 %v7572_v2, 16  ;;  %v537_v27 = vshll.u32 %v7575_v3, 16  ;;  %6530 = vmatprep.subr.bf16.mxu0 %v6984_v6 }
  0x6f   : > { %6274 = vmatprep.mubr.bf16.mxu1 %v5301_v13  ;;  %v511_v34 = vrot.slane %v510_v8, 4  ;;  %v2932_v33 = vsel %vm7491_vm5, %v5574_v12, %v2931_v15  ;;  %v2933_v46 = vrot.slane %v2931_v15, 4  ;;  %v541_v29 = vshrl.u32 %v7575_v3, 16  ;;  %v5560_v15 = vld [vmem:[%s7213_s10 + $0x48] sm:$0xe] }
  0x70   : > { %v521_v39 = vrot.slane %v520_v36, 4  ;;  %v530_v23 = vrot.slane %v528_v18, 4  ;;  %v533_v42 = vrot.slane %v531_v26, 5  ;;  %v539_v43 = vrot.slane %v537_v27, 5  ;;  %v7627_v27 = vld [vmem:[%s7213_s10 + $0xa8] sm:$0xf] }
  0x71   : > { %v516_v44 = vsel %vm7245_vm2, %v511_v34, %v515_v1  ;;  %v2935_v49 = vsel %vm7491_vm5, %v2933_v46, %v2934_v32  ;;  %v543_v50 = vrot.slane %v541_v29, 4  ;;  %v547_v52 = vshll.u32 %v232_v62, 16  ;;  %6531 = vmatpush3.bf16.msra.mxu0 %v6984_v6  ;;  %v6994_v32 = vld [vmem:[%s9016_s1 + $0x1a8] sm:$0xff]  }
  0x72   : > { %v526_v53 = vsel %vm7245_vm2, %v521_v39, %v525_v11  ;;  %v5606_v45 = vcombine.low %v2932_v33, %v2935_v49  ;;  %v534_v51 = vor.u32 %v533_v42, %v530_v23  ;;  %v5575_v55 = vrot.slane %v5559_v38, 9  ;;  %6532 = vmatprep.subr.bf16.mxu0 %v6986_v30  ;;  %v7630_v29 = vld [vmem:[%s7213_s10 + $0xac] sm:$0xf] }
  0x73   : > { %v5302_v57 = vcombine.low %v516_v44, %v526_v53  ;;  %v544_v58 = vor.u32 %v543_v50, %v539_v43  ;;  %v549_v59 = vrot.slane %v547_v52, 5  ;;  %v2938_v24 = vrot.slane %v7363_v19, 5  ;;  %v5561_v53 = vld [vmem:[%s7213_s10 + $0x54] sm:$0xe] }
  0x74   : > { %6499 = vmatmul.mubr.bf16.gmra.mrb[4].mxu0 %v5606_v45  ;;  %v535_v6 = vrot.slane %v534_v51, 4  ;;  %v2941_v63 = vrot.slane %v7371_v28, 5  ;;  %v552_v41 = vshrl.u32 %v7593_v31, 16  ;;  %v555_v1 = vshll.u32 %v7593_v31, 16  ;;  %v6998_v45 = vld [vmem:[%s9016_s1 + $0x1b0] sm:$0xff]  }
  0x75   : > { %6275 = vmatmul.mubr.bf16.gmra.mrb[20].mxu1 %v5302_v57  ;;  %v545_v7 = vrot.slane %v544_v58, 4  ;;  %v2939_v10 = vsel %vm7491_vm5, %v5575_v55, %v2938_v24  ;;  %v2940_v11 = vrot.slane %v2938_v24, 4  ;;  %v561_v12 = vshll.u32 %v7602_v48, 16  ;;  %6533 = vmatpush3.bf16.msra.mxu0 %v6986_v30 }
  0x76   : > { %v540_v19 = vsel %vm7245_vm2, %v535_v6, %v539_v43  ;;  %v554_v13 = vrot.slane %v552_v41, 4  ;;  %v557_v28 = vrot.slane %v555_v1, 5  ;;  %v565_v8 = vshrl.u32 %v7602_v48, 16  ;;  %6534 = vmatprep.subr.bf16.mxu0 %v6990_v56  ;;  %v234_v43 = vld [vmem:[%s7213_s10 + $0xb0] sm:$0x1] }
  0x77   : > { %v550_v36 = vsel %vm7245_vm2, %v545_v7, %v549_v59  ;;  %v2942_v62 = vsel %vm7491_vm5, %v2940_v11, %v2941_v63  ;;  %v563_v18 = vrot.slane %v561_v12, 5  ;;  %v571_v26 = vshll.u32 %v233_v61, 16  ;;  %v7650_v41 = vld [vmem:[%s7213_s10 + $0xb4] sm:$0xf]  ;;  %v7655_v12 = vld [vmem:[%s7213_s10 + $0xb8] sm:$0xf] }
  0x78   : > { %v5303_v30 = vcombine.low %v540_v19, %v550_v36  ;;  %v5607_v34 = vcombine.low %v2939_v10, %v2942_v62  ;;  %v558_v33 = vor.u32 %v557_v28, %v554_v13  ;;  %v567_v46 = vrot.slane %v565_v8, 4  ;;  %v235_v19 = vld [vmem:[%s7213_s10 + $0xbc] sm:$0x1] }
  0x79   : > { %v573_v38 = vrot.slane %v571_v26, 5  ;;  %v5576_v39 = vrot.slane %v5560_v15, 9  ;;  %v2945_v23 = vrot.slane %v7398_v14, 5  ;;  %v2948_v42 = vrot.slane %v7404_v22, 5  ;;  %6535 = vmatpush3.bf16.msra.mxu0 %v6990_v56  ;;  %v7002_v13 = vld [vmem:[%s9016_s1 + $0x1b8] sm:$0xff]  }
  0x7a   : > { %6278 = vmatprep.mubr.bf16.mxu1 %v5303_v30  ;;  %6502 = vmatprep.mubr.bf16.mxu0 %v5607_v34  ;;  %v559_v44 = vrot.slane %v558_v33, 4  ;;  %v568_v49 = vor.u32 %v567_v46, %v563_v18  ;;  %v576_v50 = vshrl.u32 %v7627_v27, 16  ;;  %v579_v52 = vshll.u32 %v7627_v27, 16  ;;  %v5562_v30 = vld [vmem:[%s7213_s10 + $0x60] sm:$0xe] }
  0x7b   : > { %v2946_v14 = vsel %vm7491_vm5, %v5576_v39, %v2945_v23  ;;  %v2947_v22 = vrot.slane %v2945_v23, 4  ;;  %v585_v51 = vshll.u32 %v7630_v29, 16  ;;  %v589_v55 = vshrl.u32 %v7630_v29, 16  ;;  %6536 = vmatprep.subr.bf16.mxu0 %v6994_v32  ;;  %v5492_v39 = vld [vmem:[%s7213_s10 + $0x70] sm:$0xf] }
  0x7c   : > { %v564_v56 = vsel %vm7245_vm2, %v559_v44, %v563_v18  ;;  %v569_v57 = vrot.slane %v568_v49, 4  ;;  %v578_v58 = vrot.slane %v576_v50, 4  ;;  %v581_v59 = vrot.slane %v579_v52, 5  ;;  %v7677_v44 = vld [vmem:[%s9016_s1 + $0x1c0] sm:$0xff]  }
  0x7d   : > { %v2949_v24 = vsel %vm7491_vm5, %v2947_v22, %v2948_v42  ;;  %v587_v61 = vrot.slane %v585_v51, 5  ;;  %v591_v6 = vrot.slane %v589_v55, 4  ;;  %v595_v63 = vshll.u32 %v234_v43, 16  ;;  %6537 = vmatpush3.bf16.msra.mxu0 %v6994_v32  ;;  %v5563_v43 = vld [vmem:[%s7213_s10 + $0x6c] sm:$0xe] }
  0x7e   : > { %v574_v1 = vsel %vm7245_vm2, %v569_v57, %v573_v38  ;;  %v5608_v7 = vcombine.low %v2946_v14, %v2949_v24  ;;  %v582_v10 = vor.u32 %v581_v59, %v578_v58  ;;  %v5577_v11 = vrot.slane %v5561_v53, 9  ;;  %6538 = vmatprep.subr.bf16.mxu0 %v6998_v45  ;;  %v5493_v55 = vld [vmem:[%s7213_s10 + $0x74] sm:$0x1]  ;;  %v5564_v24 = vld [vmem:[%s7213_s10 + $0x78] sm:$0xe] }
  0x7f   : > { %v5304_v28 = vcombine.low %v564_v56, %v574_v1  ;;  %v592_v8 = vor.u32 %v591_v6, %v587_v61  ;;  %v597_v15 = vrot.slane %v595_v63, 5  ;;  %v2952_v32 = vrot.slane %v7429_v0, 5 }
  0x80   : > { %6503 = vmatmul.mubr.bf16.gmra.mrb[8].mxu0 %v5608_v7  ;;  %v583_v36 = vrot.slane %v582_v10, 4  ;;  %v2955_v62 = vrot.slane %v7441_v20, 5  ;;  %v600_v18 = vshrl.u32 %v7650_v41, 16  ;;  %v603_v26 = vshll.u32 %v7650_v41, 16 }
  0x81   : > { %6279 = vmatmul.mubr.bf16.gmra.mrb[24].mxu1 %v5304_v28  ;;  %v593_v34 = vrot.slane %v592_v8, 4  ;;  %v2953_v33 = vsel %vm7491_vm5, %v5577_v11, %v2952_v32  ;;  %v2954_v46 = vrot.slane %v2952_v32, 4  ;;  %v609_v38 = vshll.u32 %v7655_v12, 16  ;;  %6539 = vmatpush3.bf16.msra.mxu0 %v6998_v45  ;;  %v7690_v11 = vld [vmem:[%s7213_s10 + $0x7c] sm:$0xf] }
  0x82   : > { %v588_v0 = vsel %vm7245_vm2, %v583_v36, %v587_v61  ;;  %v602_v20 = vrot.slane %v600_v18, 4  ;;  %v605_v23 = vrot.slane %v603_v26, 5  ;;  %v613_v42 = vshrl.u32 %v7655_v12, 16  ;;  %6540 = vmatprep.subr.bf16.mxu0 %v7002_v13  ;;  %v7071_v36 = vld [vmem:[%s7213_s10] sm:$0xf] }
  0x83   : > { %v598_v49 = vsel %vm7245_vm2, %v593_v34, %v597_v15  ;;  %v2956_v50 = vsel %vm7491_vm5, %v2954_v46, %v2955_v62  ;;  %v611_v52 = vrot.slane %v609_v38, 5  ;;  %v619_v53 = vshll.u32 %v235_v19, 16  ;;  %v5498_v15 = vld [vmem:[%s7213_s10 + $0x88] sm:$0xf]  ;;  %v7705_v62 = vld [vmem:[%s7213_s10 + $0x4] sm:$0xf] }
  0x84   : > { %v5305_v45 = vcombine.low %v588_v0, %v598_v49  ;;  %v5609_v14 = vcombine.low %v2953_v33, %v2956_v50  ;;  %v606_v22 = vor.u32 %v605_v23, %v602_v20  ;;  %v615_v51 = vrot.slane %v613_v42, 4  ;;  %v5499_v26 = vld [vmem:[%s7213_s10 + $0x8c] sm:$0x1]  ;;  %v5502_v23 = vld [vmem:[%s7213_s10 + $0x98] sm:$0x1] }
  0x85   : > { %v621_v56 = vrot.slane %v619_v53, 5  ;;  %v5578_v57 = vrot.slane %v5562_v30, 9  ;;  %v2959_v58 = vrot.slane %v7456_v60, 5  ;;  %v2962_v59 = vrot.slane %v7465_v17, 5  ;;  %6541 = vmatpush3.bf16.msra.mxu0 %v7002_v13  ;;  %v7693_v17 = vld [vmem:[%s7213_s10 + $0x80] sm:$0x1] }
  0x86   : > { %6282 = vmatprep.mubr.bf16.mxu1 %v5305_v45  ;;  %6506 = vmatprep.mubr.bf16.mxu0 %v5609_v14  ;;  %v607_v61 = vrot.slane %v606_v22, 4  ;;  %v616_v6 = vor.u32 %v615_v51, %v611_v52  ;;  %v5579_v63 = vrot.slane %v5563_v43, 9  ;;  %v2966_v1 = vrot.slane %v5492_v39, 5  ;;  %v5565_v30 = vld [vmem:[%s7213_s10 + $0x84] sm:$0xe] }
  0x87   : > { %v2960_v7 = vsel %vm7491_vm5, %v5578_v57, %v2959_v58  ;;  %v2961_v10 = vrot.slane %v2959_v58, 4  ;;  %v2969_v60 = vrot.slane %v5493_v55, 5  ;;  %6574 = vmatprep.subr.bf16.mxu0 %v7677_v44  ;;  %v5315_v18 = vcombine.low %v7071_v36, %v7705_v62  ;;  %v5501_v39 = vld [vmem:[%s7213_s10 + $0x94] sm:$0xf]  ;;  %v5566_v42 = vld [vmem:[%s7213_s10 + $0x90] sm:$0xe] }
  0x88   : > { %v612_v19 = vsel %vm7245_vm2, %v607_v61, %v611_v52  ;;  %v617_v13 = vrot.slane %v616_v6, 4  ;;  %v2967_v28 = vsel %vm7491_vm5, %v5579_v63, %v2966_v1  ;;  %v2968_v8 = vrot.slane %v2966_v1, 4  ;;  %v5567_v50 = vld [vmem:[%s7213_s10 + $0x9c] sm:$0xe]  ;;  %v5504_v14 = vld [vmem:[%s7213_s10 + $0xa0] sm:$0xf] }
  0x89   : > { %v2963_v32 = vsel %vm7491_vm5, %v2961_v10, %v2962_v59  ;;  %v5580_v38 = vrot.slane %v5564_v24, 9  ;;  %v2973_v43 = vrot.slane %v7690_v11, 5  ;;  %v2976_v49 = vrot.slane %v7693_v17, 5  ;;  %v5505_v22 = vld [vmem:[%s7213_s10 + $0xa4] sm:$0x1] }
  0x8a   : > { %v622_v34 = vsel %vm7245_vm2, %v617_v13, %v621_v56  ;;  %v5610_v33 = vcombine.low %v2960_v7, %v2963_v32  ;;  %v2970_v46 = vsel %vm7491_vm5, %v2968_v8, %v2969_v60  ;;  %v5581_v52 = vrot.slane %v5565_v30, 9  ;;  %v5507_v59 = vld [vmem:[%s7213_s10 + $0xac] sm:$0xf]  ;;  %v7729_v61 = vld [vmem:[%s7213_s10 + $0x10] sm:$0xf] }
  0x8b   : > { %v5306_v0 = vcombine.low %v612_v19, %v622_v34  ;;  %v5611_v20 = vcombine.low %v2967_v28, %v2970_v46  ;;  %v2980_v53 = vrot.slane %v5498_v15, 5  ;;  %v2983_v45 = vrot.slane %v5499_v26, 5  ;;  %v7073_v24 = vld [vmem:[%s7213_s10 + $0xc] sm:$0xf]  ;;  %v7075_v8 = vld [vmem:[%s7213_s10 + $0x18] sm:$0xf] }
  0x8c   : > { %6507 = vmatmul.mubr.bf16.gmra.mrb[12].mxu0 %v5610_v33  ;;  %v2974_v51 = vsel %vm7491_vm5, %v5580_v38, %v2973_v43  ;;  %v2975_v55 = vrot.slane %v2973_v43, 4  ;;  %v2987_v58 = vrot.slane %v5501_v39, 5  ;;  %v5316_v6 = vcombine.low %v7073_v24, %v7729_v61  ;;  %v6993_v19 = vld [vmem:[%s9016_s1 + $0x88] sm:$0xff]   ;;  %v7741_v15 = vld [vmem:[%s7213_s10 + $0x1c] sm:$0xf] }
  0x8d   : > { %6283 = vmatmul.mubr.bf16.gmra.mrb[28].mxu1 %v5306_v0  ;;  %6510 = vmatprep.mubr.bf16.mxu0 %v5611_v20  ;;  %v2981_v56 = vsel %vm7491_vm5, %v5581_v52, %v2980_v53  ;;  %v2982_v57 = vrot.slane %v2980_v53, 4  ;;  %v5582_v1 = vrot.slane %v5566_v42, 9  ;;  %v2990_v7 = vrot.slane %v5502_v23, 5  ;;  %v5508_v30 = vld [vmem:[%s7213_s10 + $0xb0] sm:$0x1] }
  0x8e   : > { %6302 = vmatprep.mubr.bf16.mxu1 %v5315_v18  ;;  %v2977_v63 = vsel %vm7491_vm5, %v2975_v55, %v2976_v49  ;;  %v2989_v13 = vrot.slane %v2987_v58, 4  ;;  %v5583_v28 = vrot.slane %v5567_v50, 9  ;;  %v5317_v32 = vcombine.low %v7075_v8, %v7741_v15  ;;  %v5568_v34 = vld [vmem:[%s7213_s10 + $0xa8] sm:$0xe]  ;;  %v5510_v33 = vld [vmem:[%s7213_s10 + $0xb8] sm:$0xf] }
  0x8f   : > { %v5612_v10 = vcombine.low %v2974_v51, %v2977_v63  ;;  %v2984_v60 = vsel %vm7491_vm5, %v2982_v57, %v2983_v45  ;;  %v2994_v18 = vrot.slane %v5504_v14, 5  ;;  %v2997_v26 = vrot.slane %v5505_v22, 5  ;;  %v5511_v20 = vld [vmem:[%s7213_s10 + $0xbc] sm:$0x1]  ;;  %v5569_v23 = vld [vmem:[%s7213_s10 + $0xb4] sm:$0xe] }
  0x90   : > { %v5613_v36 = vcombine.low %v2981_v56, %v2984_v60  ;;  %v3001_v38 = vrot.slane %v5507_v59, 5  ;;  %v2988_v39 = vsel %vm7491_vm5, %v5582_v1, %v2987_v58  ;;  %v2991_v0 = vsel %vm7491_vm5, %v2989_v13, %v2990_v7  ;;  %v6997_v50 = vld [vmem:[%s9016_s1 + $0x90] sm:$0xff]   ;;  %v5513_v53 = vld [vmem:[%s7213_s10 + $0xc4] sm:$0xf]  ;;  %v7764_v51 = vld [vmem:[%s7213_s10 + $0x28] sm:$0xf] }
  0x91   : > { %v2996_v46 = vrot.slane %v2994_v18, 4  ;;  %v2995_v42 = vsel %vm7491_vm5, %v5583_v28, %v2994_v18  ;;  %v3008_v49 = vrot.slane %v5510_v33, 5  ;;  %v5584_v52 = vrot.slane %v5568_v34, 9  ;;  %v7077_v22 = vld [vmem:[%s7213_s10 + $0x24] sm:$0xf]  ;;  %v7001_v1 = vld [vmem:[%s9016_s1 + $0x98] sm:$0xff]  }
  0x92   : > { %v5614_v45 = vcombine.low %v2988_v39, %v2991_v0  ;;  %v3003_v14 = vrot.slane %v3001_v38, 4  ;;  %v5318_v55 = vcombine.low %v7077_v22, %v7764_v51  ;;  %v7079_v57 = vld [vmem:[%s7213_s10 + $0x30] sm:$0xf]  ;;  %v7769_v58 = vld [vmem:[%s7213_s10 + $0x34] sm:$0xf]  ;;  %v5585_v24 = vrot.slane %v5569_v23, 9 }
  0x93   : > { %v2998_v43 = vsel %vm7491_vm5, %v2996_v46, %v2997_v26  ;;  %v5319_v59 = vcombine.low %v7079_v57, %v7769_v58  ;;  %v3011_v63 = vrot.slane %v5511_v20, 5  ;;  %v5570_v7 = vld [vmem:[%s7213_s10 + $0xc0] sm:$0xe]  ;;  %v3002_v60 = vsel %vm7491_vm5, %v5584_v52, %v3001_v38  ;;  %v5514_v8 = vld [vmem:[%s7213_s10 + $0xc8] sm:$0x1]  ;;  %v7004_v22 = vld [vmem:[%s7213_s10 + $0x18] sm:$0xff]  }
  0x94   : > { %6511 = vmatmul.mubr.bf16.gmra.mrb[16].mxu0 %v5612_v10  ;;  %v5615_v56 = vcombine.low %v2995_v42, %v2998_v43  ;;  %v3015_v10 = vrot.slane %v5513_v53, 5  ;;  %v3009_v13 = vsel %vm7491_vm5, %v5585_v24, %v3008_v49  ;;  %v5586_v18 = vrot.slane %v5570_v7, 9  ;;  %v7081_v26 = vld [vmem:[%s7213_s10 + $0x3c] sm:$0xf]  ;;  %v7083_v39 = vld [vmem:[%s7213_s10 + $0x48] sm:$0xf] }
  0x95   : > { %6303 = vmatmul.mubr.bf16.vlgmr.msra.gmra.mrb[0].mxu1 %v5316_v6  ;;  %6514 = vmatprep.mubr.bf16.mxu0 %v5613_v36  ;;  %v3010_v6 = vrot.slane %v3008_v49, 4  ;;  %v3018_v38 = vrot.slane %v5514_v8, 5  ;;  %v7795_v0 = vld [vmem:[%s7213_s10 + $0x4c] sm:$0xf]  ;;  %v7018_v49 = vld [vmem:[%s9016_s1 + $0xb0] sm:$0xff]   ;;  %v2368_v52 = vshrl.u32 %v7690_v11, 16 }
  0x96   : > { %6335 = vmatpush3.bf16.msra.mxu1 %v7415_v4  ;;  %6306 = vmatprep.mubr.bf16.mxu1 %v5317_v32  ;;  %v3004_v4 = vrot.slane %v5508_v30, 5  ;;  %v7006_v32 = vld [vmem:[%s9016_s1 + $0xa0] sm:$0xff]   ;;  %v3017_v46 = vrot.slane %v3015_v10, 4  ;;  %v5321_v20 = vcombine.low %v7083_v39, %v7795_v0  ;;  %v7012_v23 = vld [vmem:[%s9016_s1 + $0xa8] sm:$0xff]   ;;  %v3016_v42 = vsel %vm7491_vm5, %v5586_v18, %v3015_v10  ;;  %v7010_v18 = vld [vmem:[%s7213_s10 + $0x30] sm:$0xff]  }
  0x97   : > { %6336 = vmatprep.subr.bf16.mxu1 %v6993_v19  ;;  %v3012_v28 = vsel %vm7491_vm5, %v3010_v6, %v3011_v63  ;;  %v7790_v30 = vld [vmem:[%s7213_s10 + $0x40] sm:$0xf]  ;;  %v7823_v57 = vrot.slane %v2368_v52, 4  ;;  %v7007_v6 = vld [vmem:[%s7213_s10 + $0x24] sm:$0xff]   ;;  %v1278_v7 = vrot.slane %v7729_v61, 5  ;;  %v2374_v8 = vshll.u32 %v7693_v17, 16 }
  0x98   : > { %v5320_v34 = vcombine.low %v7081_v26, %v7790_v30  ;;  %v5617_v33 = vcombine.low %v3009_v13, %v3012_v28  ;;  %v3019_v43 = vsel %vm7491_vm5, %v3017_v46, %v3018_v38  ;;  %v1218_v63 = vld [vmem:[%s7213_s10] sm:$0xe]  ;;  %v1219_v10 = vld [vmem:[%s7213_s10 + $0xc] sm:$0xe]  ;;  %v1285_v13 = vrot.slane %v7741_v15, 5 }
  0x99   : > { %v5618_v53 = vcombine.low %v3016_v42, %v3019_v43  ;;  %v1221_v61 = vld [vmem:[%s7213_s10 + $0x24] sm:$0xe]  ;;  %v5326_v15 = vcombine.low %v7543_v16, %v7551_v40  ;;  %v5327_v26 = vcombine.low %v7572_v2, %v7575_v3  ;;  %v5339_v17 = vrot.slane %v1218_v63, 9  ;;  %v7089_v38 = vld [vmem:[%s7213_s10 + $0x20] sm:$0x1]  ;;  %v7019_v2 = vld [vmem:[%s7213_s10 + $0x54] sm:$0xff]  }
  0x9a   : > { %6337 = vmatpush3.bf16.msra.mxu1 %v6993_v19  ;;  %v3005_v19 = vsel %vm7491_vm5, %v3003_v14, %v3004_v4  ;;  %v7812_v14 = vld [vmem:[%s7213_s10 + $0x58] sm:$0xf]  ;;  %v1287_v46 = vrot.slane %v1285_v13, 4  ;;  %v1288_v39 = vrot.slane %v7089_v38, 5  ;;  %v7090_v43 = vld [vmem:[%s7213_s10 + $0x2c] sm:$0x1] }
  0x9b   : > { %6338 = vmatprep.subr.bf16.mxu1 %v6997_v50  ;;  %v5616_v36 = vcombine.low %v3002_v60, %v3005_v19  ;;  %v7838_v60 = vld [vmem:[%s9016_s1 + $0xc0] sm:$0xff]   ;;  %v1220_v19 = vld [vmem:[%s7213_s10 + $0x18] sm:$0xe]  ;;  %v7093_v38 = vld [vmem:[%s7213_s10 + $0x50] sm:$0x1]  ;;  %v1320_v16 = vrot.slane %v7812_v14, 5 }
  0x9c   : > { %6515 = vmatmul.mubr.bf16.gmra.mrb[20].mxu0 %v5614_v45  ;;  %v7085_v45 = vld [vmem:[%s7213_s10 + $0x54] sm:$0xf]  ;;  %v7961_v40 = vld [vmem:[%s7213_s10 + $0x64] sm:$0xf] }
  0x9d   : > { %6307 = vmatmul.mubr.bf16.gmra.mrb[4].mxu1 %v5318_v55  ;;  %6518 = vmatprep.mubr.bf16.mxu0 %v5615_v56  ;;  %v5322_v4 = vcombine.low %v7085_v45, %v7812_v14  ;;  %v5323_v55 = vcombine.low %v7469_v25, %v7472_v35  ;;  %v7024_v56 = vld [vmem:[%s9016_s1 + $0xb8] sm:$0xff]   ;;  %v7088_v25 = vld [vmem:[%s7213_s10 + $0x14] sm:$0x1]  ;;  %v7022_v3 = vld [vmem:[%s7213_s10 + $0x60] sm:$0xff]  }
  0x9e   : > { %6310 = vmatprep.mubr.bf16.mxu1 %v5319_v59  ;;  %6339 = vmatpush3.bf16.msra.mxu1 %v6997_v50  ;;  %v2364_v50 = vshll.u32 %v7690_v11, 16  ;;  %v7826_v59 = vld [vmem:[%s7213_s10 + $0x8] sm:$0x1]  ;;  %v1281_v35 = vrot.slane %v7088_v25, 5 }
  0x9f   : > { %6340 = vmatprep.subr.bf16.mxu1 %v7001_v1  ;;  %v1274_v24 = vrot.slane %v7826_v59, 5 }
  0xa0   : > { %v7821_v11 = vrot.slane %v2364_v50, 5 }
  0xa2   : > { %6341 = vmatpush3.bf16.msra.mxu1 %v7001_v1  ;;  %v1271_v1 = vrot.slane %v7705_v62, 5  ;;  %v5324_v62 = vcombine.low %v7487_v5, %v7499_v21  ;;  %v5340_v21 = vrot.slane %v1219_v10, 9  ;;  %v5699_v10 = vld [vmem:[%s7213_s10 + $0x18] sm:$0xf] }
  0xa3   : > { %6342 = vmatprep.subr.bf16.mxu1 %v7006_v32 }
  0xa4   : > { %6519 = vmatmul.mubr.bf16.gmra.mrb[24].mxu0 %v5616_v36  ;;  %v5325_v36 = vcombine.low %v7510_v47, %v7521_v54  ;;  %v1273_v5 = vrot.slane %v1271_v1, 4  ;;  %v7014_v47 = vld [vmem:[%s9016_s1 + $0x1c8] sm:$0xff]   ;;  %v5341_v54 = vrot.slane %v1220_v19, 9  ;;  %v7881_v59 = vsel %vm7491_vm5, %v5339_v17, %v1271_v1  ;;  %v5700_v19 = vld [vmem:[%s7213_s10 + $0x1c] sm:$0xf] }
  0xa5   : > { %6311 = vmatmul.mubr.bf16.gmra.mrb[8].mxu1 %v5320_v34  ;;  %6522 = vmatprep.mubr.bf16.mxu0 %v5617_v33  ;;  %v1299_v34 = vrot.slane %v7769_v58, 5  ;;  %v1280_v33 = vrot.slane %v1278_v7, 4  ;;  %v5342_v58 = vrot.slane %v1221_v61, 9  ;;  %v1313_v1 = vrot.slane %v7795_v0, 5  ;;  %v7016_v0 = vld [vmem:[%s7213_s10 + $0x48] sm:$0xff]  }
  0xa6   : > { %6314 = vmatprep.mubr.bf16.mxu1 %v5321_v20  ;;  %6343 = vmatpush3.bf16.msra.mxu1 %v7006_v32  ;;  %v1292_v32 = vrot.slane %v7764_v51, 5  ;;  %v1222_v51 = vld [vmem:[%s7213_s10 + $0x30] sm:$0xe]  ;;  %v5328_v20 = vcombine.low %v7593_v31, %v7602_v48  ;;  %v7889_v25 = vsel %vm7491_vm5, %v1273_v5, %v1274_v24  ;;  %v7897_v63 = vsel %vm7491_vm5, %v5341_v54, %v1285_v13  ;;  %v1224_v13 = vld [vmem:[%s7213_s10 + $0x48] sm:$0xe] }
  0xa7   : > { %6344 = vmatprep.subr.bf16.mxu1 %v7012_v23  ;;  %v5343_v50 = vrot.slane %v1222_v51, 9  ;;  %v1301_v52 = vrot.slane %v1299_v34, 4  ;;  %v3778_v5 = vshrl.u32 %v5699_v10, 16  ;;  %v3791_v51 = vshrl.u32 %v5700_v19, 16  ;;  %v7025_v48 = vld [vmem:[%s7213_s10 + $0x6c] sm:$0xff]  }
  0xa8   : > { %v1294_v42 = vrot.slane %v1292_v32, 4  ;;  %v7909_v24 = vsel %vm7491_vm5, %v5342_v58, %v1292_v32  ;;  %v7092_v32 = vld [vmem:[%s7213_s10 + $0x44] sm:$0x1]  ;;  %v5345_v54 = vrot.slane %v1224_v13, 9  ;;  %v5703_v13 = vld [vmem:[%s7213_s10 + $0x28] sm:$0xf] }
  0xa9   : > { %v7919_v61 = vsel %vm7491_vm5, %v5343_v50, %v1299_v34  ;;  %v1309_v17 = vrot.slane %v7092_v32, 5  ;;  %v5701_v50 = vld [vmem:[%s7213_s10 + $0x20] sm:$0x1]  ;;  %v1226_v32 = vld [vmem:[%s7213_s10 + $0x60] sm:$0xe] }
  0xaa   : > { %6345 = vmatpush3.bf16.msra.mxu1 %v7012_v23  ;;  %v5329_v23 = vcombine.low %v7627_v27, %v7630_v29 }
  0xab   : > { %6346 = vmatprep.subr.bf16.mxu1 %v7018_v49 }
  0xac   : > { %6523 = vmatmul.mubr.bf16.gmra.mrb[28].mxu0 %v5618_v53  ;;  %v7091_v53 = vld [vmem:[%s7213_s10 + $0x38] sm:$0x1] }
  0xad   : > { %6315 = vmatmul.mubr.bf16.gmra.mrb[12].mxu1 %v5322_v4  ;;  %6542 = vmatprep.mubr.bf16.mxu0 %v7004_v22  ;;  %v1302_v45 = vrot.slane %v7091_v53, 5  ;;  %v1223_v4 = vld [vmem:[%s7213_s10 + $0x3c] sm:$0xe]  ;;  %v1306_v22 = vrot.slane %v7790_v30, 5  ;;  %v7885_v30 = vsel %vm7491_vm5, %v5340_v21, %v1278_v7  ;;  %v3781_v21 = vshll.u32 %v5699_v10, 16  ;;  %v7030_v53 = vld [vmem:[%s9016_s1 + $0x1e0] sm:$0xff]  }
  0xae   : > { %6318 = vmatprep.mubr.bf16.mxu1 %v5323_v55  ;;  %6347 = vmatpush3.bf16.msra.mxu1 %v7018_v49  ;;  %v1295_v49 = vrot.slane %v7090_v43, 5  ;;  %v7872_v55 = vrot.slane %v2374_v8, 5  ;;  %v7013_v7 = vld [vmem:[%s7213_s10 + $0x3c] sm:$0xff]   ;;  %v7905_v8 = vsel %vm7491_vm5, %v1287_v46, %v1288_v39  ;;  %v1315_v46 = vrot.slane %v1313_v1, 4  ;;  %v5705_v43 = vld [vmem:[%s7213_s10 + $0x30] sm:$0xf] }
  0xaf   : > { %6348 = vmatprep.subr.bf16.mxu1 %v7024_v56  ;;  %v1316_v39 = vrot.slane %v7093_v38, 5  ;;  %v3780_v10 = vrot.slane %v3778_v5, 4 }
  0xb0   : > { %9037 = vst [vmem:[#allocation2_spill] sm:$0xff] %v7872_v55 }
  0xb2   : > { %6349 = vmatpush3.bf16.msra.mxu1 %v7024_v56  ;;  %v7020_v56 = vld [vmem:[%s9016_s1 + $0x1d0] sm:$0xff]  }
  0xb3   : > { %6382 = vmatprep.subr.bf16.mxu1 %v7838_v60 }
  0xb4   : > { %6543 = vmatmul.mubr.bf16.vlgmr.msra.gmra.mrb[0].mxu0 %v7007_v6  ;;  %v7893_v6 = vsel %vm7491_vm5, %v1280_v33, %v1281_v35  ;;  %v7913_v35 = vsel %vm7491_vm5, %v1294_v42, %v1295_v49  ;;  %v3787_v33 = vshll.u32 %v5700_v19, 16  ;;  %v3783_v19 = vrot.slane %v3781_v21, 5  ;;  %v1227_v21 = vld [vmem:[%s7213_s10 + $0x6c] sm:$0xe] }
  0xb5   : > { %6319 = vmatmul.mubr.bf16.gmra.mrb[16].mxu1 %v5324_v62  ;;  %6575 = vmatpush3.bf16.msra.mxu0 %v7677_v44  ;;  %v5344_v62 = vrot.slane %v1223_v4, 9  ;;  %v5348_v58 = vrot.slane %v1227_v21, 9 }
  0xb6   : > { %6322 = vmatprep.mubr.bf16.mxu1 %v5325_v36  ;;  %6546 = vmatprep.mubr.bf16.mxu0 %v7010_v18  ;;  %v7923_v36 = vsel %vm7491_vm5, %v1301_v52, %v1302_v45  ;;  %v1308_v18 = vrot.slane %v1306_v22, 4  ;;  %v5702_v52 = vld [vmem:[%s7213_s10 + $0x24] sm:$0xf]  ;;  %v3815_v45 = vshrl.u32 %v5703_v13, 16 }
  0xb7   : > { %6576 = vmatprep.subr.bf16.mxu0 %v7014_v47  ;;  %v7940_v49 = vsel %vm7491_vm5, %v5344_v62, %v1306_v22  ;;  %v7957_v22 = vld [vmem:[%s7213_s10 + $0x54] sm:$0xe]  ;;  %v3793_v62 = vrot.slane %v3791_v51, 4  ;;  %v3802_v38 = vshrl.u32 %v5702_v52, 16  ;;  %v3805_v28 = vshll.u32 %v5702_v52, 16 }
  0xb8   : > { %v7954_v4 = vsel %vm7491_vm5, %v1308_v18, %v1309_v17  ;;  %v3797_v17 = vshll.u32 %v5701_v50, 16  ;;  %v5346_v5 = vrot.slane %v7957_v22, 9  ;;  %v7034_v50 = vld [vmem:[%s9016_s1 + $0x1e8] sm:$0xff]   ;;  %v1322_v52 = vrot.slane %v1320_v16, 4 }
  0xb9   : > { %6577 = vmatpush3.bf16.msra.mxu0 %v7014_v47  ;;  %v7026_v47 = vld [vmem:[%s9016_s1 + $0x1d8] sm:$0xff]   ;;  %v3784_v22 = vor.u32 %v3783_v19, %v3780_v10  ;;  %v3804_v34 = vrot.slane %v3802_v38, 4  ;;  %v3807_v44 = vrot.slane %v3805_v28, 5  ;;  %v7098_v10 = vld [vmem:[%s7213_s10 + $0x74] sm:$0x1]  ;;  %v3817_v28 = vrot.slane %v3815_v45, 4 }
  0xba   : > { %6578 = vmatprep.subr.bf16.mxu0 %v7020_v56  ;;  %v7995_v42 = vrot.slane %v3797_v17, 5  ;;  %v1337_v19 = vrot.slane %v7098_v10, 5  ;;  %v3826_v38 = vshrl.u32 %v5705_v43, 16  ;;  %v8020_v27 = vsel %vm7491_vm5, %v5346_v5, %v1320_v16 }
  0xbb   : > { %v3785_v21 = vrot.slane %v3784_v22, 4 }
  0xbc   : > { %6547 = vmatmul.mubr.bf16.gmra.mrb[4].mxu0 %v7013_v7  ;;  %v7967_v7 = vrot.slane %v3787_v33, 5  ;;  %v7096_v33 = vld [vmem:[%s7213_s10 + $0x70] sm:$0xf] }
  0xbd   : > { %6323 = vmatmul.mubr.bf16.gmra.mrb[20].mxu1 %v5326_v15  ;;  %6550 = vmatprep.mubr.bf16.mxu0 %v7016_v0  ;;  %v1327_v15 = vrot.slane %v7961_v40, 5  ;;  %v7095_v0 = vld [vmem:[%s7213_s10 + $0x5c] sm:$0x1]  ;;  %v1334_v51 = vrot.slane %v7096_v33, 5 }
  0xbe   : > { %6326 = vmatprep.mubr.bf16.mxu1 %v5327_v26  ;;  %6579 = vmatpush3.bf16.msra.mxu0 %v7020_v56  ;;  %v1323_v18 = vrot.slane %v7095_v0, 5  ;;  %v7976_v26 = vsel %vm7491_vm5, %v5345_v54, %v1313_v1  ;;  %v7980_v56 = vsel %vm7491_vm5, %v1315_v46, %v1316_v39  ;;  %v7097_v1 = vld [vmem:[%s7213_s10 + $0x68] sm:$0x1]  ;;  %v3811_v0 = vshll.u32 %v5703_v13, 16  ;;  %v7042_v40 = vld [vmem:[%s9016_s1 + $0x1f8] sm:$0xff]  }
  0xbf   : > { %6580 = vmatprep.subr.bf16.mxu0 %v7026_v47  ;;  %v1330_v54 = vrot.slane %v7097_v1, 5  ;;  %v5347_v46 = vrot.slane %v1226_v32, 9  ;;  %v1329_v39 = vrot.slane %v1327_v15, 4  ;;  %v3794_v33 = vor.u32 %v3793_v62, %v7967_v7  ;;  %v5706_v1 = vld [vmem:[%s7213_s10 + $0x34] sm:$0xf] }
  0xc0   : > { %v1336_v32 = vrot.slane %v1334_v51, 4  ;;  %v5704_v62 = vld [vmem:[%s7213_s10 + $0x2c] sm:$0x1]  ;;  %v8007_v17 = vrot.slane %v3811_v0, 5  ;;  %v3835_v13 = vshll.u32 %v5706_v1, 16  ;;  %v3839_v31 = vshrl.u32 %v5706_v1, 16 }
  0xc1   : > { %v3795_v10 = vrot.slane %v3794_v33, 4  ;;  %v8024_v29 = vsel %vm7491_vm5, %v1322_v52, %v1323_v18  ;;  %v8031_v45 = vsel %vm7491_vm5, %v5347_v46, %v1327_v15  ;;  %v8035_v14 = vsel %vm7491_vm5, %v1329_v39, %v1330_v54  ;;  %v1228_v18 = vld [vmem:[%s7213_s10 + $0x78] sm:$0xe] }
  0xc2   : > { %6581 = vmatpush3.bf16.msra.mxu0 %v7026_v47  ;;  %v8039_v16 = vsel %vm7491_vm5, %v5348_v58, %v1334_v51  ;;  %v8049_v15 = vsel %vm7491_vm5, %v1336_v32, %v1337_v19  ;;  %v3818_v5 = vor.u32 %v3817_v28, %v8007_v17  ;;  %v3828_v52 = vrot.slane %v3826_v38, 4  ;;  %v5708_v58 = vld [vmem:[%s7213_s10 + $0x3c] sm:$0xf]  ;;  %v5709_v51 = vld [vmem:[%s7213_s10 + $0x40] sm:$0xf] }
  0xc3   : > { %6582 = vmatprep.subr.bf16.mxu0 %v7030_v53  ;;  %v3790_v0 = vsel %vm7245_vm2, %v3785_v21, %v7967_v7  ;;  %v3800_v46 = vsel %vm7245_vm2, %v3795_v10, %v7995_v42  ;;  %v8060_v39 = vrot.slane %v3835_v13, 5  ;;  %v3841_v22 = vrot.slane %v3839_v31, 4  ;;  %v7100_v19 = vld [vmem:[%s7213_s10 + $0x80] sm:$0x1]  ;;  %v8219_v47 = vld [vmem:[%s7213_s10 + $0x68] sm:$0x1] }
  0xc4   : > { %6551 = vmatmul.mubr.bf16.gmra.mrb[8].mxu0 %v7019_v2  ;;  %v3829_v2 = vshll.u32 %v5705_v43, 16  ;;  %v3821_v43 = vshll.u32 %v5704_v62, 16  ;;  %v5349_v32 = vrot.slane %v1228_v18, 9  ;;  %v1229_v62 = vld [vmem:[%s7213_s10 + $0x84] sm:$0xe]  ;;  %v3850_v28 = vshrl.u32 %v5708_v58, 16 }
  0xc5   : > { %6327 = vmatmul.mubr.bf16.gmra.mrb[24].mxu1 %v5328_v20  ;;  %6554 = vmatprep.mubr.bf16.mxu0 %v7022_v3  ;;  %v7038_v20 = vld [vmem:[%s9016_s1 + $0x1f0] sm:$0xff]   ;;  %v7099_v3 = vld [vmem:[%s7213_s10 + $0x7c] sm:$0xf]  ;;  %v3853_v7 = vshll.u32 %v5708_v58, 16  ;;  %v3859_v38 = vshll.u32 %v5709_v51, 16  ;;  %v9038_v42 = vcombine.low %v7650_v41, %v7655_v12  ;;  %v8071_v13 = vrot.slane %v3818_v5, 4 }
  0xc6   : > { %6330 = vmatprep.mubr.bf16.mxu1 %v5329_v23  ;;  %6583 = vmatpush3.bf16.msra.mxu0 %v7030_v53  ;;  %v3808_v23 = vor.u32 %v3807_v44, %v3804_v34  ;;  %v7027_v53 = vld [vmem:[%s7213_s10 + $0x78] sm:$0xff]   ;;  %v1341_v44 = vrot.slane %v7099_v3, 5  ;;  %v3831_v54 = vrot.slane %v3829_v2, 5  ;;  %v8064_v1 = vrot.slane %v3821_v43, 5  ;;  %v8076_v21 = vld [vmem:[%s9016_s1 + $0x200] sm:$0xff]   ;;  %9046 = vst [vmem:[#allocation5_spill] sm:$0xff] %v8219_v47 }
  0xc7   : > { %6584 = vmatprep.subr.bf16.mxu0 %v7034_v50  ;;  %v5707_v34 = vld [vmem:[%s7213_s10 + $0x38] sm:$0x1]  ;;  %v3863_v2 = vshrl.u32 %v5709_v51, 16  ;;  %v7029_v43 = vld [vmem:[%s7213_s10 + $0x84] sm:$0xff]   ;;  %v3842_v12 = vor.u32 %v3841_v22, %v8060_v39  ;;  %v3855_v58 = vrot.slane %v3853_v7, 5  ;;  %v8098_v51 = vrot.slane %v3859_v38, 5 }
  0xc8   : > { %v8062_v33 = vrot.slane %v3808_v23, 4  ;;  %v1343_v10 = vrot.slane %v1341_v44, 4  ;;  %v3832_v31 = vor.u32 %v3831_v54, %v3828_v52  ;;  %v9039_v23 = vcombine.low %v7881_v59, %v7889_v25  ;;  %v7101_v18 = vld [vmem:[%s7213_s10 + $0x88] sm:$0xf]  ;;  %v5710_v5 = vld [vmem:[%s7213_s10 + $0x44] sm:$0x1] }
  0xc9   : > { %v1348_v3 = vrot.slane %v7101_v18, 5  ;;  %v8089_v59 = vcombine.low %v3790_v0, %v3800_v46  ;;  %v5711_v52 = vld [vmem:[%s7213_s10 + $0x48] sm:$0xf]  ;;  %v3852_v54 = vrot.slane %v3850_v28, 4  ;;  %v3865_v22 = vrot.slane %v3863_v2, 4 }
  0xca   : > { %6585 = vmatpush3.bf16.msra.mxu0 %v7034_v50  ;;  %v1344_v50 = vrot.slane %v7100_v19, 5  ;;  %v7031_v19 = vld [vmem:[%s7213_s10 + $0x90] sm:$0xff]   ;;  %v3814_v0 = vsel %vm7245_vm2, %v8062_v33, %v8007_v17  ;;  %v3833_v46 = vrot.slane %v3832_v31, 4  ;;  %v3824_v28 = vsel %vm7245_vm2, %v8071_v13, %v8064_v1  ;;  %v8120_v33 = vld [vmem:[%s7213_s10 + $0x58] sm:$0xf]  ;;  %v7032_v31 = vld [vmem:[%s9016_s1 + $0xc8] sm:$0xff]  }
  0xcb   : > { %6586 = vmatprep.subr.bf16.mxu0 %v7038_v20  ;;  %v3843_v38 = vrot.slane %v3842_v12, 4  ;;  %v1350_v2 = vrot.slane %v1348_v3, 4  ;;  %v5714_v17 = vld [vmem:[%s7213_s10 + $0x54] sm:$0xf]  ;;  %v3869_v1 = vshll.u32 %v5710_v5, 16  ;;  %v3874_v13 = vshrl.u32 %v5711_v52, 16 }
  0xcc   : > { %6555 = vmatmul.mubr.bf16.gmra.mrb[12].mxu0 %v7025_v48  ;;  %v3845_v48 = vshll.u32 %v5707_v34, 16  ;;  %v8116_v7 = vsel %vm7491_vm5, %v1343_v10, %v1344_v50  ;;  %v3877_v50 = vshll.u32 %v5711_v52, 16  ;;  %v3856_v10 = vor.u32 %v3855_v58, %v3852_v54  ;;  %v7033_v54 = vld [vmem:[%s7213_s10 + $0x9c] sm:$0xff]   ;;  %v7107_v41 = vld [vmem:[%s7213_s10 + $0xac] sm:$0xf] }
  0xcd   : > { %6331 = vmatmul.mubr.bf16.gmra.mrb[28].mxu1 %v9038_v42  ;;  %6558 = vmatprep.mubr.bf16.mxu0 %v7027_v53  ;;  %v5350_v53 = vrot.slane %v1229_v62, 9  ;;  %v7102_v42 = vld [vmem:[%s7213_s10 + $0x8c] sm:$0x1]  ;;  %v3907_v5 = vshll.u32 %v8120_v33, 16  ;;  %v9041_v52 = vcombine.low %v7897_v63, %v7905_v8  ;;  %v8156_v63 = vld [vmem:[%s7213_s10 + $0x50] sm:$0x1] }
  0xce   : > { %6350 = vmatprep.mubr.bf16.mxu1 %v9039_v23  ;;  %6587 = vmatpush3.bf16.msra.mxu0 %v7038_v20  ;;  %v8095_v20 = vsel %vm7491_vm5, %v5349_v32, %v1341_v44  ;;  %v3847_v62 = vrot.slane %v3845_v48, 5  ;;  %v1351_v23 = vrot.slane %v7102_v42, 5  ;;  %v1230_v44 = vld [vmem:[%s7213_s10 + $0x90] sm:$0xe]  ;;  %v8108_v32 = vld [vmem:[%s7213_s10 + $0x4c] sm:$0xf]  ;;  %v3866_v48 = vor.u32 %v3865_v22, %v8098_v51 }
  0xcf   : > { %6588 = vmatprep.subr.bf16.mxu0 %v7042_v40  ;;  %v3883_v12 = vshll.u32 %v8108_v32, 16  ;;  %v3887_v18 = vshrl.u32 %v8108_v32, 16  ;;  %v9040_v42 = vcombine.low %v7885_v30, %v7893_v6  ;;  %v7036_v30 = vld [vmem:[%s9016_s1 + $0xd0] sm:$0xff]   ;;  %v3838_v6 = vsel %vm7245_vm2, %v3833_v46, %v8060_v39  ;;  %v7035_v8 = vld [vmem:[%s7213_s10 + $0xa8] sm:$0xff]   ;;  %v8163_v39 = vld [vmem:[%s7213_s10 + $0x5c] sm:$0x1] }
  0xd0   : > { %v3848_v58 = vsel %vm7245_vm2, %v3843_v38, %v3847_v62  ;;  %v5351_v22 = vrot.slane %v1230_v44, 9  ;;  %v3879_v25 = vrot.slane %v3877_v50, 5  ;;  %9042 = vst [vmem:[#allocation3_spill] sm:$0xff] %v8163_v39  ;;  %v3857_v46 = vrot.slane %v3856_v10, 4 }
  0xd1   : > { %v3867_v62 = vrot.slane %v3866_v48, 4  ;;  %v8165_v38 = vrot.slane %v3883_v12, 5  ;;  %v8167_v34 = vrot.slane %v3907_v5, 5  ;;  %v8172_v50 = vcombine.low %v3814_v0, %v3824_v28  ;;  %v5717_v28 = vld [vmem:[%s7213_s10 + $0x60] sm:$0xf] }
  0xd2   : > { %6589 = vmatpush3.bf16.msra.mxu0 %v7042_v40  ;;  %v8128_v40 = vsel %vm7491_vm5, %v5350_v53, %v1348_v3  ;;  %v3898_v53 = vshrl.u32 %v5714_v17, 16  ;;  %v3901_v3 = vshll.u32 %v5714_v17, 16  ;;  %v7103_v17 = vld [vmem:[%s7213_s10 + $0x94] sm:$0xf]  ;;  %v8176_v48 = vcombine.low %v3838_v6, %v3848_v58 }
  0xd3   : > { %6622 = vmatprep.subr.bf16.mxu0 %v8076_v21  ;;  %v3893_v0 = vshll.u32 %v8156_v63, 16  ;;  %v3862_v6 = vsel %vm7245_vm2, %v3857_v46, %v8098_v51  ;;  %v9045_v46 = vcombine.low %v7919_v61, %v7923_v36 }
  0xd4   : > { %6559 = vmatmul.mubr.bf16.gmra.mrb[16].mxu0 %v7029_v43  ;;  %v3911_v43 = vshrl.u32 %v8120_v33, 16  ;;  %v3900_v44 = vrot.slane %v3898_v53, 4  ;;  %v7104_v53 = vld [vmem:[%s7213_s10 + $0x98] sm:$0x1] }
  0xd5   : > { %6351 = vmatmul.mubr.bf16.vlgmr.msra.gmra.mrb[0].mxu1 %v9040_v42  ;;  %6562 = vmatprep.mubr.bf16.mxu0 %v7031_v19  ;;  %v8159_v19 = vrot.slane %v3869_v1, 5  ;;  %v1355_v42 = vrot.slane %v7103_v17, 5  ;;  %v7105_v17 = vld [vmem:[%s7213_s10 + $0xa0] sm:$0xf]  ;;  %v3895_v36 = vrot.slane %v3893_v0, 5 }
  0xd6   : > { %6383 = vmatpush3.bf16.msra.mxu1 %v7838_v60  ;;  %6354 = vmatprep.mubr.bf16.mxu1 %v9041_v52  ;;  %v8153_v60 = vsel %vm7491_vm5, %v1350_v2, %v1351_v23  ;;  %v3876_v52 = vrot.slane %v3874_v13, 4  ;;  %v3889_v23 = vrot.slane %v3887_v18, 4  ;;  %v3903_v2 = vrot.slane %v3901_v3, 5  ;;  %v7040_v13 = vld [vmem:[%s9016_s1 + $0xd8] sm:$0xff]  }
  0xd7   : > { %6384 = vmatprep.subr.bf16.mxu1 %v7032_v31  ;;  %v3913_v1 = vrot.slane %v3911_v43, 4  ;;  %v1231_v18 = vld [vmem:[%s7213_s10 + $0x9c] sm:$0xe]  ;;  %v1358_v3 = vrot.slane %v7104_v53, 5  ;;  %v8189_v43 = vld [vmem:[%s7213_s10 + $0x64] sm:$0xf] }
  0xd8   : > { %v3880_v5 = vor.u32 %v3879_v25, %v3876_v52  ;;  %9043 = vst [vmem:[#allocation4_spill] sm:$0xff] %v8189_v43  ;;  %v3890_v58 = vor.u32 %v3889_v23, %v8165_v38  ;;  %v1362_v12 = vrot.slane %v7105_v17, 5  ;;  %v9044_v25 = vcombine.low %v7909_v24, %v7913_v35  ;;  %v7037_v23 = vld [vmem:[%s7213_s10 + $0xb4] sm:$0xff]   ;;  %v7043_v24 = vld [vmem:[%s9016_s1 + $0xe0] sm:$0xff]   ;;  %v5720_v17 = vld [vmem:[%s7213_s10 + $0x6c] sm:$0xf] }
  0xd9   : > { %v1357_v52 = vrot.slane %v1355_v42, 4  ;;  %v3904_v53 = vor.u32 %v3903_v2, %v3900_v44  ;;  %v3914_v51 = vor.u32 %v3913_v1, %v8167_v34  ;;  %v3922_v35 = vshrl.u32 %v5717_v28, 16  ;;  %v7106_v2 = vld [vmem:[%s7213_s10 + $0xa4] sm:$0x1] }
  0xda   : > { %6385 = vmatpush3.bf16.msra.mxu1 %v7032_v31  ;;  %v8183_v31 = vsel %vm7491_vm5, %v5351_v22, %v1355_v42  ;;  %v3917_v22 = vshll.u32 %v8163_v39, 16  ;;  %v3935_v42 = vshrl.u32 %v8189_v43, 16  ;;  %v3881_v61 = vrot.slane %v3880_v5, 4  ;;  %v8358_v39 = vld [vmem:[%s7213_s10 + $0x98] sm:$0x1] }
  0xdb   : > { %6386 = vmatprep.subr.bf16.mxu1 %v7036_v30  ;;  %v5352_v44 = vrot.slane %v1231_v18, 9  ;;  %v1365_v1 = vrot.slane %v7106_v2, 5  ;;  %v3905_v5 = vrot.slane %v3904_v53, 4  ;;  %v3915_v18 = vrot.slane %v3914_v51, 4  ;;  %9059 = vst [vmem:[#allocation14_spill] sm:$0xff] %v8358_v39 }
  0xdc   : > { %6563 = vmatmul.mubr.bf16.gmra.mrb[20].mxu0 %v7033_v54  ;;  %v3872_v54 = vsel %vm7245_vm2, %v3867_v62, %v8159_v19  ;;  %v3931_v19 = vshll.u32 %v8189_v43, 16  ;;  %v7039_v62 = vld [vmem:[%s7213_s10 + $0xc0] sm:$0xff]   ;;  %v3919_v10 = vrot.slane %v3917_v22, 5  ;;  %v8225_v43 = vsel %vm7491_vm5, %v1357_v52, %v1358_v3 }
  0xdd   : > { %6355 = vmatmul.mubr.bf16.gmra.mrb[4].mxu1 %v9044_v25  ;;  %6566 = vmatprep.mubr.bf16.mxu0 %v7035_v8  ;;  %v3925_v8 = vshll.u32 %v5717_v28, 16  ;;  %v3891_v25 = vrot.slane %v3890_v58, 4  ;;  %v1369_v28 = vrot.slane %v7107_v41, 5  ;;  %v8221_v55 = vcombine.low %v3862_v6, %v3872_v54  ;;  %v7045_v41 = vld [vmem:[%s9016_s1 + $0xe8] sm:$0xff]  }
  0xde   : > { %6358 = vmatprep.mubr.bf16.mxu1 %v9045_v46  ;;  %6387 = vmatpush3.bf16.msra.mxu1 %v7036_v30  ;;  %v1232_v30 = vld [vmem:[%s7213_s10 + $0xa8] sm:$0xe]  ;;  %v1364_v46 = vrot.slane %v1362_v12, 4  ;;  %v3924_v0 = vrot.slane %v3922_v35, 4  ;;  %v8227_v58 = vrot.slane %v3931_v19, 5  ;;  %v3937_v22 = vrot.slane %v3935_v42, 4 }
  0xdf   : > { %6388 = vmatprep.subr.bf16.mxu1 %v7040_v13  ;;  %v3927_v2 = vrot.slane %v3925_v8, 5  ;;  %v3886_v3 = vsel %vm7245_vm2, %v3881_v61, %v8165_v38  ;;  %v8237_v6 = vsel %vm7491_vm5, %v5352_v44, %v1362_v12  ;;  %v3946_v54 = vshrl.u32 %v5720_v17, 16  ;;  %v7108_v38 = vld [vmem:[%s7213_s10 + $0xb0] sm:$0x1]  ;;  %v1233_v19 = vld [vmem:[%s7213_s10 + $0xb4] sm:$0xe] }
  0xe0   : > { %v3949_v52 = vshll.u32 %v5720_v17, 16  ;;  %v3896_v53 = vsel %vm7245_vm2, %v3891_v25, %v3895_v36  ;;  %v8246_v51 = vsel %vm7491_vm5, %v1364_v46, %v1365_v1  ;;  %v5353_v35 = vrot.slane %v1232_v30, 9  ;;  %v8268_v30 = vld [vmem:[%s7213_s10 + $0x74] sm:$0x1]  ;;  %v7109_v25 = vld [vmem:[%s7213_s10 + $0xb8] sm:$0xf] }
  0xe1   : > { %v1372_v8 = vrot.slane %v7108_v38, 5  ;;  %v9048_v12 = vcombine.low %v7940_v49, %v7954_v4  ;;  %v3910_v42 = vsel %vm7245_vm2, %v3905_v5, %v8167_v34  ;;  %v3920_v61 = vsel %vm7245_vm2, %v3915_v18, %v3919_v10  ;;  %v7041_v4 = vld [vmem:[%s7213_s10 + $0xcc] sm:$0xff]   ;;  %9050 = vst [vmem:[#allocation7_spill] sm:$0xff] %v8268_v30  ;;  %v5726_v38 = vld [vmem:[%s7213_s10 + $0x84] sm:$0xf] }
  0xe2   : > { %6389 = vmatpush3.bf16.msra.mxu1 %v7040_v13  ;;  %v8240_v13 = vld [vmem:[%s7213_s10 + $0x70] sm:$0xf]  ;;  %v1371_v36 = vrot.slane %v1369_v28, 4  ;;  %v3941_v44 = vshll.u32 %v8219_v47, 16  ;;  %v9049_v49 = vcombine.low %v7976_v26, %v7980_v56  ;;  %v3938_v1 = vor.u32 %v3937_v22, %v8227_v58  ;;  %v8285_v22 = vld [vmem:[%s7213_s10 + $0x7c] sm:$0xf] }
  0xe3   : > { %6390 = vmatprep.subr.bf16.mxu1 %v7043_v24  ;;  %9047 = vst [vmem:[#allocation6_spill] sm:$0xff] %v8240_v13  ;;  %v3955_v34 = vshll.u32 %v8240_v13, 16  ;;  %v3959_v10 = vshrl.u32 %v8240_v13, 16  ;;  %v5354_v17 = vrot.slane %v1233_v19, 9  ;;  %v1376_v46 = vrot.slane %v7109_v25, 5  ;;  %9051 = vst [vmem:[#allocation8_spill] sm:$0xff] %v8285_v22 }
  0xe4   : > { %6567 = vmatmul.mubr.bf16.gmra.mrb[24].mxu0 %v7037_v23  ;;  %v7047_v23 = vld [vmem:[%s9016_s1 + $0xf0] sm:$0xff]   ;;  %v3948_v26 = vrot.slane %v3946_v54, 4  ;;  %v3951_v56 = vrot.slane %v3949_v52, 5  ;;  %v8276_v18 = vcombine.low %v3886_v3, %v3896_v53  ;;  %v8288_v19 = vcombine.low %v3910_v42, %v3920_v61  ;;  %v7110_v3 = vld [vmem:[%s7213_s10 + $0xbc] sm:$0x1] }
  0xe5   : > { %6359 = vmatmul.mubr.bf16.gmra.mrb[8].mxu1 %v9048_v12  ;;  %6570 = vmatprep.mubr.bf16.mxu0 %v7039_v62  ;;  %v3928_v62 = vor.u32 %v3927_v2, %v3924_v0  ;;  %v8282_v2 = vsel %vm7491_vm5, %v5353_v35, %v1369_v28  ;;  %v8292_v54 = vsel %vm7491_vm5, %v1371_v36, %v1372_v8  ;;  %v8294_v52 = vrot.slane %v3941_v44, 5  ;;  %v7049_v12 = vld [vmem:[%s9016_s1 + $0xf8] sm:$0xff]   ;;  %v8301_v28 = vld [vmem:[%s7213_s10 + $0x88] sm:$0xf] }
  0xe6   : > { %6362 = vmatprep.mubr.bf16.mxu1 %v9049_v49  ;;  %6391 = vmatpush3.bf16.msra.mxu1 %v7043_v24  ;;  %v5723_v24 = vld [vmem:[%s7213_s10 + $0x78] sm:$0xf]  ;;  %v1379_v53 = vrot.slane %v7110_v3, 5  ;;  %9052 = vst [vmem:[#allocation9_spill] sm:$0xff] %v8301_v28  ;;  %v8305_v42 = vrot.slane %v3938_v1, 4  ;;  %v8307_v61 = vrot.slane %v3955_v34, 5  ;;  %v8311_v36 = vsel %vm7491_vm5, %v5354_v17, %v1376_v46 }
  0xe7   : > { %6392 = vmatprep.subr.bf16.mxu1 %v7045_v41  ;;  %v8303_v35 = vrot.slane %v3928_v62, 4  ;;  %v3961_v8 = vrot.slane %v3959_v10, 4  ;;  %v1378_v44 = vrot.slane %v1376_v46, 4  ;;  %v3952_v49 = vor.u32 %v3951_v56, %v3948_v26  ;;  %v5729_v3 = vld [vmem:[%s7213_s10 + $0x90] sm:$0xf] }
  0xe8   : > { %v3965_v25 = vshll.u32 %v8268_v30, 16  ;;  %v3973_v0 = vshll.u32 %v5723_v24, 16  ;;  %v3979_v62 = vshll.u32 %v8285_v22, 16  ;;  %v3983_v1 = vshrl.u32 %v8285_v22, 16  ;;  %v8318_v34 = vld [vmem:[%s7213_s10 + $0x94] sm:$0xf] }
  0xe9   : > { %9053 = vst [vmem:[#allocation10_spill] sm:$0xff] %v8318_v34  ;;  %v9054_v10 = vcombine.low %v8020_v27, %v8024_v29  ;;  %v3994_v17 = vshrl.u32 %v5726_v38, 16  ;;  %v3997_v46 = vshll.u32 %v5726_v38, 16  ;;  %v4007_v26 = vshrl.u32 %v8301_v28, 16  ;;  %v5732_v38 = vld [vmem:[%s7213_s10 + $0x9c] sm:$0xf] }
  0xea   : > { %6393 = vmatpush3.bf16.msra.mxu1 %v7045_v41  ;;  %v3970_v41 = vshrl.u32 %v5723_v24, 16  ;;  %v9055_v56 = vcombine.low %v8031_v45, %v8035_v14  ;;  %v3962_v29 = vor.u32 %v3961_v8, %v8307_v61  ;;  %v4021_v24 = vshll.u32 %v5729_v3, 16  ;;  %v8340_v45 = vld [vmem:[%s7213_s10 + $0x80] sm:$0x1] }
  0xeb   : > { %6394 = vmatprep.subr.bf16.mxu1 %v7047_v23  ;;  %v8337_v5 = vrot.slane %v3965_v25, 5  ;;  %9056 = vst [vmem:[#allocation11_spill] sm:$0xff] %v8340_v45  ;;  %v4027_v14 = vshll.u32 %v8318_v34, 16  ;;  %v3975_v27 = vrot.slane %v3973_v0, 5  ;;  %v3985_v8 = vrot.slane %v3983_v1, 4 }
  0xec   : > { %6571 = vmatmul.mubr.bf16.gmra.mrb[28].mxu0 %v7041_v4  ;;  %v4003_v4 = vshll.u32 %v8301_v28, 16  ;;  %v8344_v28 = vrot.slane %v3979_v62, 5  ;;  %v8350_v22 = vld [vmem:[%s7213_s10 + $0xa0] sm:$0xf]  ;;  %v3996_v25 = vrot.slane %v3994_v17, 4  ;;  %v3999_v30 = vrot.slane %v3997_v46, 5 }
  0xed   : > { %6363 = vmatmul.mubr.bf16.gmra.mrb[12].mxu1 %v9054_v10  ;;  %6590 = vmatprep.mubr.bf16.mxu0 %v8089_v59  ;;  %v4018_v59 = vshrl.u32 %v5729_v3, 16  ;;  %v8335_v10 = vrot.slane %v3952_v49, 4  ;;  %v8347_v3 = vld [vmem:[%s7213_s10 + $0x8c] sm:$0x1]  ;;  %9058 = vst [vmem:[#allocation13_spill] sm:$0xff] %v8350_v22  ;;  %v4009_v47 = vrot.slane %v4007_v26, 4  ;;  %v8367_v62 = vsel %vm7491_vm5, %v1378_v44, %v1379_v53 }
  0xee   : > { %6366 = vmatprep.mubr.bf16.mxu1 %v9055_v56  ;;  %6395 = vmatpush3.bf16.msra.mxu1 %v7047_v23  ;;  %v4031_v23 = vshrl.u32 %v8318_v34, 16  ;;  %v3972_v56 = vrot.slane %v3970_v41, 4  ;;  %9057 = vst [vmem:[#allocation12_spill] sm:$0xff] %v8347_v3  ;;  %v7046_v49 = vld [vmem:[%s9016_s1 + $0x208] sm:$0xff]   ;;  %v8355_v13 = vrot.slane %v4003_v4, 5  ;;  %v4023_v34 = vrot.slane %v4021_v24, 5 }
  0xef   : > { %6396 = vmatprep.subr.bf16.mxu1 %v7049_v12  ;;  %v5735_v41 = vld [vmem:[%s7213_s10 + $0xa8] sm:$0xf]  ;;  %v4020_v1 = vrot.slane %v4018_v59, 4  ;;  %v8372_v17 = vld [vmem:[%s9016_s1 + $0x100] sm:$0xff]   ;;  %v8375_v46 = vrot.slane %v4027_v14, 5  ;;  %v4042_v26 = vshrl.u32 %v5732_v38, 16  ;;  %v9061_v24 = vcombine.low %v8039_v16, %v8049_v15 }
  0xf0   : > { %9060 = vst [vmem:[#allocation15_spill] sm:$0xff] %v8372_v17  ;;  %v4033_v4 = vrot.slane %v4031_v23, 4  ;;  %v4045_v0 = vshll.u32 %v5732_v38, 16  ;;  %v8378_v53 = vrot.slane %v3962_v29, 4  ;;  %v4051_v44 = vshll.u32 %v8350_v22, 16  ;;  %v7048_v16 = vld [vmem:[%s9016_s1 + $0x210] sm:$0xff]  }
  0xf1   : > { %v4055_v59 = vshrl.u32 %v8350_v22, 16  ;;  %v3976_v14 = vor.u32 %v3975_v27, %v3972_v56  ;;  %v3986_v38 = vor.u32 %v3985_v8, %v8344_v28  ;;  %v4000_v23 = vor.u32 %v3999_v30, %v3996_v25  ;;  %v8390_v29 = vld [vmem:[%s7213_s10 + $0xac] sm:$0xf]  ;;  %v8403_v25 = vld [vmem:[%s7213_s10 + $0xa4] sm:$0x1] }
  0xf2   : > { %6397 = vmatpush3.bf16.msra.mxu1 %v7049_v12  ;;  %v3989_v12 = vshll.u32 %v8340_v45, 16  ;;  %9062 = vst [vmem:[#allocation16_spill] sm:$0xff] %v8390_v29  ;;  %v4010_v15 = vor.u32 %v4009_v47, %v8355_v13  ;;  %v4066_v27 = vshrl.u32 %v5735_v41, 16  ;;  %v4069_v30 = vshll.u32 %v5735_v41, 16 }
  0xf3   : > { %6670 = vmatprep.subr.bf16.mxu1 %v8372_v17  ;;  %v9063_v17 = vcombine.low %v8095_v20, %v8116_v7  ;;  %v4024_v56 = vor.u32 %v4023_v34, %v4020_v1  ;;  %v4034_v8 = vor.u32 %v4033_v4, %v8375_v46  ;;  %v4044_v20 = vrot.slane %v4042_v26, 4 }
  0xf4   : > { %6591 = vmatmul.mubr.bf16.vlgmr.msra.gmra.mrb[0].mxu0 %v8172_v50  ;;  %v4013_v50 = vshll.u32 %v8347_v3, 16  ;;  %v4047_v7 = vrot.slane %v4045_v0, 5  ;;  %v4079_v22 = vshrl.u32 %v8390_v29, 16  ;;  %v3977_v47 = vrot.slane %v3976_v14, 4  ;;  %v7050_v0 = vld [vmem:[%s9016_s1 + $0x218] sm:$0xff]  }
  0xf5   : > { %6367 = vmatmul.mubr.bf16.gmra.mrb[16].mxu1 %v9061_v24  ;;  %6623 = vmatpush3.bf16.msra.mxu0 %v8076_v21  ;;  %v4037_v21 = vshll.u32 %v8358_v39, 16  ;;  %v4075_v24 = vshll.u32 %v8390_v29, 16  ;;  %v3987_v39 = vrot.slane %v3986_v38, 4  ;;  %v3991_v3 = vrot.slane %v3989_v12, 5 }
  0xf6   : > { %6370 = vmatprep.mubr.bf16.mxu1 %v9063_v17  ;;  %6594 = vmatprep.mubr.bf16.mxu0 %v8176_v48  ;;  %v8405_v17 = vrot.slane %v4051_v44, 5  ;;  %v4057_v48 = vrot.slane %v4055_v59, 4  ;;  %v4015_v41 = vrot.slane %v4013_v50, 5  ;;  %v4001_v34 = vrot.slane %v4000_v23, 4 }
  0xf7   : > { %6624 = vmatprep.subr.bf16.mxu0 %v7046_v49  ;;  %v4011_v1 = vrot.slane %v4010_v15, 4  ;;  %v4068_v4 = vrot.slane %v4066_v27, 4  ;;  %v4071_v45 = vrot.slane %v4069_v30, 5  ;;  %v4025_v26 = vrot.slane %v4024_v56, 4  ;;  %v8471_v27 = vld [vmem:[%s7213_s10 + $0xbc] sm:$0x1] }
  0xf8   : > { %v4039_v44 = vrot.slane %v4037_v21, 5  ;;  %v4048_v59 = vor.u32 %v4047_v7, %v4044_v20  ;;  %v4061_v29 = vshll.u32 %v8403_v25, 16  ;;  %v4058_v12 = vor.u32 %v4057_v48, %v8405_v17  ;;  %v8438_v21 = vld [vmem:[%s7213_s10 + $0xb0] sm:$0x1] }
  0xf9   : > { %6625 = vmatpush3.bf16.msra.mxu0 %v7046_v49  ;;  %v4035_v49 = vrot.slane %v4034_v8, 4  ;;  %v8415_v14 = vrot.slane %v4075_v24, 5  ;;  %v4081_v38 = vrot.slane %v4079_v22, 4  ;;  %v9064_v23 = vor.u32 %v7823_v57, %v7821_v11 }
  0xfa   : > { %6626 = vmatprep.subr.bf16.mxu0 %v7048_v16  ;;  %v9065_v15 = vcombine.low %v8128_v40, %v8153_v60  ;;  %v3968_v22 = vsel %vm7245_vm2, %v8378_v53, %v8337_v5  ;;  %v3982_v57 = vsel %vm7245_vm2, %v3977_v47, %v8344_v28  ;;  %v9066_v40 = vcombine.low %v8183_v31, %v8225_v43  ;;  %v7053_v31 = vld [vmem:[%s9016_s1 + $0x220] sm:$0xff]  }
  0xfb   : > { %v8420_v50 = vrot.slane %v9064_v23, 4  ;;  %v3992_v60 = vsel %vm7245_vm2, %v3987_v39, %v3991_v3  ;;  %v4072_v5 = vor.u32 %v4071_v45, %v4068_v4  ;;  %v4016_v28 = vsel %vm7245_vm2, %v4011_v1, %v4015_v41  ;;  %v5791_v41 = vld [vmem:[%s7213_s10 + $0x48] sm:$0xe] }
  0xfc   : > { %6595 = vmatmul.mubr.bf16.gmra.mrb[4].mxu0 %v8221_v55  ;;  %v3958_v55 = vsel %vm7245_vm2, %v8335_v10, %v8307_v61  ;;  %v5738_v61 = vld [vmem:[%s7213_s10 + $0xb4] sm:$0xf]  ;;  %v8450_v10 = vld [vmem:[%s7213_s10 + $0xb8] sm:$0xf]  ;;  %v4030_v39 = vsel %vm7245_vm2, %v4025_v26, %v8375_v46  ;;  %v8460_v43 = vrot.slane %v4048_v59, 4  ;;  %v8462_v3 = vrot.slane %v4061_v29, 5 }
  0xfd   : > { %6371 = vmatmul.mubr.bf16.gmra.mrb[20].mxu1 %v9065_v15  ;;  %6598 = vmatprep.mubr.bf16.mxu0 %v8276_v18  ;;  %v4006_v18 = vsel %vm7245_vm2, %v4001_v34, %v8355_v13  ;;  %v4040_v13 = vsel %vm7245_vm2, %v4035_v49, %v4039_v44  ;;  %v8466_v45 = vrot.slane %v4058_v12, 4  ;;  %v4082_v53 = vor.u32 %v4081_v38, %v8415_v14  ;;  %v5792_v26 = vld [vmem:[%s7213_s10 + $0x54] sm:$0xe] }
  0xfe   : > { %6374 = vmatprep.mubr.bf16.mxu1 %v9066_v40  ;;  %6627 = vmatpush3.bf16.msra.mxu0 %v7048_v16  ;;  %v4085_v16 = vshll.u32 %v8438_v21, 16  ;;  %v9067_v46 = vsel %vm7245_vm2, %v8305_v42, %v8294_v52  ;;  %v9068_v29 = vsel %vm7245_vm2, %v8303_v35, %v8227_v58  ;;  %v4090_v56 = vshrl.u32 %v5738_v61, 16 }
  0xff   : > { %6628 = vmatprep.subr.bf16.mxu0 %v7050_v0  ;;  %v5769_v30 = vcombine.low %v9068_v29, %v9067_v46  ;;  %v4093_v8 = vshll.u32 %v5738_v61, 16  ;;  %v4099_v20 = vshll.u32 %v8450_v10, 16  ;;  %v5385_v7 = vcombine.low %v8282_v2, %v8292_v54  ;;  %v7056_v2 = vld [vmem:[%s9016_s1 + $0x228] sm:$0xff]   ;;  %v5741_v54 = vld [vmem:[%s7213_s10 + $0xc0] sm:$0xf]  ;;  %v9072_v29 = vld [vmem:[#allocation5_spill] sm:$0xff] }
 0x100   : > { %v5386_v48 = vcombine.low %v8311_v36, %v8367_v62  ;;  %v5770_v24 = vcombine.low %v3958_v55, %v3968_v22  ;;  %v8488_v52 = vrot.slane %v4072_v5, 4  ;;  %v5771_v42 = vcombine.low %v3982_v57, %v3992_v60 }
 0x101   : > { %v8490_v58 = vcombine.low %v4006_v18, %v4016_v28  ;;  %v8492_v35 = vcombine.low %v4030_v39, %v4040_v13  ;;  %v4054_v47 = vsel %vm7245_vm2, %v8460_v43, %v8405_v17  ;;  %v4064_v34 = vsel %vm7245_vm2, %v8466_v45, %v8462_v3  ;;  %v5794_v28 = vld [vmem:[%s7213_s10 + $0x6c] sm:$0xe] }
 0x102   : > { %6629 = vmatpush3.bf16.msra.mxu0 %v7050_v0  ;;  %v8508_v1 = vrot.slane %v4082_v53, 4  ;;  %v8510_v4 = vrot.slane %v4085_v16, 5  ;;  %v4103_v0 = vshrl.u32 %v8450_v10, 16  ;;  %v9069_v44 = vcombine.low %v8237_v6, %v8246_v51  ;;  %v7059_v6 = vld [vmem:[%s9016_s1 + $0x230] sm:$0xff]   ;;  %v8532_v51 = vld [vmem:[%s7213_s10 + $0xc4] sm:$0xf] }
 0x103   : > { %6630 = vmatprep.subr.bf16.mxu0 %v7053_v31  ;;  %v8517_v59 = vrot.slane %v4090_v56, 4  ;;  %v8521_v49 = vrot.slane %v4099_v20, 5  ;;  %v4109_v12 = vshll.u32 %v8471_v27, 16  ;;  %v4078_v38 = vsel %vm7245_vm2, %v8488_v52, %v8415_v14  ;;  %v5793_v14 = vld [vmem:[%s7213_s10 + $0x60] sm:$0xe]  ;;  %v9070_v39 = vld [vmem:[#allocation3_spill] sm:$0xff] }
 0x104   : > { %6599 = vmatmul.mubr.bf16.gmra.mrb[8].mxu0 %v8288_v19  ;;  %v8519_v19 = vrot.slane %v4093_v8, 5  ;;  %v4114_v23 = vshrl.u32 %v5741_v54, 16  ;;  %v5807_v15 = vrot.slane %v5791_v41, 9  ;;  %v4577_v55 = vrot.slane %v8108_v32, 5  ;;  %v7051_v13 = vld [vmem:[%s7213_s10 + $0xc] sm:$0xff]   ;;  %v7062_v56 = vld [vmem:[%s9016_s1 + $0x238] sm:$0xff]  }
 0x105   : > { %6375 = vmatmul.mubr.bf16.gmra.mrb[24].mxu1 %v9069_v44  ;;  %6602 = vmatprep.mubr.bf16.mxu0 %v5769_v30  ;;  %v4117_v22 = vshll.u32 %v5741_v54, 16  ;;  %v4580_v57 = vrot.slane %v8156_v63, 5  ;;  %v5808_v40 = vrot.slane %v5792_v26, 9  ;;  %v4584_v60 = vrot.slane %v8120_v33, 5  ;;  %v9071_v16 = vld [vmem:[#allocation4_spill] sm:$0xff]  ;;  %v9073_v52 = vld [vmem:[#allocation6_spill] sm:$0xff] }
 0x106   : > { %6378 = vmatprep.mubr.bf16.mxu1 %v5385_v7  ;;  %6631 = vmatpush3.bf16.msra.mxu0 %v7053_v31  ;;  %v4088_v18 = vsel %vm7245_vm2, %v8508_v1, %v8510_v4  ;;  %v8542_v5 = vrot.slane %v4103_v0, 4  ;;  %v8546_v61 = vsel %vm7491_vm5, %v5807_v15, %v4577_v55  ;;  %v4579_v32 = vrot.slane %v4577_v55, 4  ;;  %v9074_v4 = vld [vmem:[#allocation7_spill] sm:$0xff] }
 0x107   : > { %6632 = vmatprep.subr.bf16.mxu0 %v7056_v2  ;;  %v4123_v31 = vshll.u32 %v8532_v51, 16  ;;  %v8552_v63 = vsel %vm7491_vm5, %v5808_v40, %v4584_v60  ;;  %v4586_v33 = vrot.slane %v4584_v60, 4  ;;  %v4587_v3 = vrot.slane %v9070_v39, 5  ;;  %v8583_v26 = vld [vmem:[%s7213_s10 + $0xc8] sm:$0x1]  ;;  %v7052_v40 = vld [vmem:[%s7213_s10 + $0x18] sm:$0xff]  }
 0x108   : > { %v8558_v45 = vsel %vm7491_vm5, %v4579_v32, %v4580_v57  ;;  %v5809_v53 = vrot.slane %v5793_v14, 9  ;;  %v4591_v46 = vrot.slane %v9071_v16, 5  ;;  %v4594_v30 = vrot.slane %v9072_v29, 5  ;;  %v7054_v39 = vld [vmem:[%s7213_s10 + $0x24] sm:$0xff]  }
 0x109   : > { %v5839_v8 = vcombine.low %v8546_v61, %v8558_v45  ;;  %v8569_v20 = vsel %vm7491_vm5, %v4586_v33, %v4587_v3  ;;  %v5810_v7 = vrot.slane %v5794_v28, 9  ;;  %v4601_v0 = vrot.slane %v9074_v4, 5  ;;  %v9076_v28 = vld [vmem:[#allocation11_spill] sm:$0xff]  ;;  %v5500_v61 = vld [vmem:[%s7213_s10 + $0x90] sm:$0xf] }
 0x10a   : > { %6633 = vmatpush3.bf16.msra.mxu0 %v7056_v2  ;;  %v4598_v2 = vrot.slane %v9073_v52, 5  ;;  %v5840_v54 = vcombine.low %v8552_v63, %v8569_v20  ;;  %v8576_v41 = vsel %vm7491_vm5, %v5809_v53, %v4591_v46  ;;  %v4593_v1 = vrot.slane %v4591_v46, 4  ;;  %v9077_v53 = vld [vmem:[#allocation2_spill] sm:$0xff]  ;;  %v7068_v45 = vld [vmem:[%s7213_s10 + $0xa8] sm:$0xff]  }
 0x10b   : > { %6634 = vmatprep.subr.bf16.mxu0 %v7059_v6  ;;  %v8585_v44 = vrot.slane %v4114_v23, 4  ;;  %v8598_v36 = vcombine.low %v4054_v47, %v4064_v34  ;;  %v4096_v62 = vor.u32 %v8519_v19, %v8517_v59  ;;  %v5795_v23 = vld [vmem:[%s7213_s10 + $0x78] sm:$0xe]  ;;  %v8610_v57 = vrot.slane %v4109_v12, 5  ;;  %v5744_v12 = vld [vmem:[%s7213_s10 + $0xcc] sm:$0xf] }
 0x10c   : > { %6603 = vmatmul.mubr.bf16.gmra.mrb[12].mxu0 %v5770_v24  ;;  %v8587_v24 = vrot.slane %v4117_v22, 5  ;;  %v8591_v15 = vsel %vm7491_vm5, %v5810_v7, %v4598_v2  ;;  %v4600_v55 = vrot.slane %v4598_v2, 4  ;;  %v8608_v22 = vcombine.low %v4078_v38, %v4088_v18  ;;  %v5494_v47 = vld [vmem:[%s7213_s10 + $0x78] sm:$0xf]  ;;  %v9075_v18 = vld [vmem:[#allocation8_spill] sm:$0xff] }
 0x10d   : > { %6379 = vmatmul.mubr.bf16.gmra.mrb[28].mxu1 %v5386_v48  ;;  %6606 = vmatprep.mubr.bf16.mxu0 %v5771_v42  ;;  %v4127_v48 = vshrl.u32 %v8532_v51, 16  ;;  %v8605_v42 = vsel %vm7491_vm5, %v4593_v1, %v4594_v30  ;;  %v4106_v34 = vor.u32 %v8542_v5, %v8521_v49  ;;  %v8621_v59 = vrot.slane %v4123_v31, 5  ;;  %v8635_v31 = vld [vmem:[%s7213_s10 + $0xd0] sm:$0xf]  ;;  %v9078_v1 = vld [vmem:[#allocation9_spill] sm:$0xff] }
 0x10e   : > { %6398 = vmatprep.mubr.bf16.mxu1 %v7051_v13  ;;  %6635 = vmatpush3.bf16.msra.mxu0 %v7059_v6  ;;  %v5841_v17 = vcombine.low %v8576_v41, %v8605_v42  ;;  %v8616_v43 = vsel %vm7491_vm5, %v4600_v55, %v4601_v0  ;;  %v4133_v19 = vshll.u32 %v8583_v26, 16  ;;  %v5796_v6 = vld [vmem:[%s7213_s10 + $0x84] sm:$0xe]  ;;  %v4120_v60 = vor.u32 %v8587_v24, %v8585_v44  ;;  %v9079_v24 = vld [vmem:[#allocation12_spill] sm:$0xff]  ;;  %v7132_v63 = vld [vmem:[%s7213_s10 + $0x8c] sm:$0x1] }
 0x10f   : > { %6636 = vmatprep.subr.bf16.mxu0 %v7062_v56  ;;  %v5842_v38 = vcombine.low %v8591_v15, %v8616_v43  ;;  %v5811_v14 = vrot.slane %v5795_v23, 9  ;;  %v4605_v32 = vrot.slane %v9075_v18, 5  ;;  %v4608_v33 = vrot.slane %v9076_v28, 5 }
 0x110   : > { %v4129_v5 = vrot.slane %v4127_v48, 4  ;;  %v2355_v3 = vshrl.u32 %v5494_v47, 16  ;;  %v2358_v13 = vshll.u32 %v5494_v47, 16  ;;  %v2377_v16 = vsel %vm7245_vm2, %v8420_v50, %v9077_v53 }
 0x111   : > { %v4138_v46 = vshrl.u32 %v5744_v12, 16  ;;  %v8643_v29 = vsel %vm7491_vm5, %v5811_v14, %v4605_v32  ;;  %v4607_v30 = vrot.slane %v4605_v32, 4  ;;  %v5812_v7 = vrot.slane %v5796_v6, 9  ;;  %v7112_v6 = vld [vmem:[%s9016_s1 + $0x108] sm:$0xff]  }
 0x112   : > { %6637 = vmatpush3.bf16.msra.mxu0 %v7062_v56  ;;  %v4141_v52 = vshll.u32 %v5744_v12, 16  ;;  %v2357_v2 = vrot.slane %v2355_v3, 4  ;;  %v2360_v56 = vrot.slane %v2358_v13, 5  ;;  %v4612_v4 = vrot.slane %v9078_v1, 5  ;;  %v5797_v12 = vld [vmem:[%s7213_s10 + $0x90] sm:$0xe] }
 0x113   : > { %v4147_v50 = vshll.u32 %v8635_v31, 16  ;;  %v4151_v0 = vshrl.u32 %v8635_v31, 16  ;;  %v8652_v44 = vsel %vm7491_vm5, %v4607_v30, %v4608_v33  ;;  %v4615_v55 = vrot.slane %v9079_v24, 5  ;;  %v7055_v3 = vld [vmem:[%s7213_s10 + $0x30] sm:$0xff]  }
 0x114   : > { %6607 = vmatmul.mubr.bf16.gmra.mrb[16].mxu0 %v8490_v58  ;;  %v9080_v58 = vld [vmem:[#allocation15_spill] sm:$0xff]  ;;  %v4130_v48 = vor.u32 %v4129_v5, %v8621_v59  ;;  %v2361_v23 = vor.u32 %v2360_v56, %v2357_v2  ;;  %v4614_v47 = vrot.slane %v4612_v4, 4  ;;  %v4107_v14 = vrot.slane %v4106_v34, 4  ;;  %v8673_v13 = vld [vmem:[%s7213_s10 + $0xd4] sm:$0x1]  ;;  %v9081_v2 = vld [vmem:[#allocation10_spill] sm:$0xff] }
 0x115   : > { %6399 = vmatmul.mubr.bf16.vlgmr.msra.gmra.mrb[0].mxu1 %v7052_v40  ;;  %6610 = vmatprep.mubr.bf16.mxu0 %v8492_v35  ;;  %v5843_v35 = vcombine.low %v8643_v29, %v8652_v44  ;;  %v4097_v40 = vrot.slane %v4096_v62, 4  ;;  %v4135_v18 = vrot.slane %v4133_v19, 5  ;;  %v8665_v32 = vsel %vm7491_vm5, %v5812_v7, %v4612_v4  ;;  %v7057_v19 = vld [vmem:[%s7213_s10 + $0x3c] sm:$0xff]   ;;  %v7113_v1 = vld [vmem:[%s9016_s1 + $0x110] sm:$0xff]  }
 0x116   : > { %6678 = vmatpush3.bf16.msra.mxu1 %v9080_v58  ;;  %6402 = vmatprep.mubr.bf16.mxu1 %v7054_v39  ;;  %v4140_v28 = vrot.slane %v4138_v46, 4  ;;  %v4143_v33 = vrot.slane %v4141_v52, 5  ;;  %v2362_v39 = vrot.slane %v2361_v23, 4  ;;  %v8669_v5 = vsel %vm7491_vm5, %v4614_v47, %v4615_v55  ;;  %v7114_v47 = vld [vmem:[%s7213_s10 + $0x1c] sm:$0xf] }
 0x117   : > { %6671 = vmatprep.subr.bf16.mxu1 %v7112_v6  ;;  %v8675_v53 = vrot.slane %v4147_v50, 5  ;;  %v4153_v30 = vrot.slane %v4151_v0, 4  ;;  %v5844_v62 = vcombine.low %v8665_v32, %v8669_v5  ;;  %v5813_v34 = vrot.slane %v5797_v12, 9 }
 0x118   : > { %v4121_v7 = vrot.slane %v4120_v60, 4  ;;  %v4131_v46 = vrot.slane %v4130_v48, 4  ;;  %v2367_v52 = vsel %vm7245_vm2, %v2362_v39, %v7821_v11  ;;  %v4619_v56 = vrot.slane %v9081_v2, 5  ;;  %v9082_v11 = vld [vmem:[#allocation14_spill] sm:$0xff]  ;;  %v7058_v39 = vld [vmem:[%s7213_s10 + $0x48] sm:$0xff]  }
 0x119   : > { %v4102_v4 = vsel %vm7245_vm2, %v4097_v40, %v8521_v49  ;;  %v4112_v60 = vsel %vm7245_vm2, %v4107_v14, %v8610_v57  ;;  %v8693_v50 = vcombine.low %v2367_v52, %v2377_v16  ;;  %v4622_v0 = vrot.slane %v9082_v11, 5  ;;  %v5787_v57 = vld [vmem:[%s7213_s10 + $0x18] sm:$0xe]  ;;  %v5798_v16 = vld [vmem:[%s7213_s10 + $0x9c] sm:$0xe] }
 0x11a   : > { %6679 = vmatpush3.bf16.msra.mxu1 %v7112_v6  ;;  %v4144_v24 = vor.u32 %v4143_v33, %v4140_v28  ;;  %v4157_v55 = vshll.u32 %v8673_v13, 16  ;;  %v8700_v58 = vsel %vm7491_vm5, %v5813_v34, %v4619_v56  ;;  %v4621_v48 = vrot.slane %v4619_v56, 4  ;;  %v7115_v40 = vld [vmem:[%s9016_s1 + $0x118] sm:$0xff]   ;;  %v7116_v2 = vld [vmem:[%s7213_s10 + $0x20] sm:$0x1] }
 0x11b   : > { %6672 = vmatprep.subr.bf16.mxu1 %v7113_v1  ;;  %v4154_v49 = vor.u32 %v4153_v30, %v8675_v53  ;;  %v4136_v23 = vsel %vm7245_vm2, %v4131_v46, %v4135_v18  ;;  %v4549_v12 = vrot.slane %v7114_v47, 5  ;;  %v5776_v6 = vcombine.low %v4102_v4, %v4112_v60  ;;  %v9083_v34 = vld [vmem:[#allocation13_spill] sm:$0xff]  ;;  %v5799_v11 = vld [vmem:[%s7213_s10 + $0xa8] sm:$0xe] }
 0x11c   : > { %6611 = vmatmul.mubr.bf16.gmra.mrb[20].mxu0 %v8598_v36  ;;  %v4126_v36 = vsel %vm7245_vm2, %v4121_v7, %v8621_v59  ;;  %v4145_v14 = vrot.slane %v4144_v24, 4  ;;  %v4159_v28 = vrot.slane %v4157_v55, 5  ;;  %v5803_v18 = vrot.slane %v5787_v57, 9  ;;  %v7060_v46 = vld [vmem:[%s7213_s10 + $0x54] sm:$0xff]   ;;  %v5788_v55 = vld [vmem:[%s7213_s10 + $0x24] sm:$0xe] }
 0x11d   : > { %6403 = vmatmul.mubr.bf16.gmra.mrb[4].mxu1 %v7055_v3  ;;  %6614 = vmatprep.mubr.bf16.mxu0 %v8608_v22  ;;  %v8714_v22 = vsel %vm7491_vm5, %v4621_v48, %v4622_v0  ;;  %v5814_v33 = vrot.slane %v5798_v16, 9  ;;  %v5777_v3 = vcombine.low %v4126_v36, %v4136_v23  ;;  %v4155_v30 = vrot.slane %v4154_v49, 4  ;;  %v7118_v48 = vld [vmem:[%s7213_s10 + $0x28] sm:$0xf]  ;;  %v7119_v36 = vld [vmem:[%s7213_s10 + $0x34] sm:$0xf] }
 0x11e   : > { %6406 = vmatprep.mubr.bf16.mxu1 %v7057_v19  ;;  %6680 = vmatpush3.bf16.msra.mxu1 %v7113_v1  ;;  %v5845_v59 = vcombine.low %v8700_v58, %v8714_v22  ;;  %v4626_v19 = vrot.slane %v9083_v34, 5  ;;  %v4629_v7 = vrot.slane %v8403_v25, 5  ;;  %v4551_v52 = vrot.slane %v4549_v12, 4  ;;  %v7117_v1 = vld [vmem:[%s9016_s1 + $0x120] sm:$0xff]  }
 0x11f   : > { %6673 = vmatprep.subr.bf16.mxu1 %v7115_v40  ;;  %v4552_v56 = vrot.slane %v7116_v2, 5  ;;  %v4550_v25 = vsel %vm7491_vm5, %v5803_v18, %v4549_v12  ;;  %v4150_v0 = vsel %vm7245_vm2, %v4145_v14, %v8675_v53  ;;  %v4160_v24 = vsel %vm7245_vm2, %v4155_v30, %v4159_v28  ;;  %v5789_v12 = vld [vmem:[%s7213_s10 + $0x30] sm:$0xe]  ;;  %v7061_v30 = vld [vmem:[%s7213_s10 + $0x60] sm:$0xff]  }
 0x120   : > { %v8731_v4 = vsel %vm7491_vm5, %v5814_v33, %v4626_v19  ;;  %v4628_v60 = vrot.slane %v4626_v19, 4  ;;  %v4556_v49 = vrot.slane %v7118_v48, 5  ;;  %v4563_v23 = vrot.slane %v7119_v36, 5  ;;  %v7121_v33 = vld [vmem:[%s7213_s10 + $0x2c] sm:$0x1] }
 0x121   : > { %v4553_v16 = vsel %vm7491_vm5, %v4551_v52, %v4552_v56  ;;  %v5815_v47 = vrot.slane %v5799_v11, 9  ;;  %v5778_v28 = vcombine.low %v4150_v0, %v4160_v24  ;;  %v5804_v18 = vrot.slane %v5788_v55, 9  ;;  %v7063_v52 = vld [vmem:[%s7213_s10 + $0x6c] sm:$0xff]   ;;  %v5800_v11 = vld [vmem:[%s7213_s10 + $0xb4] sm:$0xe] }
 0x122   : > { %6681 = vmatpush3.bf16.msra.mxu1 %v7115_v40  ;;  %v8745_v57 = vsel %vm7491_vm5, %v4628_v60, %v4629_v7  ;;  %v9084_v40 = vld [vmem:[#allocation16_spill] sm:$0xff]  ;;  %v5835_v34 = vcombine.low %v4550_v25, %v4553_v16  ;;  %v4558_v19 = vrot.slane %v4556_v49, 4  ;;  %v5805_v2 = vrot.slane %v5789_v12, 9  ;;  %v5790_v0 = vld [vmem:[%s7213_s10 + $0x3c] sm:$0xe] }
 0x123   : > { %6674 = vmatprep.subr.bf16.mxu1 %v7117_v1  ;;  %v5846_v53 = vcombine.low %v8731_v4, %v8745_v57  ;;  %v4633_v14 = vrot.slane %v9084_v40, 5  ;;  %v4565_v56 = vrot.slane %v4563_v23, 4  ;;  %v7123_v24 = vld [vmem:[%s7213_s10 + $0x40] sm:$0xf]  ;;  %v4557_v48 = vsel %vm7491_vm5, %v5804_v18, %v4556_v49  ;;  %v7125_v18 = vld [vmem:[%s7213_s10 + $0x44] sm:$0x1] }
 0x124   : > { %6615 = vmatmul.mubr.bf16.gmra.mrb[24].mxu0 %v5776_v6  ;;  %v7120_v6 = vld [vmem:[%s9016_s1 + $0x128] sm:$0xff]   ;;  %v4570_v55 = vrot.slane %v7123_v24, 5  ;;  %v4640_v12 = vrot.slane %v8450_v10, 5  ;;  %v4564_v49 = vsel %vm7491_vm5, %v5805_v2, %v4563_v23  ;;  %v7126_v10 = vld [vmem:[%s9016_s1 + $0x138] sm:$0xff]   ;;  %v5801_v23 = vld [vmem:[%s7213_s10 + $0xc0] sm:$0xe] }
 0x125   : > { %6407 = vmatmul.mubr.bf16.gmra.mrb[8].mxu1 %v7058_v39  ;;  %6618 = vmatprep.mubr.bf16.mxu0 %v5777_v3  ;;  %v4559_v39 = vrot.slane %v7121_v33, 5  ;;  %v4636_v3 = vrot.slane %v8438_v21, 5  ;;  %v8762_v7 = vsel %vm7491_vm5, %v5815_v47, %v4633_v14  ;;  %v7124_v21 = vld [vmem:[%s9016_s1 + $0x130] sm:$0xff]   ;;  %v5816_v47 = vrot.slane %v5800_v11, 9 }
 0x126   : > { %6410 = vmatprep.mubr.bf16.mxu1 %v7060_v46  ;;  %6682 = vmatpush3.bf16.msra.mxu1 %v7117_v1  ;;  %v4635_v46 = vrot.slane %v4633_v14, 4  ;;  %v7122_v1 = vld [vmem:[%s7213_s10 + $0x38] sm:$0x1]  ;;  %v5806_v14 = vrot.slane %v5790_v0, 9  ;;  %v4573_v33 = vrot.slane %v7125_v18, 5  ;;  %v4647_v11 = vrot.slane %v8532_v51, 5 }
 0x127   : > { %6675 = vmatprep.subr.bf16.mxu1 %v7120_v6  ;;  %v4566_v60 = vrot.slane %v7122_v1, 5  ;;  %v4560_v36 = vsel %vm7491_vm5, %v4558_v19, %v4559_v39  ;;  %v4642_v39 = vrot.slane %v4640_v12, 4  ;;  %v5491_v19 = vld [vmem:[%s7213_s10 + $0x6c] sm:$0xf]  ;;  %v7066_v18 = vld [vmem:[%s7213_s10 + $0x90] sm:$0xff]   ;;  %v2398_v20 = vshll.u32 %v7132_v63, 16 }
 0x128   : > { %v8774_v25 = vsel %vm7491_vm5, %v4635_v46, %v4636_v3  ;;  %v5836_v3 = vcombine.low %v4557_v48, %v4560_v36  ;;  %v4571_v1 = vsel %vm7491_vm5, %v5806_v14, %v4570_v55  ;;  %v2331_v0 = vshrl.u32 %v5491_v19, 16  ;;  %v5802_v51 = vld [vmem:[%s7213_s10 + $0xcc] sm:$0xe] }
 0x129   : > { %v5847_v16 = vcombine.low %v8762_v7, %v8774_v25  ;;  %v4567_v40 = vsel %vm7491_vm5, %v4565_v56, %v4566_v60  ;;  %v5817_v56 = vrot.slane %v5801_v23, 9  ;;  %v2334_v24 = vshll.u32 %v5491_v19, 16 }
 0x12a   : > { %6683 = vmatpush3.bf16.msra.mxu1 %v7120_v6  ;;  %v4643_v6 = vrot.slane %v8471_v27, 5  ;;  %v8794_v27 = vsel %vm7491_vm5, %v5816_v47, %v4640_v12  ;;  %v4650_v36 = vrot.slane %v8583_v26, 5  ;;  %v4649_v12 = vrot.slane %v4647_v11, 4 }
 0x12b   : > { %6676 = vmatprep.subr.bf16.mxu1 %v7124_v21  ;;  %v2336_v26 = vrot.slane %v2334_v24, 5  ;;  %v4657_v23 = vrot.slane %v8673_v13, 5 }
 0x12c   : > { %6619 = vmatmul.mubr.bf16.gmra.mrb[28].mxu0 %v5778_v28  ;;  %v4572_v28 = vrot.slane %v4570_v55, 4  ;;  %v8801_v46 = vsel %vm7491_vm5, %v4642_v39, %v4643_v6  ;;  %v8815_v55 = vsel %vm7491_vm5, %v5817_v56, %v4647_v11  ;;  %v4654_v39 = vrot.slane %v8635_v31, 5  ;;  %v7128_v56 = vld [vmem:[%s7213_s10 + $0x74] sm:$0x1] }
 0x12d   : > { %6411 = vmatmul.mubr.bf16.gmra.mrb[12].mxu1 %v7061_v30  ;;  %6638 = vmatprep.mubr.bf16.mxu0 %v5835_v34  ;;  %v7064_v30 = vld [vmem:[%s7213_s10 + $0x78] sm:$0xff]   ;;  %v5837_v34 = vcombine.low %v4564_v49, %v4567_v40  ;;  %v5848_v2 = vcombine.low %v8794_v27, %v8801_v46  ;;  %v8820_v49 = vsel %vm7491_vm5, %v4649_v12, %v4650_v36  ;;  %v2333_v40 = vrot.slane %v2331_v0, 4  ;;  %v7129_v0 = vld [vmem:[%s7213_s10 + $0x88] sm:$0xf] }
 0x12e   : > { %6414 = vmatprep.mubr.bf16.mxu1 %v7063_v52  ;;  %6684 = vmatpush3.bf16.msra.mxu1 %v7124_v21  ;;  %v7065_v52 = vld [vmem:[%s7213_s10 + $0x84] sm:$0xff]   ;;  %v4574_v60 = vsel %vm7491_vm5, %v4572_v28, %v4573_v33  ;;  %v7127_v21 = vld [vmem:[%s7213_s10 + $0x70] sm:$0xf]  ;;  %v5849_v28 = vcombine.low %v8815_v55, %v8820_v49  ;;  %v4656_v19 = vrot.slane %v4654_v39, 4  ;;  %v2388_v24 = vshll.u32 %v7129_v0, 16 }
 0x12f   : > { %6677 = vmatprep.subr.bf16.mxu1 %v7126_v10  ;;  %v2340_v48 = vshll.u32 %v7127_v21, 16  ;;  %v2344_v47 = vshrl.u32 %v7127_v21, 16  ;;  %v5838_v6 = vcombine.low %v4571_v1, %v4574_v60  ;;  %v2350_v1 = vshll.u32 %v7128_v56, 16 }
 0x130   : > { %v8842_v11 = vsel %vm7491_vm5, %v4656_v19, %v4657_v23  ;;  %v2392_v21 = vshrl.u32 %v7129_v0, 16  ;;  %v7131_v19 = vld [vmem:[%s7213_s10 + $0xa0] sm:$0xf] }
 0x131   : > { %v8822_v14 = vrot.slane %v2340_v48, 5  ;;  %v2346_v33 = vrot.slane %v2344_v47, 4  ;;  %v2440_v56 = vshrl.u32 %v7131_v19, 16 }
 0x132   : > { %6685 = vmatpush3.bf16.msra.mxu1 %v7126_v10  ;;  %v5818_v10 = vrot.slane %v5802_v51, 9 }
 0x133   : > { %v2347_v31 = vor.u32 %v2346_v33, %v8822_v14  ;;  %v2406_v33 = vshll.u32 %v5500_v61, 16 }
 0x134   : > { %6639 = vmatmul.mubr.bf16.vlgmr.msra.gmra.mrb[0].mxu0 %v5836_v3  ;;  %v7067_v3 = vld [vmem:[%s7213_s10 + $0x9c] sm:$0xff]  }
 0x135   : > { %6415 = vmatmul.mubr.bf16.gmra.mrb[16].mxu1 %v7064_v30  ;;  %6642 = vmatprep.mubr.bf16.mxu0 %v5837_v34  ;;  %v5497_v30 = vld [vmem:[%s7213_s10 + $0x84] sm:$0xf]  ;;  %v8833_v34 = vsel %vm7491_vm5, %v5818_v10, %v4654_v39  ;;  %v2348_v47 = vrot.slane %v2347_v31, 4  ;;  %v7130_v10 = vld [vmem:[%s7213_s10 + $0x94] sm:$0xf]  ;;  %v2408_v0 = vrot.slane %v2406_v33, 5 }
 0x136   : > { %6418 = vmatprep.mubr.bf16.mxu1 %v7065_v52  ;;  %v2337_v52 = vor.u32 %v2336_v26, %v2333_v40  ;;  %v2379_v13 = vshrl.u32 %v5497_v30, 16  ;;  %v2382_v60 = vshll.u32 %v5497_v30, 16  ;;  %v5850_v48 = vcombine.low %v8833_v34, %v8842_v11 }
 0x137   : > { %v8851_v40 = vrot.slane %v2388_v24, 5  ;;  %v2394_v26 = vrot.slane %v2392_v21, 4  ;;  %v2412_v39 = vshll.u32 %v7130_v10, 16  ;;  %v2416_v23 = vshrl.u32 %v7130_v10, 16  ;;  %v7134_v10 = vld [vmem:[%s7213_s10 + $0xa4] sm:$0x1] }
 0x138   : > { %v2338_v36 = vrot.slane %v2337_v52, 4  ;;  %v2381_v12 = vrot.slane %v2379_v13, 4  ;;  %v2384_v51 = vrot.slane %v2382_v60, 5  ;;  %v2436_v52 = vshll.u32 %v7131_v19, 16  ;;  %v7135_v19 = vld [vmem:[%s7213_s10 + $0xac] sm:$0xf] }
 0x139   : > { %v2395_v13 = vor.u32 %v2394_v26, %v8851_v40  ;;  %v8868_v41 = vrot.slane %v2412_v39, 5  ;;  %v2418_v42 = vrot.slane %v2416_v23, 4  ;;  %v2442_v21 = vrot.slane %v2440_v56, 4  ;;  %v5509_v23 = vld [vmem:[%s7213_s10 + $0xb4] sm:$0xf] }
 0x13a   : > { %v2446_v39 = vshll.u32 %v7134_v10, 16  ;;  %v2464_v15 = vshrl.u32 %v7135_v19, 16  ;;  %v2478_v63 = vshll.u32 %v5509_v23, 16 }
 0x13b   : > { %v2419_v26 = vor.u32 %v2418_v42, %v8868_v41 }
 0x13c   : > { %6643 = vmatmul.mubr.bf16.gmra.mrb[4].mxu0 %v5838_v6  ;;  %v5503_v6 = vld [vmem:[%s7213_s10 + $0x9c] sm:$0xf] }
 0x13d   : > { %6419 = vmatmul.mubr.bf16.gmra.mrb[20].mxu1 %v7066_v18  ;;  %6646 = vmatprep.mubr.bf16.mxu0 %v5839_v8  ;;  %v2352_v8 = vrot.slane %v2350_v1, 5  ;;  %v2403_v18 = vshrl.u32 %v5500_v61, 16  ;;  %v2430_v30 = vshll.u32 %v5503_v6, 16  ;;  %v2343_v1 = vsel %vm7245_vm2, %v2338_v36, %v8822_v14  ;;  %v7070_v61 = vld [vmem:[%s7213_s10 + $0xc0] sm:$0xff]  }
 0x13e   : > { %6422 = vmatprep.mubr.bf16.mxu1 %v7067_v3  ;;  %v2427_v3 = vshrl.u32 %v5503_v6, 16  ;;  %v8870_v14 = vrot.slane %v2436_v52, 5  ;;  %v2460_v52 = vshll.u32 %v7135_v19, 16 }
 0x13f   : > { %v2353_v31 = vsel %vm7245_vm2, %v2348_v47, %v2352_v8  ;;  %v2405_v60 = vrot.slane %v2403_v18, 4  ;;  %v2432_v24 = vrot.slane %v2430_v30, 5  ;;  %v2400_v8 = vrot.slane %v2398_v20, 5  ;;  %v7136_v20 = vld [vmem:[%s7213_s10 + $0xb8] sm:$0xf] }
 0x140   : > { %v2396_v47 = vrot.slane %v2395_v13, 4  ;;  %v2443_v33 = vor.u32 %v2442_v21, %v8870_v14  ;;  %v2484_v29 = vshll.u32 %v7136_v20, 16  ;;  %v2488_v44 = vshrl.u32 %v7136_v20, 16 }
 0x142   : > { %v2444_v13 = vrot.slane %v2443_v33, 4 }
 0x144   : > { %6647 = vmatmul.mubr.bf16.gmra.mrb[8].mxu0 %v5840_v54  ;;  %v2385_v54 = vor.u32 %v2384_v51, %v2381_v12  ;;  %v2409_v12 = vor.u32 %v2408_v0, %v2405_v60  ;;  %v7133_v51 = vld [vmem:[%s7213_s10 + $0x98] sm:$0x1]  ;;  %v2448_v60 = vrot.slane %v2446_v39, 5 }
 0x145   : > { %6423 = vmatmul.mubr.bf16.gmra.mrb[24].mxu1 %v7068_v45  ;;  %6650 = vmatprep.mubr.bf16.mxu0 %v5841_v17  ;;  %v2429_v17 = vrot.slane %v2427_v3, 4  ;;  %v5539_v45 = vcombine.low %v2343_v1, %v2353_v31  ;;  %v2422_v6 = vshll.u32 %v7133_v51, 16  ;;  %v2475_v31 = vshrl.u32 %v5509_v23, 16 }
 0x146   : > { %6426 = vmatprep.mubr.bf16.mxu1 %v7069_v9  ;;  %v2386_v36 = vrot.slane %v2385_v54, 4  ;;  %v5506_v9 = vld [vmem:[%s7213_s10 + $0xa8] sm:$0xf]  ;;  %v2410_v56 = vrot.slane %v2409_v12, 4  ;;  %v2449_v32 = vsel %vm7245_vm2, %v2444_v13, %v2448_v60 }
 0x147   : > { %v2433_v18 = vor.u32 %v2432_v24, %v2429_v17  ;;  %v2451_v3 = vshrl.u32 %v5506_v9, 16  ;;  %v2454_v30 = vshll.u32 %v5506_v9, 16  ;;  %v2424_v1 = vrot.slane %v2422_v6, 5 }
 0x148   : > { %v2391_v43 = vsel %vm7245_vm2, %v2386_v36, %v8851_v40  ;;  %v2462_v17 = vrot.slane %v2460_v52, 5  ;;  %v2466_v24 = vrot.slane %v2464_v15, 4  ;;  %v2477_v21 = vrot.slane %v2475_v31, 4  ;;  %v5512_v36 = vld [vmem:[%s7213_s10 + $0xc0] sm:$0xf] }
 0x149   : > { %v2434_v54 = vrot.slane %v2433_v18, 4  ;;  %v2453_v0 = vrot.slane %v2451_v3, 4  ;;  %v2456_v42 = vrot.slane %v2454_v30, 5  ;;  %v2499_v9 = vshrl.u32 %v5512_v36, 16  ;;  %v7138_v18 = vld [vmem:[%s7213_s10 + $0xc4] sm:$0xf] }
 0x14a   : > { %v2508_v33 = vshll.u32 %v7138_v18, 16 }
 0x14b   : > { %v2439_v51 = vsel %vm7245_vm2, %v2434_v54, %v8870_v14  ;;  %v2457_v5 = vor.u32 %v2456_v42, %v2453_v0  ;;  %v2512_v14 = vshrl.u32 %v7138_v18, 16  ;;  %v2501_v19 = vrot.slane %v2499_v9, 4 }
 0x14c   : > { %6651 = vmatmul.mubr.bf16.gmra.mrb[12].mxu0 %v5842_v38  ;;  %v2401_v38 = vsel %vm7245_vm2, %v2396_v47, %v2400_v8  ;;  %v2490_v8 = vrot.slane %v2488_v44, 4  ;;  %v2415_v47 = vsel %vm7245_vm2, %v2410_v56, %v8868_v41  ;;  %v7137_v41 = vld [vmem:[%s7213_s10 + $0xb0] sm:$0x1]  ;;  %v5543_v58 = vcombine.low %v2439_v51, %v2449_v32  ;;  %v7140_v44 = vld [vmem:[%s7213_s10 + $0xc8] sm:$0x1] }
 0x14d   : > { %6427 = vmatmul.mubr.bf16.gmra.mrb[28].mxu1 %v7070_v61  ;;  %6654 = vmatprep.mubr.bf16.mxu0 %v5843_v35  ;;  %v2420_v35 = vrot.slane %v2419_v26, 4  ;;  %v5541_v40 = vcombine.low %v2391_v43, %v2401_v38  ;;  %v2480_v61 = vrot.slane %v2478_v63, 5  ;;  %v2470_v6 = vshll.u32 %v7137_v41, 16 }
 0x14e   : > { %6462 = vmatprep.mubr.bf16.mxu1 %v5539_v45  ;;  %v2486_v45 = vrot.slane %v2484_v29, 5  ;;  %v2502_v26 = vshll.u32 %v5512_v36, 16  ;;  %v2458_v22 = vrot.slane %v2457_v5, 4  ;;  %v2510_v15 = vrot.slane %v2508_v33, 5 }
 0x14f   : > { %v2425_v12 = vsel %vm7245_vm2, %v2420_v35, %v2424_v1  ;;  %v2481_v10 = vor.u32 %v2480_v61, %v2477_v21  ;;  %v2472_v30 = vrot.slane %v2470_v6, 5  ;;  %v2514_v43 = vrot.slane %v2512_v14, 4 }
 0x150   : > { %v2491_v39 = vor.u32 %v2490_v8, %v2486_v45  ;;  %v5542_v3 = vcombine.low %v2415_v47, %v2425_v12  ;;  %v2504_v52 = vrot.slane %v2502_v26, 5  ;;  %v2463_v31 = vsel %vm7245_vm2, %v2458_v22, %v2462_v17  ;;  %v8952_v8 = vld [vmem:[%s9017_s2] ss:$0 sm:$0xff] }
 0x151   : > { %v2482_v38 = vrot.slane %v2481_v10, 4  ;;  %v2515_v29 = vor.u32 %v2514_v43, %v2510_v15  ;;  %v2518_v35 = vshll.u32 %v7140_v44, 16 }
 0x152   : > { %v2492_v56 = vrot.slane %v2491_v39, 4  ;;  %v2505_v20 = vor.u32 %v2504_v52, %v2501_v19 }
 0x153   : > { %v2487_v4 = vsel %vm7245_vm2, %v2482_v38, %v2486_v45  ;;  %v2520_v54 = vrot.slane %v2518_v35, 5 }
 0x154   : > { %6655 = vmatmul.mubr.bf16.gmra.mrb[16].mxu0 %v5844_v62  ;;  %v2467_v62 = vor.u32 %v2466_v24, %v2462_v17  ;;  %v2506_v25 = vrot.slane %v2505_v20, 4 }
 0x155   : > { %6463 = vmatmul.mubr.bf16.vlgmr.msra.gmra.mrb[16].mxu1 %v8693_v50  ;;  %6658 = vmatprep.mubr.bf16.mxu0 %v5845_v59  ;;  %v7139_v50 = vld [vmem:[%s7213_s10 + $0xbc] sm:$0x1] }
 0x156   : > { %6466 = vmatprep.mubr.bf16.mxu1 %v5541_v40  ;;  %v2494_v23 = vshll.u32 %v7139_v50, 16  ;;  %v2468_v59 = vrot.slane %v2467_v62, 4  ;;  %v2511_v13 = vsel %vm7245_vm2, %v2506_v25, %v2510_v15 }
 0x158   : > { %v2496_v1 = vrot.slane %v2494_v23, 5  ;;  %v2473_v63 = vsel %vm7245_vm2, %v2468_v59, %v2472_v30 }
 0x15a   : > { %v2497_v57 = vsel %vm7245_vm2, %v2492_v56, %v2496_v1 }
 0x15b   : > { %v5545_v7 = vcombine.low %v2487_v4, %v2497_v57 }
 0x15c   : > { %6659 = vmatmul.mubr.bf16.gmra.mrb[20].mxu0 %v5846_v53  ;;  %v5544_v53 = vcombine.low %v2463_v31, %v2473_v63 }
 0x15d   : > { %6467 = vmatmul.mubr.bf16.gmra.mrb[20].mxu1 %v5542_v3  ;;  %6662 = vmatprep.mubr.bf16.mxu0 %v5847_v16  ;;  %v2516_v16 = vrot.slane %v2515_v29, 4 }
 0x15e   : > { %6470 = vmatprep.mubr.bf16.mxu1 %v5543_v58 }
 0x15f   : > { %v2521_v60 = vsel %vm7245_vm2, %v2516_v16, %v2520_v54 }
 0x160   : > { %v5546_v0 = vcombine.low %v2511_v13, %v2521_v60 }
 0x164   : > { %6663 = vmatmul.mubr.bf16.gmra.mrb[24].mxu0 %v5848_v2 }
 0x165   : > { %6471 = vmatmul.mubr.bf16.gmra.mrb[24].mxu1 %v5544_v53  ;;  %6666 = vmatprep.mubr.bf16.mxu0 %v5849_v28 }
 0x166   : > { %6474 = vmatprep.mubr.bf16.mxu1 %v5545_v7 }
 0x16c   : > { %6667 = vmatmul.mubr.bf16.gmra.mrb[28].mxu0 %v5850_v48 }
 0x16d   : > { %6475 = vmatmul.mubr.bf16.gmra.mrb[28].mxu1 %v5546_v0 }
 0x1e8   : > { %v6400_v27 = vpop.f32.mrb[0].mxu1 }
 0x1e9   : > { %v1931_v46 = vpop.f32.mrb[1].mxu1 }
 0x1ea   : > { %v6401_v2 = vpop.f32.mrb[2].mxu1 }
 0x1eb   : > { %v1934_v42 = vpop.f32.mrb[3].mxu1 }
 0x1f0   : > { %v6404_v17 = vpop.f32.mrb[4].mxu1 }
 0x1f1   : > { %v1947_v55 = vpop.f32.mrb[5].mxu1 }
 0x1f2   : > { %v6405_v49 = vpop.f32.mrb[6].mxu1 }
 0x1f3   : > { %v1950_v28 = vpop.f32.mrb[7].mxu1 }
 0x1f8   : > { %v6408_v24 = vpop.f32.mrb[8].mxu1 }
 0x1f9   : > { %v1963_v40 = vpop.f32.mrb[9].mxu1 }
 0x1fa   : > { %v6409_v21 = vpop.f32.mrb[10].mxu1 }
 0x1fb   : > { %v1966_v61 = vpop.f32.mrb[11].mxu1 }
 0x200   : > { %v8941_v37 = vpop.f32.mrb[12].mxu1 }
 0x201   : > { %v8943_v45 = vpop.f32.mrb[13].mxu1 }
 0x202   : > { %v8945_v34 = vpop.f32.mrb[14].mxu1 }
 0x203   : > { %v8947_v11 = vpop.f32.mrb[15].mxu1 }
 0x207   : > { %v6640_v48 = vpop.f32.mrb[0].mxu0 }
 0x208   : > { %v6686_v36 = vadd.f32 %v6640_v48, %v6400_v27  ;;  %v4822_v47 = vpop.f32.mrb[1].mxu0 }
 0x209   : > { %v6687_v12 = vadd.f32 %v4822_v47, %v1931_v46  ;;  %v6641_v51 = vpop.f32.mrb[2].mxu0 }
 0x20a   : > { %v4990_v32 = vadd.f32 %v6686_v36, %v8952_v8  ;;  %v6688_v5 = vadd.f32 %v6641_v51, %v6401_v2  ;;  %v4825_v62 = vpop.f32.mrb[3].mxu0 }
 0x20b   : > { %v4988_v41 = vadd.f32 %v6687_v12, %v8952_v8  ;;  %v6689_v6 = vadd.f32 %v4825_v62, %v1934_v42 }
 0x20c   : > { %v4991_v9 = vadd.f32 %v6688_v5, %v8952_v8  ;;  %v5022_v18 = vmax.f32 %v4990_v32, 0.0 }
 0x20d   : > { %v4989_v26 = vadd.f32 %v6689_v6, %v8952_v8  ;;  %v5020_v14 = vmax.f32 %v4988_v41, 0.0 }
 0x20e   : > { %v5023_v33 = vmax.f32 %v4991_v9, 0.0 }
 0x20f   : > { %v5021_v10 = vmax.f32 %v4989_v26, 0.0  ;;  %v6644_v39 = vpop.f32.mrb[4].mxu0 }
 0x210   : > { %v5935_v50 = vpack.c.bf16 %v5023_v33, %v5022_v18  ;;  %v6690_v23 = vadd.f32 %v6644_v39, %v6404_v17  ;;  %v4838_v3 = vpop.f32.mrb[5].mxu0 }
 0x211   : > { %v5930_v58 = vpack.c.bf16 %v5021_v10, %v5020_v14  ;;  %v6691_v22 = vadd.f32 %v4838_v3, %v1947_v55  ;;  %v6645_v59 = vpop.f32.mrb[6].mxu0 }
 0x212   : > { %6007 = vst [vmem:[%s8962_s11 + $0x8] sm:$0xff] %v5935_v50   ;;  %v4994_v30 = vadd.f32 %v6690_v23, %v8952_v8  ;;  %v6692_v19 = vadd.f32 %v6645_v59, %v6405_v49  ;;  %v4841_v52 = vpop.f32.mrb[7].mxu0 }
 0x213   : > { %5931 = vst [vmem:[%s8962_s11] sm:$0xff] %v5930_v58   ;;  %v4992_v15 = vadd.f32 %v6691_v22, %v8952_v8  ;;  %v6693_v43 = vadd.f32 %v4841_v52, %v1950_v28 }
 0x214   : > { %v4995_v38 = vadd.f32 %v6692_v19, %v8952_v8  ;;  %v5026_v1 = vmax.f32 %v4994_v30, 0.0 }
 0x215   : > { %v4993_v56 = vadd.f32 %v6693_v43, %v8952_v8  ;;  %v5024_v63 = vmax.f32 %v4992_v15, 0.0 }
 0x216   : > { %v5027_v31 = vmax.f32 %v4995_v38, 0.0 }
 0x217   : > { %v5025_v20 = vmax.f32 %v4993_v56, 0.0  ;;  %v6648_v29 = vpop.f32.mrb[8].mxu0 }
 0x218   : > { %v5945_v44 = vpack.c.bf16 %v5027_v31, %v5026_v1  ;;  %v6694_v35 = vadd.f32 %v6648_v29, %v6408_v24  ;;  %v4854_v4 = vpop.f32.mrb[9].mxu0 }
 0x219   : > { %v5940_v57 = vpack.c.bf16 %v5025_v20, %v5024_v63  ;;  %v6695_v53 = vadd.f32 %v4854_v4, %v1963_v40  ;;  %v6649_v7 = vpop.f32.mrb[10].mxu0 }
 0x21a   : > { %6009 = vst [vmem:[%s8962_s11 + $0x18] sm:$0xff] %v5945_v44   ;;  %v4998_v25 = vadd.f32 %v6694_v35, %v8952_v8  ;;  %v6696_v16 = vadd.f32 %v6649_v7, %v6409_v21  ;;  %v4857_v54 = vpop.f32.mrb[11].mxu0 }
 0x21b   : > { %6008 = vst [vmem:[%s8962_s11 + $0x10] sm:$0xff] %v5940_v57   ;;  %v4996_v13 = vadd.f32 %v6695_v53, %v8952_v8  ;;  %v6697_v60 = vadd.f32 %v4857_v54, %v1966_v61 }
 0x21c   : > { %v4999_v0 = vadd.f32 %v6696_v16, %v8952_v8  ;;  %v5030_v46 = vmax.f32 %v4998_v25, 0.0 }
 0x21d   : > { %v4997_v27 = vadd.f32 %v6697_v60, %v8952_v8  ;;  %v5028_v42 = vmax.f32 %v4996_v13, 0.0 }
 0x21e   : > { %v5031_v2 = vmax.f32 %v4999_v0, 0.0 }
 0x21f   : > { %v5029_v17 = vmax.f32 %v4997_v27, 0.0  ;;  %v6652_v55 = vpop.f32.mrb[12].mxu0 }
 0x220   : > { %v5955_v49 = vpack.c.bf16 %v5031_v2, %v5030_v46  ;;  %v6698_v28 = vadd.f32 %v6652_v55, %v8941_v37  ;;  %v4870_v24 = vpop.f32.mrb[13].mxu0 }
 0x221   : > { %v5950_v40 = vpack.c.bf16 %v5029_v17, %v5028_v42  ;;  %v6699_v21 = vadd.f32 %v4870_v24, %v8943_v45  ;;  %v6653_v48 = vpop.f32.mrb[14].mxu0 }
 0x222   : > { %6011 = vst [vmem:[%s8962_s11 + $0x28] sm:$0xff] %v5955_v49   ;;  %v5002_v61 = vadd.f32 %v6698_v28, %v8952_v8  ;;  %v6700_v36 = vadd.f32 %v6653_v48, %v8945_v34  ;;  %v4873_v47 = vpop.f32.mrb[15].mxu0 }
 0x223   : > { %6010 = vst [vmem:[%s8962_s11 + $0x20] sm:$0xff] %v5950_v40   ;;  %v5000_v12 = vadd.f32 %v6699_v21, %v8952_v8  ;;  %v6701_v51 = vadd.f32 %v4873_v47, %v8947_v11 }
 0x224   : > { %v5003_v32 = vadd.f32 %v6700_v36, %v8952_v8  ;;  %v5034_v5 = vmax.f32 %v5002_v61, 0.0 }
 0x225   : > { %v5001_v37 = vadd.f32 %v6701_v51, %v8952_v8  ;;  %v5032_v62 = vmax.f32 %v5000_v12, 0.0 }
 0x226   : > { %v5035_v45 = vmax.f32 %v5003_v32, 0.0 }
 0x227   : > { %v5033_v41 = vmax.f32 %v5001_v37, 0.0  ;;  %v6656_v6 = vpop.f32.mrb[16].mxu0 }
 0x228   : > { %v5965_v9 = vpack.c.bf16 %v5035_v45, %v5034_v5  ;;  %v6464_v26 = vpop.f32.mrb[16].mxu1  ;;  %v4886_v34 = vpop.f32.mrb[17].mxu0 }
 0x229   : > { %v5960_v18 = vpack.c.bf16 %v5033_v41, %v5032_v62  ;;  %v6702_v33 = vadd.f32 %v6656_v6, %v6464_v26  ;;  %v2749_v14 = vpop.f32.mrb[17].mxu1  ;;  %v6657_v10 = vpop.f32.mrb[18].mxu0 }
 0x22a   : > { %6013 = vst [vmem:[%s8962_s11 + $0x38] sm:$0xff] %v5965_v9   ;;  %v6703_v39 = vadd.f32 %v4886_v34, %v2749_v14  ;;  %v6465_v11 = vpop.f32.mrb[18].mxu1  ;;  %v4889_v50 = vpop.f32.mrb[19].mxu0 }
 0x22b   : > { %6012 = vst [vmem:[%s8962_s11 + $0x30] sm:$0xff] %v5960_v18   ;;  %v5006_v23 = vadd.f32 %v6702_v33, %v8952_v8  ;;  %v6704_v3 = vadd.f32 %v6657_v10, %v6465_v11  ;;  %v2752_v58 = vpop.f32.mrb[19].mxu1 }
 0x22c   : > { %v5004_v22 = vadd.f32 %v6703_v39, %v8952_v8  ;;  %v6705_v59 = vadd.f32 %v4889_v50, %v2752_v58 }
 0x22d   : > { %v5007_v30 = vadd.f32 %v6704_v3, %v8952_v8  ;;  %v5038_v52 = vmax.f32 %v5006_v23, 0.0 }
 0x22e   : > { %v5005_v19 = vadd.f32 %v6705_v59, %v8952_v8  ;;  %v5036_v38 = vmax.f32 %v5004_v22, 0.0 }
 0x22f   : > { %v5039_v15 = vmax.f32 %v5007_v30, 0.0  ;;  %v6660_v43 = vpop.f32.mrb[20].mxu0 }
 0x230   : > { %v5037_v56 = vmax.f32 %v5005_v19, 0.0  ;;  %v6468_v1 = vpop.f32.mrb[20].mxu1  ;;  %v4902_v31 = vpop.f32.mrb[21].mxu0 }
 0x231   : > { %v5975_v63 = vpack.c.bf16 %v5039_v15, %v5038_v52  ;;  %v6706_v20 = vadd.f32 %v6660_v43, %v6468_v1  ;;  %v2765_v29 = vpop.f32.mrb[21].mxu1  ;;  %v6661_v44 = vpop.f32.mrb[22].mxu0 }
 0x232   : > { %v5970_v35 = vpack.c.bf16 %v5037_v56, %v5036_v38  ;;  %v6707_v4 = vadd.f32 %v4902_v31, %v2765_v29  ;;  %v6469_v57 = vpop.f32.mrb[22].mxu1  ;;  %v4905_v53 = vpop.f32.mrb[23].mxu0 }
 0x233   : > { %6015 = vst [vmem:[%s8962_s11 + $0x48] sm:$0xff] %v5975_v63   ;;  %v5010_v7 = vadd.f32 %v6706_v20, %v8952_v8  ;;  %v6708_v25 = vadd.f32 %v6661_v44, %v6469_v57  ;;  %v2768_v16 = vpop.f32.mrb[23].mxu1 }
 0x234   : > { %6014 = vst [vmem:[%s8962_s11 + $0x40] sm:$0xff] %v5970_v35   ;;  %v5008_v54 = vadd.f32 %v6707_v4, %v8952_v8  ;;  %v6709_v13 = vadd.f32 %v4905_v53, %v2768_v16 }
 0x235   : > { %v5011_v60 = vadd.f32 %v6708_v25, %v8952_v8  ;;  %v5042_v27 = vmax.f32 %v5010_v7, 0.0 }
 0x236   : > { %v5009_v0 = vadd.f32 %v6709_v13, %v8952_v8  ;;  %v5040_v42 = vmax.f32 %v5008_v54, 0.0 }
 0x237   : > { %v5043_v46 = vmax.f32 %v5011_v60, 0.0  ;;  %v6664_v2 = vpop.f32.mrb[24].mxu0 }
 0x238   : > { %v5041_v17 = vmax.f32 %v5009_v0, 0.0  ;;  %v6472_v55 = vpop.f32.mrb[24].mxu1  ;;  %v4918_v49 = vpop.f32.mrb[25].mxu0 }
 0x239   : > { %v5985_v28 = vpack.c.bf16 %v5043_v46, %v5042_v27  ;;  %v6710_v24 = vadd.f32 %v6664_v2, %v6472_v55  ;;  %v2781_v40 = vpop.f32.mrb[25].mxu1  ;;  %v6665_v21 = vpop.f32.mrb[26].mxu0 }
 0x23a   : > { %v5980_v48 = vpack.c.bf16 %v5041_v17, %v5040_v42  ;;  %v6711_v61 = vadd.f32 %v4918_v49, %v2781_v40  ;;  %v6473_v36 = vpop.f32.mrb[26].mxu1  ;;  %v4921_v47 = vpop.f32.mrb[27].mxu0 }
 0x23b   : > { %6017 = vst [vmem:[%s8962_s11 + $0x58] sm:$0xff] %v5985_v28   ;;  %v5014_v12 = vadd.f32 %v6710_v24, %v8952_v8  ;;  %v6712_v51 = vadd.f32 %v6665_v21, %v6473_v36  ;;  %v2784_v32 = vpop.f32.mrb[27].mxu1 }
 0x23c   : > { %6016 = vst [vmem:[%s8962_s11 + $0x50] sm:$0xff] %v5980_v48   ;;  %v5012_v37 = vadd.f32 %v6711_v61, %v8952_v8  ;;  %v6713_v5 = vadd.f32 %v4921_v47, %v2784_v32 }
 0x23d   : > { %v5015_v45 = vadd.f32 %v6712_v51, %v8952_v8  ;;  %v5046_v41 = vmax.f32 %v5014_v12, 0.0 }
 0x23e   : > { %v5013_v62 = vadd.f32 %v6713_v5, %v8952_v8  ;;  %v5044_v26 = vmax.f32 %v5012_v37, 0.0 }
 0x23f   : > { %v5047_v6 = vmax.f32 %v5015_v45, 0.0  ;;  %v6668_v9 = vpop.f32.mrb[28].mxu0 }
 0x240   : > { %v5045_v34 = vmax.f32 %v5013_v62, 0.0  ;;  %v6476_v18 = vpop.f32.mrb[28].mxu1  ;;  %v4934_v33 = vpop.f32.mrb[29].mxu0 }
 0x241   : > { %v5995_v14 = vpack.c.bf16 %v5047_v6, %v5046_v41  ;;  %v6714_v10 = vadd.f32 %v6668_v9, %v6476_v18  ;;  %v2797_v39 = vpop.f32.mrb[29].mxu1  ;;  %v6669_v11 = vpop.f32.mrb[30].mxu0 }
 0x242   : > { %v5990_v50 = vpack.c.bf16 %v5045_v34, %v5044_v26  ;;  %v6715_v23 = vadd.f32 %v4934_v33, %v2797_v39  ;;  %v6477_v3 = vpop.f32.mrb[30].mxu1  ;;  %v4937_v58 = vpop.f32.mrb[31].mxu0 }
 0x243   : > { %6019 = vst [vmem:[%s8962_s11 + $0x68] sm:$0xff] %v5995_v14   ;;  %v5018_v22 = vadd.f32 %v6714_v10, %v8952_v8  ;;  %v6716_v59 = vadd.f32 %v6669_v11, %v6477_v3  ;;  %v2800_v30 = vpop.f32.mrb[31].mxu1 }
 0x244   : > { %6018 = vst [vmem:[%s8962_s11 + $0x60] sm:$0xff] %v5990_v50   ;;  %v5016_v19 = vadd.f32 %v6715_v23, %v8952_v8  ;;  %v6717_v52 = vadd.f32 %v4937_v58, %v2800_v30 }
 0x245   : > { %v5019_v15 = vadd.f32 %v6716_v59, %v8952_v8  ;;  %v5050_v38 = vmax.f32 %v5018_v22, 0.0 }
 0x246   : > { %v5017_v43 = vadd.f32 %v6717_v52, %v8952_v8  ;;  %v5048_v1 = vmax.f32 %v5016_v19, 0.0 }
 0x247   : > { %v5051_v56 = vmax.f32 %v5019_v15, 0.0 }
 0x248   : > { %v5049_v31 = vmax.f32 %v5017_v43, 0.0 }
 0x249   : > { %v6005_v63 = vpack.c.bf16 %v5051_v56, %v5050_v38 }
 0x24a   : > { %v6000_v20 = vpack.c.bf16 %v5049_v31, %v5048_v1 }
 0x24b   : > { %6021 = vst [vmem:[%s8962_s11 + $0x78] sm:$0xff] %v6005_v63  }
 0x24c   : > { %6020 = vst [vmem:[%s8962_s11 + $0x70] sm:$0xff] %v6000_v20  }
 0x24d PF: > { %s13_s12 = sadd.s32 1, %s7147_s12  }
 0x24e   : > { %p10_p4 = scmp.ge.s32.totalorder %s13_s12, 4  }
 0x250   :  { %12 = sbr.rel (!%p10_p4) target bundleno = 1 (0x1), region = 72 }

// kernel: encoder_cnn_forward.5
= control target key start
LH: loop header
LB: loop body
LE: loop exit
PB: predicated region body
PF: predicated region fallthrough
CT: control target
= control target key end

     0   :  { %11 = vsyncpa [#allocation3], 0  ;;  %s9574_s0 = inlined_call_operand.vmem [shape: bf16[2,18,18,128], index: 0, kind: input, shape index: {}]   ;;  %s9575_s1 = inlined_call_operand.vmem [shape: bf16[2,16,16,128], index: 1, kind: input, shape index: {}]   ;;  %s9576_s2 = inlined_call_operand.vmem [shape: bf16[9,128,128], index: 2, kind: input, shape index: {}]   ;;  %s9577_s3 = inlined_call_operand.vmem [shape: f32[1,128], index: 3, kind: input, shape index: {}]   ;;  %s9578_s4 = inlined_call_operand.vmem [shape: bf16[128,128], index: 4, kind: input, shape index: {}]   ;;  %s9579_s5 = inlined_call_operand.vmem [shape: f32[1,128], index: 5, kind: input, shape index: {}]   ;;  %s9580_s6 = inlined_call_operand.hbm [shape: f32[2,1,128], index: 6, kind: output, shape index: {}]  }
   0x1   :  { %13 = vsyncpa [#allocation3 + $0x1], 0  ;;  %s7589_s21 = smov 0   ;;  %s7591_s22 = smov 0  }
   0x2   :  { %s7593_s23 = smov 0   ;;  %s7595_s24 = smov 0  }
   0x3 LB: > { %s7610_s25 = sadd.s32 4294967295, %s7548_s24   ;;  %s5543_s26 = sadd.s32 4294967294, %s7548_s24   ;;  %s7548_s24 = sphi %s7595_s24, %s9652_s24   ;;  %s7544_s23 = sphi %s7593_s23, %s9651_s23   ;;  %s7540_s22 = sphi %s7591_s22, %s9650_s22   ;;  %s7536_s21 = sphi %s7589_s21, %s9649_s21  }
   0x4   : > { %s7614_s27 = sadd.s32 1, %s7548_s24   ;;  %s162_s28 = sadd.s32 1, %s7544_s23 }
   0x5   : > { %s159_s29 = ssub.s32 %s7548_s24, %s7614_s27  ;;  %p172_p0 = scmp.ne.s32.totalorder %s7544_s23, %s7540_s22 }
   0x6   : > { %p160_p1 = scmp.eq.s32.totalorder %s159_s29, 0  ;;  %p173_p2 = scmp.eq.s32.totalorder %s7610_s25, 1 }
   0x7   : > { %p178_p3 = scmp.ne.s32.totalorder %s7540_s22, %s7536_s21  ;;  %p179_p4 = scmp.eq.s32.totalorder %s5543_s26, 1 }
   0x8   : > { %s7625_s30 = scalar_select %p160_p1, %s7544_s23, %s162_s28  }
   0x9   : > { %p7627_p5 = por %p173_p2, %p172_p0  ;;  %p7631_p6 = por %p179_p4, %p178_p3 }
   0xa   : > { %p5546_p7 = scmp.ge.s32.totalorder %s7548_s24, 1  ;;  %p225_p8 = scmp.lt.s32.totalorder %s7548_s24, 3 }
   0xc   : > { %p226_p9 = pnand %p5546_p7, %p225_p8 }
   0xe   : > { %229 = sbr.rel (%p226_p9) target bundleno = 860 (0x35c), region = 44 }
  0x15   : > { %v7296_v0 = vld [vmem:[%s9576_s2 + $0x40] sm:$0xff]   ;;  %p259_p10 = scmp.lt.s32.totalorder %s7610_s25, 1  ;;  %v7298_v2 = vld [vmem:[%s9576_s2 + $0x48] sm:$0xff]   ;;  %v7300_v4 = vld [vmem:[%s9576_s2 + $0x50] sm:$0xff]   ;;  %vm334_vm0 = vsmask.f32 3328 }
  0x16   : > { %v7297_v1 = vld [vmem:[%s9576_s2 + $0x100] sm:$0xff]   ;;  %6490 = vmatprep.subr.bf16.mxu1 %v7296_v0  ;;  %v7299_v3 = vld [vmem:[%s9576_s2 + $0x108] sm:$0xff]   ;;  %v7301_v5 = vld [vmem:[%s9576_s2 + $0x110] sm:$0xff]   ;;  %vm335_vm1 = vsmask.f32 7440  ;;  %vm1364_vm3 = vcmask 1042432  }
  0x17   : > { %6682 = vmatprep.subr.bf16.mxu0 %v7297_v1  ;;  %6491 = vmatpush3.bf16.msra.mxu1 %v7296_v0  ;;  %s7657_s26 = scalar_select %p259_p10, %s7610_s25, 1  ;;  %v7302_v6 = vld [vmem:[%s9576_s2 + $0x58] sm:$0xff]   ;;  %v7304_v8 = vld [vmem:[%s9576_s2 + $0x60] sm:$0xff]   ;;  %v7306_v10 = vld [vmem:[%s9576_s2 + $0x68] sm:$0xff]   ;;  %vm1365_vm4 = vcmask 1046532   ;;  %vm7551_vm6 = vmmov 0  }
  0x18   : > { %6683 = vmatpush3.bf16.msra.mxu0 %v7297_v1  ;;  %6492 = vmatprep.subr.bf16.mxu1 %v7298_v2  ;;  %v7303_v7 = vld [vmem:[%s9576_s2 + $0x118] sm:$0xff]   ;;  %v7305_v9 = vld [vmem:[%s9576_s2 + $0x120] sm:$0xff]   ;;  %v7307_v11 = vld [vmem:[%s9576_s2 + $0x128] sm:$0xff]   ;;  %vm5367_vm7 = vcmask 1041409   ;;  %vm5369_vm8 = vcmask 1042434   ;;  %vm5371_vm9 = vcmask 1043459  }
  0x19   : > { %6684 = vmatprep.subr.bf16.mxu0 %v7299_v3  ;;  %s7253_s11 = smul.u32 216, %s7657_s26  ;;  %v7308_v25 = vld [vmem:[%s9576_s2 + $0x70] sm:$0xff]   ;;  %v7310_v36 = vld [vmem:[%s9576_s2 + $0x78] sm:$0xff]   ;;  %vm7707_vm2 = vmor %vm334_vm0, %vm335_vm1  ;;  %s6138_s16 = sshll.u32 %s7657_s26, 7  ;;  %vm5373_vm10 = vcmask 1044484   ;;  %vm5375_vm11 = vcmask 1045509  }
  0x1a   : > { %v7309_v30 = vld [vmem:[%s9576_s2 + $0x130] sm:$0xff]   ;;  %v7311_v51 = vld [vmem:[%s9576_s2 + $0x138] sm:$0xff]   ;;  %vm7953_vm5 = vmor %vm1364_vm3, %vm1365_vm4  ;;  %s9447_s20 = scalar_lea.vmem %s9575_s1, %s6138_s16  ;;  %vm5377_vm12 = vcmask 1046534   ;;  %vm5379_vm13 = vcmask 1047559   ;;  %s257_s26 = sand.u32 1, %s7540_s22  }
  0x1b   : > { %6493 = vmatpush3.bf16.msra.mxu1 %v7298_v2  ;;  %s7675_s18 = scalar_lea.vmem %s9574_s0, %s7253_s11  ;;  %v6251_v37 = vld [vmem:[%s9578_s4 + $0x10] sm:$0xff]   ;;  %s6135_s11 = sshll.u32 %s7610_s25, 4 }
  0x1c   : > { %6685 = vmatpush3.bf16.msra.mxu0 %v7299_v3  ;;  %6494 = vmatprep.subr.bf16.mxu1 %v7300_v4  ;;  %v270_v12 = vld [vmem:[%s7675_s18] sm:$0xf]  ;;  %v271_v13 = vld [vmem:[%s7675_s18 + $0x4] sm:$0xf]  ;;  %v318_v14 = vld [vmem:[%s7675_s18 + $0x8] sm:$0x1]  ;;  %s9532_s15 = scalar_lea.hbm %s9580_s6, %s6135_s11 }
  0x1d   : > { %6686 = vmatprep.subr.bf16.mxu0 %v7301_v5  ;;  %v338_v15 = vshrl.u32 %v270_v12, 16  ;;  %v341_v16 = vshll.u32 %v270_v12, 16  ;;  %v347_v17 = vshll.u32 %v271_v13, 16  ;;  %v351_v18 = vshrl.u32 %v271_v13, 16  ;;  %v5742_v20 = vld [vmem:[%s7675_s18 + $0xc] sm:$0xf] }
  0x1e   : > { %v357_v19 = vshll.u32 %v318_v14, 16  ;;  %v7688_v23 = vld [vmem:[%s7675_s18 + $0x10] sm:$0xf]  ;;  %v7691_v24 = vld [vmem:[%s7675_s18 + $0x14] sm:$0x1]  ;;  %v2237_v29 = vshrl.u32 %v5742_v20, 16 }
  0x1f   : > { %6495 = vmatpush3.bf16.msra.mxu1 %v7300_v4  ;;  %v340_v21 = vrot.slane %v338_v15, 4  ;;  %v343_v22 = vrot.slane %v341_v16, 5  ;;  %v349_v26 = vrot.slane %v347_v17, 5  ;;  %v353_v27 = vrot.slane %v351_v18, 4  ;;  %v272_v35 = vld [vmem:[%s7675_s18 + $0xc] sm:$0xf] }
  0x20   : > { %6687 = vmatpush3.bf16.msra.mxu0 %v7301_v5  ;;  %6496 = vmatprep.subr.bf16.mxu1 %v7302_v6  ;;  %v359_v28 = vrot.slane %v357_v19, 5  ;;  %v2240_v32 = vshll.u32 %v5742_v20, 16  ;;  %v2246_v33 = vshll.u32 %v7688_v23, 16  ;;  %v2250_v34 = vshrl.u32 %v7688_v23, 16  ;;  %v273_v42 = vld [vmem:[%s7675_s18 + $0x10] sm:$0xf] }
  0x21   : > { %6688 = vmatprep.subr.bf16.mxu0 %v7303_v7  ;;  %v344_v31 = vor.u32 %v343_v22, %v340_v21  ;;  %v354_v38 = vor.u32 %v353_v27, %v349_v26  ;;  %v2239_v39 = vrot.slane %v2237_v29, 4  ;;  %v2256_v40 = vshll.u32 %v7691_v24, 16  ;;  %v319_v55 = vld [vmem:[%s7675_s18 + $0x14] sm:$0x1]  ;;  %v5745_v57 = vld [vmem:[%s7675_s18 + $0x18] sm:$0xf] }
  0x22   : > { %v3011_v41 = vrot.slane %v7691_v24, 5  ;;  %v2242_v44 = vrot.slane %v2240_v32, 5  ;;  %v2248_v45 = vrot.slane %v2246_v33, 5  ;;  %v2252_v46 = vrot.slane %v2250_v34, 4  ;;  %v7724_v62 = vld [vmem:[%s7675_s18 + $0x1c] sm:$0xf] }
  0x23   : > { %6497 = vmatpush3.bf16.msra.mxu1 %v7302_v6  ;;  %v345_v43 = vrot.slane %v344_v31, 4  ;;  %v355_v47 = vrot.slane %v354_v38, 4  ;;  %v2258_v48 = vrot.slane %v2256_v40, 5  ;;  %v362_v49 = vshrl.u32 %v272_v35, 16  ;;  %v7312_v3 = vld [vmem:[%s9576_s2] sm:$0xff]   ;;  %s258_s12 = scalar_lea.vmem [#allocation2], %s257_s26 }
  0x24   : > { %6689 = vmatpush3.bf16.msra.mxu0 %v7303_v7  ;;  %6498 = vmatprep.subr.bf16.mxu1 %v7304_v8  ;;  %v365_v50 = vshll.u32 %v272_v35, 16  ;;  %v2243_v53 = vor.u32 %v2242_v44, %v2239_v39  ;;  %v2253_v54 = vor.u32 %v2252_v46, %v2248_v45  ;;  %v371_v56 = vshll.u32 %v273_v42, 16  ;;  %v7732_v4 = vld [vmem:[%s9576_s2 + $0x140] sm:$0xff]   ;;  %v274_v21 = vld [vmem:[%s7675_s18 + $0x18] sm:$0xf]  ;;  %v7315_v46 = vld [vmem:[%s9576_s2 + $0x8] sm:$0xff]  }
  0x25   : > { %6690 = vmatprep.subr.bf16.mxu0 %v7305_v9  ;;  %v350_v52 = vsel %vm7707_vm2, %v345_v43, %v349_v26  ;;  %v360_v58 = vsel %vm7707_vm2, %v355_v47, %v359_v28  ;;  %v364_v59 = vrot.slane %v362_v49, 4  ;;  %v375_v61 = vshrl.u32 %v273_v42, 16  ;;  %v275_v28 = vld [vmem:[%s7675_s18 + $0x1c] sm:$0xf]  ;;  %v320_v33 = vld [vmem:[%s7675_s18 + $0x20] sm:$0x1] }
  0x26   : > { %v367_v60 = vrot.slane %v365_v50, 5  ;;  %v5566_v63 = vcombine.low %v350_v52, %v360_v58  ;;  %v2244_v0 = vrot.slane %v2243_v53, 4  ;;  %v2254_v1 = vrot.slane %v2253_v54, 4  ;;  %v5748_v39 = vld [vmem:[%s7675_s18 + $0x24] sm:$0xf]  ;;  %s5476_s13 = sshll.u32 %s258_s12, 4  ;;  %s9534_s13 = int_to_ptr.vmem [resolvable:$true] %s5476_s13 }
  0x27   : > { %6499 = vmatpush3.bf16.msra.mxu1 %v7304_v8  ;;  %v373_v2 = vrot.slane %v371_v56, 5  ;;  %v377_v6 = vrot.slane %v375_v61, 4  ;;  %v381_v7 = vshll.u32 %v319_v55, 16  ;;  %v7735_v8 = vld [vmem:[%s7675_s18 + $0x20] sm:$0x1]  ;;  %v2264_v12 = vshll.u32 %v5745_v57, 16 }
  0x28   : > { %6691 = vmatpush3.bf16.msra.mxu0 %v7305_v9  ;;  %6500 = vmatprep.subr.bf16.mxu1 %v7306_v10  ;;  %v368_v5 = vor.u32 %v367_v60, %v364_v59  ;;  %v2249_v9 = vsel %vm7707_vm2, %v2244_v0, %v2248_v45  ;;  %v2270_v19 = vshll.u32 %v7724_v62, 16  ;;  %v2274_v20 = vshrl.u32 %v7724_v62, 16  ;;  %v7760_v45 = vld [vmem:[%s7675_s18 + $0x28] sm:$0xf]  ;;  %v276_v52 = vld [vmem:[%s7675_s18 + $0x24] sm:$0xf] }
  0x29   : > { %6692 = vmatprep.subr.bf16.mxu0 %v7307_v11  ;;  %6506 = vmatprep.mubr.bf16.mxu1 %v5566_v63  ;;  %v378_v15 = vor.u32 %v377_v6, %v373_v2  ;;  %v383_v16 = vrot.slane %v381_v7, 5  ;;  %v2266_v18 = vrot.slane %v2264_v12, 5  ;;  %v2280_v26 = vshll.u32 %v7735_v8, 16  ;;  %v7314_v63 = vld [vmem:[%s9576_s2 + $0x148] sm:$0xff]   ;;  %s5464_s16 = scalar_lea.sflag [#allocation3], %s257_s26  ;;  %s7486_s17 = scalar_lea.vmem %s9534_s13, 16 }
  0x2a   : > { %v369_v14 = vrot.slane %v368_v5, 4  ;;  %v3015_v27 = vrot.slane %v7724_v62, 5  ;;  %v2276_v31 = vrot.slane %v2274_v20, 4  ;;  %v3018_v32 = vrot.slane %v7735_v8, 5  ;;  %v277_v5 = vld [vmem:[%s7675_s18 + $0x28] sm:$0xf]  ;;  %p7487_p11 = scmp.ne.s32.totalorder %s9534_s13, %s7486_s17 }
  0x2b   : > { %6501 = vmatpush3.bf16.msra.mxu1 %v7306_v10  ;;  %v2259_v10 = vsel %vm7707_vm2, %v2254_v1, %v2258_v48  ;;  %v2282_v35 = vrot.slane %v2280_v26, 5  ;;  %v386_v38 = vshrl.u32 %v274_v21, 16  ;;  %v389_v44 = vshll.u32 %v274_v21, 16  ;;  %s7553_s25 = smov [#allocation2]  }
  0x2c   : > { %6693 = vmatpush3.bf16.msra.mxu0 %v7307_v11  ;;  %6502 = vmatprep.subr.bf16.mxu1 %v7308_v25  ;;  %v2261_v11 = vshrl.u32 %v5745_v57, 16  ;;  %v5806_v13 = vcombine.low %v2249_v9, %v2259_v10  ;;  %v374_v22 = vsel %vm7707_vm2, %v369_v14, %v373_v2  ;;  %v395_v48 = vshll.u32 %v275_v28, 16  ;;  %p7488_p12 = pnand %p7487_p11, %p7627_p5  ;;  %s7490_s19 = sshll.u32 %s7553_s25, 4  ;;  %s7491_s19 = int_to_ptr.vmem [resolvable:$false] %s7490_s19 }
  0x2d   : > { %6694 = vmatprep.subr.bf16.mxu0 %v7309_v30  ;;  %v388_v47 = vrot.slane %v386_v38, 4  ;;  %v399_v49 = vshrl.u32 %v275_v28, 16  ;;  %v405_v50 = vshll.u32 %v320_v33, 16  ;;  %v391_v55 = vrot.slane %v389_v44, 5  ;;  %v7791_v33 = vld [vmem:[%s7675_s18 + $0x34] sm:$0xf]  ;;  %p7493_p0 = scmp.lt.s32.totalorder %s9534_s13, %s7491_s19 }
  0x2e   : > { %v2263_v17 = vrot.slane %v2261_v11, 4  ;;  %6698 = vmatprep.mubr.bf16.mxu0 %v5806_v13  ;;  %v2285_v56 = vshrl.u32 %v5748_v39, 16  ;;  %v397_v57 = vrot.slane %v395_v48, 5  ;;  %v2288_v60 = vshll.u32 %v5748_v39, 16  ;;  %v321_v11 = vld [vmem:[%s7675_s18 + $0x2c] sm:$0x1]  ;;  %p7489_p13 = pneg %p7488_p12 }
  0x2f   : > { %6503 = vmatpush3.bf16.msra.mxu1 %v7308_v25  ;;  %v379_v25 = vrot.slane %v378_v15, 4  ;;  %v401_v58 = vrot.slane %v399_v49, 4  ;;  %v407_v59 = vrot.slane %v405_v50, 5  ;;  %v392_v0 = vor.u32 %v391_v55, %v388_v47  ;;  %v7317_v48 = vld [vmem:[%s9576_s2 + $0x158] sm:$0xff]  }
  0x30   : > { %6695 = vmatpush3.bf16.msra.mxu0 %v7309_v30  ;;  %6504 = vmatprep.subr.bf16.mxu1 %v7310_v36  ;;  %v2267_v29 = vor.u32 %v2266_v18, %v2263_v17  ;;  %v2272_v30 = vrot.slane %v2270_v19, 5  ;;  %v2287_v1 = vrot.slane %v2285_v56, 4  ;;  %v2294_v2 = vshll.u32 %v7760_v45, 16 }
  0x31   : > { %6696 = vmatprep.subr.bf16.mxu0 %v7311_v51  ;;  %v384_v34 = vsel %vm7707_vm2, %v379_v25, %v383_v16  ;;  %v402_v7 = vor.u32 %v401_v58, %v397_v57  ;;  %v2290_v9 = vrot.slane %v2288_v60, 5  ;;  %v2298_v10 = vshrl.u32 %v7760_v45, 16  ;;  %v5751_v16 = vld [vmem:[%s7675_s18 + $0x30] sm:$0xf]  ;;  %v7324_v60 = vld [vmem:[%s9576_s2 + $0x20] sm:$0xff]  }
  0x32   : > { %v5567_v40 = vcombine.low %v374_v22, %v384_v34  ;;  %v2268_v42 = vrot.slane %v2267_v29, 4  ;;  %v2277_v43 = vor.u32 %v2276_v31, %v2272_v30  ;;  %v393_v12 = vrot.slane %v392_v0, 4  ;;  %v7321_v34 = vld [vmem:[%s9576_s2 + $0x18] sm:$0xff]  }
  0x33   : > { %6505 = vmatpush3.bf16.msra.mxu1 %v7310_v36  ;;  %v7756_v36 = vrot.slane %v3015_v27, 4  ;;  %v2296_v13 = vrot.slane %v2294_v2, 5  ;;  %v410_v15 = vshrl.u32 %v276_v52, 16  ;;  %v403_v17 = vrot.slane %v402_v7, 4  ;;  %v322_v2 = vld [vmem:[%s7675_s18 + $0x38] sm:$0x1] }
  0x34   : > { %6697 = vmatpush3.bf16.msra.mxu0 %v7311_v51  ;;  %6538 = vmatprep.subr.bf16.mxu1 %v7312_v3  ;;  %v7766_v51 = vld [vmem:[%s7675_s18 + $0x2c] sm:$0x1]  ;;  %v2273_v53 = vsel %vm7707_vm2, %v2268_v42, %v2272_v30  ;;  %v2278_v54 = vrot.slane %v2277_v43, 4  ;;  %v2291_v18 = vor.u32 %v2290_v9, %v2287_v1  ;;  %v2300_v19 = vrot.slane %v2298_v10, 4  ;;  %v5754_v9 = vld [vmem:[%s7675_s18 + $0x3c] sm:$0xf] }
  0x35   : > { %6730 = vmatprep.subr.bf16.mxu0 %v7732_v4  ;;  %v2304_v14 = vshll.u32 %v7766_v51, 16  ;;  %v413_v20 = vshll.u32 %v276_v52, 16  ;;  %v398_v21 = vsel %vm7707_vm2, %v393_v12, %v397_v57  ;;  %v412_v25 = vrot.slane %v410_v15, 4 }
  0x36   : > { %6507 = vmatmul.mubr.bf16.vlgmr.msra.gmra.mrb[0].mxu1 %v5567_v40  ;;  %v2283_v61 = vsel %vm7707_vm2, %v2278_v54, %v2282_v35  ;;  %v419_v26 = vshll.u32 %v277_v5, 16  ;;  %v408_v28 = vsel %vm7707_vm2, %v403_v17, %v407_v59  ;;  %v2292_v29 = vrot.slane %v2291_v18, 4  ;;  %v278_v54 = vld [vmem:[%s7675_s18 + $0x30] sm:$0xf]  ;;  %v279_v59 = vld [vmem:[%s7675_s18 + $0x34] sm:$0xf] }
  0x37   : > { %6539 = vmatpush3.bf16.msra.mxu1 %v7312_v3  ;;  %v7318_v3 = vld [vmem:[%s9576_s2 + $0x10] sm:$0xff]   ;;  %v5807_v6 = vcombine.low %v2273_v53, %v2283_v61  ;;  %v2306_v22 = vrot.slane %v2304_v14, 5  ;;  %v2301_v30 = vor.u32 %v2300_v19, %v2296_v13  ;;  %v415_v31 = vrot.slane %v413_v20, 5  ;;  %v7326_v14 = vld [vmem:[%s9576_s2 + $0x28] sm:$0xff]   ;;  %v7825_v19 = vld [vmem:[%s7675_s18 + $0x40] sm:$0xf] }
  0x38   : > { %6540 = vmatprep.subr.bf16.mxu1 %v7315_v46  ;;  %v5568_v35 = vcombine.low %v398_v21, %v408_v28  ;;  %v421_v38 = vrot.slane %v419_v26, 5  ;;  %v423_v39 = vshrl.u32 %v277_v5, 16  ;;  %v429_v40 = vshll.u32 %v321_v11, 16  ;;  %v7319_v20 = vld [vmem:[%s9576_s2 + $0x160] sm:$0xff]  }
  0x39   : > { %6699 = vmatmul.mubr.bf16.vlgmr.msra.gmra.mrb[0].mxu0 %v5807_v6  ;;  %v2297_v42 = vsel %vm7707_vm2, %v2292_v29, %v2296_v13  ;;  %v2302_v43 = vrot.slane %v2301_v30, 4  ;;  %v416_v44 = vor.u32 %v415_v31, %v412_v25  ;;  %v2309_v47 = vshrl.u32 %v5751_v16, 16  ;;  %v7833_v28 = vld [vmem:[%s7675_s18 + $0x44] sm:$0x1] }
  0x3a   : > { %6731 = vmatpush3.bf16.msra.mxu0 %v7732_v4  ;;  %v7316_v4 = vld [vmem:[%s9576_s2 + $0x150] sm:$0xff]   ;;  %6510 = vmatprep.mubr.bf16.mxu1 %v5568_v35  ;;  %v425_v49 = vrot.slane %v423_v39, 4  ;;  %v431_v50 = vrot.slane %v429_v40, 5  ;;  %v2312_v52 = vshll.u32 %v5751_v16, 16  ;;  %v2318_v53 = vshll.u32 %v7791_v33, 16 }
  0x3b   : > { %6541 = vmatpush3.bf16.msra.mxu1 %v7315_v46  ;;  %6732 = vmatprep.subr.bf16.mxu0 %v7314_v63  ;;  %v7802_v46 = vld [vmem:[%s7675_s18 + $0x38] sm:$0x1]  ;;  %v2307_v55 = vsel %vm7707_vm2, %v2302_v43, %v2306_v22  ;;  %v417_v56 = vrot.slane %v416_v44, 4  ;;  %v2311_v57 = vrot.slane %v2309_v47, 4  ;;  %v2322_v58 = vshrl.u32 %v7791_v33, 16  ;;  %v7328_v35 = vld [vmem:[%s9576_s2 + $0x30] sm:$0xff]  }
  0x3c   : > { %6542 = vmatprep.subr.bf16.mxu1 %v7318_v3  ;;  %v5808_v61 = vcombine.low %v2297_v42, %v2307_v55  ;;  %v2314_v0 = vrot.slane %v2312_v52, 5  ;;  %v2320_v1 = vrot.slane %v2318_v53, 5  ;;  %v2328_v6 = vshll.u32 %v7802_v46, 16  ;;  %v281_v55 = vld [vmem:[%s7675_s18 + $0x40] sm:$0xf] }
  0x3d   : > { %v422_v5 = vsel %vm7707_vm2, %v417_v56, %v421_v38  ;;  %v434_v7 = vshrl.u32 %v278_v54, 16  ;;  %v437_v12 = vshll.u32 %v278_v54, 16  ;;  %v443_v13 = vshll.u32 %v279_v59, 16 }
  0x3e   : > { %6733 = vmatpush3.bf16.msra.mxu0 %v7314_v63  ;;  %v426_v63 = vor.u32 %v425_v49, %v421_v38  ;;  %6702 = vmatprep.mubr.bf16.mxu0 %v5808_v61  ;;  %v2315_v11 = vor.u32 %v2314_v0, %v2311_v57  ;;  %v2330_v16 = vrot.slane %v2328_v6, 5  ;;  %v447_v18 = vshrl.u32 %v279_v59, 16 }
  0x3f   : > { %6543 = vmatpush3.bf16.msra.mxu1 %v7318_v3  ;;  %6734 = vmatprep.subr.bf16.mxu0 %v7316_v4  ;;  %v2324_v3 = vrot.slane %v2322_v58, 4  ;;  %v436_v17 = vrot.slane %v434_v7, 4  ;;  %v439_v25 = vrot.slane %v437_v12, 5  ;;  %v445_v26 = vrot.slane %v443_v13, 5 }
  0x40   : > { %6544 = vmatprep.subr.bf16.mxu1 %v7321_v34  ;;  %v427_v10 = vrot.slane %v426_v63, 4  ;;  %v2316_v22 = vrot.slane %v2315_v11, 4  ;;  %v449_v31 = vrot.slane %v447_v18, 4  ;;  %v2333_v40 = vshrl.u32 %v5754_v9, 16  ;;  %v323_v63 = vld [vmem:[%s7675_s18 + $0x44] sm:$0x1] }
  0x41   : > { %v2325_v15 = vor.u32 %v2324_v3, %v2320_v1  ;;  %v440_v39 = vor.u32 %v439_v25, %v436_v17  ;;  %v2336_v42 = vshll.u32 %v5754_v9, 16  ;;  %v2342_v49 = vshll.u32 %v7825_v19, 16  ;;  %v5757_v9 = vld [vmem:[%s7675_s18 + $0x48] sm:$0xf] }
  0x42   : > { %6735 = vmatpush3.bf16.msra.mxu0 %v7316_v4  ;;  %v432_v21 = vsel %vm7707_vm2, %v427_v10, %v431_v50  ;;  %v453_v4 = vshll.u32 %v322_v2, 16  ;;  %v2321_v38 = vsel %vm7707_vm2, %v2316_v22, %v2320_v1  ;;  %v450_v44 = vor.u32 %v449_v31, %v445_v26  ;;  %v7330_v2 = vld [vmem:[%s9576_s2 + $0x38] sm:$0xff]   ;;  %v7866_v22 = vld [vmem:[%s7675_s18 + $0x50] sm:$0x1] }
  0x43   : > { %6545 = vmatpush3.bf16.msra.mxu1 %v7321_v34  ;;  %6736 = vmatprep.subr.bf16.mxu0 %v7317_v48  ;;  %v5569_v29 = vcombine.low %v422_v5, %v432_v21  ;;  %v2326_v30 = vrot.slane %v2325_v15, 4  ;;  %v280_v34 = vld [vmem:[%s7675_s18 + $0x3c] sm:$0xf]  ;;  %v441_v52 = vrot.slane %v440_v39, 4  ;;  %v2335_v53 = vrot.slane %v2333_v40, 4  ;;  %v7322_v15 = vld [vmem:[%s9576_s2 + $0x170] sm:$0xff]  }
  0x44   : > { %6546 = vmatprep.subr.bf16.mxu1 %v7324_v60  ;;  %v455_v47 = vrot.slane %v453_v4, 5  ;;  %v2338_v54 = vrot.slane %v2336_v42, 5  ;;  %v451_v56 = vrot.slane %v450_v44, 4  ;;  %v2344_v57 = vrot.slane %v2342_v49, 5  ;;  %v7323_v31 = vld [vmem:[%s9576_s2 + $0x178] sm:$0xff]   ;;  %v7877_v4 = vld [vmem:[%s9576_s2 + $0x80] sm:$0xff]  }
  0x45   : > { %6511 = vmatmul.mubr.bf16.gmra.mrb[4].mxu1 %v5569_v29  ;;  %v2331_v43 = vsel %vm7707_vm2, %v2326_v30, %v2330_v16  ;;  %v2346_v58 = vshrl.u32 %v7825_v19, 16  ;;  %v2352_v59 = vshll.u32 %v7833_v28, 16  ;;  %v458_v0 = vshrl.u32 %v280_v34, 16  ;;  %v282_v30 = vld [vmem:[%s7675_s18 + $0x48] sm:$0xf] }
  0x46   : > { %6737 = vmatpush3.bf16.msra.mxu0 %v7317_v48  ;;  %v5809_v50 = vcombine.low %v2321_v38, %v2331_v43  ;;  %v7320_v48 = vld [vmem:[%s9576_s2 + $0x168] sm:$0xff]   ;;  %v2339_v61 = vor.u32 %v2338_v54, %v2335_v53  ;;  %v461_v1 = vshll.u32 %v280_v34, 16  ;;  %v456_v5 = vsel %vm7707_vm2, %v451_v56, %v455_v47  ;;  %v324_v54 = vld [vmem:[%s7675_s18 + $0x50] sm:$0x1] }
  0x47   : > { %6547 = vmatpush3.bf16.msra.mxu1 %v7324_v60  ;;  %6738 = vmatprep.subr.bf16.mxu0 %v7319_v20  ;;  %v446_v60 = vsel %vm7707_vm2, %v441_v52, %v445_v26  ;;  %v2348_v3 = vrot.slane %v2346_v58, 4  ;;  %v2354_v6 = vrot.slane %v2352_v59, 5  ;;  %v467_v7 = vshll.u32 %v281_v55, 16  ;;  %v283_v53 = vld [vmem:[%s7675_s18 + $0x4c] sm:$0xf] }
  0x48   : > { %6548 = vmatprep.subr.bf16.mxu1 %v7326_v14  ;;  %6703 = vmatmul.mubr.bf16.gmra.mrb[4].mxu0 %v5809_v50  ;;  %v5570_v10 = vcombine.low %v446_v60, %v456_v5  ;;  %v2340_v11 = vrot.slane %v2339_v61, 4  ;;  %v460_v12 = vrot.slane %v458_v0, 4  ;;  %v463_v13 = vrot.slane %v461_v1, 5  ;;  %v5760_v58 = vld [vmem:[%s7675_s18 + $0x54] sm:$0xf] }
  0x49   : > { %v2349_v16 = vor.u32 %v2348_v3, %v2344_v57  ;;  %v469_v17 = vrot.slane %v467_v7, 5  ;;  %v471_v18 = vshrl.u32 %v281_v55, 16  ;;  %v477_v21 = vshll.u32 %v323_v63, 16  ;;  %v7891_v0 = vld [vmem:[%s7675_s18 + $0x58] sm:$0xf] }
  0x4a   : > { %6739 = vmatpush3.bf16.msra.mxu0 %v7319_v20  ;;  %6514 = vmatprep.mubr.bf16.mxu1 %v5570_v10  ;;  %v2345_v20 = vsel %vm7707_vm2, %v2340_v11, %v2344_v57  ;;  %v464_v25 = vor.u32 %v463_v13, %v460_v12  ;;  %v2357_v26 = vshrl.u32 %v5757_v9, 16  ;;  %v2360_v29 = vshll.u32 %v5757_v9, 16 }
  0x4b   : > { %6549 = vmatpush3.bf16.msra.mxu1 %v7326_v14  ;;  %v7860_v14 = vld [vmem:[%s7675_s18 + $0x4c] sm:$0xf]  ;;  %6740 = vmatprep.subr.bf16.mxu0 %v7320_v48  ;;  %v2350_v34 = vrot.slane %v2349_v16, 4  ;;  %v479_v38 = vrot.slane %v477_v21, 5  ;;  %v2376_v52 = vshll.u32 %v7866_v22, 16  ;;  %v482_v61 = vshrl.u32 %v282_v30, 16 }
  0x4c   : > { %6550 = vmatprep.subr.bf16.mxu1 %v7328_v35  ;;  %v2366_v39 = vshll.u32 %v7860_v14, 16  ;;  %v465_v40 = vrot.slane %v464_v25, 4  ;;  %v2359_v42 = vrot.slane %v2357_v26, 4  ;;  %v2362_v43 = vrot.slane %v2360_v29, 5 }
  0x4d   : > { %v2370_v44 = vshrl.u32 %v7860_v14, 16  ;;  %v2355_v47 = vsel %vm7707_vm2, %v2350_v34, %v2354_v6  ;;  %v2378_v60 = vrot.slane %v2376_v52, 5  ;;  %v485_v63 = vshll.u32 %v282_v30, 16  ;;  %v7896_v6 = vld [vmem:[%s9576_s2 + $0x180] sm:$0xff]  }
  0x4e   : > { %6741 = vmatpush3.bf16.msra.mxu0 %v7320_v48  ;;  %v2368_v50 = vrot.slane %v2366_v39, 5  ;;  %v5810_v55 = vcombine.low %v2345_v20, %v2355_v47  ;;  %v470_v48 = vsel %vm7707_vm2, %v465_v40, %v469_v17  ;;  %v2363_v56 = vor.u32 %v2362_v43, %v2359_v42  ;;  %v7903_v20 = vld [vmem:[%s7675_s18 + $0x5c] sm:$0x1]  ;;  %v285_v43 = vld [vmem:[%s7675_s18 + $0x58] sm:$0xf] }
  0x4f   : > { %6551 = vmatpush3.bf16.msra.mxu1 %v7328_v35  ;;  %v473_v35 = vrot.slane %v471_v18, 4  ;;  %6742 = vmatprep.subr.bf16.mxu0 %v7322_v15  ;;  %v2372_v57 = vrot.slane %v2370_v44, 4  ;;  %v495_v3 = vshrl.u32 %v283_v53, 16  ;;  %v484_v9 = vrot.slane %v482_v61, 4  ;;  %v5763_v52 = vld [vmem:[%s7675_s18 + $0x60] sm:$0xf] }
  0x50   : > { %6552 = vmatprep.subr.bf16.mxu1 %v7330_v2  ;;  %6706 = vmatprep.mubr.bf16.mxu0 %v5810_v55  ;;  %v2364_v1 = vrot.slane %v2363_v56, 4  ;;  %v487_v10 = vrot.slane %v485_v63, 5  ;;  %v501_v11 = vshll.u32 %v324_v54, 16  ;;  %v2381_v25 = vshrl.u32 %v5760_v58, 16 }
  0x51   : > { %v474_v49 = vor.u32 %v473_v35, %v469_v17  ;;  %v2373_v5 = vor.u32 %v2372_v57, %v2368_v50  ;;  %v497_v18 = vrot.slane %v495_v3, 4  ;;  %v2384_v29 = vshll.u32 %v5760_v58, 16  ;;  %v284_v35 = vld [vmem:[%s7675_s18 + $0x54] sm:$0xf] }
  0x52   : > { %6743 = vmatpush3.bf16.msra.mxu0 %v7322_v15  ;;  %v2369_v13 = vsel %vm7707_vm2, %v2364_v1, %v2368_v50  ;;  %v488_v17 = vor.u32 %v487_v10, %v484_v9  ;;  %v503_v21 = vrot.slane %v501_v11, 5  ;;  %v2390_v30 = vshll.u32 %v7891_v0, 16  ;;  %v325_v50 = vld [vmem:[%s7675_s18 + $0x5c] sm:$0x1] }
  0x53   : > { %6553 = vmatpush3.bf16.msra.mxu1 %v7330_v2  ;;  %v475_v59 = vrot.slane %v474_v49, 4  ;;  %v491_v2 = vshll.u32 %v283_v53, 16  ;;  %6744 = vmatprep.subr.bf16.mxu0 %v7323_v31  ;;  %v2374_v15 = vrot.slane %v2373_v5, 4  ;;  %v2394_v34 = vshrl.u32 %v7891_v0, 16 }
  0x54   : > { %6586 = vmatprep.subr.bf16.mxu1 %v7877_v4  ;;  %v489_v39 = vrot.slane %v488_v17, 4  ;;  %v2383_v42 = vrot.slane %v2381_v25, 4  ;;  %v2392_v44 = vrot.slane %v2390_v30, 5  ;;  %v2400_v49 = vshll.u32 %v7903_v20, 16  ;;  %v7927_v17 = vld [vmem:[%s7675_s18 + $0x68] sm:$0x1] }
  0x55   : > { %v480_v7 = vsel %vm7707_vm2, %v475_v59, %v479_v38  ;;  %v493_v16 = vrot.slane %v491_v2, 5  ;;  %v2379_v26 = vsel %vm7707_vm2, %v2374_v15, %v2378_v60  ;;  %v2396_v47 = vrot.slane %v2394_v34, 4  ;;  %v7918_v60 = vld [vmem:[%s7675_s18 + $0x64] sm:$0xf]  ;;  %v7931_v25 = vld [vmem:[%s7675_s18 + $0x60] sm:$0xf] }
  0x56   : > { %v5571_v12 = vcombine.low %v470_v48, %v480_v7  ;;  %6745 = vmatpush3.bf16.msra.mxu0 %v7323_v31  ;;  %v5811_v38 = vcombine.low %v2369_v13, %v2379_v26  ;;  %v2386_v31 = vrot.slane %v2384_v29, 5  ;;  %v506_v55 = vshrl.u32 %v284_v35, 16 }
  0x57   : > { %6778 = vmatprep.subr.bf16.mxu0 %v7896_v6  ;;  %v498_v40 = vor.u32 %v497_v18, %v493_v16  ;;  %v494_v53 = vsel %vm7707_vm2, %v489_v39, %v493_v16  ;;  %v509_v48 = vshll.u32 %v284_v35, 16  ;;  %v2397_v57 = vor.u32 %v2396_v47, %v2392_v44  ;;  %v7934_v35 = vld [vmem:[%s7675_s18 + $0x64] sm:$0xf] }
  0x58   : > { %6515 = vmatmul.mubr.bf16.gmra.mrb[8].mxu1 %v5571_v12  ;;  %6707 = vmatmul.mubr.bf16.gmra.mrb[8].mxu0 %v5811_v38  ;;  %v2387_v56 = vor.u32 %v2386_v31, %v2383_v42  ;;  %v2402_v58 = vrot.slane %v2400_v49, 5  ;;  %v515_v59 = vshll.u32 %v285_v43, 16  ;;  %v508_v63 = vrot.slane %v506_v55, 4 }
  0x59   : > { %v499_v54 = vrot.slane %v498_v40, 4  ;;  %v511_v1 = vrot.slane %v509_v48, 5  ;;  %v519_v5 = vshrl.u32 %v285_v43, 16  ;;  %v2398_v7 = vrot.slane %v2397_v57, 4  ;;  %v326_v43 = vld [vmem:[%s7675_s18 + $0x68] sm:$0x1] }
  0x5a   : > { %v2388_v3 = vrot.slane %v2387_v56, 4  ;;  %v517_v9 = vrot.slane %v515_v59, 5  ;;  %v525_v12 = vshll.u32 %v325_v50, 16  ;;  %v2405_v13 = vshrl.u32 %v5763_v52, 16  ;;  %v5830_v50 = vld [vmem:[%s7675_s18 + $0xc] sm:$0xe] }
  0x5b   : > { %v504_v61 = vsel %vm7707_vm2, %v499_v54, %v503_v21  ;;  %v512_v10 = vor.u32 %v511_v1, %v508_v63  ;;  %v521_v11 = vrot.slane %v519_v5, 4  ;;  %v2403_v16 = vsel %vm7707_vm2, %v2398_v7, %v2402_v58  ;;  %v7949_v5 = vld [vmem:[%s7675_s18 + $0x6c] sm:$0xf] }
  0x5c   : > { %v5572_v2 = vcombine.low %v494_v53, %v504_v61  ;;  %v2393_v15 = vsel %vm7707_vm2, %v2388_v3, %v2392_v44  ;;  %v2408_v18 = vshll.u32 %v5763_v52, 16  ;;  %v2414_v21 = vshll.u32 %v7918_v60, 16 }
  0x5d   : > { %v5812_v26 = vcombine.low %v2393_v15, %v2403_v16  ;;  %v513_v29 = vrot.slane %v512_v10, 4  ;;  %v522_v30 = vor.u32 %v521_v11, %v517_v9  ;;  %v527_v34 = vrot.slane %v525_v12, 5 }
  0x5e   : > { %6518 = vmatprep.mubr.bf16.mxu1 %v5572_v2  ;;  %v2407_v38 = vrot.slane %v2405_v13, 4  ;;  %v2410_v39 = vrot.slane %v2408_v18, 5  ;;  %v2416_v40 = vrot.slane %v2414_v21, 5  ;;  %v2418_v42 = vshrl.u32 %v7918_v60, 16  ;;  %v7961_v21 = vld [vmem:[%s7675_s18 + $0x70] sm:$0xf] }
  0x5f   : > { %6710 = vmatprep.mubr.bf16.mxu0 %v5812_v26  ;;  %v518_v31 = vsel %vm7707_vm2, %v513_v29, %v517_v9  ;;  %v523_v44 = vrot.slane %v522_v30, 4  ;;  %v2424_v47 = vshll.u32 %v7927_v17, 16  ;;  %v530_v49 = vshrl.u32 %v7931_v25, 16  ;;  %v7414_v9 = vld [vmem:[%s7675_s18 + $0xb4] sm:$0xff]  }
  0x60   : > { %v2411_v52 = vor.u32 %v2410_v39, %v2407_v38  ;;  %v2420_v53 = vrot.slane %v2418_v42, 4  ;;  %v533_v54 = vshll.u32 %v7931_v25, 16  ;;  %v539_v55 = vshll.u32 %v7934_v35, 16 }
  0x61   : > { %v528_v48 = vsel %vm7707_vm2, %v523_v44, %v527_v34  ;;  %v2426_v56 = vrot.slane %v2424_v47, 5  ;;  %v532_v57 = vrot.slane %v530_v49, 4  ;;  %v543_v58 = vshrl.u32 %v7934_v35, 16  ;;  %v7972_v47 = vld [vmem:[%s7675_s18 + $0x78] sm:$0xf] }
  0x62   : > { %v5573_v59 = vcombine.low %v518_v31, %v528_v48  ;;  %v2412_v61 = vrot.slane %v2411_v52, 4  ;;  %v2421_v63 = vor.u32 %v2420_v53, %v2416_v40  ;;  %v535_v1 = vrot.slane %v533_v54, 5  ;;  %v7983_v54 = vld [vmem:[%s7675_s18 + $0x7c] sm:$0xf] }
  0x63   : > { %v541_v2 = vrot.slane %v539_v55, 5  ;;  %v545_v3 = vrot.slane %v543_v58, 4  ;;  %v549_v7 = vshll.u32 %v326_v43, 16  ;;  %v5846_v10 = vrot.slane %v5830_v50, 9  ;;  %v328_v58 = vld [vmem:[%s7675_s18 + $0x80] sm:$0x1] }
  0x64   : > { %6519 = vmatmul.mubr.bf16.gmra.mrb[12].mxu1 %v5573_v59  ;;  %v2417_v11 = vsel %vm7707_vm2, %v2412_v61, %v2416_v40  ;;  %v2422_v12 = vrot.slane %v2421_v63, 4  ;;  %v536_v13 = vor.u32 %v535_v1, %v532_v57  ;;  %v3008_v15 = vrot.slane %v7688_v23, 5  ;;  %v327_v40 = vld [vmem:[%s7675_s18 + $0x74] sm:$0x1]  ;;  %v5831_v23 = vld [vmem:[%s7675_s18 + $0x18] sm:$0xe] }
  0x65   : > { %v546_v16 = vor.u32 %v545_v3, %v541_v2  ;;  %v551_v18 = vrot.slane %v549_v7, 5  ;;  %v554_v26 = vshrl.u32 %v7949_v5, 16  ;;  %v557_v29 = vshll.u32 %v7949_v5, 16 }
  0x66   : > { %v2427_v30 = vsel %vm7707_vm2, %v2422_v12, %v2426_v56  ;;  %v537_v34 = vrot.slane %v536_v13, 4  ;;  %v3009_v38 = vsel %vm7953_vm5, %v5846_v10, %v3008_v15  ;;  %v3010_v39 = vrot.slane %v3008_v15, 4  ;;  %v5832_v13 = vld [vmem:[%s7675_s18 + $0x24] sm:$0xe] }
  0x67   : > { %v5813_v42 = vcombine.low %v2417_v11, %v2427_v30  ;;  %v547_v43 = vrot.slane %v546_v16, 4  ;;  %v556_v31 = vrot.slane %v554_v26, 4  ;;  %v559_v44 = vrot.slane %v557_v29, 5  ;;  %v8005_v16 = vld [vmem:[%s7675_s18 + $0x84] sm:$0xf]  ;;  %v7327_v29 = vld [vmem:[%s9576_s2 + $0x188] sm:$0xff]  }
  0x68   : > { %v542_v49 = vsel %vm7707_vm2, %v537_v34, %v541_v2  ;;  %v3012_v50 = vsel %vm7953_vm5, %v3010_v39, %v3011_v41  ;;  %v563_v52 = vshll.u32 %v7961_v21, 16  ;;  %v567_v53 = vshrl.u32 %v7961_v21, 16 }
  0x69   : > { %6711 = vmatmul.mubr.bf16.gmra.mrb[12].mxu0 %v5813_v42  ;;  %v552_v55 = vsel %vm7707_vm2, %v547_v43, %v551_v18  ;;  %v5878_v48 = vcombine.low %v3009_v38, %v3012_v50  ;;  %v560_v56 = vor.u32 %v559_v44, %v556_v31  ;;  %v573_v57 = vshll.u32 %v327_v40, 16  ;;  %v8013_v40 = vld [vmem:[%s7675_s18 + $0x88] sm:$0xf]  ;;  %v329_v31 = vld [vmem:[%s7675_s18 + $0x8c] sm:$0x1] }
  0x6a   : > { %v5574_v59 = vcombine.low %v542_v49, %v552_v55  ;;  %v565_v24 = vrot.slane %v563_v52, 5  ;;  %v569_v61 = vrot.slane %v567_v53, 4  ;;  %v5847_v63 = vrot.slane %v5831_v23, 9 }
  0x6b   : > { %6746 = vmatprep.mubr.bf16.mxu0 %v5878_v48  ;;  %v561_v41 = vrot.slane %v560_v56, 4  ;;  %v575_v1 = vrot.slane %v573_v57, 5  ;;  %v3019_v2 = vsel %vm7953_vm5, %v7756_v36, %v3018_v32  ;;  %v578_v3 = vshrl.u32 %v7972_v47, 16 }
  0x6c   : > { %6522 = vmatprep.mubr.bf16.mxu1 %v5574_v59  ;;  %v570_v7 = vor.u32 %v569_v61, %v565_v24  ;;  %v3016_v10 = vsel %vm7953_vm5, %v5847_v63, %v3015_v27  ;;  %v581_v11 = vshll.u32 %v7972_v47, 16  ;;  %v587_v12 = vshll.u32 %v7983_v54, 16 }
  0x6d   : > { %v566_v8 = vsel %vm7707_vm2, %v561_v41, %v565_v24  ;;  %v5879_v15 = vcombine.low %v3016_v10, %v3019_v2  ;;  %v580_v32 = vrot.slane %v578_v3, 4  ;;  %v591_v36 = vshrl.u32 %v7983_v54, 16  ;;  %v8034_v2 = vld [vmem:[%s7675_s18 + $0x90] sm:$0xf]  ;;  %v8037_v3 = vld [vmem:[%s7675_s18 + $0x94] sm:$0xf] }
  0x6e   : > { %v571_v62 = vrot.slane %v570_v7, 4  ;;  %v583_v18 = vrot.slane %v581_v11, 5  ;;  %v589_v26 = vrot.slane %v587_v12, 5  ;;  %v597_v27 = vshll.u32 %v328_v58, 16 }
  0x6f   : > { %v593_v30 = vrot.slane %v591_v36, 4  ;;  %v5848_v34 = vrot.slane %v5832_v13, 9  ;;  %v3022_v38 = vrot.slane %v7760_v45, 5  ;;  %v3025_v39 = vrot.slane %v7766_v51, 5  ;;  %v5833_v45 = vld [vmem:[%s7675_s18 + $0x30] sm:$0xe] }
  0x70   : > { %v576_v23 = vsel %vm7707_vm2, %v571_v62, %v575_v1  ;;  %v584_v42 = vor.u32 %v583_v18, %v580_v32  ;;  %v599_v43 = vrot.slane %v597_v27, 5  ;;  %v602_v44 = vshrl.u32 %v8005_v16, 16  ;;  %v330_v62 = vld [vmem:[%s7675_s18 + $0x98] sm:$0x1] }
  0x71   : > { %v5575_v49 = vcombine.low %v566_v8, %v576_v23  ;;  %6747 = vmatmul.mubr.bf16.vlgmr.msra.gmra.mrb[0].mxu0 %v5879_v15  ;;  %v594_v50 = vor.u32 %v593_v30, %v589_v26  ;;  %v3023_v52 = vsel %vm7953_vm5, %v5848_v34, %v3022_v38  ;;  %v3024_v53 = vrot.slane %v3022_v38, 4  ;;  %v7331_v30 = vld [vmem:[%s9576_s2 + $0x198] sm:$0xff]  }
  0x72   : > { %6779 = vmatpush3.bf16.msra.mxu0 %v7896_v6  ;;  %v585_v51 = vrot.slane %v584_v42, 4  ;;  %v604_v55 = vrot.slane %v602_v44, 4  ;;  %v605_v48 = vshll.u32 %v8005_v16, 16  ;;  %v611_v56 = vshll.u32 %v8013_v40, 16  ;;  %v7329_v6 = vld [vmem:[%s9576_s2 + $0x190] sm:$0xff]  }
  0x73   : > { %6523 = vmatmul.mubr.bf16.gmra.mrb[16].mxu1 %v5575_v49  ;;  %v595_v57 = vrot.slane %v594_v50, 4  ;;  %v3026_v58 = vsel %vm7953_vm5, %v3024_v53, %v3025_v39  ;;  %v615_v59 = vshrl.u32 %v8013_v40, 16  ;;  %v621_v24 = vshll.u32 %v329_v31, 16  ;;  %6780 = vmatprep.subr.bf16.mxu0 %v7327_v29  ;;  %v5834_v38 = vld [vmem:[%s7675_s18 + $0x3c] sm:$0xe] }
  0x74   : > { %v590_v61 = vsel %vm7707_vm2, %v585_v51, %v589_v26  ;;  %v5880_v63 = vcombine.low %v3023_v52, %v3026_v58  ;;  %v607_v41 = vrot.slane %v605_v48, 5  ;;  %v613_v1 = vrot.slane %v611_v56, 5  ;;  %v8055_v31 = vld [vmem:[%s7675_s18 + $0x9c] sm:$0xf]  ;;  %v8064_v48 = vld [vmem:[%s7675_s18 + $0xa0] sm:$0xf] }
  0x75   : > { %v600_v7 = vsel %vm7707_vm2, %v595_v57, %v599_v43  ;;  %v617_v10 = vrot.slane %v615_v59, 4  ;;  %v623_v11 = vrot.slane %v621_v24, 5  ;;  %v5849_v12 = vrot.slane %v5833_v45, 9  ;;  %v7335_v56 = vld [vmem:[%s9576_s2 + $0x1a0] sm:$0xff]  }
  0x76   : > { %v5576_v13 = vcombine.low %v590_v61, %v600_v7  ;;  %6750 = vmatprep.mubr.bf16.mxu0 %v5880_v63  ;;  %v608_v8 = vor.u32 %v607_v41, %v604_v55  ;;  %v3029_v15 = vrot.slane %v7791_v33, 5  ;;  %v3032_v32 = vrot.slane %v7802_v46, 5  ;;  %6781 = vmatpush3.bf16.msra.mxu0 %v7327_v29  ;;  %v331_v61 = vld [vmem:[%s7675_s18 + $0xa4] sm:$0x1] }
  0x77   : > { %v618_v36 = vor.u32 %v617_v10, %v613_v1  ;;  %v626_v18 = vshrl.u32 %v8034_v2, 16  ;;  %v629_v26 = vshll.u32 %v8034_v2, 16  ;;  %v635_v27 = vshll.u32 %v8037_v3, 16  ;;  %6782 = vmatprep.subr.bf16.mxu0 %v7329_v6 }
  0x78   : > { %6526 = vmatprep.mubr.bf16.mxu1 %v5576_v13  ;;  %v609_v34 = vrot.slane %v608_v8, 4  ;;  %v3030_v33 = vsel %vm7953_vm5, %v5849_v12, %v3029_v15  ;;  %v3031_v46 = vrot.slane %v3029_v15, 4  ;;  %v639_v29 = vshrl.u32 %v8037_v3, 16  ;;  %v5835_v15 = vld [vmem:[%s7675_s18 + $0x48] sm:$0xe] }
  0x79   : > { %v619_v39 = vrot.slane %v618_v36, 4  ;;  %v628_v23 = vrot.slane %v626_v18, 4  ;;  %v631_v42 = vrot.slane %v629_v26, 5  ;;  %v637_v43 = vrot.slane %v635_v27, 5  ;;  %v8089_v27 = vld [vmem:[%s7675_s18 + $0xa8] sm:$0xf] }
  0x7a   : > { %v614_v44 = vsel %vm7707_vm2, %v609_v34, %v613_v1  ;;  %v3033_v49 = vsel %vm7953_vm5, %v3031_v46, %v3032_v32  ;;  %v641_v50 = vrot.slane %v639_v29, 4  ;;  %v645_v52 = vshll.u32 %v330_v62, 16  ;;  %6783 = vmatpush3.bf16.msra.mxu0 %v7329_v6  ;;  %v7339_v32 = vld [vmem:[%s9576_s2 + $0x1a8] sm:$0xff]  }
  0x7b   : > { %v624_v53 = vsel %vm7707_vm2, %v619_v39, %v623_v11  ;;  %v5881_v45 = vcombine.low %v3030_v33, %v3033_v49  ;;  %v632_v51 = vor.u32 %v631_v42, %v628_v23  ;;  %v5850_v55 = vrot.slane %v5834_v38, 9  ;;  %6784 = vmatprep.subr.bf16.mxu0 %v7331_v30  ;;  %v8092_v29 = vld [vmem:[%s7675_s18 + $0xac] sm:$0xf] }
  0x7c   : > { %v5577_v57 = vcombine.low %v614_v44, %v624_v53  ;;  %v642_v58 = vor.u32 %v641_v50, %v637_v43  ;;  %v647_v59 = vrot.slane %v645_v52, 5  ;;  %v3036_v24 = vrot.slane %v7825_v19, 5  ;;  %v5836_v53 = vld [vmem:[%s7675_s18 + $0x54] sm:$0xe] }
  0x7d   : > { %6751 = vmatmul.mubr.bf16.gmra.mrb[4].mxu0 %v5881_v45  ;;  %v633_v6 = vrot.slane %v632_v51, 4  ;;  %v3039_v63 = vrot.slane %v7833_v28, 5  ;;  %v650_v41 = vshrl.u32 %v8055_v31, 16  ;;  %v653_v1 = vshll.u32 %v8055_v31, 16  ;;  %v7343_v45 = vld [vmem:[%s9576_s2 + $0x1b0] sm:$0xff]  }
  0x7e   : > { %6527 = vmatmul.mubr.bf16.gmra.mrb[20].mxu1 %v5577_v57  ;;  %v643_v7 = vrot.slane %v642_v58, 4  ;;  %v3037_v10 = vsel %vm7953_vm5, %v5850_v55, %v3036_v24  ;;  %v3038_v11 = vrot.slane %v3036_v24, 4  ;;  %v659_v12 = vshll.u32 %v8064_v48, 16  ;;  %6785 = vmatpush3.bf16.msra.mxu0 %v7331_v30 }
  0x7f   : > { %v638_v19 = vsel %vm7707_vm2, %v633_v6, %v637_v43  ;;  %v652_v13 = vrot.slane %v650_v41, 4  ;;  %v655_v28 = vrot.slane %v653_v1, 5  ;;  %v663_v8 = vshrl.u32 %v8064_v48, 16  ;;  %6786 = vmatprep.subr.bf16.mxu0 %v7335_v56  ;;  %v332_v43 = vld [vmem:[%s7675_s18 + $0xb0] sm:$0x1] }
  0x80   : > { %v648_v36 = vsel %vm7707_vm2, %v643_v7, %v647_v59  ;;  %v3040_v62 = vsel %vm7953_vm5, %v3038_v11, %v3039_v63  ;;  %v661_v18 = vrot.slane %v659_v12, 5  ;;  %v669_v26 = vshll.u32 %v331_v61, 16  ;;  %v8112_v41 = vld [vmem:[%s7675_s18 + $0xb4] sm:$0xf]  ;;  %v8117_v12 = vld [vmem:[%s7675_s18 + $0xb8] sm:$0xf] }
  0x81   : > { %v5578_v30 = vcombine.low %v638_v19, %v648_v36  ;;  %v5882_v34 = vcombine.low %v3037_v10, %v3040_v62  ;;  %v656_v33 = vor.u32 %v655_v28, %v652_v13  ;;  %v665_v46 = vrot.slane %v663_v8, 4  ;;  %v333_v19 = vld [vmem:[%s7675_s18 + $0xbc] sm:$0x1] }
  0x82   : > { %v671_v38 = vrot.slane %v669_v26, 5  ;;  %v5851_v39 = vrot.slane %v5835_v15, 9  ;;  %v3043_v23 = vrot.slane %v7860_v14, 5  ;;  %v3046_v42 = vrot.slane %v7866_v22, 5  ;;  %6787 = vmatpush3.bf16.msra.mxu0 %v7335_v56  ;;  %v7347_v13 = vld [vmem:[%s9576_s2 + $0x1b8] sm:$0xff]  }
  0x83   : > { %6530 = vmatprep.mubr.bf16.mxu1 %v5578_v30  ;;  %6754 = vmatprep.mubr.bf16.mxu0 %v5882_v34  ;;  %v657_v44 = vrot.slane %v656_v33, 4  ;;  %v666_v49 = vor.u32 %v665_v46, %v661_v18  ;;  %v674_v50 = vshrl.u32 %v8089_v27, 16  ;;  %v677_v52 = vshll.u32 %v8089_v27, 16  ;;  %v5837_v30 = vld [vmem:[%s7675_s18 + $0x60] sm:$0xe] }
  0x84   : > { %v3044_v14 = vsel %vm7953_vm5, %v5851_v39, %v3043_v23  ;;  %v3045_v22 = vrot.slane %v3043_v23, 4  ;;  %v683_v51 = vshll.u32 %v8092_v29, 16  ;;  %v687_v55 = vshrl.u32 %v8092_v29, 16  ;;  %6788 = vmatprep.subr.bf16.mxu0 %v7339_v32  ;;  %v5767_v39 = vld [vmem:[%s7675_s18 + $0x70] sm:$0xf] }
  0x85   : > { %v662_v56 = vsel %vm7707_vm2, %v657_v44, %v661_v18  ;;  %v667_v57 = vrot.slane %v666_v49, 4  ;;  %v676_v58 = vrot.slane %v674_v50, 4  ;;  %v679_v59 = vrot.slane %v677_v52, 5  ;;  %v8139_v44 = vld [vmem:[%s9576_s2 + $0x1c0] sm:$0xff]  }
  0x86   : > { %v3047_v24 = vsel %vm7953_vm5, %v3045_v22, %v3046_v42  ;;  %v685_v61 = vrot.slane %v683_v51, 5  ;;  %v689_v6 = vrot.slane %v687_v55, 4  ;;  %v693_v63 = vshll.u32 %v332_v43, 16  ;;  %6789 = vmatpush3.bf16.msra.mxu0 %v7339_v32  ;;  %v5838_v43 = vld [vmem:[%s7675_s18 + $0x6c] sm:$0xe] }
  0x87   : > { %v672_v1 = vsel %vm7707_vm2, %v667_v57, %v671_v38  ;;  %v5883_v7 = vcombine.low %v3044_v14, %v3047_v24  ;;  %v680_v10 = vor.u32 %v679_v59, %v676_v58  ;;  %v5852_v11 = vrot.slane %v5836_v53, 9  ;;  %6790 = vmatprep.subr.bf16.mxu0 %v7343_v45  ;;  %v5768_v55 = vld [vmem:[%s7675_s18 + $0x74] sm:$0x1]  ;;  %v5839_v24 = vld [vmem:[%s7675_s18 + $0x78] sm:$0xe] }
  0x88   : > { %v5579_v28 = vcombine.low %v662_v56, %v672_v1  ;;  %v690_v8 = vor.u32 %v689_v6, %v685_v61  ;;  %v695_v15 = vrot.slane %v693_v63, 5  ;;  %v3050_v32 = vrot.slane %v7891_v0, 5 }
  0x89   : > { %6755 = vmatmul.mubr.bf16.gmra.mrb[8].mxu0 %v5883_v7  ;;  %v681_v36 = vrot.slane %v680_v10, 4  ;;  %v3053_v62 = vrot.slane %v7903_v20, 5  ;;  %v698_v18 = vshrl.u32 %v8112_v41, 16  ;;  %v701_v26 = vshll.u32 %v8112_v41, 16 }
  0x8a   : > { %6531 = vmatmul.mubr.bf16.gmra.mrb[24].mxu1 %v5579_v28  ;;  %v691_v34 = vrot.slane %v690_v8, 4  ;;  %v3051_v33 = vsel %vm7953_vm5, %v5852_v11, %v3050_v32  ;;  %v3052_v46 = vrot.slane %v3050_v32, 4  ;;  %v707_v38 = vshll.u32 %v8117_v12, 16  ;;  %6791 = vmatpush3.bf16.msra.mxu0 %v7343_v45  ;;  %v8152_v11 = vld [vmem:[%s7675_s18 + $0x7c] sm:$0xf] }
  0x8b   : > { %v686_v0 = vsel %vm7707_vm2, %v681_v36, %v685_v61  ;;  %v700_v20 = vrot.slane %v698_v18, 4  ;;  %v703_v23 = vrot.slane %v701_v26, 5  ;;  %v711_v42 = vshrl.u32 %v8117_v12, 16  ;;  %6792 = vmatprep.subr.bf16.mxu0 %v7347_v13  ;;  %v7416_v36 = vld [vmem:[%s7675_s18] sm:$0xf] }
  0x8c   : > { %v696_v49 = vsel %vm7707_vm2, %v691_v34, %v695_v15  ;;  %v3054_v50 = vsel %vm7953_vm5, %v3052_v46, %v3053_v62  ;;  %v709_v52 = vrot.slane %v707_v38, 5  ;;  %v717_v53 = vshll.u32 %v333_v19, 16  ;;  %v5773_v15 = vld [vmem:[%s7675_s18 + $0x88] sm:$0xf]  ;;  %v8167_v62 = vld [vmem:[%s7675_s18 + $0x4] sm:$0xf] }
  0x8d   : > { %v5580_v45 = vcombine.low %v686_v0, %v696_v49  ;;  %v5884_v14 = vcombine.low %v3051_v33, %v3054_v50  ;;  %v704_v22 = vor.u32 %v703_v23, %v700_v20  ;;  %v713_v51 = vrot.slane %v711_v42, 4  ;;  %v5774_v26 = vld [vmem:[%s7675_s18 + $0x8c] sm:$0x1]  ;;  %v5777_v23 = vld [vmem:[%s7675_s18 + $0x98] sm:$0x1] }
  0x8e   : > { %v719_v56 = vrot.slane %v717_v53, 5  ;;  %v5853_v57 = vrot.slane %v5837_v30, 9  ;;  %v3057_v58 = vrot.slane %v7918_v60, 5  ;;  %v3060_v59 = vrot.slane %v7927_v17, 5  ;;  %6793 = vmatpush3.bf16.msra.mxu0 %v7347_v13  ;;  %v8155_v17 = vld [vmem:[%s7675_s18 + $0x80] sm:$0x1] }
  0x8f   : > { %6534 = vmatprep.mubr.bf16.mxu1 %v5580_v45  ;;  %6758 = vmatprep.mubr.bf16.mxu0 %v5884_v14  ;;  %v705_v61 = vrot.slane %v704_v22, 4  ;;  %v714_v6 = vor.u32 %v713_v51, %v709_v52  ;;  %v5854_v63 = vrot.slane %v5838_v43, 9  ;;  %v3064_v1 = vrot.slane %v5767_v39, 5  ;;  %v5840_v30 = vld [vmem:[%s7675_s18 + $0x84] sm:$0xe] }
  0x90   : > { %v3058_v7 = vsel %vm7953_vm5, %v5853_v57, %v3057_v58  ;;  %v3059_v10 = vrot.slane %v3057_v58, 4  ;;  %v3067_v60 = vrot.slane %v5768_v55, 5  ;;  %6826 = vmatprep.subr.bf16.mxu0 %v8139_v44  ;;  %v5590_v18 = vcombine.low %v7416_v36, %v8167_v62  ;;  %v5776_v39 = vld [vmem:[%s7675_s18 + $0x94] sm:$0xf]  ;;  %v5841_v42 = vld [vmem:[%s7675_s18 + $0x90] sm:$0xe] }
  0x91   : > { %v710_v19 = vsel %vm7707_vm2, %v705_v61, %v709_v52  ;;  %v715_v13 = vrot.slane %v714_v6, 4  ;;  %v3065_v28 = vsel %vm7953_vm5, %v5854_v63, %v3064_v1  ;;  %v3066_v8 = vrot.slane %v3064_v1, 4  ;;  %v5842_v50 = vld [vmem:[%s7675_s18 + $0x9c] sm:$0xe]  ;;  %v5779_v14 = vld [vmem:[%s7675_s18 + $0xa0] sm:$0xf] }
  0x92   : > { %v3061_v32 = vsel %vm7953_vm5, %v3059_v10, %v3060_v59  ;;  %v5855_v38 = vrot.slane %v5839_v24, 9  ;;  %v3071_v43 = vrot.slane %v8152_v11, 5  ;;  %v3074_v49 = vrot.slane %v8155_v17, 5  ;;  %v5780_v22 = vld [vmem:[%s7675_s18 + $0xa4] sm:$0x1] }
  0x93   : > { %v720_v34 = vsel %vm7707_vm2, %v715_v13, %v719_v56  ;;  %v5885_v33 = vcombine.low %v3058_v7, %v3061_v32  ;;  %v3068_v46 = vsel %vm7953_vm5, %v3066_v8, %v3067_v60  ;;  %v5856_v52 = vrot.slane %v5840_v30, 9  ;;  %v5782_v59 = vld [vmem:[%s7675_s18 + $0xac] sm:$0xf]  ;;  %v8191_v61 = vld [vmem:[%s7675_s18 + $0x10] sm:$0xf] }
  0x94   : > { %v5581_v0 = vcombine.low %v710_v19, %v720_v34  ;;  %v5886_v20 = vcombine.low %v3065_v28, %v3068_v46  ;;  %v3078_v53 = vrot.slane %v5773_v15, 5  ;;  %v3081_v45 = vrot.slane %v5774_v26, 5  ;;  %v7418_v24 = vld [vmem:[%s7675_s18 + $0xc] sm:$0xf]  ;;  %v7420_v8 = vld [vmem:[%s7675_s18 + $0x18] sm:$0xf] }
  0x95   : > { %6759 = vmatmul.mubr.bf16.gmra.mrb[12].mxu0 %v5885_v33  ;;  %v3072_v51 = vsel %vm7953_vm5, %v5855_v38, %v3071_v43  ;;  %v3073_v55 = vrot.slane %v3071_v43, 4  ;;  %v3085_v58 = vrot.slane %v5776_v39, 5  ;;  %v5591_v6 = vcombine.low %v7418_v24, %v8191_v61  ;;  %v7338_v19 = vld [vmem:[%s9576_s2 + $0x88] sm:$0xff]   ;;  %v8203_v15 = vld [vmem:[%s7675_s18 + $0x1c] sm:$0xf] }
  0x96   : > { %6535 = vmatmul.mubr.bf16.gmra.mrb[28].mxu1 %v5581_v0  ;;  %6762 = vmatprep.mubr.bf16.mxu0 %v5886_v20  ;;  %v3079_v56 = vsel %vm7953_vm5, %v5856_v52, %v3078_v53  ;;  %v3080_v57 = vrot.slane %v3078_v53, 4  ;;  %v5857_v1 = vrot.slane %v5841_v42, 9  ;;  %v3088_v7 = vrot.slane %v5777_v23, 5  ;;  %v5783_v30 = vld [vmem:[%s7675_s18 + $0xb0] sm:$0x1] }
  0x97   : > { %6554 = vmatprep.mubr.bf16.mxu1 %v5590_v18  ;;  %v3075_v63 = vsel %vm7953_vm5, %v3073_v55, %v3074_v49  ;;  %v3087_v13 = vrot.slane %v3085_v58, 4  ;;  %v5858_v28 = vrot.slane %v5842_v50, 9  ;;  %v5592_v32 = vcombine.low %v7420_v8, %v8203_v15  ;;  %v5843_v34 = vld [vmem:[%s7675_s18 + $0xa8] sm:$0xe]  ;;  %v5785_v33 = vld [vmem:[%s7675_s18 + $0xb8] sm:$0xf] }
  0x98   : > { %v5887_v10 = vcombine.low %v3072_v51, %v3075_v63  ;;  %v3082_v60 = vsel %vm7953_vm5, %v3080_v57, %v3081_v45  ;;  %v3092_v18 = vrot.slane %v5779_v14, 5  ;;  %v3095_v26 = vrot.slane %v5780_v22, 5  ;;  %v5786_v20 = vld [vmem:[%s7675_s18 + $0xbc] sm:$0x1]  ;;  %v5844_v23 = vld [vmem:[%s7675_s18 + $0xb4] sm:$0xe] }
  0x99   : > { %v5888_v36 = vcombine.low %v3079_v56, %v3082_v60  ;;  %v3099_v38 = vrot.slane %v5782_v59, 5  ;;  %v3086_v39 = vsel %vm7953_vm5, %v5857_v1, %v3085_v58  ;;  %v3089_v0 = vsel %vm7953_vm5, %v3087_v13, %v3088_v7  ;;  %v7342_v50 = vld [vmem:[%s9576_s2 + $0x90] sm:$0xff]   ;;  %v5788_v53 = vld [vmem:[%s7675_s18 + $0xc4] sm:$0xf]  ;;  %v8226_v51 = vld [vmem:[%s7675_s18 + $0x28] sm:$0xf] }
  0x9a   : > { %v3094_v46 = vrot.slane %v3092_v18, 4  ;;  %v3093_v42 = vsel %vm7953_vm5, %v5858_v28, %v3092_v18  ;;  %v3106_v49 = vrot.slane %v5785_v33, 5  ;;  %v5859_v52 = vrot.slane %v5843_v34, 9  ;;  %v7422_v22 = vld [vmem:[%s7675_s18 + $0x24] sm:$0xf]  ;;  %v7346_v1 = vld [vmem:[%s9576_s2 + $0x98] sm:$0xff]  }
  0x9b   : > { %v5889_v45 = vcombine.low %v3086_v39, %v3089_v0  ;;  %v3101_v14 = vrot.slane %v3099_v38, 4  ;;  %v5593_v55 = vcombine.low %v7422_v22, %v8226_v51  ;;  %v7424_v57 = vld [vmem:[%s7675_s18 + $0x30] sm:$0xf]  ;;  %v8231_v58 = vld [vmem:[%s7675_s18 + $0x34] sm:$0xf]  ;;  %v5860_v24 = vrot.slane %v5844_v23, 9 }
  0x9c   : > { %v3096_v43 = vsel %vm7953_vm5, %v3094_v46, %v3095_v26  ;;  %v5594_v59 = vcombine.low %v7424_v57, %v8231_v58  ;;  %v3109_v63 = vrot.slane %v5786_v20, 5  ;;  %v5845_v7 = vld [vmem:[%s7675_s18 + $0xc0] sm:$0xe]  ;;  %v3100_v60 = vsel %vm7953_vm5, %v5859_v52, %v3099_v38  ;;  %v5789_v8 = vld [vmem:[%s7675_s18 + $0xc8] sm:$0x1]  ;;  %v7349_v22 = vld [vmem:[%s7675_s18 + $0x18] sm:$0xff]  }
  0x9d   : > { %6763 = vmatmul.mubr.bf16.gmra.mrb[16].mxu0 %v5887_v10  ;;  %v5890_v56 = vcombine.low %v3093_v42, %v3096_v43  ;;  %v3113_v10 = vrot.slane %v5788_v53, 5  ;;  %v3107_v13 = vsel %vm7953_vm5, %v5860_v24, %v3106_v49  ;;  %v5861_v18 = vrot.slane %v5845_v7, 9  ;;  %v7426_v26 = vld [vmem:[%s7675_s18 + $0x3c] sm:$0xf]  ;;  %v7428_v39 = vld [vmem:[%s7675_s18 + $0x48] sm:$0xf] }
  0x9e   : > { %6555 = vmatmul.mubr.bf16.vlgmr.msra.gmra.mrb[0].mxu1 %v5591_v6  ;;  %6766 = vmatprep.mubr.bf16.mxu0 %v5888_v36  ;;  %v3108_v6 = vrot.slane %v3106_v49, 4  ;;  %v3116_v38 = vrot.slane %v5789_v8, 5  ;;  %v8257_v0 = vld [vmem:[%s7675_s18 + $0x4c] sm:$0xf]  ;;  %v7363_v49 = vld [vmem:[%s9576_s2 + $0xb0] sm:$0xff]   ;;  %v2466_v52 = vshrl.u32 %v8152_v11, 16 }
  0x9f   : > { %6587 = vmatpush3.bf16.msra.mxu1 %v7877_v4  ;;  %6558 = vmatprep.mubr.bf16.mxu1 %v5592_v32  ;;  %v3102_v4 = vrot.slane %v5783_v30, 5  ;;  %v7351_v32 = vld [vmem:[%s9576_s2 + $0xa0] sm:$0xff]   ;;  %v3115_v46 = vrot.slane %v3113_v10, 4  ;;  %v5596_v20 = vcombine.low %v7428_v39, %v8257_v0  ;;  %v7357_v23 = vld [vmem:[%s9576_s2 + $0xa8] sm:$0xff]   ;;  %v3114_v42 = vsel %vm7953_vm5, %v5861_v18, %v3113_v10  ;;  %v7355_v18 = vld [vmem:[%s7675_s18 + $0x30] sm:$0xff]  }
  0xa0   : > { %6588 = vmatprep.subr.bf16.mxu1 %v7338_v19  ;;  %v3110_v28 = vsel %vm7953_vm5, %v3108_v6, %v3109_v63  ;;  %v8252_v30 = vld [vmem:[%s7675_s18 + $0x40] sm:$0xf]  ;;  %v8285_v57 = vrot.slane %v2466_v52, 4  ;;  %v7352_v6 = vld [vmem:[%s7675_s18 + $0x24] sm:$0xff]   ;;  %v1376_v7 = vrot.slane %v8191_v61, 5  ;;  %v2472_v8 = vshll.u32 %v8155_v17, 16 }
  0xa1   : > { %v5595_v34 = vcombine.low %v7426_v26, %v8252_v30  ;;  %v5892_v33 = vcombine.low %v3107_v13, %v3110_v28  ;;  %v3117_v43 = vsel %vm7953_vm5, %v3115_v46, %v3116_v38  ;;  %v1316_v63 = vld [vmem:[%s7675_s18] sm:$0xe]  ;;  %v1317_v10 = vld [vmem:[%s7675_s18 + $0xc] sm:$0xe]  ;;  %v1383_v13 = vrot.slane %v8203_v15, 5 }
  0xa2   : > { %v5893_v53 = vcombine.low %v3114_v42, %v3117_v43  ;;  %v1319_v61 = vld [vmem:[%s7675_s18 + $0x24] sm:$0xe]  ;;  %v5601_v15 = vcombine.low %v8005_v16, %v8013_v40  ;;  %v5602_v26 = vcombine.low %v8034_v2, %v8037_v3  ;;  %v5614_v17 = vrot.slane %v1316_v63, 9  ;;  %v7434_v38 = vld [vmem:[%s7675_s18 + $0x20] sm:$0x1]  ;;  %v7364_v2 = vld [vmem:[%s7675_s18 + $0x54] sm:$0xff]  }
  0xa3   : > { %6589 = vmatpush3.bf16.msra.mxu1 %v7338_v19  ;;  %v3103_v19 = vsel %vm7953_vm5, %v3101_v14, %v3102_v4  ;;  %v8274_v14 = vld [vmem:[%s7675_s18 + $0x58] sm:$0xf]  ;;  %v1385_v46 = vrot.slane %v1383_v13, 4  ;;  %v1386_v39 = vrot.slane %v7434_v38, 5  ;;  %v7435_v43 = vld [vmem:[%s7675_s18 + $0x2c] sm:$0x1] }
  0xa4   : > { %6590 = vmatprep.subr.bf16.mxu1 %v7342_v50  ;;  %v5891_v36 = vcombine.low %v3100_v60, %v3103_v19  ;;  %v8300_v60 = vld [vmem:[%s9576_s2 + $0xc0] sm:$0xff]   ;;  %v1318_v19 = vld [vmem:[%s7675_s18 + $0x18] sm:$0xe]  ;;  %v7438_v38 = vld [vmem:[%s7675_s18 + $0x50] sm:$0x1]  ;;  %v1418_v16 = vrot.slane %v8274_v14, 5 }
  0xa5   : > { %6767 = vmatmul.mubr.bf16.gmra.mrb[20].mxu0 %v5889_v45  ;;  %v7430_v45 = vld [vmem:[%s7675_s18 + $0x54] sm:$0xf]  ;;  %v8423_v40 = vld [vmem:[%s7675_s18 + $0x64] sm:$0xf] }
  0xa6   : > { %6559 = vmatmul.mubr.bf16.gmra.mrb[4].mxu1 %v5593_v55  ;;  %6770 = vmatprep.mubr.bf16.mxu0 %v5890_v56  ;;  %v5597_v4 = vcombine.low %v7430_v45, %v8274_v14  ;;  %v5598_v55 = vcombine.low %v7931_v25, %v7934_v35  ;;  %v7369_v56 = vld [vmem:[%s9576_s2 + $0xb8] sm:$0xff]   ;;  %v7433_v25 = vld [vmem:[%s7675_s18 + $0x14] sm:$0x1]  ;;  %v7367_v3 = vld [vmem:[%s7675_s18 + $0x60] sm:$0xff]  }
  0xa7   : > { %6562 = vmatprep.mubr.bf16.mxu1 %v5594_v59  ;;  %6591 = vmatpush3.bf16.msra.mxu1 %v7342_v50  ;;  %v2462_v50 = vshll.u32 %v8152_v11, 16  ;;  %v8288_v59 = vld [vmem:[%s7675_s18 + $0x8] sm:$0x1]  ;;  %v1379_v35 = vrot.slane %v7433_v25, 5 }
  0xa8   : > { %6592 = vmatprep.subr.bf16.mxu1 %v7346_v1  ;;  %v1372_v24 = vrot.slane %v8288_v59, 5 }
  0xa9   : > { %v8283_v11 = vrot.slane %v2462_v50, 5 }
  0xab   : > { %6593 = vmatpush3.bf16.msra.mxu1 %v7346_v1  ;;  %v1369_v1 = vrot.slane %v8167_v62, 5  ;;  %v5599_v62 = vcombine.low %v7949_v5, %v7961_v21  ;;  %v5615_v21 = vrot.slane %v1317_v10, 9  ;;  %v5974_v10 = vld [vmem:[%s7675_s18 + $0x18] sm:$0xf] }
  0xac   : > { %6594 = vmatprep.subr.bf16.mxu1 %v7351_v32 }
  0xad   : > { %6771 = vmatmul.mubr.bf16.gmra.mrb[24].mxu0 %v5891_v36  ;;  %v5600_v36 = vcombine.low %v7972_v47, %v7983_v54  ;;  %v1371_v5 = vrot.slane %v1369_v1, 4  ;;  %v7359_v47 = vld [vmem:[%s9576_s2 + $0x1c8] sm:$0xff]   ;;  %v5616_v54 = vrot.slane %v1318_v19, 9  ;;  %v8343_v59 = vsel %vm7953_vm5, %v5614_v17, %v1369_v1  ;;  %v5975_v19 = vld [vmem:[%s7675_s18 + $0x1c] sm:$0xf] }
  0xae   : > { %6563 = vmatmul.mubr.bf16.gmra.mrb[8].mxu1 %v5595_v34  ;;  %6774 = vmatprep.mubr.bf16.mxu0 %v5892_v33  ;;  %v1397_v34 = vrot.slane %v8231_v58, 5  ;;  %v1378_v33 = vrot.slane %v1376_v7, 4  ;;  %v5617_v58 = vrot.slane %v1319_v61, 9  ;;  %v1411_v1 = vrot.slane %v8257_v0, 5  ;;  %v7361_v0 = vld [vmem:[%s7675_s18 + $0x48] sm:$0xff]  }
  0xaf   : > { %6566 = vmatprep.mubr.bf16.mxu1 %v5596_v20  ;;  %6595 = vmatpush3.bf16.msra.mxu1 %v7351_v32  ;;  %v1390_v32 = vrot.slane %v8226_v51, 5  ;;  %v1320_v51 = vld [vmem:[%s7675_s18 + $0x30] sm:$0xe]  ;;  %v5603_v20 = vcombine.low %v8055_v31, %v8064_v48  ;;  %v8351_v25 = vsel %vm7953_vm5, %v1371_v5, %v1372_v24  ;;  %v8359_v63 = vsel %vm7953_vm5, %v5616_v54, %v1383_v13  ;;  %v1322_v13 = vld [vmem:[%s7675_s18 + $0x48] sm:$0xe] }
  0xb0   : > { %6596 = vmatprep.subr.bf16.mxu1 %v7357_v23  ;;  %v5618_v50 = vrot.slane %v1320_v51, 9  ;;  %v1399_v52 = vrot.slane %v1397_v34, 4  ;;  %v3876_v5 = vshrl.u32 %v5974_v10, 16  ;;  %v3889_v51 = vshrl.u32 %v5975_v19, 16  ;;  %v7370_v48 = vld [vmem:[%s7675_s18 + $0x6c] sm:$0xff]  }
  0xb1   : > { %v1392_v42 = vrot.slane %v1390_v32, 4  ;;  %v8371_v24 = vsel %vm7953_vm5, %v5617_v58, %v1390_v32  ;;  %v7437_v32 = vld [vmem:[%s7675_s18 + $0x44] sm:$0x1]  ;;  %v5620_v54 = vrot.slane %v1322_v13, 9  ;;  %v5978_v13 = vld [vmem:[%s7675_s18 + $0x28] sm:$0xf] }
  0xb2   : > { %v8381_v61 = vsel %vm7953_vm5, %v5618_v50, %v1397_v34  ;;  %v1407_v17 = vrot.slane %v7437_v32, 5  ;;  %v5976_v50 = vld [vmem:[%s7675_s18 + $0x20] sm:$0x1]  ;;  %v1324_v32 = vld [vmem:[%s7675_s18 + $0x60] sm:$0xe] }
  0xb3   : > { %6597 = vmatpush3.bf16.msra.mxu1 %v7357_v23  ;;  %v5604_v23 = vcombine.low %v8089_v27, %v8092_v29 }
  0xb4   : > { %6598 = vmatprep.subr.bf16.mxu1 %v7363_v49 }
  0xb5   : > { %6775 = vmatmul.mubr.bf16.gmra.mrb[28].mxu0 %v5893_v53  ;;  %v7436_v53 = vld [vmem:[%s7675_s18 + $0x38] sm:$0x1] }
  0xb6   : > { %6567 = vmatmul.mubr.bf16.gmra.mrb[12].mxu1 %v5597_v4  ;;  %6794 = vmatprep.mubr.bf16.mxu0 %v7349_v22  ;;  %v1400_v45 = vrot.slane %v7436_v53, 5  ;;  %v1321_v4 = vld [vmem:[%s7675_s18 + $0x3c] sm:$0xe]  ;;  %v1404_v22 = vrot.slane %v8252_v30, 5  ;;  %v8347_v30 = vsel %vm7953_vm5, %v5615_v21, %v1376_v7  ;;  %v3879_v21 = vshll.u32 %v5974_v10, 16  ;;  %v7375_v53 = vld [vmem:[%s9576_s2 + $0x1e0] sm:$0xff]  }
  0xb7   : > { %6570 = vmatprep.mubr.bf16.mxu1 %v5598_v55  ;;  %6599 = vmatpush3.bf16.msra.mxu1 %v7363_v49  ;;  %v1393_v49 = vrot.slane %v7435_v43, 5  ;;  %v8334_v55 = vrot.slane %v2472_v8, 5  ;;  %v7358_v7 = vld [vmem:[%s7675_s18 + $0x3c] sm:$0xff]   ;;  %v8367_v8 = vsel %vm7953_vm5, %v1385_v46, %v1386_v39  ;;  %v1413_v46 = vrot.slane %v1411_v1, 4  ;;  %v5980_v43 = vld [vmem:[%s7675_s18 + $0x30] sm:$0xf] }
  0xb8   : > { %6600 = vmatprep.subr.bf16.mxu1 %v7369_v56  ;;  %v1414_v39 = vrot.slane %v7438_v38, 5  ;;  %v3878_v10 = vrot.slane %v3876_v5, 4 }
  0xb9   : > { %9601 = vst [vmem:[#allocation5_spill] sm:$0xff] %v8334_v55 }
  0xbb   : > { %6601 = vmatpush3.bf16.msra.mxu1 %v7369_v56  ;;  %v7365_v56 = vld [vmem:[%s9576_s2 + $0x1d0] sm:$0xff]  }
  0xbc   : > { %6634 = vmatprep.subr.bf16.mxu1 %v8300_v60 }
  0xbd   : > { %6795 = vmatmul.mubr.bf16.vlgmr.msra.gmra.mrb[0].mxu0 %v7352_v6  ;;  %v8355_v6 = vsel %vm7953_vm5, %v1378_v33, %v1379_v35  ;;  %v8375_v35 = vsel %vm7953_vm5, %v1392_v42, %v1393_v49  ;;  %v3885_v33 = vshll.u32 %v5975_v19, 16  ;;  %v3881_v19 = vrot.slane %v3879_v21, 5  ;;  %v1325_v21 = vld [vmem:[%s7675_s18 + $0x6c] sm:$0xe] }
  0xbe   : > { %6571 = vmatmul.mubr.bf16.gmra.mrb[16].mxu1 %v5599_v62  ;;  %6827 = vmatpush3.bf16.msra.mxu0 %v8139_v44  ;;  %v5619_v62 = vrot.slane %v1321_v4, 9  ;;  %v5623_v58 = vrot.slane %v1325_v21, 9 }
  0xbf   : > { %6574 = vmatprep.mubr.bf16.mxu1 %v5600_v36  ;;  %6798 = vmatprep.mubr.bf16.mxu0 %v7355_v18  ;;  %v8385_v36 = vsel %vm7953_vm5, %v1399_v52, %v1400_v45  ;;  %v1406_v18 = vrot.slane %v1404_v22, 4  ;;  %v5977_v52 = vld [vmem:[%s7675_s18 + $0x24] sm:$0xf]  ;;  %v3913_v45 = vshrl.u32 %v5978_v13, 16 }
  0xc0   : > { %6828 = vmatprep.subr.bf16.mxu0 %v7359_v47  ;;  %v8402_v49 = vsel %vm7953_vm5, %v5619_v62, %v1404_v22  ;;  %v8419_v22 = vld [vmem:[%s7675_s18 + $0x54] sm:$0xe]  ;;  %v3891_v62 = vrot.slane %v3889_v51, 4  ;;  %v3900_v38 = vshrl.u32 %v5977_v52, 16  ;;  %v3903_v28 = vshll.u32 %v5977_v52, 16 }
  0xc1   : > { %v8416_v4 = vsel %vm7953_vm5, %v1406_v18, %v1407_v17  ;;  %v3895_v17 = vshll.u32 %v5976_v50, 16  ;;  %v5621_v5 = vrot.slane %v8419_v22, 9  ;;  %v7379_v50 = vld [vmem:[%s9576_s2 + $0x1e8] sm:$0xff]   ;;  %v1420_v52 = vrot.slane %v1418_v16, 4 }
  0xc2   : > { %6829 = vmatpush3.bf16.msra.mxu0 %v7359_v47  ;;  %v7371_v47 = vld [vmem:[%s9576_s2 + $0x1d8] sm:$0xff]   ;;  %v3882_v22 = vor.u32 %v3881_v19, %v3878_v10  ;;  %v3902_v34 = vrot.slane %v3900_v38, 4  ;;  %v3905_v44 = vrot.slane %v3903_v28, 5  ;;  %v7443_v10 = vld [vmem:[%s7675_s18 + $0x74] sm:$0x1]  ;;  %v3915_v28 = vrot.slane %v3913_v45, 4 }
  0xc3   : > { %6830 = vmatprep.subr.bf16.mxu0 %v7365_v56  ;;  %v8457_v42 = vrot.slane %v3895_v17, 5  ;;  %v1435_v19 = vrot.slane %v7443_v10, 5  ;;  %v3924_v38 = vshrl.u32 %v5980_v43, 16  ;;  %v8482_v27 = vsel %vm7953_vm5, %v5621_v5, %v1418_v16 }
  0xc4   : > { %v3883_v21 = vrot.slane %v3882_v22, 4 }
  0xc5   : > { %6799 = vmatmul.mubr.bf16.gmra.mrb[4].mxu0 %v7358_v7  ;;  %v8429_v7 = vrot.slane %v3885_v33, 5  ;;  %v7441_v33 = vld [vmem:[%s7675_s18 + $0x70] sm:$0xf] }
  0xc6   : > { %6575 = vmatmul.mubr.bf16.gmra.mrb[20].mxu1 %v5601_v15  ;;  %6802 = vmatprep.mubr.bf16.mxu0 %v7361_v0  ;;  %v1425_v15 = vrot.slane %v8423_v40, 5  ;;  %v7440_v0 = vld [vmem:[%s7675_s18 + $0x5c] sm:$0x1]  ;;  %v1432_v51 = vrot.slane %v7441_v33, 5 }
  0xc7   : > { %6578 = vmatprep.mubr.bf16.mxu1 %v5602_v26  ;;  %6831 = vmatpush3.bf16.msra.mxu0 %v7365_v56  ;;  %v1421_v18 = vrot.slane %v7440_v0, 5  ;;  %v8438_v26 = vsel %vm7953_vm5, %v5620_v54, %v1411_v1  ;;  %v8442_v56 = vsel %vm7953_vm5, %v1413_v46, %v1414_v39  ;;  %v7442_v1 = vld [vmem:[%s7675_s18 + $0x68] sm:$0x1]  ;;  %v3909_v0 = vshll.u32 %v5978_v13, 16  ;;  %v7387_v40 = vld [vmem:[%s9576_s2 + $0x1f8] sm:$0xff]  }
  0xc8   : > { %6832 = vmatprep.subr.bf16.mxu0 %v7371_v47  ;;  %v1428_v54 = vrot.slane %v7442_v1, 5  ;;  %v5622_v46 = vrot.slane %v1324_v32, 9  ;;  %v1427_v39 = vrot.slane %v1425_v15, 4  ;;  %v3892_v33 = vor.u32 %v3891_v62, %v8429_v7  ;;  %v5981_v1 = vld [vmem:[%s7675_s18 + $0x34] sm:$0xf] }
  0xc9   : > { %v1434_v32 = vrot.slane %v1432_v51, 4  ;;  %v5979_v62 = vld [vmem:[%s7675_s18 + $0x2c] sm:$0x1]  ;;  %v8469_v17 = vrot.slane %v3909_v0, 5  ;;  %v3933_v13 = vshll.u32 %v5981_v1, 16  ;;  %v3937_v31 = vshrl.u32 %v5981_v1, 16 }
  0xca   : > { %v3893_v10 = vrot.slane %v3892_v33, 4  ;;  %v8486_v29 = vsel %vm7953_vm5, %v1420_v52, %v1421_v18  ;;  %v8493_v45 = vsel %vm7953_vm5, %v5622_v46, %v1425_v15  ;;  %v8497_v14 = vsel %vm7953_vm5, %v1427_v39, %v1428_v54  ;;  %v1326_v18 = vld [vmem:[%s7675_s18 + $0x78] sm:$0xe] }
  0xcb   : > { %6833 = vmatpush3.bf16.msra.mxu0 %v7371_v47  ;;  %v8501_v16 = vsel %vm7953_vm5, %v5623_v58, %v1432_v51  ;;  %v8511_v15 = vsel %vm7953_vm5, %v1434_v32, %v1435_v19  ;;  %v3916_v5 = vor.u32 %v3915_v28, %v8469_v17  ;;  %v3926_v52 = vrot.slane %v3924_v38, 4  ;;  %v5983_v58 = vld [vmem:[%s7675_s18 + $0x3c] sm:$0xf]  ;;  %v5984_v51 = vld [vmem:[%s7675_s18 + $0x40] sm:$0xf] }
  0xcc   : > { %6834 = vmatprep.subr.bf16.mxu0 %v7375_v53  ;;  %v3888_v0 = vsel %vm7707_vm2, %v3883_v21, %v8429_v7  ;;  %v3898_v46 = vsel %vm7707_vm2, %v3893_v10, %v8457_v42  ;;  %v8522_v39 = vrot.slane %v3933_v13, 5  ;;  %v3939_v22 = vrot.slane %v3937_v31, 4  ;;  %v7445_v19 = vld [vmem:[%s7675_s18 + $0x80] sm:$0x1]  ;;  %v8681_v47 = vld [vmem:[%s7675_s18 + $0x68] sm:$0x1] }
  0xcd   : > { %6803 = vmatmul.mubr.bf16.gmra.mrb[8].mxu0 %v7364_v2  ;;  %v3927_v2 = vshll.u32 %v5980_v43, 16  ;;  %v3919_v43 = vshll.u32 %v5979_v62, 16  ;;  %v5624_v32 = vrot.slane %v1326_v18, 9  ;;  %v1327_v62 = vld [vmem:[%s7675_s18 + $0x84] sm:$0xe]  ;;  %v3948_v28 = vshrl.u32 %v5983_v58, 16 }
  0xce   : > { %6579 = vmatmul.mubr.bf16.gmra.mrb[24].mxu1 %v5603_v20  ;;  %6806 = vmatprep.mubr.bf16.mxu0 %v7367_v3  ;;  %v7383_v20 = vld [vmem:[%s9576_s2 + $0x1f0] sm:$0xff]   ;;  %v7444_v3 = vld [vmem:[%s7675_s18 + $0x7c] sm:$0xf]  ;;  %v3951_v7 = vshll.u32 %v5983_v58, 16  ;;  %v3957_v38 = vshll.u32 %v5984_v51, 16  ;;  %v9602_v42 = vcombine.low %v8112_v41, %v8117_v12  ;;  %v8533_v13 = vrot.slane %v3916_v5, 4 }
  0xcf   : > { %6582 = vmatprep.mubr.bf16.mxu1 %v5604_v23  ;;  %6835 = vmatpush3.bf16.msra.mxu0 %v7375_v53  ;;  %v3906_v23 = vor.u32 %v3905_v44, %v3902_v34  ;;  %v7372_v53 = vld [vmem:[%s7675_s18 + $0x78] sm:$0xff]   ;;  %v1439_v44 = vrot.slane %v7444_v3, 5  ;;  %v3929_v54 = vrot.slane %v3927_v2, 5  ;;  %v8526_v1 = vrot.slane %v3919_v43, 5  ;;  %v8538_v21 = vld [vmem:[%s9576_s2 + $0x200] sm:$0xff]   ;;  %9610 = vst [vmem:[#allocation8_spill] sm:$0xff] %v8681_v47 }
  0xd0   : > { %6836 = vmatprep.subr.bf16.mxu0 %v7379_v50  ;;  %v5982_v34 = vld [vmem:[%s7675_s18 + $0x38] sm:$0x1]  ;;  %v3961_v2 = vshrl.u32 %v5984_v51, 16  ;;  %v7374_v43 = vld [vmem:[%s7675_s18 + $0x84] sm:$0xff]   ;;  %v3940_v12 = vor.u32 %v3939_v22, %v8522_v39  ;;  %v3953_v58 = vrot.slane %v3951_v7, 5  ;;  %v8560_v51 = vrot.slane %v3957_v38, 5 }
  0xd1   : > { %v8524_v33 = vrot.slane %v3906_v23, 4  ;;  %v1441_v10 = vrot.slane %v1439_v44, 4  ;;  %v3930_v31 = vor.u32 %v3929_v54, %v3926_v52  ;;  %v9603_v23 = vcombine.low %v8343_v59, %v8351_v25  ;;  %v7446_v18 = vld [vmem:[%s7675_s18 + $0x88] sm:$0xf]  ;;  %v5985_v5 = vld [vmem:[%s7675_s18 + $0x44] sm:$0x1] }
  0xd2   : > { %v1446_v3 = vrot.slane %v7446_v18, 5  ;;  %v8551_v59 = vcombine.low %v3888_v0, %v3898_v46  ;;  %v5986_v52 = vld [vmem:[%s7675_s18 + $0x48] sm:$0xf]  ;;  %v3950_v54 = vrot.slane %v3948_v28, 4  ;;  %v3963_v22 = vrot.slane %v3961_v2, 4 }
  0xd3   : > { %6837 = vmatpush3.bf16.msra.mxu0 %v7379_v50  ;;  %v1442_v50 = vrot.slane %v7445_v19, 5  ;;  %v7376_v19 = vld [vmem:[%s7675_s18 + $0x90] sm:$0xff]   ;;  %v3912_v0 = vsel %vm7707_vm2, %v8524_v33, %v8469_v17  ;;  %v3931_v46 = vrot.slane %v3930_v31, 4  ;;  %v3922_v28 = vsel %vm7707_vm2, %v8533_v13, %v8526_v1  ;;  %v8582_v33 = vld [vmem:[%s7675_s18 + $0x58] sm:$0xf]  ;;  %v7377_v31 = vld [vmem:[%s9576_s2 + $0xc8] sm:$0xff]  }
  0xd4   : > { %6838 = vmatprep.subr.bf16.mxu0 %v7383_v20  ;;  %v3941_v38 = vrot.slane %v3940_v12, 4  ;;  %v1448_v2 = vrot.slane %v1446_v3, 4  ;;  %v5989_v17 = vld [vmem:[%s7675_s18 + $0x54] sm:$0xf]  ;;  %v3967_v1 = vshll.u32 %v5985_v5, 16  ;;  %v3972_v13 = vshrl.u32 %v5986_v52, 16 }
  0xd5   : > { %6807 = vmatmul.mubr.bf16.gmra.mrb[12].mxu0 %v7370_v48  ;;  %v3943_v48 = vshll.u32 %v5982_v34, 16  ;;  %v8578_v7 = vsel %vm7953_vm5, %v1441_v10, %v1442_v50  ;;  %v3975_v50 = vshll.u32 %v5986_v52, 16  ;;  %v3954_v10 = vor.u32 %v3953_v58, %v3950_v54  ;;  %v7378_v54 = vld [vmem:[%s7675_s18 + $0x9c] sm:$0xff]   ;;  %v7452_v41 = vld [vmem:[%s7675_s18 + $0xac] sm:$0xf] }
  0xd6   : > { %6583 = vmatmul.mubr.bf16.gmra.mrb[28].mxu1 %v9602_v42  ;;  %6810 = vmatprep.mubr.bf16.mxu0 %v7372_v53  ;;  %v5625_v53 = vrot.slane %v1327_v62, 9  ;;  %v7447_v42 = vld [vmem:[%s7675_s18 + $0x8c] sm:$0x1]  ;;  %v4005_v5 = vshll.u32 %v8582_v33, 16  ;;  %v9605_v52 = vcombine.low %v8359_v63, %v8367_v8  ;;  %v8618_v63 = vld [vmem:[%s7675_s18 + $0x50] sm:$0x1] }
  0xd7   : > { %6602 = vmatprep.mubr.bf16.mxu1 %v9603_v23  ;;  %6839 = vmatpush3.bf16.msra.mxu0 %v7383_v20  ;;  %v8557_v20 = vsel %vm7953_vm5, %v5624_v32, %v1439_v44  ;;  %v3945_v62 = vrot.slane %v3943_v48, 5  ;;  %v1449_v23 = vrot.slane %v7447_v42, 5  ;;  %v1328_v44 = vld [vmem:[%s7675_s18 + $0x90] sm:$0xe]  ;;  %v8570_v32 = vld [vmem:[%s7675_s18 + $0x4c] sm:$0xf]  ;;  %v3964_v48 = vor.u32 %v3963_v22, %v8560_v51 }
  0xd8   : > { %6840 = vmatprep.subr.bf16.mxu0 %v7387_v40  ;;  %v3981_v12 = vshll.u32 %v8570_v32, 16  ;;  %v3985_v18 = vshrl.u32 %v8570_v32, 16  ;;  %v9604_v42 = vcombine.low %v8347_v30, %v8355_v6  ;;  %v7381_v30 = vld [vmem:[%s9576_s2 + $0xd0] sm:$0xff]   ;;  %v3936_v6 = vsel %vm7707_vm2, %v3931_v46, %v8522_v39  ;;  %v7380_v8 = vld [vmem:[%s7675_s18 + $0xa8] sm:$0xff]   ;;  %v8625_v39 = vld [vmem:[%s7675_s18 + $0x5c] sm:$0x1] }
  0xd9   : > { %v3946_v58 = vsel %vm7707_vm2, %v3941_v38, %v3945_v62  ;;  %v5626_v22 = vrot.slane %v1328_v44, 9  ;;  %v3977_v25 = vrot.slane %v3975_v50, 5  ;;  %9606 = vst [vmem:[#allocation6_spill] sm:$0xff] %v8625_v39  ;;  %v3955_v46 = vrot.slane %v3954_v10, 4 }
  0xda   : > { %v3965_v62 = vrot.slane %v3964_v48, 4  ;;  %v8627_v38 = vrot.slane %v3981_v12, 5  ;;  %v8629_v34 = vrot.slane %v4005_v5, 5  ;;  %v8634_v50 = vcombine.low %v3912_v0, %v3922_v28  ;;  %v5992_v28 = vld [vmem:[%s7675_s18 + $0x60] sm:$0xf] }
  0xdb   : > { %6841 = vmatpush3.bf16.msra.mxu0 %v7387_v40  ;;  %v8590_v40 = vsel %vm7953_vm5, %v5625_v53, %v1446_v3  ;;  %v3996_v53 = vshrl.u32 %v5989_v17, 16  ;;  %v3999_v3 = vshll.u32 %v5989_v17, 16  ;;  %v7448_v17 = vld [vmem:[%s7675_s18 + $0x94] sm:$0xf]  ;;  %v8638_v48 = vcombine.low %v3936_v6, %v3946_v58 }
  0xdc   : > { %6874 = vmatprep.subr.bf16.mxu0 %v8538_v21  ;;  %v3991_v0 = vshll.u32 %v8618_v63, 16  ;;  %v3960_v6 = vsel %vm7707_vm2, %v3955_v46, %v8560_v51  ;;  %v9609_v46 = vcombine.low %v8381_v61, %v8385_v36 }
  0xdd   : > { %6811 = vmatmul.mubr.bf16.gmra.mrb[16].mxu0 %v7374_v43  ;;  %v4009_v43 = vshrl.u32 %v8582_v33, 16  ;;  %v3998_v44 = vrot.slane %v3996_v53, 4  ;;  %v7449_v53 = vld [vmem:[%s7675_s18 + $0x98] sm:$0x1] }
  0xde   : > { %6603 = vmatmul.mubr.bf16.vlgmr.msra.gmra.mrb[0].mxu1 %v9604_v42  ;;  %6814 = vmatprep.mubr.bf16.mxu0 %v7376_v19  ;;  %v8621_v19 = vrot.slane %v3967_v1, 5  ;;  %v1453_v42 = vrot.slane %v7448_v17, 5  ;;  %v7450_v17 = vld [vmem:[%s7675_s18 + $0xa0] sm:$0xf]  ;;  %v3993_v36 = vrot.slane %v3991_v0, 5 }
  0xdf   : > { %6635 = vmatpush3.bf16.msra.mxu1 %v8300_v60  ;;  %6606 = vmatprep.mubr.bf16.mxu1 %v9605_v52  ;;  %v8615_v60 = vsel %vm7953_vm5, %v1448_v2, %v1449_v23  ;;  %v3974_v52 = vrot.slane %v3972_v13, 4  ;;  %v3987_v23 = vrot.slane %v3985_v18, 4  ;;  %v4001_v2 = vrot.slane %v3999_v3, 5  ;;  %v7385_v13 = vld [vmem:[%s9576_s2 + $0xd8] sm:$0xff]  }
  0xe0   : > { %6636 = vmatprep.subr.bf16.mxu1 %v7377_v31  ;;  %v4011_v1 = vrot.slane %v4009_v43, 4  ;;  %v1329_v18 = vld [vmem:[%s7675_s18 + $0x9c] sm:$0xe]  ;;  %v1456_v3 = vrot.slane %v7449_v53, 5  ;;  %v8651_v43 = vld [vmem:[%s7675_s18 + $0x64] sm:$0xf] }
  0xe1   : > { %v3978_v5 = vor.u32 %v3977_v25, %v3974_v52  ;;  %9607 = vst [vmem:[#allocation7_spill] sm:$0xff] %v8651_v43  ;;  %v3988_v58 = vor.u32 %v3987_v23, %v8627_v38  ;;  %v1460_v12 = vrot.slane %v7450_v17, 5  ;;  %v9608_v25 = vcombine.low %v8371_v24, %v8375_v35  ;;  %v7382_v23 = vld [vmem:[%s7675_s18 + $0xb4] sm:$0xff]   ;;  %v7388_v24 = vld [vmem:[%s9576_s2 + $0xe0] sm:$0xff]   ;;  %v5995_v17 = vld [vmem:[%s7675_s18 + $0x6c] sm:$0xf] }
  0xe2   : > { %v1455_v52 = vrot.slane %v1453_v42, 4  ;;  %v4002_v53 = vor.u32 %v4001_v2, %v3998_v44  ;;  %v4012_v51 = vor.u32 %v4011_v1, %v8629_v34  ;;  %v4020_v35 = vshrl.u32 %v5992_v28, 16  ;;  %v7451_v2 = vld [vmem:[%s7675_s18 + $0xa4] sm:$0x1] }
  0xe3   : > { %6637 = vmatpush3.bf16.msra.mxu1 %v7377_v31  ;;  %v8645_v31 = vsel %vm7953_vm5, %v5626_v22, %v1453_v42  ;;  %v4015_v22 = vshll.u32 %v8625_v39, 16  ;;  %v4033_v42 = vshrl.u32 %v8651_v43, 16  ;;  %v3979_v61 = vrot.slane %v3978_v5, 4  ;;  %v8820_v39 = vld [vmem:[%s7675_s18 + $0x98] sm:$0x1] }
  0xe4   : > { %6638 = vmatprep.subr.bf16.mxu1 %v7381_v30  ;;  %v5627_v44 = vrot.slane %v1329_v18, 9  ;;  %v1463_v1 = vrot.slane %v7451_v2, 5  ;;  %v4003_v5 = vrot.slane %v4002_v53, 4  ;;  %v4013_v18 = vrot.slane %v4012_v51, 4  ;;  %9623 = vst [vmem:[#allocation17_spill] sm:$0xff] %v8820_v39 }
  0xe5   : > { %6815 = vmatmul.mubr.bf16.gmra.mrb[20].mxu0 %v7378_v54  ;;  %v3970_v54 = vsel %vm7707_vm2, %v3965_v62, %v8621_v19  ;;  %v4029_v19 = vshll.u32 %v8651_v43, 16  ;;  %v7384_v62 = vld [vmem:[%s7675_s18 + $0xc0] sm:$0xff]   ;;  %v4017_v10 = vrot.slane %v4015_v22, 5  ;;  %v8687_v43 = vsel %vm7953_vm5, %v1455_v52, %v1456_v3 }
  0xe6   : > { %6607 = vmatmul.mubr.bf16.gmra.mrb[4].mxu1 %v9608_v25  ;;  %6818 = vmatprep.mubr.bf16.mxu0 %v7380_v8  ;;  %v4023_v8 = vshll.u32 %v5992_v28, 16  ;;  %v3989_v25 = vrot.slane %v3988_v58, 4  ;;  %v1467_v28 = vrot.slane %v7452_v41, 5  ;;  %v8683_v55 = vcombine.low %v3960_v6, %v3970_v54  ;;  %v7390_v41 = vld [vmem:[%s9576_s2 + $0xe8] sm:$0xff]  }
  0xe7   : > { %6610 = vmatprep.mubr.bf16.mxu1 %v9609_v46  ;;  %6639 = vmatpush3.bf16.msra.mxu1 %v7381_v30  ;;  %v1330_v30 = vld [vmem:[%s7675_s18 + $0xa8] sm:$0xe]  ;;  %v1462_v46 = vrot.slane %v1460_v12, 4  ;;  %v4022_v0 = vrot.slane %v4020_v35, 4  ;;  %v8689_v58 = vrot.slane %v4029_v19, 5  ;;  %v4035_v22 = vrot.slane %v4033_v42, 4 }
  0xe8   : > { %6640 = vmatprep.subr.bf16.mxu1 %v7385_v13  ;;  %v4025_v2 = vrot.slane %v4023_v8, 5  ;;  %v3984_v3 = vsel %vm7707_vm2, %v3979_v61, %v8627_v38  ;;  %v8699_v6 = vsel %vm7953_vm5, %v5627_v44, %v1460_v12  ;;  %v4044_v54 = vshrl.u32 %v5995_v17, 16  ;;  %v7453_v38 = vld [vmem:[%s7675_s18 + $0xb0] sm:$0x1]  ;;  %v1331_v19 = vld [vmem:[%s7675_s18 + $0xb4] sm:$0xe] }
  0xe9   : > { %v4047_v52 = vshll.u32 %v5995_v17, 16  ;;  %v3994_v53 = vsel %vm7707_vm2, %v3989_v25, %v3993_v36  ;;  %v8708_v51 = vsel %vm7953_vm5, %v1462_v46, %v1463_v1  ;;  %v5628_v35 = vrot.slane %v1330_v30, 9  ;;  %v8730_v30 = vld [vmem:[%s7675_s18 + $0x74] sm:$0x1]  ;;  %v7454_v25 = vld [vmem:[%s7675_s18 + $0xb8] sm:$0xf] }
  0xea   : > { %v1470_v8 = vrot.slane %v7453_v38, 5  ;;  %v9612_v12 = vcombine.low %v8402_v49, %v8416_v4  ;;  %v4008_v42 = vsel %vm7707_vm2, %v4003_v5, %v8629_v34  ;;  %v4018_v61 = vsel %vm7707_vm2, %v4013_v18, %v4017_v10  ;;  %v7386_v4 = vld [vmem:[%s7675_s18 + $0xcc] sm:$0xff]   ;;  %9614 = vst [vmem:[#allocation10_spill] sm:$0xff] %v8730_v30  ;;  %v6001_v38 = vld [vmem:[%s7675_s18 + $0x84] sm:$0xf] }
  0xeb   : > { %6641 = vmatpush3.bf16.msra.mxu1 %v7385_v13  ;;  %v8702_v13 = vld [vmem:[%s7675_s18 + $0x70] sm:$0xf]  ;;  %v1469_v36 = vrot.slane %v1467_v28, 4  ;;  %v4039_v44 = vshll.u32 %v8681_v47, 16  ;;  %v9613_v49 = vcombine.low %v8438_v26, %v8442_v56  ;;  %v4036_v1 = vor.u32 %v4035_v22, %v8689_v58  ;;  %v8747_v22 = vld [vmem:[%s7675_s18 + $0x7c] sm:$0xf] }
  0xec   : > { %6642 = vmatprep.subr.bf16.mxu1 %v7388_v24  ;;  %9611 = vst [vmem:[#allocation9_spill] sm:$0xff] %v8702_v13  ;;  %v4053_v34 = vshll.u32 %v8702_v13, 16  ;;  %v4057_v10 = vshrl.u32 %v8702_v13, 16  ;;  %v5629_v17 = vrot.slane %v1331_v19, 9  ;;  %v1474_v46 = vrot.slane %v7454_v25, 5  ;;  %9615 = vst [vmem:[#allocation11_spill] sm:$0xff] %v8747_v22 }
  0xed   : > { %6819 = vmatmul.mubr.bf16.gmra.mrb[24].mxu0 %v7382_v23  ;;  %v7392_v23 = vld [vmem:[%s9576_s2 + $0xf0] sm:$0xff]   ;;  %v4046_v26 = vrot.slane %v4044_v54, 4  ;;  %v4049_v56 = vrot.slane %v4047_v52, 5  ;;  %v8738_v18 = vcombine.low %v3984_v3, %v3994_v53  ;;  %v8750_v19 = vcombine.low %v4008_v42, %v4018_v61  ;;  %v7455_v3 = vld [vmem:[%s7675_s18 + $0xbc] sm:$0x1] }
  0xee   : > { %6611 = vmatmul.mubr.bf16.gmra.mrb[8].mxu1 %v9612_v12  ;;  %6822 = vmatprep.mubr.bf16.mxu0 %v7384_v62  ;;  %v4026_v62 = vor.u32 %v4025_v2, %v4022_v0  ;;  %v8744_v2 = vsel %vm7953_vm5, %v5628_v35, %v1467_v28  ;;  %v8754_v54 = vsel %vm7953_vm5, %v1469_v36, %v1470_v8  ;;  %v8756_v52 = vrot.slane %v4039_v44, 5  ;;  %v7394_v12 = vld [vmem:[%s9576_s2 + $0xf8] sm:$0xff]   ;;  %v8763_v28 = vld [vmem:[%s7675_s18 + $0x88] sm:$0xf] }
  0xef   : > { %6614 = vmatprep.mubr.bf16.mxu1 %v9613_v49  ;;  %6643 = vmatpush3.bf16.msra.mxu1 %v7388_v24  ;;  %v5998_v24 = vld [vmem:[%s7675_s18 + $0x78] sm:$0xf]  ;;  %v1477_v53 = vrot.slane %v7455_v3, 5  ;;  %9616 = vst [vmem:[#allocation12_spill] sm:$0xff] %v8763_v28  ;;  %v8767_v42 = vrot.slane %v4036_v1, 4  ;;  %v8769_v61 = vrot.slane %v4053_v34, 5  ;;  %v8773_v36 = vsel %vm7953_vm5, %v5629_v17, %v1474_v46 }
  0xf0   : > { %6644 = vmatprep.subr.bf16.mxu1 %v7390_v41  ;;  %v8765_v35 = vrot.slane %v4026_v62, 4  ;;  %v4059_v8 = vrot.slane %v4057_v10, 4  ;;  %v1476_v44 = vrot.slane %v1474_v46, 4  ;;  %v4050_v49 = vor.u32 %v4049_v56, %v4046_v26  ;;  %v6004_v3 = vld [vmem:[%s7675_s18 + $0x90] sm:$0xf] }
  0xf1   : > { %v4063_v25 = vshll.u32 %v8730_v30, 16  ;;  %v4071_v0 = vshll.u32 %v5998_v24, 16  ;;  %v4077_v62 = vshll.u32 %v8747_v22, 16  ;;  %v4081_v1 = vshrl.u32 %v8747_v22, 16  ;;  %v8780_v34 = vld [vmem:[%s7675_s18 + $0x94] sm:$0xf] }
  0xf2   : > { %9617 = vst [vmem:[#allocation13_spill] sm:$0xff] %v8780_v34  ;;  %v9618_v10 = vcombine.low %v8482_v27, %v8486_v29  ;;  %v4092_v17 = vshrl.u32 %v6001_v38, 16  ;;  %v4095_v46 = vshll.u32 %v6001_v38, 16  ;;  %v4105_v26 = vshrl.u32 %v8763_v28, 16  ;;  %v6007_v38 = vld [vmem:[%s7675_s18 + $0x9c] sm:$0xf] }
  0xf3   : > { %6645 = vmatpush3.bf16.msra.mxu1 %v7390_v41  ;;  %v4068_v41 = vshrl.u32 %v5998_v24, 16  ;;  %v9619_v56 = vcombine.low %v8493_v45, %v8497_v14  ;;  %v4060_v29 = vor.u32 %v4059_v8, %v8769_v61  ;;  %v4119_v24 = vshll.u32 %v6004_v3, 16  ;;  %v8802_v45 = vld [vmem:[%s7675_s18 + $0x80] sm:$0x1] }
  0xf4   : > { %6646 = vmatprep.subr.bf16.mxu1 %v7392_v23  ;;  %v8799_v5 = vrot.slane %v4063_v25, 5  ;;  %9620 = vst [vmem:[#allocation14_spill] sm:$0xff] %v8802_v45  ;;  %v4125_v14 = vshll.u32 %v8780_v34, 16  ;;  %v4073_v27 = vrot.slane %v4071_v0, 5  ;;  %v4083_v8 = vrot.slane %v4081_v1, 4 }
  0xf5   : > { %6823 = vmatmul.mubr.bf16.gmra.mrb[28].mxu0 %v7386_v4  ;;  %v4101_v4 = vshll.u32 %v8763_v28, 16  ;;  %v8806_v28 = vrot.slane %v4077_v62, 5  ;;  %v8812_v22 = vld [vmem:[%s7675_s18 + $0xa0] sm:$0xf]  ;;  %v4094_v25 = vrot.slane %v4092_v17, 4  ;;  %v4097_v30 = vrot.slane %v4095_v46, 5 }
  0xf6   : > { %6615 = vmatmul.mubr.bf16.gmra.mrb[12].mxu1 %v9618_v10  ;;  %6842 = vmatprep.mubr.bf16.mxu0 %v8551_v59  ;;  %v4116_v59 = vshrl.u32 %v6004_v3, 16  ;;  %v8797_v10 = vrot.slane %v4050_v49, 4  ;;  %v8809_v3 = vld [vmem:[%s7675_s18 + $0x8c] sm:$0x1]  ;;  %9622 = vst [vmem:[#allocation16_spill] sm:$0xff] %v8812_v22  ;;  %v4107_v47 = vrot.slane %v4105_v26, 4  ;;  %v8829_v62 = vsel %vm7953_vm5, %v1476_v44, %v1477_v53 }
  0xf7   : > { %6618 = vmatprep.mubr.bf16.mxu1 %v9619_v56  ;;  %6647 = vmatpush3.bf16.msra.mxu1 %v7392_v23  ;;  %v4129_v23 = vshrl.u32 %v8780_v34, 16  ;;  %v4070_v56 = vrot.slane %v4068_v41, 4  ;;  %9621 = vst [vmem:[#allocation15_spill] sm:$0xff] %v8809_v3  ;;  %v7391_v49 = vld [vmem:[%s9576_s2 + $0x208] sm:$0xff]   ;;  %v8817_v13 = vrot.slane %v4101_v4, 5  ;;  %v4121_v34 = vrot.slane %v4119_v24, 5 }
  0xf8   : > { %6648 = vmatprep.subr.bf16.mxu1 %v7394_v12  ;;  %v6010_v41 = vld [vmem:[%s7675_s18 + $0xa8] sm:$0xf]  ;;  %v4118_v1 = vrot.slane %v4116_v59, 4  ;;  %v8834_v17 = vld [vmem:[%s9576_s2 + $0x100] sm:$0xff]   ;;  %v8837_v46 = vrot.slane %v4125_v14, 5  ;;  %v4140_v26 = vshrl.u32 %v6007_v38, 16  ;;  %v9625_v24 = vcombine.low %v8501_v16, %v8511_v15 }
  0xf9   : > { %9624 = vst [vmem:[#allocation18_spill] sm:$0xff] %v8834_v17  ;;  %v4131_v4 = vrot.slane %v4129_v23, 4  ;;  %v4143_v0 = vshll.u32 %v6007_v38, 16  ;;  %v8840_v53 = vrot.slane %v4060_v29, 4  ;;  %v4149_v44 = vshll.u32 %v8812_v22, 16  ;;  %v7393_v16 = vld [vmem:[%s9576_s2 + $0x210] sm:$0xff]  }
  0xfa   : > { %v4153_v59 = vshrl.u32 %v8812_v22, 16  ;;  %v4074_v14 = vor.u32 %v4073_v27, %v4070_v56  ;;  %v4084_v38 = vor.u32 %v4083_v8, %v8806_v28  ;;  %v4098_v23 = vor.u32 %v4097_v30, %v4094_v25  ;;  %v8852_v29 = vld [vmem:[%s7675_s18 + $0xac] sm:$0xf]  ;;  %v8865_v25 = vld [vmem:[%s7675_s18 + $0xa4] sm:$0x1] }
  0xfb   : > { %6649 = vmatpush3.bf16.msra.mxu1 %v7394_v12  ;;  %v4087_v12 = vshll.u32 %v8802_v45, 16  ;;  %9626 = vst [vmem:[#allocation19_spill] sm:$0xff] %v8852_v29  ;;  %v4108_v15 = vor.u32 %v4107_v47, %v8817_v13  ;;  %v4164_v27 = vshrl.u32 %v6010_v41, 16  ;;  %v4167_v30 = vshll.u32 %v6010_v41, 16 }
  0xfc   : > { %6981 = vmatprep.subr.bf16.mxu1 %v8834_v17  ;;  %v9627_v17 = vcombine.low %v8557_v20, %v8578_v7  ;;  %v4122_v56 = vor.u32 %v4121_v34, %v4118_v1  ;;  %v4132_v8 = vor.u32 %v4131_v4, %v8837_v46  ;;  %v4142_v20 = vrot.slane %v4140_v26, 4 }
  0xfd   : > { %6843 = vmatmul.mubr.bf16.vlgmr.msra.gmra.mrb[0].mxu0 %v8634_v50  ;;  %v4111_v50 = vshll.u32 %v8809_v3, 16  ;;  %v4145_v7 = vrot.slane %v4143_v0, 5  ;;  %v4177_v22 = vshrl.u32 %v8852_v29, 16  ;;  %v4075_v47 = vrot.slane %v4074_v14, 4  ;;  %v7395_v0 = vld [vmem:[%s9576_s2 + $0x218] sm:$0xff]  }
  0xfe   : > { %6619 = vmatmul.mubr.bf16.gmra.mrb[16].mxu1 %v9625_v24  ;;  %6875 = vmatpush3.bf16.msra.mxu0 %v8538_v21  ;;  %v4135_v21 = vshll.u32 %v8820_v39, 16  ;;  %v4173_v24 = vshll.u32 %v8852_v29, 16  ;;  %v4085_v39 = vrot.slane %v4084_v38, 4  ;;  %v4089_v3 = vrot.slane %v4087_v12, 5 }
  0xff   : > { %6622 = vmatprep.mubr.bf16.mxu1 %v9627_v17  ;;  %6846 = vmatprep.mubr.bf16.mxu0 %v8638_v48  ;;  %v8867_v17 = vrot.slane %v4149_v44, 5  ;;  %v4155_v48 = vrot.slane %v4153_v59, 4  ;;  %v4113_v41 = vrot.slane %v4111_v50, 5  ;;  %v4099_v34 = vrot.slane %v4098_v23, 4 }
 0x100   : > { %6876 = vmatprep.subr.bf16.mxu0 %v7391_v49  ;;  %v4109_v1 = vrot.slane %v4108_v15, 4  ;;  %v4166_v4 = vrot.slane %v4164_v27, 4  ;;  %v4169_v45 = vrot.slane %v4167_v30, 5  ;;  %v4123_v26 = vrot.slane %v4122_v56, 4  ;;  %v8933_v27 = vld [vmem:[%s7675_s18 + $0xbc] sm:$0x1] }
 0x101   : > { %v4137_v44 = vrot.slane %v4135_v21, 5  ;;  %v4146_v59 = vor.u32 %v4145_v7, %v4142_v20  ;;  %v4159_v29 = vshll.u32 %v8865_v25, 16  ;;  %v4156_v12 = vor.u32 %v4155_v48, %v8867_v17  ;;  %v8900_v21 = vld [vmem:[%s7675_s18 + $0xb0] sm:$0x1] }
 0x102   : > { %6877 = vmatpush3.bf16.msra.mxu0 %v7391_v49  ;;  %v4133_v49 = vrot.slane %v4132_v8, 4  ;;  %v8877_v14 = vrot.slane %v4173_v24, 5  ;;  %v4179_v38 = vrot.slane %v4177_v22, 4  ;;  %v9628_v23 = vor.u32 %v8285_v57, %v8283_v11 }
 0x103   : > { %6878 = vmatprep.subr.bf16.mxu0 %v7393_v16  ;;  %v9629_v15 = vcombine.low %v8590_v40, %v8615_v60  ;;  %v4066_v22 = vsel %vm7707_vm2, %v8840_v53, %v8799_v5  ;;  %v4080_v57 = vsel %vm7707_vm2, %v4075_v47, %v8806_v28  ;;  %v9630_v40 = vcombine.low %v8645_v31, %v8687_v43  ;;  %v7398_v31 = vld [vmem:[%s9576_s2 + $0x220] sm:$0xff]  }
 0x104   : > { %v8882_v50 = vrot.slane %v9628_v23, 4  ;;  %v4090_v60 = vsel %vm7707_vm2, %v4085_v39, %v4089_v3  ;;  %v4170_v5 = vor.u32 %v4169_v45, %v4166_v4  ;;  %v4114_v28 = vsel %vm7707_vm2, %v4109_v1, %v4113_v41  ;;  %v6066_v41 = vld [vmem:[%s7675_s18 + $0x48] sm:$0xe] }
 0x105   : > { %6847 = vmatmul.mubr.bf16.gmra.mrb[4].mxu0 %v8683_v55  ;;  %v4056_v55 = vsel %vm7707_vm2, %v8797_v10, %v8769_v61  ;;  %v6013_v61 = vld [vmem:[%s7675_s18 + $0xb4] sm:$0xf]  ;;  %v8912_v10 = vld [vmem:[%s7675_s18 + $0xb8] sm:$0xf]  ;;  %v4128_v39 = vsel %vm7707_vm2, %v4123_v26, %v8837_v46  ;;  %v8922_v43 = vrot.slane %v4146_v59, 4  ;;  %v8924_v3 = vrot.slane %v4159_v29, 5 }
 0x106   : > { %6623 = vmatmul.mubr.bf16.gmra.mrb[20].mxu1 %v9629_v15  ;;  %6850 = vmatprep.mubr.bf16.mxu0 %v8738_v18  ;;  %v4104_v18 = vsel %vm7707_vm2, %v4099_v34, %v8817_v13  ;;  %v4138_v13 = vsel %vm7707_vm2, %v4133_v49, %v4137_v44  ;;  %v8928_v45 = vrot.slane %v4156_v12, 4  ;;  %v4180_v53 = vor.u32 %v4179_v38, %v8877_v14  ;;  %v6067_v26 = vld [vmem:[%s7675_s18 + $0x54] sm:$0xe] }
 0x107   : > { %6626 = vmatprep.mubr.bf16.mxu1 %v9630_v40  ;;  %6879 = vmatpush3.bf16.msra.mxu0 %v7393_v16  ;;  %v4183_v16 = vshll.u32 %v8900_v21, 16  ;;  %v9631_v46 = vsel %vm7707_vm2, %v8767_v42, %v8756_v52  ;;  %v9632_v29 = vsel %vm7707_vm2, %v8765_v35, %v8689_v58  ;;  %v4188_v56 = vshrl.u32 %v6013_v61, 16 }
 0x108   : > { %6880 = vmatprep.subr.bf16.mxu0 %v7395_v0  ;;  %v6044_v30 = vcombine.low %v9632_v29, %v9631_v46  ;;  %v4191_v8 = vshll.u32 %v6013_v61, 16  ;;  %v4197_v20 = vshll.u32 %v8912_v10, 16  ;;  %v5660_v7 = vcombine.low %v8744_v2, %v8754_v54  ;;  %v7401_v2 = vld [vmem:[%s9576_s2 + $0x228] sm:$0xff]   ;;  %v6016_v54 = vld [vmem:[%s7675_s18 + $0xc0] sm:$0xf] }
 0x109   : > { %v5661_v48 = vcombine.low %v8773_v36, %v8829_v62  ;;  %v6045_v24 = vcombine.low %v4056_v55, %v4066_v22  ;;  %v8950_v52 = vrot.slane %v4170_v5, 4  ;;  %v6046_v42 = vcombine.low %v4080_v57, %v4090_v60  ;;  %v9636_v29 = vld [vmem:[#allocation8_spill] sm:$0xff] }
 0x10a   : > { %v8952_v58 = vcombine.low %v4104_v18, %v4114_v28  ;;  %v8954_v35 = vcombine.low %v4128_v39, %v4138_v13  ;;  %v4152_v47 = vsel %vm7707_vm2, %v8922_v43, %v8867_v17  ;;  %v4162_v34 = vsel %vm7707_vm2, %v8928_v45, %v8924_v3  ;;  %v6069_v28 = vld [vmem:[%s7675_s18 + $0x6c] sm:$0xe] }
 0x10b   : > { %6881 = vmatpush3.bf16.msra.mxu0 %v7395_v0  ;;  %v8970_v1 = vrot.slane %v4180_v53, 4  ;;  %v8972_v4 = vrot.slane %v4183_v16, 5  ;;  %v4201_v0 = vshrl.u32 %v8912_v10, 16  ;;  %v9633_v44 = vcombine.low %v8699_v6, %v8708_v51  ;;  %v7404_v6 = vld [vmem:[%s9576_s2 + $0x230] sm:$0xff]   ;;  %v8994_v51 = vld [vmem:[%s7675_s18 + $0xc4] sm:$0xf] }
 0x10c   : > { %6882 = vmatprep.subr.bf16.mxu0 %v7398_v31  ;;  %v8979_v59 = vrot.slane %v4188_v56, 4  ;;  %v8983_v49 = vrot.slane %v4197_v20, 5  ;;  %v4207_v12 = vshll.u32 %v8933_v27, 16  ;;  %v4176_v38 = vsel %vm7707_vm2, %v8950_v52, %v8877_v14  ;;  %v6068_v14 = vld [vmem:[%s7675_s18 + $0x60] sm:$0xe]  ;;  %v9634_v39 = vld [vmem:[#allocation6_spill] sm:$0xff] }
 0x10d   : > { %6851 = vmatmul.mubr.bf16.gmra.mrb[8].mxu0 %v8750_v19  ;;  %v8981_v19 = vrot.slane %v4191_v8, 5  ;;  %v4212_v23 = vshrl.u32 %v6016_v54, 16  ;;  %v6082_v15 = vrot.slane %v6066_v41, 9  ;;  %v4675_v55 = vrot.slane %v8570_v32, 5  ;;  %v7396_v13 = vld [vmem:[%s7675_s18 + $0xc] sm:$0xff]   ;;  %v7407_v56 = vld [vmem:[%s9576_s2 + $0x238] sm:$0xff]  }
 0x10e   : > { %6627 = vmatmul.mubr.bf16.gmra.mrb[24].mxu1 %v9633_v44  ;;  %6854 = vmatprep.mubr.bf16.mxu0 %v6044_v30  ;;  %v4215_v22 = vshll.u32 %v6016_v54, 16  ;;  %v4678_v57 = vrot.slane %v8618_v63, 5  ;;  %v6083_v40 = vrot.slane %v6067_v26, 9  ;;  %v4682_v60 = vrot.slane %v8582_v33, 5  ;;  %v9635_v16 = vld [vmem:[#allocation7_spill] sm:$0xff]  ;;  %v9637_v52 = vld [vmem:[#allocation9_spill] sm:$0xff] }
 0x10f   : > { %6630 = vmatprep.mubr.bf16.mxu1 %v5660_v7  ;;  %6883 = vmatpush3.bf16.msra.mxu0 %v7398_v31  ;;  %v4186_v18 = vsel %vm7707_vm2, %v8970_v1, %v8972_v4  ;;  %v9004_v5 = vrot.slane %v4201_v0, 4  ;;  %v9008_v61 = vsel %vm7953_vm5, %v6082_v15, %v4675_v55  ;;  %v4677_v32 = vrot.slane %v4675_v55, 4  ;;  %v9638_v4 = vld [vmem:[#allocation10_spill] sm:$0xff]  ;;  %v9045_v26 = vld [vmem:[%s7675_s18 + $0xc8] sm:$0x1] }
 0x110   : > { %6884 = vmatprep.subr.bf16.mxu0 %v7401_v2  ;;  %v4221_v31 = vshll.u32 %v8994_v51, 16  ;;  %v9014_v63 = vsel %vm7953_vm5, %v6083_v40, %v4682_v60  ;;  %v4684_v33 = vrot.slane %v4682_v60, 4  ;;  %v4685_v3 = vrot.slane %v9634_v39, 5  ;;  %v7397_v40 = vld [vmem:[%s7675_s18 + $0x18] sm:$0xff]   ;;  %v7399_v39 = vld [vmem:[%s7675_s18 + $0x24] sm:$0xff]  }
 0x111   : > { %v9020_v45 = vsel %vm7953_vm5, %v4677_v32, %v4678_v57  ;;  %v6084_v53 = vrot.slane %v6068_v14, 9  ;;  %v4689_v46 = vrot.slane %v9635_v16, 5  ;;  %v4692_v30 = vrot.slane %v9636_v29, 5 }
 0x112   : > { %v6114_v8 = vcombine.low %v9008_v61, %v9020_v45  ;;  %v9031_v20 = vsel %vm7953_vm5, %v4684_v33, %v4685_v3  ;;  %v6085_v7 = vrot.slane %v6069_v28, 9  ;;  %v4699_v0 = vrot.slane %v9638_v4, 5  ;;  %v9640_v28 = vld [vmem:[#allocation14_spill] sm:$0xff] }
 0x113   : > { %6885 = vmatpush3.bf16.msra.mxu0 %v7401_v2  ;;  %v4696_v2 = vrot.slane %v9637_v52, 5  ;;  %v6115_v54 = vcombine.low %v9014_v63, %v9031_v20  ;;  %v9038_v41 = vsel %vm7953_vm5, %v6084_v53, %v4689_v46  ;;  %v4691_v1 = vrot.slane %v4689_v46, 4  ;;  %v9641_v53 = vld [vmem:[#allocation5_spill] sm:$0xff]  ;;  %v5775_v61 = vld [vmem:[%s7675_s18 + $0x90] sm:$0xf] }
 0x114   : > { %6886 = vmatprep.subr.bf16.mxu0 %v7404_v6  ;;  %v9047_v44 = vrot.slane %v4212_v23, 4  ;;  %v9060_v36 = vcombine.low %v4152_v47, %v4162_v34  ;;  %v4194_v62 = vor.u32 %v8981_v19, %v8979_v59  ;;  %v6070_v23 = vld [vmem:[%s7675_s18 + $0x78] sm:$0xe]  ;;  %v9072_v57 = vrot.slane %v4207_v12, 5  ;;  %v6019_v12 = vld [vmem:[%s7675_s18 + $0xcc] sm:$0xf] }
 0x115   : > { %6855 = vmatmul.mubr.bf16.gmra.mrb[12].mxu0 %v6045_v24  ;;  %v9049_v24 = vrot.slane %v4215_v22, 5  ;;  %v9053_v15 = vsel %vm7953_vm5, %v6085_v7, %v4696_v2  ;;  %v4698_v55 = vrot.slane %v4696_v2, 4  ;;  %v9070_v22 = vcombine.low %v4176_v38, %v4186_v18  ;;  %v5769_v47 = vld [vmem:[%s7675_s18 + $0x78] sm:$0xf]  ;;  %v7413_v45 = vld [vmem:[%s7675_s18 + $0xa8] sm:$0xff]  }
 0x116   : > { %6631 = vmatmul.mubr.bf16.gmra.mrb[28].mxu1 %v5661_v48  ;;  %6858 = vmatprep.mubr.bf16.mxu0 %v6046_v42  ;;  %v4225_v48 = vshrl.u32 %v8994_v51, 16  ;;  %v9067_v42 = vsel %vm7953_vm5, %v4691_v1, %v4692_v30  ;;  %v4204_v34 = vor.u32 %v9004_v5, %v8983_v49  ;;  %v9083_v59 = vrot.slane %v4221_v31, 5  ;;  %v9639_v18 = vld [vmem:[#allocation11_spill] sm:$0xff]  ;;  %v9642_v1 = vld [vmem:[#allocation12_spill] sm:$0xff]  ;;  %v7477_v63 = vld [vmem:[%s7675_s18 + $0x8c] sm:$0x1] }
 0x117   : > { %6650 = vmatprep.mubr.bf16.mxu1 %v7396_v13  ;;  %6887 = vmatpush3.bf16.msra.mxu0 %v7404_v6  ;;  %v6116_v17 = vcombine.low %v9038_v41, %v9067_v42  ;;  %v9078_v43 = vsel %vm7953_vm5, %v4698_v55, %v4699_v0  ;;  %v4231_v19 = vshll.u32 %v9045_v26, 16  ;;  %v6071_v6 = vld [vmem:[%s7675_s18 + $0x84] sm:$0xe]  ;;  %v4218_v60 = vor.u32 %v9049_v24, %v9047_v44  ;;  %v9097_v31 = vld [vmem:[%s7675_s18 + $0xd0] sm:$0xf] }
 0x118   : > { %6888 = vmatprep.subr.bf16.mxu0 %v7407_v56  ;;  %v6117_v38 = vcombine.low %v9053_v15, %v9078_v43  ;;  %v6086_v14 = vrot.slane %v6070_v23, 9  ;;  %v4703_v32 = vrot.slane %v9639_v18, 5  ;;  %v4706_v33 = vrot.slane %v9640_v28, 5  ;;  %v9643_v24 = vld [vmem:[#allocation15_spill] sm:$0xff] }
 0x119   : > { %v4227_v5 = vrot.slane %v4225_v48, 4  ;;  %v2453_v3 = vshrl.u32 %v5769_v47, 16  ;;  %v2456_v13 = vshll.u32 %v5769_v47, 16  ;;  %v2475_v16 = vsel %vm7707_vm2, %v8882_v50, %v9641_v53 }
 0x11a   : > { %v4236_v46 = vshrl.u32 %v6019_v12, 16  ;;  %v9105_v29 = vsel %vm7953_vm5, %v6086_v14, %v4703_v32  ;;  %v4705_v30 = vrot.slane %v4703_v32, 4  ;;  %v6087_v7 = vrot.slane %v6071_v6, 9  ;;  %v7457_v6 = vld [vmem:[%s9576_s2 + $0x108] sm:$0xff]  }
 0x11b   : > { %6889 = vmatpush3.bf16.msra.mxu0 %v7407_v56  ;;  %v4239_v52 = vshll.u32 %v6019_v12, 16  ;;  %v2455_v2 = vrot.slane %v2453_v3, 4  ;;  %v2458_v56 = vrot.slane %v2456_v13, 5  ;;  %v4710_v4 = vrot.slane %v9642_v1, 5  ;;  %v6072_v12 = vld [vmem:[%s7675_s18 + $0x90] sm:$0xe] }
 0x11c   : > { %v4245_v50 = vshll.u32 %v9097_v31, 16  ;;  %v4249_v0 = vshrl.u32 %v9097_v31, 16  ;;  %v9114_v44 = vsel %vm7953_vm5, %v4705_v30, %v4706_v33  ;;  %v4713_v55 = vrot.slane %v9643_v24, 5  ;;  %v7400_v3 = vld [vmem:[%s7675_s18 + $0x30] sm:$0xff]  }
 0x11d   : > { %6859 = vmatmul.mubr.bf16.gmra.mrb[16].mxu0 %v8952_v58  ;;  %v9644_v58 = vld [vmem:[#allocation18_spill] sm:$0xff]  ;;  %v4228_v48 = vor.u32 %v4227_v5, %v9083_v59  ;;  %v2459_v23 = vor.u32 %v2458_v56, %v2455_v2  ;;  %v4712_v47 = vrot.slane %v4710_v4, 4  ;;  %v4205_v14 = vrot.slane %v4204_v34, 4  ;;  %v9135_v13 = vld [vmem:[%s7675_s18 + $0xd4] sm:$0x1]  ;;  %v9645_v2 = vld [vmem:[#allocation13_spill] sm:$0xff] }
 0x11e   : > { %6651 = vmatmul.mubr.bf16.vlgmr.msra.gmra.mrb[0].mxu1 %v7397_v40  ;;  %6862 = vmatprep.mubr.bf16.mxu0 %v8954_v35  ;;  %v6118_v35 = vcombine.low %v9105_v29, %v9114_v44  ;;  %v4195_v40 = vrot.slane %v4194_v62, 4  ;;  %v4233_v18 = vrot.slane %v4231_v19, 5  ;;  %v9127_v32 = vsel %vm7953_vm5, %v6087_v7, %v4710_v4  ;;  %v7402_v19 = vld [vmem:[%s7675_s18 + $0x3c] sm:$0xff]   ;;  %v7458_v1 = vld [vmem:[%s9576_s2 + $0x110] sm:$0xff]  }
 0x11f   : > { %6989 = vmatpush3.bf16.msra.mxu1 %v9644_v58  ;;  %6654 = vmatprep.mubr.bf16.mxu1 %v7399_v39  ;;  %v4238_v28 = vrot.slane %v4236_v46, 4  ;;  %v4241_v33 = vrot.slane %v4239_v52, 5  ;;  %v2460_v39 = vrot.slane %v2459_v23, 4  ;;  %v9131_v5 = vsel %vm7953_vm5, %v4712_v47, %v4713_v55  ;;  %v7459_v47 = vld [vmem:[%s7675_s18 + $0x1c] sm:$0xf] }
 0x120   : > { %6982 = vmatprep.subr.bf16.mxu1 %v7457_v6  ;;  %v9137_v53 = vrot.slane %v4245_v50, 5  ;;  %v4251_v30 = vrot.slane %v4249_v0, 4  ;;  %v6119_v62 = vcombine.low %v9127_v32, %v9131_v5  ;;  %v6088_v34 = vrot.slane %v6072_v12, 9 }
 0x121   : > { %v4219_v7 = vrot.slane %v4218_v60, 4  ;;  %v4229_v46 = vrot.slane %v4228_v48, 4  ;;  %v2465_v52 = vsel %vm7707_vm2, %v2460_v39, %v8283_v11  ;;  %v4717_v56 = vrot.slane %v9645_v2, 5  ;;  %v9646_v11 = vld [vmem:[#allocation17_spill] sm:$0xff]  ;;  %v7461_v2 = vld [vmem:[%s7675_s18 + $0x20] sm:$0x1] }
 0x122   : > { %v4200_v4 = vsel %vm7707_vm2, %v4195_v40, %v8983_v49  ;;  %v4210_v60 = vsel %vm7707_vm2, %v4205_v14, %v9072_v57  ;;  %v9155_v50 = vcombine.low %v2465_v52, %v2475_v16  ;;  %v4720_v0 = vrot.slane %v9646_v11, 5  ;;  %v6062_v57 = vld [vmem:[%s7675_s18 + $0x18] sm:$0xe]  ;;  %v6073_v16 = vld [vmem:[%s7675_s18 + $0x9c] sm:$0xe]  ;;  %v7403_v39 = vld [vmem:[%s7675_s18 + $0x48] sm:$0xff]  }
 0x123   : > { %6990 = vmatpush3.bf16.msra.mxu1 %v7457_v6  ;;  %v4242_v24 = vor.u32 %v4241_v33, %v4238_v28  ;;  %v4255_v55 = vshll.u32 %v9135_v13, 16  ;;  %v9162_v58 = vsel %vm7953_vm5, %v6088_v34, %v4717_v56  ;;  %v4719_v48 = vrot.slane %v4717_v56, 4  ;;  %v7460_v40 = vld [vmem:[%s9576_s2 + $0x118] sm:$0xff]   ;;  %v6074_v11 = vld [vmem:[%s7675_s18 + $0xa8] sm:$0xe] }
 0x124   : > { %6983 = vmatprep.subr.bf16.mxu1 %v7458_v1  ;;  %v4252_v49 = vor.u32 %v4251_v30, %v9137_v53  ;;  %v4234_v23 = vsel %vm7707_vm2, %v4229_v46, %v4233_v18  ;;  %v4647_v12 = vrot.slane %v7459_v47, 5  ;;  %v6051_v6 = vcombine.low %v4200_v4, %v4210_v60  ;;  %v9647_v34 = vld [vmem:[#allocation16_spill] sm:$0xff] }
 0x125   : > { %6863 = vmatmul.mubr.bf16.gmra.mrb[20].mxu0 %v9060_v36  ;;  %v4224_v36 = vsel %vm7707_vm2, %v4219_v7, %v9083_v59  ;;  %v4243_v14 = vrot.slane %v4242_v24, 4  ;;  %v4257_v28 = vrot.slane %v4255_v55, 5  ;;  %v6078_v18 = vrot.slane %v6062_v57, 9  ;;  %v7405_v46 = vld [vmem:[%s7675_s18 + $0x54] sm:$0xff]   ;;  %v6063_v55 = vld [vmem:[%s7675_s18 + $0x24] sm:$0xe] }
 0x126   : > { %6655 = vmatmul.mubr.bf16.gmra.mrb[4].mxu1 %v7400_v3  ;;  %6866 = vmatprep.mubr.bf16.mxu0 %v9070_v22  ;;  %v9176_v22 = vsel %vm7953_vm5, %v4719_v48, %v4720_v0  ;;  %v6089_v33 = vrot.slane %v6073_v16, 9  ;;  %v6052_v3 = vcombine.low %v4224_v36, %v4234_v23  ;;  %v4253_v30 = vrot.slane %v4252_v49, 4  ;;  %v7463_v48 = vld [vmem:[%s7675_s18 + $0x28] sm:$0xf]  ;;  %v7464_v36 = vld [vmem:[%s7675_s18 + $0x34] sm:$0xf] }
 0x127   : > { %6658 = vmatprep.mubr.bf16.mxu1 %v7402_v19  ;;  %6991 = vmatpush3.bf16.msra.mxu1 %v7458_v1  ;;  %v6120_v59 = vcombine.low %v9162_v58, %v9176_v22  ;;  %v4724_v19 = vrot.slane %v9647_v34, 5  ;;  %v4727_v7 = vrot.slane %v8865_v25, 5  ;;  %v4649_v52 = vrot.slane %v4647_v12, 4  ;;  %v7462_v1 = vld [vmem:[%s9576_s2 + $0x120] sm:$0xff]  }
 0x128   : > { %6984 = vmatprep.subr.bf16.mxu1 %v7460_v40  ;;  %v4650_v56 = vrot.slane %v7461_v2, 5  ;;  %v4648_v25 = vsel %vm7953_vm5, %v6078_v18, %v4647_v12  ;;  %v4248_v0 = vsel %vm7707_vm2, %v4243_v14, %v9137_v53  ;;  %v4258_v24 = vsel %vm7707_vm2, %v4253_v30, %v4257_v28  ;;  %v6064_v12 = vld [vmem:[%s7675_s18 + $0x30] sm:$0xe]  ;;  %v7406_v30 = vld [vmem:[%s7675_s18 + $0x60] sm:$0xff]  }
 0x129   : > { %v9193_v4 = vsel %vm7953_vm5, %v6089_v33, %v4724_v19  ;;  %v4726_v60 = vrot.slane %v4724_v19, 4  ;;  %v4654_v49 = vrot.slane %v7463_v48, 5  ;;  %v4661_v23 = vrot.slane %v7464_v36, 5  ;;  %v7466_v33 = vld [vmem:[%s7675_s18 + $0x2c] sm:$0x1] }
 0x12a   : > { %v4651_v16 = vsel %vm7953_vm5, %v4649_v52, %v4650_v56  ;;  %v6090_v47 = vrot.slane %v6074_v11, 9  ;;  %v6053_v28 = vcombine.low %v4248_v0, %v4258_v24  ;;  %v6079_v18 = vrot.slane %v6063_v55, 9  ;;  %v7408_v52 = vld [vmem:[%s7675_s18 + $0x6c] sm:$0xff]   ;;  %v6075_v11 = vld [vmem:[%s7675_s18 + $0xb4] sm:$0xe] }
 0x12b   : > { %6992 = vmatpush3.bf16.msra.mxu1 %v7460_v40  ;;  %v9207_v57 = vsel %vm7953_vm5, %v4726_v60, %v4727_v7  ;;  %v9648_v40 = vld [vmem:[#allocation19_spill] sm:$0xff]  ;;  %v6110_v34 = vcombine.low %v4648_v25, %v4651_v16  ;;  %v4656_v19 = vrot.slane %v4654_v49, 4  ;;  %v6080_v2 = vrot.slane %v6064_v12, 9  ;;  %v6065_v0 = vld [vmem:[%s7675_s18 + $0x3c] sm:$0xe] }
 0x12c   : > { %6985 = vmatprep.subr.bf16.mxu1 %v7462_v1  ;;  %v6121_v53 = vcombine.low %v9193_v4, %v9207_v57  ;;  %v4731_v14 = vrot.slane %v9648_v40, 5  ;;  %v4663_v56 = vrot.slane %v4661_v23, 4  ;;  %v7468_v24 = vld [vmem:[%s7675_s18 + $0x40] sm:$0xf]  ;;  %v4655_v48 = vsel %vm7953_vm5, %v6079_v18, %v4654_v49  ;;  %v7470_v18 = vld [vmem:[%s7675_s18 + $0x44] sm:$0x1] }
 0x12d   : > { %6867 = vmatmul.mubr.bf16.gmra.mrb[24].mxu0 %v6051_v6  ;;  %v7465_v6 = vld [vmem:[%s9576_s2 + $0x128] sm:$0xff]   ;;  %v4668_v55 = vrot.slane %v7468_v24, 5  ;;  %v4738_v12 = vrot.slane %v8912_v10, 5  ;;  %v4662_v49 = vsel %vm7953_vm5, %v6080_v2, %v4661_v23  ;;  %v7471_v10 = vld [vmem:[%s9576_s2 + $0x138] sm:$0xff]   ;;  %v6076_v23 = vld [vmem:[%s7675_s18 + $0xc0] sm:$0xe] }
 0x12e   : > { %6659 = vmatmul.mubr.bf16.gmra.mrb[8].mxu1 %v7403_v39  ;;  %6870 = vmatprep.mubr.bf16.mxu0 %v6052_v3  ;;  %v4657_v39 = vrot.slane %v7466_v33, 5  ;;  %v4734_v3 = vrot.slane %v8900_v21, 5  ;;  %v9224_v7 = vsel %vm7953_vm5, %v6090_v47, %v4731_v14  ;;  %v7469_v21 = vld [vmem:[%s9576_s2 + $0x130] sm:$0xff]   ;;  %v6091_v47 = vrot.slane %v6075_v11, 9 }
 0x12f   : > { %6662 = vmatprep.mubr.bf16.mxu1 %v7405_v46  ;;  %6993 = vmatpush3.bf16.msra.mxu1 %v7462_v1  ;;  %v4733_v46 = vrot.slane %v4731_v14, 4  ;;  %v7467_v1 = vld [vmem:[%s7675_s18 + $0x38] sm:$0x1]  ;;  %v6081_v14 = vrot.slane %v6065_v0, 9  ;;  %v4671_v33 = vrot.slane %v7470_v18, 5  ;;  %v4745_v11 = vrot.slane %v8994_v51, 5 }
 0x130   : > { %6986 = vmatprep.subr.bf16.mxu1 %v7465_v6  ;;  %v4664_v60 = vrot.slane %v7467_v1, 5  ;;  %v4658_v36 = vsel %vm7953_vm5, %v4656_v19, %v4657_v39  ;;  %v4740_v39 = vrot.slane %v4738_v12, 4  ;;  %v5766_v19 = vld [vmem:[%s7675_s18 + $0x6c] sm:$0xf]  ;;  %v7411_v18 = vld [vmem:[%s7675_s18 + $0x90] sm:$0xff]   ;;  %v2496_v20 = vshll.u32 %v7477_v63, 16 }
 0x131   : > { %v9236_v25 = vsel %vm7953_vm5, %v4733_v46, %v4734_v3  ;;  %v6111_v3 = vcombine.low %v4655_v48, %v4658_v36  ;;  %v4669_v1 = vsel %vm7953_vm5, %v6081_v14, %v4668_v55  ;;  %v2429_v0 = vshrl.u32 %v5766_v19, 16  ;;  %v6077_v51 = vld [vmem:[%s7675_s18 + $0xcc] sm:$0xe] }
 0x132   : > { %v6122_v16 = vcombine.low %v9224_v7, %v9236_v25  ;;  %v4665_v40 = vsel %vm7953_vm5, %v4663_v56, %v4664_v60  ;;  %v6092_v56 = vrot.slane %v6076_v23, 9  ;;  %v2432_v24 = vshll.u32 %v5766_v19, 16 }
 0x133   : > { %6994 = vmatpush3.bf16.msra.mxu1 %v7465_v6  ;;  %v4741_v6 = vrot.slane %v8933_v27, 5  ;;  %v9256_v27 = vsel %vm7953_vm5, %v6091_v47, %v4738_v12  ;;  %v4748_v36 = vrot.slane %v9045_v26, 5  ;;  %v4747_v12 = vrot.slane %v4745_v11, 4 }
 0x134   : > { %6987 = vmatprep.subr.bf16.mxu1 %v7469_v21  ;;  %v2434_v26 = vrot.slane %v2432_v24, 5  ;;  %v4755_v23 = vrot.slane %v9135_v13, 5 }
 0x135   : > { %6871 = vmatmul.mubr.bf16.gmra.mrb[28].mxu0 %v6053_v28  ;;  %v4670_v28 = vrot.slane %v4668_v55, 4  ;;  %v9263_v46 = vsel %vm7953_vm5, %v4740_v39, %v4741_v6  ;;  %v9277_v55 = vsel %vm7953_vm5, %v6092_v56, %v4745_v11  ;;  %v4752_v39 = vrot.slane %v9097_v31, 5  ;;  %v7473_v56 = vld [vmem:[%s7675_s18 + $0x74] sm:$0x1] }
 0x136   : > { %6663 = vmatmul.mubr.bf16.gmra.mrb[12].mxu1 %v7406_v30  ;;  %6890 = vmatprep.mubr.bf16.mxu0 %v6110_v34  ;;  %v7409_v30 = vld [vmem:[%s7675_s18 + $0x78] sm:$0xff]   ;;  %v6112_v34 = vcombine.low %v4662_v49, %v4665_v40  ;;  %v6123_v2 = vcombine.low %v9256_v27, %v9263_v46  ;;  %v9282_v49 = vsel %vm7953_vm5, %v4747_v12, %v4748_v36  ;;  %v2431_v40 = vrot.slane %v2429_v0, 4  ;;  %v7474_v0 = vld [vmem:[%s7675_s18 + $0x88] sm:$0xf]  ;;  %v6204_v46 = vld [vmem:[%s9578_s4] sm:$0xff]  }
 0x137   : > { %6666 = vmatprep.mubr.bf16.mxu1 %v7408_v52  ;;  %6995 = vmatpush3.bf16.msra.mxu1 %v7469_v21  ;;  %v7410_v52 = vld [vmem:[%s7675_s18 + $0x84] sm:$0xff]   ;;  %v4672_v60 = vsel %vm7953_vm5, %v4670_v28, %v4671_v33  ;;  %v7472_v21 = vld [vmem:[%s7675_s18 + $0x70] sm:$0xf]  ;;  %v6124_v28 = vcombine.low %v9277_v55, %v9282_v49  ;;  %v4754_v19 = vrot.slane %v4752_v39, 4  ;;  %v2486_v24 = vshll.u32 %v7474_v0, 16  ;;  %v6252_v55 = vld [vmem:[%s9578_s4 + $0x18] sm:$0xff]  }
 0x138   : > { %6988 = vmatprep.subr.bf16.mxu1 %v7471_v10  ;;  %v2438_v48 = vshll.u32 %v7472_v21, 16  ;;  %v2442_v47 = vshrl.u32 %v7472_v21, 16  ;;  %v6113_v6 = vcombine.low %v4669_v1, %v4672_v60  ;;  %v2448_v1 = vshll.u32 %v7473_v56, 16  ;;  %v6253_v49 = vld [vmem:[%s9578_s4 + $0x20] sm:$0xff]  }
 0x139   : > { %v9304_v11 = vsel %vm7953_vm5, %v4754_v19, %v4755_v23  ;;  %v2490_v21 = vshrl.u32 %v7474_v0, 16  ;;  %v7476_v19 = vld [vmem:[%s7675_s18 + $0xa0] sm:$0xf]  ;;  %v7550_v27 = vmov 0.0|0.0  }
 0x13a   : > { %v9284_v14 = vrot.slane %v2438_v48, 5  ;;  %v2444_v33 = vrot.slane %v2442_v47, 4  ;;  %v2538_v56 = vshrl.u32 %v7476_v19, 16 }
 0x13b   : > { %6996 = vmatpush3.bf16.msra.mxu1 %v7471_v10  ;;  %v6093_v10 = vrot.slane %v6077_v51, 9 }
 0x13c   : > { %v2445_v31 = vor.u32 %v2444_v33, %v9284_v14  ;;  %v2504_v33 = vshll.u32 %v5775_v61, 16  ;;  %6957 = vmatprep.subr.bf16.mxu1 %v7550_v27 }
 0x13d   : > { %6891 = vmatmul.mubr.bf16.vlgmr.msra.gmra.mrb[0].mxu0 %v6111_v3  ;;  %v7412_v3 = vld [vmem:[%s7675_s18 + $0x9c] sm:$0xff]  }
 0x13e   : > { %6667 = vmatmul.mubr.bf16.gmra.mrb[16].mxu1 %v7409_v30  ;;  %6894 = vmatprep.mubr.bf16.mxu0 %v6112_v34  ;;  %v5772_v30 = vld [vmem:[%s7675_s18 + $0x84] sm:$0xf]  ;;  %v9295_v34 = vsel %vm7953_vm5, %v6093_v10, %v4752_v39  ;;  %v2446_v47 = vrot.slane %v2445_v31, 4  ;;  %v7475_v10 = vld [vmem:[%s7675_s18 + $0x94] sm:$0xf]  ;;  %v2506_v0 = vrot.slane %v2504_v33, 5 }
 0x13f   : > { %6670 = vmatprep.mubr.bf16.mxu1 %v7410_v52  ;;  %v2435_v52 = vor.u32 %v2434_v26, %v2431_v40  ;;  %v2477_v13 = vshrl.u32 %v5772_v30, 16  ;;  %v2480_v60 = vshll.u32 %v5772_v30, 16  ;;  %v6125_v48 = vcombine.low %v9295_v34, %v9304_v11  ;;  %v6255_v11 = vld [vmem:[%s9578_s4 + $0x30] sm:$0xff]  }
 0x140   : > { %v9313_v40 = vrot.slane %v2486_v24, 5  ;;  %v2492_v26 = vrot.slane %v2490_v21, 4  ;;  %v2510_v39 = vshll.u32 %v7475_v10, 16  ;;  %v2514_v23 = vshrl.u32 %v7475_v10, 16  ;;  %v7479_v10 = vld [vmem:[%s7675_s18 + $0xa4] sm:$0x1] }
 0x141   : > { %v2436_v36 = vrot.slane %v2435_v52, 4  ;;  %v2479_v12 = vrot.slane %v2477_v13, 4  ;;  %v2482_v51 = vrot.slane %v2480_v60, 5  ;;  %v2534_v52 = vshll.u32 %v7476_v19, 16  ;;  %v7480_v19 = vld [vmem:[%s7675_s18 + $0xac] sm:$0xf] }
 0x142   : > { %v2493_v13 = vor.u32 %v2492_v26, %v9313_v40  ;;  %v9330_v41 = vrot.slane %v2510_v39, 5  ;;  %v2516_v42 = vrot.slane %v2514_v23, 4  ;;  %v2540_v21 = vrot.slane %v2538_v56, 4  ;;  %v5784_v23 = vld [vmem:[%s7675_s18 + $0xb4] sm:$0xf] }
 0x143   : > { %v2544_v39 = vshll.u32 %v7479_v10, 16  ;;  %v2562_v15 = vshrl.u32 %v7480_v19, 16  ;;  %v2576_v63 = vshll.u32 %v5784_v23, 16  ;;  %v7552_v34 = vmov 0.0  }
 0x144   : > { %v2517_v26 = vor.u32 %v2516_v42, %v9330_v41 }
 0x145   : > { %6895 = vmatmul.mubr.bf16.gmra.mrb[4].mxu0 %v6113_v6  ;;  %v5778_v6 = vld [vmem:[%s7675_s18 + $0x9c] sm:$0xf] }
 0x146   : > { %6671 = vmatmul.mubr.bf16.gmra.mrb[20].mxu1 %v7411_v18  ;;  %6898 = vmatprep.mubr.bf16.mxu0 %v6114_v8  ;;  %v2450_v8 = vrot.slane %v2448_v1, 5  ;;  %v2501_v18 = vshrl.u32 %v5775_v61, 16  ;;  %v2528_v30 = vshll.u32 %v5778_v6, 16  ;;  %v2441_v1 = vsel %vm7707_vm2, %v2436_v36, %v9284_v14  ;;  %v7415_v61 = vld [vmem:[%s7675_s18 + $0xc0] sm:$0xff]  }
 0x147   : > { %6674 = vmatprep.mubr.bf16.mxu1 %v7412_v3  ;;  %v2525_v3 = vshrl.u32 %v5778_v6, 16  ;;  %v9332_v14 = vrot.slane %v2534_v52, 5  ;;  %v2558_v52 = vshll.u32 %v7480_v19, 16 }
 0x148   : > { %v2451_v31 = vsel %vm7707_vm2, %v2446_v47, %v2450_v8  ;;  %v2503_v60 = vrot.slane %v2501_v18, 4  ;;  %v2530_v24 = vrot.slane %v2528_v30, 5  ;;  %v2498_v8 = vrot.slane %v2496_v20, 5  ;;  %v7481_v20 = vld [vmem:[%s7675_s18 + $0xb8] sm:$0xf] }
 0x149   : > { %v2494_v47 = vrot.slane %v2493_v13, 4  ;;  %v2541_v33 = vor.u32 %v2540_v21, %v9332_v14  ;;  %v2582_v29 = vshll.u32 %v7481_v20, 16  ;;  %v2586_v44 = vshrl.u32 %v7481_v20, 16 }
 0x14b   : > { %v2542_v13 = vrot.slane %v2541_v33, 4 }
 0x14d   : > { %6899 = vmatmul.mubr.bf16.gmra.mrb[8].mxu0 %v6115_v54  ;;  %v2483_v54 = vor.u32 %v2482_v51, %v2479_v12  ;;  %v2507_v12 = vor.u32 %v2506_v0, %v2503_v60  ;;  %v7478_v51 = vld [vmem:[%s7675_s18 + $0x98] sm:$0x1]  ;;  %v2546_v60 = vrot.slane %v2544_v39, 5 }
 0x14e   : > { %6675 = vmatmul.mubr.bf16.gmra.mrb[24].mxu1 %v7413_v45  ;;  %6902 = vmatprep.mubr.bf16.mxu0 %v6116_v17  ;;  %v2527_v17 = vrot.slane %v2525_v3, 4  ;;  %v5814_v45 = vcombine.low %v2441_v1, %v2451_v31  ;;  %v2520_v6 = vshll.u32 %v7478_v51, 16  ;;  %v2573_v31 = vshrl.u32 %v5784_v23, 16 }
 0x14f   : > { %6678 = vmatprep.mubr.bf16.mxu1 %v7414_v9  ;;  %v2484_v36 = vrot.slane %v2483_v54, 4  ;;  %v5781_v9 = vld [vmem:[%s7675_s18 + $0xa8] sm:$0xf]  ;;  %v2508_v56 = vrot.slane %v2507_v12, 4  ;;  %v2547_v32 = vsel %vm7707_vm2, %v2542_v13, %v2546_v60 }
 0x150   : > { %v2531_v18 = vor.u32 %v2530_v24, %v2527_v17  ;;  %v2549_v3 = vshrl.u32 %v5781_v9, 16  ;;  %v2552_v30 = vshll.u32 %v5781_v9, 16  ;;  %v2522_v1 = vrot.slane %v2520_v6, 5 }
 0x151   : > { %v2489_v43 = vsel %vm7707_vm2, %v2484_v36, %v9313_v40  ;;  %v2560_v17 = vrot.slane %v2558_v52, 5  ;;  %v2564_v24 = vrot.slane %v2562_v15, 4  ;;  %v2575_v21 = vrot.slane %v2573_v31, 4  ;;  %v5787_v36 = vld [vmem:[%s7675_s18 + $0xc0] sm:$0xf] }
 0x152   : > { %v2532_v54 = vrot.slane %v2531_v18, 4  ;;  %v2551_v0 = vrot.slane %v2549_v3, 4  ;;  %v2554_v42 = vrot.slane %v2552_v30, 5  ;;  %v2597_v9 = vshrl.u32 %v5787_v36, 16  ;;  %v7483_v18 = vld [vmem:[%s7675_s18 + $0xc4] sm:$0xf] }
 0x153   : > { %v2606_v33 = vshll.u32 %v7483_v18, 16 }
 0x154   : > { %v2537_v51 = vsel %vm7707_vm2, %v2532_v54, %v9332_v14  ;;  %v2555_v5 = vor.u32 %v2554_v42, %v2551_v0  ;;  %v2610_v14 = vshrl.u32 %v7483_v18, 16  ;;  %v2599_v19 = vrot.slane %v2597_v9, 4 }
 0x155   : > { %6903 = vmatmul.mubr.bf16.gmra.mrb[12].mxu0 %v6117_v38  ;;  %v2499_v38 = vsel %vm7707_vm2, %v2494_v47, %v2498_v8  ;;  %v2588_v8 = vrot.slane %v2586_v44, 4  ;;  %v2513_v47 = vsel %vm7707_vm2, %v2508_v56, %v9330_v41  ;;  %v7482_v41 = vld [vmem:[%s7675_s18 + $0xb0] sm:$0x1]  ;;  %v5818_v58 = vcombine.low %v2537_v51, %v2547_v32  ;;  %v7485_v44 = vld [vmem:[%s7675_s18 + $0xc8] sm:$0x1] }
 0x156   : > { %6679 = vmatmul.mubr.bf16.gmra.mrb[28].mxu1 %v7415_v61  ;;  %6906 = vmatprep.mubr.bf16.mxu0 %v6118_v35  ;;  %v2518_v35 = vrot.slane %v2517_v26, 4  ;;  %v5816_v40 = vcombine.low %v2489_v43, %v2499_v38  ;;  %v2578_v61 = vrot.slane %v2576_v63, 5  ;;  %v2568_v6 = vshll.u32 %v7482_v41, 16 }
 0x157   : > { %6714 = vmatprep.mubr.bf16.mxu1 %v5814_v45  ;;  %v2584_v45 = vrot.slane %v2582_v29, 5  ;;  %v2600_v26 = vshll.u32 %v5787_v36, 16  ;;  %v2556_v22 = vrot.slane %v2555_v5, 4  ;;  %v2608_v15 = vrot.slane %v2606_v33, 5  ;;  %v9454_v33 = vld [vmem:[%s9577_s3] ss:$0 sm:$0xff] }
 0x158   : > { %v2523_v12 = vsel %vm7707_vm2, %v2518_v35, %v2522_v1  ;;  %v2579_v10 = vor.u32 %v2578_v61, %v2575_v21  ;;  %v2570_v30 = vrot.slane %v2568_v6, 5  ;;  %v2612_v43 = vrot.slane %v2610_v14, 4  ;;  %v6140_v6 = vld [vmem:[%s9447_s20] sm:$0xff]  }
 0x159   : > { %v2589_v39 = vor.u32 %v2588_v8, %v2584_v45  ;;  %v5817_v3 = vcombine.low %v2513_v47, %v2523_v12  ;;  %v2602_v52 = vrot.slane %v2600_v26, 5  ;;  %v2561_v31 = vsel %vm7707_vm2, %v2556_v22, %v2560_v17  ;;  %v6235_v26 = vld [vmem:[%s9447_s20 + $0x8] sm:$0xff]  }
 0x15a   : > { %v2580_v38 = vrot.slane %v2579_v10, 4  ;;  %v2613_v29 = vor.u32 %v2612_v43, %v2608_v15  ;;  %v2616_v35 = vshll.u32 %v7485_v44, 16 }
 0x15b   : > { %v2590_v56 = vrot.slane %v2589_v39, 4  ;;  %v2603_v20 = vor.u32 %v2602_v52, %v2599_v19  ;;  %v6141_v39 = vunpack.c.l.bf16 %v6140_v6  ;;  %v6142_v19 = vunpack.c.h.bf16 %v6140_v6 }
 0x15c   : > { %v2585_v4 = vsel %vm7707_vm2, %v2580_v38, %v2584_v45  ;;  %v2618_v54 = vrot.slane %v2616_v35, 5 }
 0x15d   : > { %6907 = vmatmul.mubr.bf16.gmra.mrb[16].mxu0 %v6119_v62  ;;  %v2565_v62 = vor.u32 %v2564_v24, %v2560_v17  ;;  %v2604_v25 = vrot.slane %v2603_v20, 4  ;;  %v6237_v20 = vld [vmem:[%s9447_s20 + $0x18] sm:$0xff]  }
 0x15e   : > { %6715 = vmatmul.mubr.bf16.vlgmr.msra.gmra.mrb[16].mxu1 %v9155_v50  ;;  %6910 = vmatprep.mubr.bf16.mxu0 %v6120_v59  ;;  %v7484_v50 = vld [vmem:[%s7675_s18 + $0xbc] sm:$0x1] }
 0x15f   : > { %6718 = vmatprep.mubr.bf16.mxu1 %v5816_v40  ;;  %v2592_v23 = vshll.u32 %v7484_v50, 16  ;;  %v2566_v59 = vrot.slane %v2565_v62, 4  ;;  %v2609_v13 = vsel %vm7707_vm2, %v2604_v25, %v2608_v15  ;;  %6959 = vmatpush3.bf16.msra.mxu1 %v6204_v46  ;;  %v6146_v15 = vunpack.c.h.bf16 %v6235_v26 }
 0x160   : > { %6960 = vmatprep.subr.bf16.mxu1 %v7550_v27 }
 0x161   : > { %v2594_v1 = vrot.slane %v2592_v23, 5  ;;  %v2571_v63 = vsel %vm7707_vm2, %v2566_v59, %v2570_v30  ;;  %v6145_v23 = vunpack.c.l.bf16 %v6235_v26 }
 0x163   : > { %v2595_v57 = vsel %vm7707_vm2, %v2590_v56, %v2594_v1  ;;  %v6236_v56 = vld [vmem:[%s9447_s20 + $0x10] sm:$0xff]  }
 0x164   : > { %v5820_v7 = vcombine.low %v2585_v4, %v2595_v57  ;;  %v6149_v35 = vunpack.c.l.bf16 %v6236_v56 }
 0x165   : > { %6911 = vmatmul.mubr.bf16.gmra.mrb[20].mxu0 %v6121_v53  ;;  %v5819_v53 = vcombine.low %v2561_v31, %v2571_v63 }
 0x166   : > { %6719 = vmatmul.mubr.bf16.gmra.mrb[20].mxu1 %v5817_v3  ;;  %6914 = vmatprep.mubr.bf16.mxu0 %v6122_v16  ;;  %v2614_v16 = vrot.slane %v2613_v29, 4 }
 0x167   : > { %6722 = vmatprep.mubr.bf16.mxu1 %v5818_v58 }
 0x168   : > { %v2619_v60 = vsel %vm7707_vm2, %v2614_v16, %v2618_v54  ;;  %v6153_v16 = vunpack.c.l.bf16 %v6237_v20 }
 0x169   : > { %v5821_v0 = vcombine.low %v2609_v13, %v2619_v60 }
 0x16d   : > { %6915 = vmatmul.mubr.bf16.gmra.mrb[24].mxu0 %v6123_v2  ;;  %v6250_v2 = vld [vmem:[%s9578_s4 + $0x8] sm:$0xff]  }
 0x16e   : > { %6723 = vmatmul.mubr.bf16.gmra.mrb[24].mxu1 %v5819_v53  ;;  %6918 = vmatprep.mubr.bf16.mxu0 %v6124_v28  ;;  %v6254_v28 = vld [vmem:[%s9578_s4 + $0x28] sm:$0xff]  }
 0x16f   : > { %6726 = vmatprep.mubr.bf16.mxu1 %v5820_v7  ;;  %6962 = vmatpush3.bf16.msra.mxu1 %v6250_v2 }
 0x170   : > { %6963 = vmatprep.subr.bf16.mxu1 %v7550_v27 }
 0x173   : > { %6965 = vmatpush3.bf16.msra.mxu1 %v6251_v37 }
 0x174   : > { %6966 = vmatprep.subr.bf16.mxu1 %v7550_v27 }
 0x175   : > { %6919 = vmatmul.mubr.bf16.gmra.mrb[28].mxu0 %v6125_v48  ;;  %v6256_v48 = vld [vmem:[%s9578_s4 + $0x38] sm:$0xff]  }
 0x176   : > { %6727 = vmatmul.mubr.bf16.gmra.mrb[28].mxu1 %v5821_v0  ;;  %v6150_v0 = vunpack.c.h.bf16 %v6236_v56 }
 0x177   : > { %6968 = vmatpush3.bf16.msra.mxu1 %v6252_v55  ;;  %6954 = vmatprep.mubr.msk.f32.mxu1 %vm7551_vm6, %v7552_v34  ;;  %v6154_v55 = vunpack.c.h.bf16 %v6237_v20 }
 0x178   : > { %6969 = vmatprep.subr.bf16.mxu1 %v7550_v27 }
 0x17b   : > { %6971 = vmatpush3.bf16.msra.mxu1 %v6253_v49 }
 0x17c   : > { %6972 = vmatprep.subr.bf16.mxu1 %v7550_v27 }
 0x17f   : > { %6974 = vmatpush3.bf16.msra.mxu1 %v6254_v28 }
 0x180   : > { %6975 = vmatprep.subr.bf16.mxu1 %v7550_v27 }
 0x183   : > { %6977 = vmatpush3.bf16.msra.mxu1 %v6255_v11 }
 0x184   : > { %6978 = vmatprep.subr.bf16.mxu1 %v7550_v27 }
 0x187   : > { %6980 = vmatpush3.bf16.msra.mxu1 %v6256_v48 }
 0x1f1   : > { %v6652_v42 = vpop.f32.mrb[0].mxu1 }
 0x1f2   : > { %v2029_v17 = vpop.f32.mrb[1].mxu1 }
 0x1f3   : > { %v6653_v24 = vpop.f32.mrb[2].mxu1 }
 0x1f4   : > { %v2032_v40 = vpop.f32.mrb[3].mxu1 }
 0x1f9   : > { %v6656_v21 = vpop.f32.mrb[4].mxu1 }
 0x1fa   : > { %v2045_v61 = vpop.f32.mrb[5].mxu1 }
 0x1fb   : > { %v6657_v45 = vpop.f32.mrb[6].mxu1 }
 0x1fc   : > { %v2048_v8 = vpop.f32.mrb[7].mxu1 }
 0x201   : > { %v9427_v36 = vpop.f32.mrb[8].mxu1 }
 0x202   : > { %v9429_v47 = vpop.f32.mrb[9].mxu1 }
 0x203   : > { %v9431_v12 = vpop.f32.mrb[10].mxu1 }
 0x204   : > { %v9433_v51 = vpop.f32.mrb[11].mxu1 }
 0x209   : > { %v9435_v32 = vpop.f32.mrb[12].mxu1 }
 0x20a   : > { %v9438_v5 = vpop.f32.mrb[13].mxu1 }
 0x20b   : > { %v9440_v62 = vpop.f32.mrb[14].mxu1 }
 0x20c   : > { %v9442_v41 = vpop.f32.mrb[15].mxu1 }
 0x210   : > { %v6892_v9 = vpop.f32.mrb[0].mxu0 }
 0x211   : > { %v6997_v18 = vadd.f32 %v6892_v9, %v6652_v42  ;;  %v4920_v14 = vpop.f32.mrb[1].mxu0  ;;  %v6239_v42 = vld [vmem:[%s9447_s20 + $0x28] sm:$0xff]  }
 0x212   : > { %v6998_v10 = vadd.f32 %v4920_v14, %v2029_v17  ;;  %v6893_v50 = vpop.f32.mrb[2].mxu0  ;;  %v6238_v17 = vld [vmem:[%s9447_s20 + $0x20] sm:$0xff]   ;;  %v6161_v9 = vunpack.c.l.bf16 %v6239_v42 }
 0x213   : > { %v6999_v3 = vadd.f32 %v6893_v50, %v6653_v24  ;;  %v4923_v58 = vpop.f32.mrb[3].mxu0  ;;  %v5152_v22 = vadd.f32 %v6997_v18, %v9454_v33 }
 0x214   : > { %v5150_v59 = vadd.f32 %v6998_v10, %v9454_v33  ;;  %v7000_v30 = vadd.f32 %v4923_v58, %v2032_v40 }
 0x215   : > { %v5153_v43 = vadd.f32 %v6999_v3, %v9454_v33  ;;  %v5184_v1 = vadd.f32 %v6145_v23, %v5152_v22 }
 0x216   : > { %v5182_v52 = vadd.f32 %v6141_v39, %v5150_v59  ;;  %v5151_v38 = vadd.f32 %v7000_v30, %v9454_v33  ;;  %v6158_v59 = vunpack.c.h.bf16 %v6238_v17 }
 0x217   : > { %v5185_v57 = vadd.f32 %v6146_v15, %v5153_v43  ;;  %v5216_v27 = vmax.f32 %v5184_v1, 0.0  ;;  %v6162_v43 = vunpack.c.h.bf16 %v6239_v42 }
 0x218   : > { %v5183_v31 = vadd.f32 %v6142_v19, %v5151_v38  ;;  %v6896_v63 = vpop.f32.mrb[4].mxu0  ;;  %v5214_v4 = vmax.f32 %v5182_v52, 0.0 }
 0x219   : > { %v7001_v29 = vadd.f32 %v6896_v63, %v6656_v21  ;;  %v4936_v44 = vpop.f32.mrb[5].mxu0  ;;  %v5217_v28 = vmax.f32 %v5185_v57, 0.0 }
 0x21a   : > { %v5215_v53 = vmax.f32 %v5183_v31, 0.0  ;;  %v7002_v7 = vadd.f32 %v4936_v44, %v2045_v61  ;;  %v6897_v25 = vpop.f32.mrb[6].mxu0  ;;  %v6241_v44 = vld [vmem:[%s9447_s20 + $0x38] sm:$0xff]  }
 0x21b   : > { %v5156_v54 = vadd.f32 %v7001_v29, %v9454_v33  ;;  %v7003_v13 = vadd.f32 %v6897_v25, %v6657_v45  ;;  %v4939_v60 = vpop.f32.mrb[7].mxu0 }
 0x21c   : > { %v5246_v46 = vadd.f32 %v5215_v53, %v5214_v4  ;;  %v5154_v2 = vadd.f32 %v7002_v7, %v9454_v33  ;;  %v7004_v37 = vadd.f32 %v4939_v60, %v2048_v8  ;;  %v6157_v8 = vunpack.c.l.bf16 %v6238_v17 }
 0x21d   : > { %v5157_v49 = vadd.f32 %v7003_v13, %v9454_v33  ;;  %v5188_v24 = vadd.f32 %v6153_v16, %v5156_v54  ;;  %v6169_v60 = vunpack.c.l.bf16 %v6241_v44 }
 0x21e   : > { %v5247_v34 = vadd.f32 %v5246_v46, %v5216_v27  ;;  %v5186_v11 = vadd.f32 %v6149_v35, %v5154_v2  ;;  %v5155_v48 = vadd.f32 %v7004_v37, %v9454_v33  ;;  %v6240_v35 = vld [vmem:[%s9447_s20 + $0x30] sm:$0xff]  }
 0x21f   : > { %v5189_v45 = vadd.f32 %v6154_v55, %v5157_v49  ;;  %v5220_v23 = vmax.f32 %v5188_v24, 0.0 }
 0x220   : > { %v5248_v40 = vadd.f32 %v5247_v34, %v5217_v28  ;;  %v5187_v21 = vadd.f32 %v6150_v0, %v5155_v48  ;;  %v6900_v61 = vpop.f32.mrb[8].mxu0  ;;  %v5218_v14 = vmax.f32 %v5186_v11, 0.0  ;;  %v6165_v0 = vunpack.c.l.bf16 %v6240_v35  ;;  %v9483_v28 = vld [vmem:[%s9447_s20 + $0x48] sm:$0xff]  }
 0x221   : > { %v7005_v6 = vadd.f32 %v6900_v61, %v9427_v36  ;;  %v4952_v26 = vpop.f32.mrb[9].mxu0  ;;  %v5221_v15 = vmax.f32 %v5189_v45, 0.0  ;;  %v6170_v34 = vunpack.c.h.bf16 %v6241_v44  ;;  %v6166_v48 = vunpack.c.h.bf16 %v6240_v35  ;;  %v9495_v35 = vld [vmem:[%s9447_s20 + $0x58] sm:$0xff]  }
 0x222   : > { %v5249_v18 = vrot.slane %v5248_v40, 4  ;;  %v5219_v10 = vmax.f32 %v5187_v21, 0.0  ;;  %v7006_v39 = vadd.f32 %v4952_v26, %v9429_v47  ;;  %v6901_v50 = vpop.f32.mrb[10].mxu0  ;;  %v6177_v45 = vunpack.c.l.bf16 %v9483_v28 }
 0x223   : > { %v5160_v3 = vadd.f32 %v7005_v6, %v9454_v33  ;;  %v7007_v58 = vadd.f32 %v6901_v50, %v9431_v12  ;;  %v4955_v22 = vpop.f32.mrb[11].mxu0 }
 0x224   : > { %v5250_v30 = vadd.f32 %v5249_v18, %v5248_v40  ;;  %v5255_v36 = vadd.f32 %v5219_v10, %v5218_v14  ;;  %v5158_v19 = vadd.f32 %v7006_v39, %v9454_v33  ;;  %v7008_v52 = vadd.f32 %v4955_v22, %v9433_v51 }
 0x225   : > { %v5161_v47 = vadd.f32 %v7007_v58, %v9454_v33  ;;  %v5192_v63 = vadd.f32 %v6161_v9, %v5160_v3  ;;  %v6178_v18 = vunpack.c.h.bf16 %v9483_v28 }
 0x226   : > { %v5251_v38 = vrot.slane %v5250_v30, 2  ;;  %v5256_v56 = vadd.f32 %v5255_v36, %v5220_v23  ;;  %v5190_v1 = vadd.f32 %v6157_v8, %v5158_v19  ;;  %v5159_v31 = vadd.f32 %v7008_v52, %v9454_v33 }
 0x227   : > { %v5193_v57 = vadd.f32 %v6162_v43, %v5161_v47  ;;  %v5224_v37 = vmax.f32 %v5192_v63, 0.0 }
 0x228   : > { %v5257_v12 = vadd.f32 %v5256_v56, %v5221_v15  ;;  %v5191_v20 = vadd.f32 %v6158_v59, %v5159_v31  ;;  %v6904_v29 = vpop.f32.mrb[12].mxu0  ;;  %v5252_v4 = vadd.f32 %v5251_v38, %v5250_v30  ;;  %v5222_v25 = vmax.f32 %v5190_v1, 0.0 }
 0x229   : > { %v7009_v51 = vadd.f32 %v6904_v29, %v9435_v32  ;;  %v4968_v53 = vpop.f32.mrb[13].mxu0  ;;  %v5225_v24 = vmax.f32 %v5193_v57, 0.0 }
 0x22a   : > { %v5258_v7 = vrot.slane %v5257_v12, 4  ;;  %v5223_v16 = vmax.f32 %v5191_v20, 0.0  ;;  %v7010_v54 = vadd.f32 %v4968_v53, %v9438_v5  ;;  %v6905_v13 = vpop.f32.mrb[14].mxu0  ;;  %v6242_v5 = vld [vmem:[%s9447_s20 + $0x40] sm:$0xff]   ;;  %v5253_v42 = vrot.slane %v5252_v4, 1 }
 0x22b   : > { %v7011_v27 = vadd.f32 %v6905_v13, %v9440_v62  ;;  %v4971_v46 = vpop.f32.mrb[15].mxu0  ;;  %v5164_v32 = vadd.f32 %v7009_v51, %v9454_v33  ;;  %v6173_v8 = vunpack.c.l.bf16 %v6242_v5  ;;  %v6174_v50 = vunpack.c.h.bf16 %v6242_v5 }
 0x22c   : > { %v5259_v2 = vadd.f32 %v5258_v7, %v5257_v12  ;;  %v5264_v55 = vadd.f32 %v5223_v16, %v5222_v25  ;;  %v5162_v49 = vadd.f32 %v7010_v54, %v9454_v33  ;;  %v7012_v11 = vadd.f32 %v4971_v46, %v9442_v41  ;;  %v6244_v7 = vld [vmem:[%s9447_s20 + $0x50] sm:$0xff]  }
 0x22d   : > { %v5165_v21 = vadd.f32 %v7011_v27, %v9454_v33  ;;  %v5196_v41 = vadd.f32 %v6169_v60, %v5164_v32  ;;  %v5254_v23 = vadd.f32 %v5253_v42, %v5252_v4  ;;  %v6185_v46 = vunpack.c.l.bf16 %v9495_v35 }
 0x22e   : > { %v5260_v17 = vrot.slane %v5259_v2, 2  ;;  %v5265_v40 = vadd.f32 %v5264_v55, %v5224_v37  ;;  %v5194_v62 = vadd.f32 %v6165_v0, %v5162_v49  ;;  %v5163_v61 = vadd.f32 %v7012_v11, %v9454_v33 }
 0x22f   : > { %v5197_v19 = vadd.f32 %v6170_v34, %v5165_v21  ;;  %v5228_v63 = vmax.f32 %v5196_v41, 0.0  ;;  %v5319_v4 = vmul.f32 0.03125, %v5254_v23  ;;  %v6181_v32 = vunpack.c.l.bf16 %v6244_v7 }
 0x230   : > { %v5261_v6 = vadd.f32 %v5260_v17, %v5259_v2  ;;  %v5266_v9 = vadd.f32 %v5265_v40, %v5225_v24  ;;  %v6908_v26 = vpop.f32.mrb[16].mxu0  ;;  %v5195_v14 = vadd.f32 %v6166_v48, %v5163_v61  ;;  %v5226_v36 = vmax.f32 %v5194_v62, 0.0 }
 0x231   : > { %v6716_v10 = vpop.f32.mrb[16].mxu1  ;;  %v4984_v39 = vpop.f32.mrb[17].mxu0  ;;  %v5229_v25 = vmax.f32 %v5197_v19, 0.0  ;;  %v6182_v34 = vunpack.c.h.bf16 %v6244_v7 }
 0x232   : > { %v5262_v3 = vrot.slane %v5261_v6, 1  ;;  %v5267_v58 = vrot.slane %v5266_v9, 4  ;;  %v7013_v22 = vadd.f32 %v6908_v26, %v6716_v10  ;;  %v2847_v59 = vpop.f32.mrb[17].mxu1  ;;  %v6909_v30 = vpop.f32.mrb[18].mxu0  ;;  %v5227_v52 = vmax.f32 %v5195_v14, 0.0 }
 0x233   : > { %v7014_v15 = vadd.f32 %v4984_v39, %v2847_v59  ;;  %v6717_v43 = vpop.f32.mrb[18].mxu1  ;;  %v4987_v47 = vpop.f32.mrb[19].mxu0 }
 0x234   : > { %v5263_v38 = vadd.f32 %v5262_v3, %v5261_v6  ;;  %v5268_v56 = vadd.f32 %v5267_v58, %v5266_v9  ;;  %v5168_v1 = vadd.f32 %v7013_v22, %v9454_v33  ;;  %v7015_v31 = vadd.f32 %v6909_v30, %v6717_v43  ;;  %v2850_v12 = vpop.f32.mrb[19].mxu1  ;;  %v9507_v22 = vld [vmem:[%s9447_s20 + $0x68] sm:$0xff]  }
 0x235   : > { %v5273_v20 = vadd.f32 %v5227_v52, %v5226_v36  ;;  %v5166_v29 = vadd.f32 %v7014_v15, %v9454_v33  ;;  %v7016_v44 = vadd.f32 %v4987_v47, %v2850_v12  ;;  %v6186_v3 = vunpack.c.h.bf16 %v9495_v35  ;;  %v6246_v52 = vld [vmem:[%s9447_s20 + $0x60] sm:$0xff]  }
 0x236   : > { %v5320_v57 = vmul.f32 0.03125, %v5263_v38  ;;  %v5269_v51 = vrot.slane %v5268_v56, 2  ;;  %v5169_v53 = vadd.f32 %v7015_v31, %v9454_v33  ;;  %v5200_v0 = vadd.f32 %v6177_v45, %v5168_v1 }
 0x237   : > { %v5274_v16 = vadd.f32 %v5273_v20, %v5228_v63  ;;  %v5198_v54 = vadd.f32 %v6173_v8, %v5166_v29  ;;  %v5167_v13 = vadd.f32 %v7016_v44, %v9454_v33  ;;  %v6193_v12 = vunpack.c.l.bf16 %v9507_v22 }
 0x238   : > { %v5270_v60 = vadd.f32 %v5269_v51, %v5268_v56  ;;  %v6912_v27 = vpop.f32.mrb[20].mxu0  ;;  %v5368_v2 = vsel %vm5367_vm7, %v5320_v57, %v5319_v4  ;;  %v5201_v48 = vadd.f32 %v6178_v18, %v5169_v53  ;;  %v5232_v9 = vmax.f32 %v5200_v0, 0.0 }
 0x239   : > { %v5275_v37 = vadd.f32 %v5274_v16, %v5229_v25  ;;  %v5199_v55 = vadd.f32 %v6174_v50, %v5167_v13  ;;  %v6720_v49 = vpop.f32.mrb[20].mxu1  ;;  %v5000_v28 = vpop.f32.mrb[21].mxu0  ;;  %v5230_v40 = vmax.f32 %v5198_v54, 0.0  ;;  %v6189_v4 = vunpack.c.l.bf16 %v6246_v52 }
 0x23a   : > { %v5271_v11 = vrot.slane %v5270_v60, 1  ;;  %v7017_v5 = vadd.f32 %v6912_v27, %v6720_v49  ;;  %v2863_v42 = vpop.f32.mrb[21].mxu1  ;;  %v6913_v17 = vpop.f32.mrb[22].mxu0  ;;  %v5233_v23 = vmax.f32 %v5201_v48, 0.0  ;;  %v6194_v0 = vunpack.c.h.bf16 %v9507_v22 }
 0x23b   : > { %v5276_v24 = vrot.slane %v5275_v37, 4  ;;  %v5231_v62 = vmax.f32 %v5199_v55, 0.0  ;;  %v7018_v21 = vadd.f32 %v5000_v28, %v2863_v42  ;;  %v6721_v61 = vpop.f32.mrb[22].mxu1  ;;  %v5003_v45 = vpop.f32.mrb[23].mxu0  ;;  %v6249_v28 = vld [vmem:[%s9447_s20 + $0x78] sm:$0xff]  }
 0x23c   : > { %v5272_v6 = vadd.f32 %v5271_v11, %v5270_v60  ;;  %v5172_v26 = vadd.f32 %v7017_v5, %v9454_v33  ;;  %v7019_v8 = vadd.f32 %v6913_v17, %v6721_v61  ;;  %v2866_v41 = vpop.f32.mrb[23].mxu1  ;;  %v6201_v61 = vunpack.c.l.bf16 %v6249_v28 }
 0x23d   : > { %v5277_v14 = vadd.f32 %v5276_v24, %v5275_v37  ;;  %v5282_v18 = vadd.f32 %v5231_v62, %v5230_v40  ;;  %v5170_v10 = vadd.f32 %v7018_v21, %v9454_v33  ;;  %v7020_v39 = vadd.f32 %v5003_v45, %v2866_v41 }
 0x23e   : > { %v5321_v50 = vmul.f32 0.03125, %v5272_v6  ;;  %v5173_v58 = vadd.f32 %v7019_v8, %v9454_v33  ;;  %v5204_v15 = vadd.f32 %v6185_v46, %v5172_v26  ;;  %v6190_v46 = vunpack.c.h.bf16 %v6246_v52 }
 0x23f   : > { %v5278_v59 = vrot.slane %v5277_v14, 2  ;;  %v5283_v30 = vadd.f32 %v5282_v18, %v5232_v9  ;;  %v5202_v36 = vadd.f32 %v6181_v32, %v5170_v10  ;;  %v5171_v19 = vadd.f32 %v7020_v39, %v9454_v33  ;;  %v6248_v32 = vld [vmem:[%s9447_s20 + $0x70] sm:$0xff]   ;;  %s7492_s20 = scalar_lea.vmem %s7491_s19, 32 }
 0x240   : > { %v6916_v43 = vpop.f32.mrb[24].mxu0  ;;  %v5370_v47 = vsel %vm5369_vm8, %v5321_v50, %v5368_v2  ;;  %v5205_v29 = vadd.f32 %v6186_v3, %v5173_v58  ;;  %v5236_v13 = vmax.f32 %v5204_v15, 0.0  ;;  %v6197_v45 = vunpack.c.l.bf16 %v6248_v32  ;;  %p7494_p1 = scmp.lt.s32.totalorder %s7492_s20, %s7486_s17 }
 0x241   : > { %v5279_v38 = vadd.f32 %v5278_v59, %v5277_v14  ;;  %v5284_v56 = vadd.f32 %v5283_v30, %v5233_v23  ;;  %v5203_v1 = vadd.f32 %v6182_v34, %v5171_v19  ;;  %v6724_v31 = vpop.f32.mrb[24].mxu1  ;;  %v5016_v63 = vpop.f32.mrb[25].mxu0  ;;  %v5234_v20 = vmax.f32 %v5202_v36, 0.0 }
 0x242   : > { %v7021_v44 = vadd.f32 %v6916_v43, %v6724_v31  ;;  %v2879_v35 = vpop.f32.mrb[25].mxu1  ;;  %v6917_v57 = vpop.f32.mrb[26].mxu0  ;;  %v5237_v34 = vmax.f32 %v5205_v29, 0.0  ;;  %v6202_v41 = vunpack.c.h.bf16 %v6249_v28  ;;  %v6198_v3 = vunpack.c.h.bf16 %v6248_v32  ;;  %p7495_p2 = por %p7494_p1, %p7493_p0 }
 0x243   : > { %v5280_v51 = vrot.slane %v5279_v38, 1  ;;  %v5285_v53 = vrot.slane %v5284_v56, 4  ;;  %v5235_v7 = vmax.f32 %v5203_v1, 0.0  ;;  %v7022_v25 = vadd.f32 %v5016_v63, %v2879_v35  ;;  %v6725_v16 = vpop.f32.mrb[26].mxu1  ;;  %v5019_v54 = vpop.f32.mrb[27].mxu0 }
 0x244   : > { %v7023_v60 = vadd.f32 %v6917_v57, %v6725_v16  ;;  %v2882_v27 = vpop.f32.mrb[27].mxu1  ;;  %v5176_v11 = vadd.f32 %v7021_v44, %v9454_v33  ;;  %p7496_p3 = pnand %p7495_p2, %p7489_p13 }
 0x245   : > { %v5281_v2 = vadd.f32 %v5280_v51, %v5279_v38  ;;  %v5286_v37 = vadd.f32 %v5285_v53, %v5284_v56  ;;  %v5291_v55 = vadd.f32 %v5235_v7, %v5234_v20  ;;  %v5174_v49 = vadd.f32 %v7022_v25, %v9454_v33 }
 0x246   : > { %v7024_v48 = vadd.f32 %v5019_v54, %v2882_v27  ;;  %v5177_v24 = vadd.f32 %v7023_v60, %v9454_v33  ;;  %v5208_v18 = vadd.f32 %v6193_v12, %v5176_v11 }
 0x247   : > { %v5322_v5 = vmul.f32 0.03125, %v5281_v2  ;;  %v5287_v42 = vrot.slane %v5286_v37, 2  ;;  %v5292_v17 = vadd.f32 %v5291_v55, %v5236_v13  ;;  %v5206_v40 = vadd.f32 %v6189_v4, %v5174_v49 }
 0x248   : > { %v5175_v62 = vadd.f32 %v7024_v48, %v9454_v33  ;;  %v6920_v21 = vpop.f32.mrb[28].mxu0  ;;  %v5209_v59 = vadd.f32 %v6194_v0, %v5177_v24  ;;  %v5240_v63 = vmax.f32 %v5208_v18, 0.0 }
 0x249   : > { %v5288_v6 = vadd.f32 %v5287_v42, %v5286_v37  ;;  %v5293_v9 = vadd.f32 %v5292_v17, %v5237_v34  ;;  %v6728_v26 = vpop.f32.mrb[28].mxu1  ;;  %v5032_v8 = vpop.f32.mrb[29].mxu0  ;;  %v5372_v14 = vsel %vm5371_vm9, %v5322_v5, %v5370_v47  ;;  %v5238_v52 = vmax.f32 %v5206_v40, 0.0 }
 0x24a   : > { %v5207_v10 = vadd.f32 %v6190_v46, %v5175_v62  ;;  %v7025_v39 = vadd.f32 %v6920_v21, %v6728_v26  ;;  %v2895_v50 = vpop.f32.mrb[29].mxu1  ;;  %v6921_v23 = vpop.f32.mrb[30].mxu0  ;;  %v5241_v51 = vmax.f32 %v5209_v59, 0.0 }
 0x24b   : > { %v5289_v58 = vrot.slane %v5288_v6, 1  ;;  %v5294_v22 = vrot.slane %v5293_v9, 4  ;;  %v7026_v30 = vadd.f32 %v5032_v8, %v2895_v50  ;;  %v6729_v36 = vpop.f32.mrb[30].mxu1  ;;  %v5035_v19 = vpop.f32.mrb[31].mxu0 }
 0x24c   : > { %v5239_v15 = vmax.f32 %v5207_v10, 0.0  ;;  %v5180_v43 = vadd.f32 %v7025_v39, %v9454_v33  ;;  %v7027_v38 = vadd.f32 %v6921_v23, %v6729_v36  ;;  %v2898_v56 = vpop.f32.mrb[31].mxu1 }
 0x24d   : > { %v5290_v1 = vadd.f32 %v5289_v58, %v5288_v6  ;;  %v5295_v47 = vadd.f32 %v5294_v22, %v5293_v9  ;;  %v5178_v31 = vadd.f32 %v7026_v30, %v9454_v33  ;;  %v7028_v12 = vadd.f32 %v5035_v19, %v2898_v56  ;;  %v5460_v22 = vld [vmem:[%s9579_s5] sm:$0x1] }
 0x24e   : > { %v5300_v20 = vadd.f32 %v5239_v15, %v5238_v52  ;;  %v5181_v29 = vadd.f32 %v7027_v38, %v9454_v33  ;;  %v5212_v25 = vadd.f32 %v6201_v61, %v5180_v43 }
 0x24f   : > { %v5296_v44 = vrot.slane %v5295_v47, 2  ;;  %v5210_v35 = vadd.f32 %v6197_v45, %v5178_v31  ;;  %v5179_v4 = vadd.f32 %v7028_v12, %v9454_v33  ;;  %v5323_v57 = vmul.f32 0.03125, %v5290_v1 }
 0x250   : > { %v5301_v53 = vadd.f32 %v5300_v20, %v5240_v63  ;;  %v5213_v27 = vadd.f32 %v6202_v41, %v5181_v29  ;;  %v5244_v37 = vmax.f32 %v5212_v25, 0.0 }
 0x251   : > { %v5297_v7 = vadd.f32 %v5296_v44, %v5295_v47  ;;  %v5211_v16 = vadd.f32 %v6198_v3, %v5179_v4  ;;  %v5374_v54 = vsel %vm5373_vm10, %v5323_v57, %v5372_v14  ;;  %v5242_v0 = vmax.f32 %v5210_v35, 0.0 }
 0x252   : > { %v5302_v13 = vadd.f32 %v5301_v53, %v5241_v51  ;;  %v5245_v32 = vmax.f32 %v5213_v27, 0.0 }
 0x253   : > { %v5298_v60 = vrot.slane %v5297_v7, 1  ;;  %v5243_v46 = vmax.f32 %v5211_v16, 0.0 }
 0x254   : > { %v5303_v2 = vrot.slane %v5302_v13, 4 }
 0x255   : > { %v5309_v55 = vadd.f32 %v5243_v46, %v5242_v0  ;;  %v5299_v49 = vadd.f32 %v5298_v60, %v5297_v7 }
 0x256   : > { %v5304_v28 = vadd.f32 %v5303_v2, %v5302_v13 }
 0x257   : > { %v5310_v33 = vadd.f32 %v5309_v55, %v5244_v37  ;;  %v5324_v34 = vmul.f32 0.03125, %v5299_v49 }
 0x258   : > { %v5305_v11 = vrot.slane %v5304_v28, 2 }
 0x259   : > { %v5311_v48 = vadd.f32 %v5310_v33, %v5245_v32  ;;  %v5376_v5 = vsel %vm5375_vm11, %v5324_v34, %v5374_v54 }
 0x25a   : > { %v5306_v42 = vadd.f32 %v5305_v11, %v5304_v28 }
 0x25b   : > { %v5312_v17 = vrot.slane %v5311_v48, 4 }
 0x25c   : > { %v5307_v24 = vrot.slane %v5306_v42, 1 }
 0x25d   : > { %v5313_v40 = vadd.f32 %v5312_v17, %v5311_v48 }
 0x25e   : > { %v5308_v62 = vadd.f32 %v5307_v24, %v5306_v42 }
 0x25f   : > { %v5314_v21 = vrot.slane %v5313_v40, 2 }
 0x260   : > { %v5325_v61 = vmul.f32 0.03125, %v5308_v62 }
 0x261   : > { %v5315_v45 = vadd.f32 %v5314_v21, %v5313_v40 }
 0x262   : > { %v5378_v6 = vsel %vm5377_vm12, %v5325_v61, %v5376_v5 }
 0x263   : > { %v5316_v9 = vrot.slane %v5315_v45, 1 }
 0x265   : > { %v5317_v26 = vadd.f32 %v5316_v9, %v5315_v45 }
 0x267   : > { %v5326_v8 = vmul.f32 0.03125, %v5317_v26 }
 0x269   : > { %v5380_v41 = vsel %vm5379_vm13, %v5326_v8, %v5378_v6 }
 0x26a   : > { %6955 = vmatmul.mubr.f32.vlgmr.msra.gmra.mrb[32].mxu1 %v5380_v41 }
 0x33d   : > { %v5448_v14 = vpop.f32.mrb[32].mxu1 }
 0x33e   : > { %v5452_v18 = vrot.slane %v5448_v14, 4  ;;  %v6956_v10 = vpop.f32.mrb[33].mxu1 }
 0x340   : > { %v5453_v39 = vadd.f32 %v5452_v18, %v5448_v14 }
 0x342   : > { %v5454_v50 = vrot.slane %v5453_v39, 2 }
 0x344   : > { %v5455_v23 = vadd.f32 %v5454_v50, %v5453_v39 }
 0x346   : > { %v5456_v3 = vrot.slane %v5455_v23, 1 }
 0x348   : > { %v5457_v58 = vadd.f32 %v5456_v3, %v5455_v23 }
 0x34a   : > { %v5459_v59 = vmul.f32 0.125, %v5457_v58 }
 0x34c   : > { %v5461_v30 = vadd.f32 %v5460_v22, %v5459_v59 }
 0x34e   : > { %5462 = vst [vmem:[%s258_s12] sm:$0x1] %v5461_v30 }
 0x34f   : > { %7499 = shalt.err (!%p7496_p3)
}
 0x350   : > { %s7500_s28 = scalar_lea.hbm %s9532_s15, 16  ;;  %s7504_s9 = scalar_lea.hbm %s9580_s6, 32 }
 0x351   : > { %p7501_p4 = scmp.ne.s32.totalorder %s9532_s15, %s7500_s28  ;;  %p7505_p9 = scmp.lt.u32.totalorder %s9532_s15, %s9580_s6 }
 0x352   : > { %p7506_p10 = scmp.lt.u32.totalorder %s7504_s9, %s7500_s28  ;;  %p7508_p12 = scmp.lt.u32.totalorder %s7500_s28, %s9532_s15 }
 0x353   : > { %p7502_p7 = pnand %p7501_p4, %p7627_p5 }
 0x354   : > { %p7507_p11 = por %p7506_p10, %p7505_p9 }
 0x355   : > { %p7503_p8 = pneg %p7502_p7 }
 0x356   : > { %p7509_p13 = por %p7508_p12, %p7507_p11 }
 0x358   : > { %p7510_p0 = pnand %p7509_p13, %p7503_p8 }
 0x35a   : > { %7513 = shalt.err (!%p7510_p0)
}
 0x35b   : > { %7254 = dma.vmem_to_hbm [thread:$0]  (%p7627_p5), %s9534_s13, 16, %s9532_s15, %s5464_s16  }
 0x35c PF: > { %p7260_p1 = scmp.ge.s32.totalorder %s7548_s24, 2  ;;  %s5488_s12 = sand.u32 1, %s7536_s21  }
 0x35d   : > { %s5489_s14 = scalar_lea.sflag [#allocation3], %s5488_s12 }
 0x35e   : > { %p7257_p2 = pnand %p7260_p1, %p7631_p6 }
 0x360   : > { %7531 = dma.done.wait (!%p7257_p2), %s5489_s14, 16  }
 0x361   : > { %7533 = vsyncadd (!%p7257_p2), %s5489_s14, 4294967280  ;;  %p16_p3 = scmp.ge.s32.totalorder %s7614_s27, 4   ;;  %s9649_s21 = smov %s7540_s22 }
 0x362   : > { %s9650_s22 = smov %s7544_s23  ;;  %s9651_s23 = smov %s7625_s30 }
 0x363   : > { %s9652_s24 = smov %s7614_s27  ;;  %18 = sbr.rel (!%p16_p3) target bundleno = 3 (0x3), region = 92 }
 0x36a   :  { %5493 = vsyncpa [#allocation3], 1 }
 0x36b   :  { %5495 = vsyncpa [#allocation3 + $0x1], 1 }

</bundles_post_ra>
